<compile_context>
chip_gen: v5e
topology: v5e:2x2
jax: 0.10.0
libtpu: 0.0.40
codegen_flags: <defaults>
</compile_context>

<pallas_src>
import jax
import jax.numpy as jnp
from jax import lax
from jax.experimental import pallas as pl
from jax.experimental.pallas import tpu as pltpu


# ----------------------------------------------------------------------------
# Fused per-layer Pallas kernel
# ----------------------------------------------------------------------------
def _make_fused_layer_kernel(tm, w, out_ch, has_res):
    """poly matmul -> clamp(1+.,0) -> (+ residual 1x1x1 conv) -> 2x2 max-pool
    -> per-tile BatchNorm partial sums.  `tm` rows per grid step, `w` = spatial
    width of the (pre-pool) activation, row order is (b, d, h, w)."""
    w2 = w // 2
    groups = tm // (2 * w)          # number of (b,d,h-pair) groups in the tile

    def pool_group(g, y_ref, out_ref):
        base = g * (2 * w)
        # the four 2x2 pool taps, read with strided sublane loads from VMEM
        p00 = y_ref[pl.ds(base, w2, 2), :]
        p01 = y_ref[pl.ds(base + 1, w2, 2), :]
        p10 = y_ref[pl.ds(base + w, w2, 2), :]
        p11 = y_ref[pl.ds(base + w + 1, w2, 2), :]
        out_ref[pl.ds(g * w2, w2), :] = jnp.maximum(
            jnp.maximum(p00, p01), jnp.maximum(p10, p11))

    def kernel(*refs):
        if has_res:
            patches_ref, wf_ref, res_ref, wres_ref, out_ref, stats_ref, y_ref = refs
        else:
            patches_ref, wf_ref, out_ref, stats_ref, y_ref = refs

        # single fused matmul (proj^T @ alpha pre-fused in the wrapper)
        y = jnp.dot(patches_ref[...], wf_ref[...],
                    preferred_element_type=jnp.float32)
        y = jnp.maximum(1.0 + y, 0.0)
        if has_res:
            # residual 1x1x1 conv + add, fused post-clamp
            y = y + jnp.dot(res_ref[...], wres_ref[...],
                            preferred_element_type=jnp.float32)
        y_ref[...] = y

        # fused MaxPool3d((1,2,2)) over the VMEM stage
        if groups <= 64:
            for g in range(groups):
                pool_group(g, y_ref, out_ref)
        else:
            @pl.loop(0, groups)
            def _(g):
                pool_group(g, y_ref, out_ref)

        # per-tile BatchNorm partial statistics (finalized in the wrapper)
        pooled = out_ref[...]
        s1 = jnp.sum(pooled, axis=0, keepdims=True)
        s2 = jnp.sum(pooled * pooled, axis=0, keepdims=True)
        stats_ref[0:1, 0:1, :] = s1.reshape(1, 1, out_ch)
        stats_ref[0:1, 1:2, :] = s2.reshape(1, 1, out_ch)

    return kernel


def _pick_rows(m, w, k_dim, vmem_budget_bytes=4 << 20, max_groups=32):
    """Rows per tile: a multiple of 2*w (whole 2x2 pool groups), a multiple of
    32 (sublane/layout friendly), dividing m (no tail / no BN-stat pollution),
    sized against a bf16 patch-row VMEM budget."""
    base = 2 * w
    q = m // base
    row_budget = max(1, vmem_budget_bytes // (2 * k_dim))
    g_cap = max(1, min(max_groups, row_budget // base))
    for g in range(min(g_cap, q), 0, -1):
        if q % g == 0 and (base * g) % 32 == 0:
            return base * g
    return m  # degenerate fallback: single block (block dims == array dims)


def fused_rkhs_layer(patches, w_fused, res_2d, w_res, *, width):
    """patches: (M, C*27) bf16, w_fused: (C*27, O) bf16, optional residual
    res_2d: (M, Cin) bf16 with w_res: (Cin, O) bf16.  Returns the 2x2-pooled
    activation (M//4, O) f32 and per-tile BN partial sums (n_tiles, 2, O)."""
    m, k_dim = patches.shape
    out_ch = w_fused.shape[1]
    has_res = res_2d is not None
    tm = _pick_rows(m, width, k_dim)
    n_tiles = m // tm
    kernel = _make_fused_layer_kernel(tm, width, out_ch, has_res)

    in_specs = [pl.BlockSpec((tm, k_dim), lambda i: (i, 0)),
                pl.BlockSpec((k_dim, out_ch), lambda i: (0, 0))]
    inputs = [patches, w_fused]
    flops = 2 * m * k_dim * out_ch
    bytes_accessed = (m * k_dim * 2 + k_dim * out_ch * 2
                      + (m // 4) * out_ch * 4 + n_tiles * 2 * out_ch * 4)
    if has_res:
        c_res = res_2d.shape[1]
        in_specs += [pl.BlockSpec((tm, c_res), lambda i: (i, 0)),
                     pl.BlockSpec((c_res, out_ch), lambda i: (0, 0))]
        inputs += [res_2d, w_res]
        flops += 2 * m * c_res * out_ch
        bytes_accessed += m * c_res * 2 + c_res * out_ch * 2

    pooled, stats = pl.pallas_call(
        kernel,
        out_shape=(jax.ShapeDtypeStruct((m // 4, out_ch), jnp.float32),
                   jax.ShapeDtypeStruct((n_tiles, 2, out_ch), jnp.float32)),
        grid_spec=pltpu.PrefetchScalarGridSpec(
            num_scalar_prefetch=0,
            grid=(n_tiles,),
            in_specs=in_specs,
            out_specs=[pl.BlockSpec((tm // 4, out_ch), lambda i: (i, 0)),
                       pl.BlockSpec((1, 2, out_ch), lambda i: (i, 0, 0))],
            scratch_shapes=[pltpu.VMEM((tm, out_ch), jnp.float32)]),
        compiler_params=pltpu.CompilerParams(
            dimension_semantics=("parallel",),
            vmem_limit_bytes=32 * 1024 * 1024),
        cost_estimate=pl.CostEstimate(flops=flops, transcendentals=0,
                                      bytes_accessed=bytes_accessed),
    )(*inputs)
    return pooled, stats


# ----------------------------------------------------------------------------
# Glue (patch extraction) — plain JAX, matches the torch code bit-for-bit
# ----------------------------------------------------------------------------
def extract_patches(x):
    """torch: pad(1) + unfold(2).unfold(3).unfold(4) + contiguous().reshape(
    B, D, H, W, C*27).  NOTE: that reshape is a raw row-major re-fold of the
    (B, C, D, H, W, 27) buffer; reproduced exactly here."""
    B, C, D, H, W = x.shape
    xp = jnp.pad(x, ((0, 0), (0, 0), (1, 1), (1, 1), (1, 1)))
    taps = []
    for i in range(3):
        for j in range(3):
            for k in range(3):
                taps.append(xp[:, :, i:i + D, j:j + H, k:k + W])
    stack = jnp.stack(taps, axis=-1)              # (B, C, D, H, W, 27)
    return stack.reshape(B, D, H, W, C * 27)      # raw re-fold, as in torch


# ----------------------------------------------------------------------------
# Forward pass (layers 1..3 of RKHS_VNN.forward)
# ----------------------------------------------------------------------------
@jax.jit
def rkhs_vnn_forward(x, params):
    """x: (B, C, D, H, W) float32 NCDHW (PyTorch layout)."""
    B = x.shape[0]
    x_cl = jnp.transpose(x, (0, 2, 3, 4, 1))       # channel-last between layers
    for layer in (1, 2, 3):
        _, D, H, W, C = x_cl.shape
        assert H % 2 == 0 and W % 2 == 0
        M = B * D * H * W
        K = C * 27

        # fused weight: W_fused = proj^T @ alpha (exact algebra), bf16 for MXU
        w_fused = jnp.matmul(params[f"proj_{layer}"], params[f"alpha_{layer}"],
                             precision="highest").astype(jnp.bfloat16)
        O = w_fused.shape[1]

        x_bf = x_cl.astype(jnp.bfloat16)
        patches = extract_patches(
            jnp.transpose(x_bf, (0, 4, 1, 2, 3))).reshape(M, K)

        # residual path (channel-last activation is already the (M, C) matrix)
        w_res = params.get(f"res_w_{layer}")
        if w_res is not None and w_res.shape[0] == C:
            res_2d = x_bf.reshape(M, C)
            w_res_b = w_res.astype(jnp.bfloat16)
        elif w_res is None and C == O:
            res_2d = x_bf.reshape(M, C)
            w_res_b = jnp.eye(C, dtype=jnp.bfloat16)
        else:
            res_2d, w_res_b = None, None           # layer 1: no residual add

        pooled, stats = fused_rkhs_layer(patches, w_fused, res_2d, w_res_b,
                                         width=W)

        # finalize train-mode BatchNorm3d stats (global, biased) from per-tile
        # partials; the affine is folded lazily into the next layer's patch /
        # residual producers (or the final transpose) -> no extra HBM pass.
        Mp = M // 4
        s1 = jnp.sum(stats[:, 0, :], axis=0)
        s2 = jnp.sum(stats[:, 1, :], axis=0)
        mean = s1 / Mp
        var = jnp.maximum(s2 / Mp - mean * mean, 0.0)
        scale = lax.rsqrt(var + 1e-5)
        x_cl = (pooled * scale - mean * scale).reshape(B, D, H // 2, W // 2, O)
    return jnp.transpose(x_cl, (0, 4, 1, 2, 3))    # back to NCDHW once


# ----------------------------------------------------------------------------
# Deterministic parameter construction (mirrors RKHS_VNN.__init__ shapes)
# ----------------------------------------------------------------------------
def init_params(key, *, num_ch, depth, num_projector=8):
    out_chs = {1: 16, 2: 24, 3: 48}
    params = {}
    ref_in = depth      # reference starts its in_channels chain at input_shape[0]
    act_in = num_ch     # actual channel count feeding each layer's poly kernel
    for l in (1, 2, 3):
        O = out_chs[l]
        k_alpha, k_proj, k_res, key = jax.random.split(key, 4)
        # alpha_l: kaiming_normal_(fan_out) on shape (P, O) -> std = sqrt(2/P)
        params[f"alpha_{l}"] = (
            jax.random.normal(k_alpha, (num_projector, O), jnp.float32)
            * (2.0 / num_projector) ** 0.5
        )
        # pre_determined_projectors[l]: (P, C, 3, 3, 3) centroids, stored
        # pre-reshaped/transposed as (C*27, P) for the matmul formulation.
        proj = jax.random.normal(k_proj, (num_projector, act_in, 3, 3, 3),
                                 jnp.float32) * 0.1
        params[f"proj_{l}"] = proj.reshape(num_projector, act_in * 27).T
        if ref_in != O:
            # res_l: Conv3d(ref_in, O, kernel=1, bias=False), stored as (ref_in, O)
            w = jax.random.normal(k_res, (O, ref_in), jnp.float32) * (2.0 / O) ** 0.5
            params[f"res_w_{l}"] = w.T
        ref_in = O
        act_in = O
    return params


# ----------------------------------------------------------------------------
# Pure-JAX f32 reference (numerical sanity check of the Pallas path)
# ----------------------------------------------------------------------------
def reference_forward(x, params):
    for layer in (1, 2, 3):
        residual = x
        B, C, D, H, W = x.shape
        patches = extract_patches(x)
        ws = jnp.einsum("bdhwk,kp->bdhwp", patches, params[f"proj_{layer}"],
                        precision="highest")
        out = jnp.einsum("bdhwp,po->bdhwo", ws, params[f"alpha_{layer}"],
                         precision="highest")
        out = jnp.maximum(1.0 + out, 0.0)
        x = jnp.transpose(out, (0, 4, 1, 2, 3))
        O = x.shape[1]
        if f"res_w_{layer}" in params:
            residual = jnp.einsum("bcdhw,co->bodhw", residual,
                                  params[f"res_w_{layer}"], precision="highest")
        if residual.shape == x.shape:
            x = x + residual
        x = x.reshape(B, O, D, H // 2, 2, W // 2, 2).max(axis=(4, 6))
        mean = x.mean(axis=(0, 2, 3, 4), keepdims=True)
        var = ((x - mean) ** 2).mean(axis=(0, 2, 3, 4), keepdims=True)
        x = (x - mean) / jnp.sqrt(var + 1e-5)
    return x


if __name__ == "__main__":
    key = jax.random.PRNGKey(0)
    kx, kp = jax.random.split(key)

    B, C = 2, 3                       # batch, num_ch (RGB)
    D, H, W = 16, 16, 16              # input_shape = (depth, height, width)
    x = jax.random.normal(kx, (B, C, D, H, W), jnp.float32)
    params = init_params(kp, num_ch=C, depth=D, num_projector=8)

    out = jax.block_until_ready(rkhs_vnn_forward(x, params))
    assert out.shape == (B, 48, D, H // 8, W // 8), out.shape

    ref = reference_forward(x, params)
    max_err = float(jnp.max(jnp.abs(out - ref)))
    # tolerance accounts for bf16 matmul operands (f32 MXU accumulation)
    assert jnp.allclose(out, ref, atol=7.5e-2, rtol=5e-2), max_err
    print("KERNEL_OK")
</pallas_src>

<mosaic_0001>
module attributes {stable_mosaic.version = 11 : i64} {
  func.func @kernel(%arg0: i32, %arg1: memref<1024x81xbf16, #tpu.memory_space<vmem>>, %arg2: memref<81x16xbf16, #tpu.memory_space<vmem>>, %arg3: memref<256x16xf32, #tpu.memory_space<vmem>>, %arg4: memref<1x2x16xf32, #tpu.memory_space<vmem>>, %arg5: memref<1024x16xf32, #tpu.memory_space<vmem>>) attributes {dimension_semantics = [#tpu.dimension_semantics<parallel>], iteration_bounds = array<i64: 8>, scalar_prefetch = 0 : i64, scratch_operands = 1 : i64, tpu.core_type = #tpu.core_type<tc>, window_params = [{transform_indices = @transform_0, window_bounds = array<i64: 1024, 81>}, {pipeline_mode = #tpu.pipeline_mode<synchronous>, transform_indices = @transform_1, window_bounds = array<i64: 81, 16>}, {transform_indices = @transform_2, window_bounds = array<i64: 256, 16>}, {transform_indices = @transform_3, window_bounds = array<i64: 1, 2, 16>}]} {
    %c0 = arith.constant 0 : index
    %c0_0 = arith.constant 0 : index
    %0 = vector.load %arg1[%c0, %c0_0] : memref<1024x81xbf16, #tpu.memory_space<vmem>>, vector<1024x81xbf16>
    %c0_1 = arith.constant 0 : index
    %c0_2 = arith.constant 0 : index
    %1 = vector.load %arg2[%c0_1, %c0_2] : memref<81x16xbf16, #tpu.memory_space<vmem>>, vector<81x16xbf16>
    %cst = arith.constant dense<0.000000e+00> : vector<1024x16xf32>
    %2 = tpu.matmul %0, %1, %cst {dimension_numbers = #tpu.dot_dimension_numbers<[1], [0], [0], [1], [0, 0, 1, 1], [], []>} : vector<1024x81xbf16>, vector<81x16xbf16>, vector<1024x16xf32> -> vector<1024x16xf32>
    %cst_3 = arith.constant 1.000000e+00 : f32
    %3 = vector.broadcast %cst_3 : f32 to vector<1024x16xf32>
    %4 = arith.addf %3, %2 : vector<1024x16xf32>
    %cst_4 = arith.constant 0.000000e+00 : f32
    %5 = vector.broadcast %cst_4 : f32 to vector<1024x16xf32>
    %6 = arith.maximumf %4, %5 : vector<1024x16xf32>
    %c0_5 = arith.constant 0 : index
    %c0_6 = arith.constant 0 : index
    %7 = vector.load %arg5[%c0_5, %c0_6] : memref<1024x16xf32, #tpu.memory_space<vmem>>, vector<1024x16xf32>
    tpu.vector_store %arg5[%c0_5, %c0_6], %6 {strides = array<i32>} : memref<1024x16xf32, #tpu.memory_space<vmem>>, vector<1024x16xf32>,
    %c0_7 = arith.constant 0 : index
    %c0_8 = arith.constant 0 : index
    %8 = tpu.strided_load %arg5[%c0_7, %c0_8] {strides = array<i32: 2, 1>} : memref<1024x16xf32, #tpu.memory_space<vmem>>, vector<8x16xf32>
    %c1 = arith.constant 1 : index
    %c0_9 = arith.constant 0 : index
    %9 = tpu.strided_load %arg5[%c1, %c0_9] {strides = array<i32: 2, 1>} : memref<1024x16xf32, #tpu.memory_space<vmem>>, vector<8x16xf32>
    %c16 = arith.constant 16 : index
    %c0_10 = arith.constant 0 : index
    %10 = tpu.strided_load %arg5[%c16, %c0_10] {strides = array<i32: 2, 1>} : memref<1024x16xf32, #tpu.memory_space<vmem>>, vector<8x16xf32>
    %c17 = arith.constant 17 : index
    %c0_11 = arith.constant 0 : index
    %11 = tpu.strided_load %arg5[%c17, %c0_11] {strides = array<i32: 2, 1>} : memref<1024x16xf32, #tpu.memory_space<vmem>>, vector<8x16xf32>
    %12 = arith.maximumf %8, %9 : vector<8x16xf32>
    %13 = arith.maximumf %10, %11 : vector<8x16xf32>
    %14 = arith.maximumf %12, %13 : vector<8x16xf32>
    %c0_12 = arith.constant 0 : index
    %c0_13 = arith.constant 0 : index
    %15 = vector.load %arg3[%c0_12, %c0_13] : memref<256x16xf32, #tpu.memory_space<vmem>>, vector<8x16xf32>
    tpu.vector_store %arg3[%c0_12, %c0_13], %14 {strides = array<i32>} : memref<256x16xf32, #tpu.memory_space<vmem>>, vector<8x16xf32>,
    %c32 = arith.constant 32 : index
    %c0_14 = arith.constant 0 : index
    %16 = tpu.strided_load %arg5[%c32, %c0_14] {strides = array<i32: 2, 1>} : memref<1024x16xf32, #tpu.memory_space<vmem>>, vector<8x16xf32>
    %c33 = arith.constant 33 : index
    %c0_15 = arith.constant 0 : index
    %17 = tpu.strided_load %arg5[%c33, %c0_15] {strides = array<i32: 2, 1>} : memref<1024x16xf32, #tpu.memory_space<vmem>>, vector<8x16xf32>
    %c48 = arith.constant 48 : index
    %c0_16 = arith.constant 0 : index
    %18 = tpu.strided_load %arg5[%c48, %c0_16] {strides = array<i32: 2, 1>} : memref<1024x16xf32, #tpu.memory_space<vmem>>, vector<8x16xf32>
    %c49 = arith.constant 49 : index
    %c0_17 = arith.constant 0 : index
    %19 = tpu.strided_load %arg5[%c49, %c0_17] {strides = array<i32: 2, 1>} : memref<1024x16xf32, #tpu.memory_space<vmem>>, vector<8x16xf32>
    %20 = arith.maximumf %16, %17 : vector<8x16xf32>
    %21 = arith.maximumf %18, %19 : vector<8x16xf32>
    %22 = arith.maximumf %20, %21 : vector<8x16xf32>
    %c8 = arith.constant 8 : index
    %c0_18 = arith.constant 0 : index
    %23 = vector.load %arg3[%c8, %c0_18] : memref<256x16xf32, #tpu.memory_space<vmem>>, vector<8x16xf32>
    tpu.vector_store %arg3[%c8, %c0_18], %22 {strides = array<i32>} : memref<256x16xf32, #tpu.memory_space<vmem>>, vector<8x16xf32>,
    %c64 = arith.constant 64 : index
    %c0_19 = arith.constant 0 : index
    %24 = tpu.strided_load %arg5[%c64, %c0_19] {strides = array<i32: 2, 1>} : memref<1024x16xf32, #tpu.memory_space<vmem>>, vector<8x16xf32>
    %c65 = arith.constant 65 : index
    %c0_20 = arith.constant 0 : index
    %25 = tpu.strided_load %arg5[%c65, %c0_20] {strides = array<i32: 2, 1>} : memref<1024x16xf32, #tpu.memory_space<vmem>>, vector<8x16xf32>
    %c80 = arith.constant 80 : index
    %c0_21 = arith.constant 0 : index
    %26 = tpu.strided_load %arg5[%c80, %c0_21] {strides = array<i32: 2, 1>} : memref<1024x16xf32, #tpu.memory_space<vmem>>, vector<8x16xf32>
    %c81 = arith.constant 81 : index
    %c0_22 = arith.constant 0 : index
    %27 = tpu.strided_load %arg5[%c81, %c0_22] {strides = array<i32: 2, 1>} : memref<1024x16xf32, #tpu.memory_space<vmem>>, vector<8x16xf32>
    %28 = arith.maximumf %24, %25 : vector<8x16xf32>
    %29 = arith.maximumf %26, %27 : vector<8x16xf32>
    %30 = arith.maximumf %28, %29 : vector<8x16xf32>
    %c16_23 = arith.constant 16 : index
    %c0_24 = arith.constant 0 : index
    %31 = vector.load %arg3[%c16_23, %c0_24] : memref<256x16xf32, #tpu.memory_space<vmem>>, vector<8x16xf32>
    tpu.vector_store %arg3[%c16_23, %c0_24], %30 {strides = array<i32>} : memref<256x16xf32, #tpu.memory_space<vmem>>, vector<8x16xf32>,
    %c96 = arith.constant 96 : index
    %c0_25 = arith.constant 0 : index
    %32 = tpu.strided_load %arg5[%c96, %c0_25] {strides = array<i32: 2, 1>} : memref<1024x16xf32, #tpu.memory_space<vmem>>, vector<8x16xf32>
    %c97 = arith.constant 97 : index
    %c0_26 = arith.constant 0 : index
    %33 = tpu.strided_load %arg5[%c97, %c0_26] {strides = array<i32: 2, 1>} : memref<1024x16xf32, #tpu.memory_space<vmem>>, vector<8x16xf32>
    %c112 = arith.constant 112 : index
    %c0_27 = arith.constant 0 : index
    %34 = tpu.strided_load %arg5[%c112, %c0_27] {strides = array<i32: 2, 1>} : memref<1024x16xf32, #tpu.memory_space<vmem>>, vector<8x16xf32>
    %c113 = arith.constant 113 : index
    %c0_28 = arith.constant 0 : index
    %35 = tpu.strided_load %arg5[%c113, %c0_28] {strides = array<i32: 2, 1>} : memref<1024x16xf32, #tpu.memory_space<vmem>>, vector<8x16xf32>
    %36 = arith.maximumf %32, %33 : vector<8x16xf32>
    %37 = arith.maximumf %34, %35 : vector<8x16xf32>
    %38 = arith.maximumf %36, %37 : vector<8x16xf32>
    %c24 = arith.constant 24 : index
    %c0_29 = arith.constant 0 : index
    %39 = vector.load %arg3[%c24, %c0_29] : memref<256x16xf32, #tpu.memory_space<vmem>>, vector<8x16xf32>
    tpu.vector_store %arg3[%c24, %c0_29], %38 {strides = array<i32>} : memref<256x16xf32, #tpu.memory_space<vmem>>, vector<8x16xf32>,
    %c128 = arith.constant 128 : index
    %c0_30 = arith.constant 0 : index
    %40 = tpu.strided_load %arg5[%c128, %c0_30] {strides = array<i32: 2, 1>} : memref<1024x16xf32, #tpu.memory_space<vmem>>, vector<8x16xf32>
    %c129 = arith.constant 129 : index
    %c0_31 = arith.constant 0 : index
    %41 = tpu.strided_load %arg5[%c129, %c0_31] {strides = array<i32: 2, 1>} : memref<1024x16xf32, #tpu.memory_space<vmem>>, vector<8x16xf32>
    %c144 = arith.constant 144 : index
    %c0_32 = arith.constant 0 : index
    %42 = tpu.strided_load %arg5[%c144, %c0_32] {strides = array<i32: 2, 1>} : memref<1024x16xf32, #tpu.memory_space<vmem>>, vector<8x16xf32>
    %c145 = arith.constant 145 : index
    %c0_33 = arith.constant 0 : index
    %43 = tpu.strided_load %arg5[%c145, %c0_33] {strides = array<i32: 2, 1>} : memref<1024x16xf32, #tpu.memory_space<vmem>>, vector<8x16xf32>
    %44 = arith.maximumf %40, %41 : vector<8x16xf32>
    %45 = arith.maximumf %42, %43 : vector<8x16xf32>
    %46 = arith.maximumf %44, %45 : vector<8x16xf32>
    %c32_34 = arith.constant 32 : index
    %c0_35 = arith.constant 0 : index
    %47 = vector.load %arg3[%c32_34, %c0_35] : memref<256x16xf32, #tpu.memory_space<vmem>>, vector<8x16xf32>
    tpu.vector_store %arg3[%c32_34, %c0_35], %46 {strides = array<i32>} : memref<256x16xf32, #tpu.memory_space<vmem>>, vector<8x16xf32>,
    %c160 = arith.constant 160 : index
    %c0_36 = arith.constant 0 : index
    %48 = tpu.strided_load %arg5[%c160, %c0_36] {strides = array<i32: 2, 1>} : memref<1024x16xf32, #tpu.memory_space<vmem>>, vector<8x16xf32>
    %c161 = arith.constant 161 : index
    %c0_37 = arith.constant 0 : index
    %49 = tpu.strided_load %arg5[%c161, %c0_37] {strides = array<i32: 2, 1>} : memref<1024x16xf32, #tpu.memory_space<vmem>>, vector<8x16xf32>
    %c176 = arith.constant 176 : index
    %c0_38 = arith.constant 0 : index
    %50 = tpu.strided_load %arg5[%c176, %c0_38] {strides = array<i32: 2, 1>} : memref<1024x16xf32, #tpu.memory_space<vmem>>, vector<8x16xf32>
    %c177 = arith.constant 177 : index
    %c0_39 = arith.constant 0 : index
    %51 = tpu.strided_load %arg5[%c177, %c0_39] {strides = array<i32: 2, 1>} : memref<1024x16xf32, #tpu.memory_space<vmem>>, vector<8x16xf32>
    %52 = arith.maximumf %48, %49 : vector<8x16xf32>
    %53 = arith.maximumf %50, %51 : vector<8x16xf32>
    %54 = arith.maximumf %52, %53 : vector<8x16xf32>
    %c40 = arith.constant 40 : index
    %c0_40 = arith.constant 0 : index
    %55 = vector.load %arg3[%c40, %c0_40] : memref<256x16xf32, #tpu.memory_space<vmem>>, vector<8x16xf32>
    tpu.vector_store %arg3[%c40, %c0_40], %54 {strides = array<i32>} : memref<256x16xf32, #tpu.memory_space<vmem>>, vector<8x16xf32>,
    %c192 = arith.constant 192 : index
    %c0_41 = arith.constant 0 : index
    %56 = tpu.strided_load %arg5[%c192, %c0_41] {strides = array<i32: 2, 1>} : memref<1024x16xf32, #tpu.memory_space<vmem>>, vector<8x16xf32>
    %c193 = arith.constant 193 : index
    %c0_42 = arith.constant 0 : index
    %57 = tpu.strided_load %arg5[%c193, %c0_42] {strides = array<i32: 2, 1>} : memref<1024x16xf32, #tpu.memory_space<vmem>>, vector<8x16xf32>
    %c208 = arith.constant 208 : index
    %c0_43 = arith.constant 0 : index
    %58 = tpu.strided_load %arg5[%c208, %c0_43] {strides = array<i32: 2, 1>} : memref<1024x16xf32, #tpu.memory_space<vmem>>, vector<8x16xf32>
    %c209 = arith.constant 209 : index
    %c0_44 = arith.constant 0 : index
    %59 = tpu.strided_load %arg5[%c209, %c0_44] {strides = array<i32: 2, 1>} : memref<1024x16xf32, #tpu.memory_space<vmem>>, vector<8x16xf32>
    %60 = arith.maximumf %56, %57 : vector<8x16xf32>
    %61 = arith.maximumf %58, %59 : vector<8x16xf32>
    %62 = arith.maximumf %60, %61 : vector<8x16xf32>
    %c48_45 = arith.constant 48 : index
    %c0_46 = arith.constant 0 : index
    %63 = vector.load %arg3[%c48_45, %c0_46] : memref<256x16xf32, #tpu.memory_space<vmem>>, vector<8x16xf32>
    tpu.vector_store %arg3[%c48_45, %c0_46], %62 {strides = array<i32>} : memref<256x16xf32, #tpu.memory_space<vmem>>, vector<8x16xf32>,
    %c224 = arith.constant 224 : index
    %c0_47 = arith.constant 0 : index
    %64 = tpu.strided_load %arg5[%c224, %c0_47] {strides = array<i32: 2, 1>} : memref<1024x16xf32, #tpu.memory_space<vmem>>, vector<8x16xf32>
    %c225 = arith.constant 225 : index
    %c0_48 = arith.constant 0 : index
    %65 = tpu.strided_load %arg5[%c225, %c0_48] {strides = array<i32: 2, 1>} : memref<1024x16xf32, #tpu.memory_space<vmem>>, vector<8x16xf32>
    %c240 = arith.constant 240 : index
    %c0_49 = arith.constant 0 : index
    %66 = tpu.strided_load %arg5[%c240, %c0_49] {strides = array<i32: 2, 1>} : memref<1024x16xf32, #tpu.memory_space<vmem>>, vector<8x16xf32>
    %c241 = arith.constant 241 : index
    %c0_50 = arith.constant 0 : index
    %67 = tpu.strided_load %arg5[%c241, %c0_50] {strides = array<i32: 2, 1>} : memref<1024x16xf32, #tpu.memory_space<vmem>>, vector<8x16xf32>
    %68 = arith.maximumf %64, %65 : vector<8x16xf32>
    %69 = arith.maximumf %66, %67 : vector<8x16xf32>
    %70 = arith.maximumf %68, %69 : vector<8x16xf32>
    %c56 = arith.constant 56 : index
    %c0_51 = arith.constant 0 : index
    %71 = vector.load %arg3[%c56, %c0_51] : memref<256x16xf32, #tpu.memory_space<vmem>>, vector<8x16xf32>
    tpu.vector_store %arg3[%c56, %c0_51], %70 {strides = array<i32>} : memref<256x16xf32, #tpu.memory_space<vmem>>, vector<8x16xf32>,
    %c256 = arith.constant 256 : index
    %c0_52 = arith.constant 0 : index
    %72 = tpu.strided_load %arg5[%c256, %c0_52] {strides = array<i32: 2, 1>} : memref<1024x16xf32, #tpu.memory_space<vmem>>, vector<8x16xf32>
    %c257 = arith.constant 257 : index
    %c0_53 = arith.constant 0 : index
    %73 = tpu.strided_load %arg5[%c257, %c0_53] {strides = array<i32: 2, 1>} : memref<1024x16xf32, #tpu.memory_space<vmem>>, vector<8x16xf32>
    %c272 = arith.constant 272 : index
    %c0_54 = arith.constant 0 : index
    %74 = tpu.strided_load %arg5[%c272, %c0_54] {strides = array<i32: 2, 1>} : memref<1024x16xf32, #tpu.memory_space<vmem>>, vector<8x16xf32>
    %c273 = arith.constant 273 : index
    %c0_55 = arith.constant 0 : index
    %75 = tpu.strided_load %arg5[%c273, %c0_55] {strides = array<i32: 2, 1>} : memref<1024x16xf32, #tpu.memory_space<vmem>>, vector<8x16xf32>
    %76 = arith.maximumf %72, %73 : vector<8x16xf32>
    %77 = arith.maximumf %74, %75 : vector<8x16xf32>
    %78 = arith.maximumf %76, %77 : vector<8x16xf32>
    %c64_56 = arith.constant 64 : index
    %c0_57 = arith.constant 0 : index
    %79 = vector.load %arg3[%c64_56, %c0_57] : memref<256x16xf32, #tpu.memory_space<vmem>>, vector<8x16xf32>
    tpu.vector_store %arg3[%c64_56, %c0_57], %78 {strides = array<i32>} : memref<256x16xf32, #tpu.memory_space<vmem>>, vector<8x16xf32>,
    %c288 = arith.constant 288 : index
    %c0_58 = arith.constant 0 : index
    %80 = tpu.strided_load %arg5[%c288, %c0_58] {strides = array<i32: 2, 1>} : memref<1024x16xf32, #tpu.memory_space<vmem>>, vector<8x16xf32>
    %c289 = arith.constant 289 : index
    %c0_59 = arith.constant 0 : index
    %81 = tpu.strided_load %arg5[%c289, %c0_59] {strides = array<i32: 2, 1>} : memref<1024x16xf32, #tpu.memory_space<vmem>>, vector<8x16xf32>
    %c304 = arith.constant 304 : index
    %c0_60 = arith.constant 0 : index
    %82 = tpu.strided_load %arg5[%c304, %c0_60] {strides = array<i32: 2, 1>} : memref<1024x16xf32, #tpu.memory_space<vmem>>, vector<8x16xf32>
    %c305 = arith.constant 305 : index
    %c0_61 = arith.constant 0 : index
    %83 = tpu.strided_load %arg5[%c305, %c0_61] {strides = array<i32: 2, 1>} : memref<1024x16xf32, #tpu.memory_space<vmem>>, vector<8x16xf32>
    %84 = arith.maximumf %80, %81 : vector<8x16xf32>
    %85 = arith.maximumf %82, %83 : vector<8x16xf32>
    %86 = arith.maximumf %84, %85 : vector<8x16xf32>
    %c72 = arith.constant 72 : index
    %c0_62 = arith.constant 0 : index
    %87 = vector.load %arg3[%c72, %c0_62] : memref<256x16xf32, #tpu.memory_space<vmem>>, vector<8x16xf32>
    tpu.vector_store %arg3[%c72, %c0_62], %86 {strides = array<i32>} : memref<256x16xf32, #tpu.memory_space<vmem>>, vector<8x16xf32>,
    %c320 = arith.constant 320 : index
    %c0_63 = arith.constant 0 : index
    %88 = tpu.strided_load %arg5[%c320, %c0_63] {strides = array<i32: 2, 1>} : memref<1024x16xf32, #tpu.memory_space<vmem>>, vector<8x16xf32>
    %c321 = arith.constant 321 : index
    %c0_64 = arith.constant 0 : index
    %89 = tpu.strided_load %arg5[%c321, %c0_64] {strides = array<i32: 2, 1>} : memref<1024x16xf32, #tpu.memory_space<vmem>>, vector<8x16xf32>
    %c336 = arith.constant 336 : index
    %c0_65 = arith.constant 0 : index
    %90 = tpu.strided_load %arg5[%c336, %c0_65] {strides = array<i32: 2, 1>} : memref<1024x16xf32, #tpu.memory_space<vmem>>, vector<8x16xf32>
    %c337 = arith.constant 337 : index
    %c0_66 = arith.constant 0 : index
    %91 = tpu.strided_load %arg5[%c337, %c0_66] {strides = array<i32: 2, 1>} : memref<1024x16xf32, #tpu.memory_space<vmem>>, vector<8x16xf32>
    %92 = arith.maximumf %88, %89 : vector<8x16xf32>
    %93 = arith.maximumf %90, %91 : vector<8x16xf32>
    %94 = arith.maximumf %92, %93 : vector<8x16xf32>
    %c80_67 = arith.constant 80 : index
    %c0_68 = arith.constant 0 : index
    %95 = vector.load %arg3[%c80_67, %c0_68] : memref<256x16xf32, #tpu.memory_space<vmem>>, vector<8x16xf32>
    tpu.vector_store %arg3[%c80_67, %c0_68], %94 {strides = array<i32>} : memref<256x16xf32, #tpu.memory_space<vmem>>, vector<8x16xf32>,
    %c352 = arith.constant 352 : index
    %c0_69 = arith.constant 0 : index
    %96 = tpu.strided_load %arg5[%c352, %c0_69] {strides = array<i32: 2, 1>} : memref<1024x16xf32, #tpu.memory_space<vmem>>, vector<8x16xf32>
    %c353 = arith.constant 353 : index
    %c0_70 = arith.constant 0 : index
    %97 = tpu.strided_load %arg5[%c353, %c0_70] {strides = array<i32: 2, 1>} : memref<1024x16xf32, #tpu.memory_space<vmem>>, vector<8x16xf32>
    %c368 = arith.constant 368 : index
    %c0_71 = arith.constant 0 : index
    %98 = tpu.strided_load %arg5[%c368, %c0_71] {strides = array<i32: 2, 1>} : memref<1024x16xf32, #tpu.memory_space<vmem>>, vector<8x16xf32>
    %c369 = arith.constant 369 : index
    %c0_72 = arith.constant 0 : index
    %99 = tpu.strided_load %arg5[%c369, %c0_72] {strides = array<i32: 2, 1>} : memref<1024x16xf32, #tpu.memory_space<vmem>>, vector<8x16xf32>
    %100 = arith.maximumf %96, %97 : vector<8x16xf32>
    %101 = arith.maximumf %98, %99 : vector<8x16xf32>
    %102 = arith.maximumf %100, %101 : vector<8x16xf32>
    %c88 = arith.constant 88 : index
    %c0_73 = arith.constant 0 : index
    %103 = vector.load %arg3[%c88, %c0_73] : memref<256x16xf32, #tpu.memory_space<vmem>>, vector<8x16xf32>
    tpu.vector_store %arg3[%c88, %c0_73], %102 {strides = array<i32>} : memref<256x16xf32, #tpu.memory_space<vmem>>, vector<8x16xf32>,
    %c384 = arith.constant 384 : index
    %c0_74 = arith.constant 0 : index
    %104 = tpu.strided_load %arg5[%c384, %c0_74] {strides = array<i32: 2, 1>} : memref<1024x16xf32, #tpu.memory_space<vmem>>, vector<8x16xf32>
    %c385 = arith.constant 385 : index
    %c0_75 = arith.constant 0 : index
    %105 = tpu.strided_load %arg5[%c385, %c0_75] {strides = array<i32: 2, 1>} : memref<1024x16xf32, #tpu.memory_space<vmem>>, vector<8x16xf32>
    %c400 = arith.constant 400 : index
    %c0_76 = arith.constant 0 : index
    %106 = tpu.strided_load %arg5[%c400, %c0_76] {strides = array<i32: 2, 1>} : memref<1024x16xf32, #tpu.memory_space<vmem>>, vector<8x16xf32>
    %c401 = arith.constant 401 : index
    %c0_77 = arith.constant 0 : index
    %107 = tpu.strided_load %arg5[%c401, %c0_77] {strides = array<i32: 2, 1>} : memref<1024x16xf32, #tpu.memory_space<vmem>>, vector<8x16xf32>
    %108 = arith.maximumf %104, %105 : vector<8x16xf32>
    %109 = arith.maximumf %106, %107 : vector<8x16xf32>
    %110 = arith.maximumf %108, %109 : vector<8x16xf32>
    %c96_78 = arith.constant 96 : index
    %c0_79 = arith.constant 0 : index
    %111 = vector.load %arg3[%c96_78, %c0_79] : memref<256x16xf32, #tpu.memory_space<vmem>>, vector<8x16xf32>
    tpu.vector_store %arg3[%c96_78, %c0_79], %110 {strides = array<i32>} : memref<256x16xf32, #tpu.memory_space<vmem>>, vector<8x16xf32>,
    %c416 = arith.constant 416 : index
    %c0_80 = arith.constant 0 : index
    %112 = tpu.strided_load %arg5[%c416, %c0_80] {strides = array<i32: 2, 1>} : memref<1024x16xf32, #tpu.memory_space<vmem>>, vector<8x16xf32>
    %c417 = arith.constant 417 : index
    %c0_81 = arith.constant 0 : index
    %113 = tpu.strided_load %arg5[%c417, %c0_81] {strides = array<i32: 2, 1>} : memref<1024x16xf32, #tpu.memory_space<vmem>>, vector<8x16xf32>
    %c432 = arith.constant 432 : index
    %c0_82 = arith.constant 0 : index
    %114 = tpu.strided_load %arg5[%c432, %c0_82] {strides = array<i32: 2, 1>} : memref<1024x16xf32, #tpu.memory_space<vmem>>, vector<8x16xf32>
    %c433 = arith.constant 433 : index
    %c0_83 = arith.constant 0 : index
    %115 = tpu.strided_load %arg5[%c433, %c0_83] {strides = array<i32: 2, 1>} : memref<1024x16xf32, #tpu.memory_space<vmem>>, vector<8x16xf32>
    %116 = arith.maximumf %112, %113 : vector<8x16xf32>
    %117 = arith.maximumf %114, %115 : vector<8x16xf32>
    %118 = arith.maximumf %116, %117 : vector<8x16xf32>
    %c104 = arith.constant 104 : index
    %c0_84 = arith.constant 0 : index
    %119 = vector.load %arg3[%c104, %c0_84] : memref<256x16xf32, #tpu.memory_space<vmem>>, vector<8x16xf32>
    tpu.vector_store %arg3[%c104, %c0_84], %118 {strides = array<i32>} : memref<256x16xf32, #tpu.memory_space<vmem>>, vector<8x16xf32>,
    %c448 = arith.constant 448 : index
    %c0_85 = arith.constant 0 : index
    %120 = tpu.strided_load %arg5[%c448, %c0_85] {strides = array<i32: 2, 1>} : memref<1024x16xf32, #tpu.memory_space<vmem>>, vector<8x16xf32>
    %c449 = arith.constant 449 : index
    %c0_86 = arith.constant 0 : index
    %121 = tpu.strided_load %arg5[%c449, %c0_86] {strides = array<i32: 2, 1>} : memref<1024x16xf32, #tpu.memory_space<vmem>>, vector<8x16xf32>
    %c464 = arith.constant 464 : index
    %c0_87 = arith.constant 0 : index
    %122 = tpu.strided_load %arg5[%c464, %c0_87] {strides = array<i32: 2, 1>} : memref<1024x16xf32, #tpu.memory_space<vmem>>, vector<8x16xf32>
    %c465 = arith.constant 465 : index
    %c0_88 = arith.constant 0 : index
    %123 = tpu.strided_load %arg5[%c465, %c0_88] {strides = array<i32: 2, 1>} : memref<1024x16xf32, #tpu.memory_space<vmem>>, vector<8x16xf32>
    %124 = arith.maximumf %120, %121 : vector<8x16xf32>
    %125 = arith.maximumf %122, %123 : vector<8x16xf32>
    %126 = arith.maximumf %124, %125 : vector<8x16xf32>
    %c112_89 = arith.constant 112 : index
    %c0_90 = arith.constant 0 : index
    %127 = vector.load %arg3[%c112_89, %c0_90] : memref<256x16xf32, #tpu.memory_space<vmem>>, vector<8x16xf32>
    tpu.vector_store %arg3[%c112_89, %c0_90], %126 {strides = array<i32>} : memref<256x16xf32, #tpu.memory_space<vmem>>, vector<8x16xf32>,
    %c480 = arith.constant 480 : index
    %c0_91 = arith.constant 0 : index
    %128 = tpu.strided_load %arg5[%c480, %c0_91] {strides = array<i32: 2, 1>} : memref<1024x16xf32, #tpu.memory_space<vmem>>, vector<8x16xf32>
    %c481 = arith.constant 481 : index
    %c0_92 = arith.constant 0 : index
    %129 = tpu.strided_load %arg5[%c481, %c0_92] {strides = array<i32: 2, 1>} : memref<1024x16xf32, #tpu.memory_space<vmem>>, vector<8x16xf32>
    %c496 = arith.constant 496 : index
    %c0_93 = arith.constant 0 : index
    %130 = tpu.strided_load %arg5[%c496, %c0_93] {strides = array<i32: 2, 1>} : memref<1024x16xf32, #tpu.memory_space<vmem>>, vector<8x16xf32>
    %c497 = arith.constant 497 : index
    %c0_94 = arith.constant 0 : index
    %131 = tpu.strided_load %arg5[%c497, %c0_94] {strides = array<i32: 2, 1>} : memref<1024x16xf32, #tpu.memory_space<vmem>>, vector<8x16xf32>
    %132 = arith.maximumf %128, %129 : vector<8x16xf32>
    %133 = arith.maximumf %130, %131 : vector<8x16xf32>
    %134 = arith.maximumf %132, %133 : vector<8x16xf32>
    %c120 = arith.constant 120 : index
    %c0_95 = arith.constant 0 : index
    %135 = vector.load %arg3[%c120, %c0_95] : memref<256x16xf32, #tpu.memory_space<vmem>>, vector<8x16xf32>
    tpu.vector_store %arg3[%c120, %c0_95], %134 {strides = array<i32>} : memref<256x16xf32, #tpu.memory_space<vmem>>, vector<8x16xf32>,
    %c512 = arith.constant 512 : index
    %c0_96 = arith.constant 0 : index
    %136 = tpu.strided_load %arg5[%c512, %c0_96] {strides = array<i32: 2, 1>} : memref<1024x16xf32, #tpu.memory_space<vmem>>, vector<8x16xf32>
    %c513 = arith.constant 513 : index
    %c0_97 = arith.constant 0 : index
    %137 = tpu.strided_load %arg5[%c513, %c0_97] {strides = array<i32: 2, 1>} : memref<1024x16xf32, #tpu.memory_space<vmem>>, vector<8x16xf32>
    %c528 = arith.constant 528 : index
    %c0_98 = arith.constant 0 : index
    %138 = tpu.strided_load %arg5[%c528, %c0_98] {strides = array<i32: 2, 1>} : memref<1024x16xf32, #tpu.memory_space<vmem>>, vector<8x16xf32>
    %c529 = arith.constant 529 : index
    %c0_99 = arith.constant 0 : index
    %139 = tpu.strided_load %arg5[%c529, %c0_99] {strides = array<i32: 2, 1>} : memref<1024x16xf32, #tpu.memory_space<vmem>>, vector<8x16xf32>
    %140 = arith.maximumf %136, %137 : vector<8x16xf32>
    %141 = arith.maximumf %138, %139 : vector<8x16xf32>
    %142 = arith.maximumf %140, %141 : vector<8x16xf32>
    %c128_100 = arith.constant 128 : index
    %c0_101 = arith.constant 0 : index
    %143 = vector.load %arg3[%c128_100, %c0_101] : memref<256x16xf32, #tpu.memory_space<vmem>>, vector<8x16xf32>
    tpu.vector_store %arg3[%c128_100, %c0_101], %142 {strides = array<i32>} : memref<256x16xf32, #tpu.memory_space<vmem>>, vector<8x16xf32>,
    %c544 = arith.constant 544 : index
    %c0_102 = arith.constant 0 : index
    %144 = tpu.strided_load %arg5[%c544, %c0_102] {strides = array<i32: 2, 1>} : memref<1024x16xf32, #tpu.memory_space<vmem>>, vector<8x16xf32>
    %c545 = arith.constant 545 : index
    %c0_103 = arith.constant 0 : index
    %145 = tpu.strided_load %arg5[%c545, %c0_103] {strides = array<i32: 2, 1>} : memref<1024x16xf32, #tpu.memory_space<vmem>>, vector<8x16xf32>
    %c560 = arith.constant 560 : index
    %c0_104 = arith.constant 0 : index
    %146 = tpu.strided_load %arg5[%c560, %c0_104] {strides = array<i32: 2, 1>} : memref<1024x16xf32, #tpu.memory_space<vmem>>, vector<8x16xf32>
    %c561 = arith.constant 561 : index
    %c0_105 = arith.constant 0 : index
    %147 = tpu.strided_load %arg5[%c561, %c0_105] {strides = array<i32: 2, 1>} : memref<1024x16xf32, #tpu.memory_space<vmem>>, vector<8x16xf32>
    %148 = arith.maximumf %144, %145 : vector<8x16xf32>
    %149 = arith.maximumf %146, %147 : vector<8x16xf32>
    %150 = arith.maximumf %148, %149 : vector<8x16xf32>
    %c136 = arith.constant 136 : index
    %c0_106 = arith.constant 0 : index
    %151 = vector.load %arg3[%c136, %c0_106] : memref<256x16xf32, #tpu.memory_space<vmem>>, vector<8x16xf32>
    tpu.vector_store %arg3[%c136, %c0_106], %150 {strides = array<i32>} : memref<256x16xf32, #tpu.memory_space<vmem>>, vector<8x16xf32>,
    %c576 = arith.constant 576 : index
    %c0_107 = arith.constant 0 : index
    %152 = tpu.strided_load %arg5[%c576, %c0_107] {strides = array<i32: 2, 1>} : memref<1024x16xf32, #tpu.memory_space<vmem>>, vector<8x16xf32>
    %c577 = arith.constant 577 : index
    %c0_108 = arith.constant 0 : index
    %153 = tpu.strided_load %arg5[%c577, %c0_108] {strides = array<i32: 2, 1>} : memref<1024x16xf32, #tpu.memory_space<vmem>>, vector<8x16xf32>
    %c592 = arith.constant 592 : index
    %c0_109 = arith.constant 0 : index
    %154 = tpu.strided_load %arg5[%c592, %c0_109] {strides = array<i32: 2, 1>} : memref<1024x16xf32, #tpu.memory_space<vmem>>, vector<8x16xf32>
    %c593 = arith.constant 593 : index
    %c0_110 = arith.constant 0 : index
    %155 = tpu.strided_load %arg5[%c593, %c0_110] {strides = array<i32: 2, 1>} : memref<1024x16xf32, #tpu.memory_space<vmem>>, vector<8x16xf32>
    %156 = arith.maximumf %152, %153 : vector<8x16xf32>
    %157 = arith.maximumf %154, %155 : vector<8x16xf32>
    %158 = arith.maximumf %156, %157 : vector<8x16xf32>
    %c144_111 = arith.constant 144 : index
    %c0_112 = arith.constant 0 : index
    %159 = vector.load %arg3[%c144_111, %c0_112] : memref<256x16xf32, #tpu.memory_space<vmem>>, vector<8x16xf32>
    tpu.vector_store %arg3[%c144_111, %c0_112], %158 {strides = array<i32>} : memref<256x16xf32, #tpu.memory_space<vmem>>, vector<8x16xf32>,
    %c608 = arith.constant 608 : index
    %c0_113 = arith.constant 0 : index
    %160 = tpu.strided_load %arg5[%c608, %c0_113] {strides = array<i32: 2, 1>} : memref<1024x16xf32, #tpu.memory_space<vmem>>, vector<8x16xf32>
    %c609 = arith.constant 609 : index
    %c0_114 = arith.constant 0 : index
    %161 = tpu.strided_load %arg5[%c609, %c0_114] {strides = array<i32: 2, 1>} : memref<1024x16xf32, #tpu.memory_space<vmem>>, vector<8x16xf32>
    %c624 = arith.constant 624 : index
    %c0_115 = arith.constant 0 : index
    %162 = tpu.strided_load %arg5[%c624, %c0_115] {strides = array<i32: 2, 1>} : memref<1024x16xf32, #tpu.memory_space<vmem>>, vector<8x16xf32>
    %c625 = arith.constant 625 : index
    %c0_116 = arith.constant 0 : index
    %163 = tpu.strided_load %arg5[%c625, %c0_116] {strides = array<i32: 2, 1>} : memref<1024x16xf32, #tpu.memory_space<vmem>>, vector<8x16xf32>
    %164 = arith.maximumf %160, %161 : vector<8x16xf32>
    %165 = arith.maximumf %162, %163 : vector<8x16xf32>
    %166 = arith.maximumf %164, %165 : vector<8x16xf32>
    %c152 = arith.constant 152 : index
    %c0_117 = arith.constant 0 : index
    %167 = vector.load %arg3[%c152, %c0_117] : memref<256x16xf32, #tpu.memory_space<vmem>>, vector<8x16xf32>
    tpu.vector_store %arg3[%c152, %c0_117], %166 {strides = array<i32>} : memref<256x16xf32, #tpu.memory_space<vmem>>, vector<8x16xf32>,
    %c640 = arith.constant 640 : index
    %c0_118 = arith.constant 0 : index
    %168 = tpu.strided_load %arg5[%c640, %c0_118] {strides = array<i32: 2, 1>} : memref<1024x16xf32, #tpu.memory_space<vmem>>, vector<8x16xf32>
    %c641 = arith.constant 641 : index
    %c0_119 = arith.constant 0 : index
    %169 = tpu.strided_load %arg5[%c641, %c0_119] {strides = array<i32: 2, 1>} : memref<1024x16xf32, #tpu.memory_space<vmem>>, vector<8x16xf32>
    %c656 = arith.constant 656 : index
    %c0_120 = arith.constant 0 : index
    %170 = tpu.strided_load %arg5[%c656, %c0_120] {strides = array<i32: 2, 1>} : memref<1024x16xf32, #tpu.memory_space<vmem>>, vector<8x16xf32>
    %c657 = arith.constant 657 : index
    %c0_121 = arith.constant 0 : index
    %171 = tpu.strided_load %arg5[%c657, %c0_121] {strides = array<i32: 2, 1>} : memref<1024x16xf32, #tpu.memory_space<vmem>>, vector<8x16xf32>
    %172 = arith.maximumf %168, %169 : vector<8x16xf32>
    %173 = arith.maximumf %170, %171 : vector<8x16xf32>
    %174 = arith.maximumf %172, %173 : vector<8x16xf32>
    %c160_122 = arith.constant 160 : index
    %c0_123 = arith.constant 0 : index
    %175 = vector.load %arg3[%c160_122, %c0_123] : memref<256x16xf32, #tpu.memory_space<vmem>>, vector<8x16xf32>
    tpu.vector_store %arg3[%c160_122, %c0_123], %174 {strides = array<i32>} : memref<256x16xf32, #tpu.memory_space<vmem>>, vector<8x16xf32>,
    %c672 = arith.constant 672 : index
    %c0_124 = arith.constant 0 : index
    %176 = tpu.strided_load %arg5[%c672, %c0_124] {strides = array<i32: 2, 1>} : memref<1024x16xf32, #tpu.memory_space<vmem>>, vector<8x16xf32>
    %c673 = arith.constant 673 : index
    %c0_125 = arith.constant 0 : index
    %177 = tpu.strided_load %arg5[%c673, %c0_125] {strides = array<i32: 2, 1>} : memref<1024x16xf32, #tpu.memory_space<vmem>>, vector<8x16xf32>
    %c688 = arith.constant 688 : index
    %c0_126 = arith.constant 0 : index
    %178 = tpu.strided_load %arg5[%c688, %c0_126] {strides = array<i32: 2, 1>} : memref<1024x16xf32, #tpu.memory_space<vmem>>, vector<8x16xf32>
    %c689 = arith.constant 689 : index
    %c0_127 = arith.constant 0 : index
    %179 = tpu.strided_load %arg5[%c689, %c0_127] {strides = array<i32: 2, 1>} : memref<1024x16xf32, #tpu.memory_space<vmem>>, vector<8x16xf32>
    %180 = arith.maximumf %176, %177 : vector<8x16xf32>
    %181 = arith.maximumf %178, %179 : vector<8x16xf32>
    %182 = arith.maximumf %180, %181 : vector<8x16xf32>
    %c168 = arith.constant 168 : index
    %c0_128 = arith.constant 0 : index
    %183 = vector.load %arg3[%c168, %c0_128] : memref<256x16xf32, #tpu.memory_space<vmem>>, vector<8x16xf32>
    tpu.vector_store %arg3[%c168, %c0_128], %182 {strides = array<i32>} : memref<256x16xf32, #tpu.memory_space<vmem>>, vector<8x16xf32>,
    %c704 = arith.constant 704 : index
    %c0_129 = arith.constant 0 : index
    %184 = tpu.strided_load %arg5[%c704, %c0_129] {strides = array<i32: 2, 1>} : memref<1024x16xf32, #tpu.memory_space<vmem>>, vector<8x16xf32>
    %c705 = arith.constant 705 : index
    %c0_130 = arith.constant 0 : index
    %185 = tpu.strided_load %arg5[%c705, %c0_130] {strides = array<i32: 2, 1>} : memref<1024x16xf32, #tpu.memory_space<vmem>>, vector<8x16xf32>
    %c720 = arith.constant 720 : index
    %c0_131 = arith.constant 0 : index
    %186 = tpu.strided_load %arg5[%c720, %c0_131] {strides = array<i32: 2, 1>} : memref<1024x16xf32, #tpu.memory_space<vmem>>, vector<8x16xf32>
    %c721 = arith.constant 721 : index
    %c0_132 = arith.constant 0 : index
    %187 = tpu.strided_load %arg5[%c721, %c0_132] {strides = array<i32: 2, 1>} : memref<1024x16xf32, #tpu.memory_space<vmem>>, vector<8x16xf32>
    %188 = arith.maximumf %184, %185 : vector<8x16xf32>
    %189 = arith.maximumf %186, %187 : vector<8x16xf32>
    %190 = arith.maximumf %188, %189 : vector<8x16xf32>
    %c176_133 = arith.constant 176 : index
    %c0_134 = arith.constant 0 : index
    %191 = vector.load %arg3[%c176_133, %c0_134] : memref<256x16xf32, #tpu.memory_space<vmem>>, vector<8x16xf32>
    tpu.vector_store %arg3[%c176_133, %c0_134], %190 {strides = array<i32>} : memref<256x16xf32, #tpu.memory_space<vmem>>, vector<8x16xf32>,
    %c736 = arith.constant 736 : index
    %c0_135 = arith.constant 0 : index
    %192 = tpu.strided_load %arg5[%c736, %c0_135] {strides = array<i32: 2, 1>} : memref<1024x16xf32, #tpu.memory_space<vmem>>, vector<8x16xf32>
    %c737 = arith.constant 737 : index
    %c0_136 = arith.constant 0 : index
    %193 = tpu.strided_load %arg5[%c737, %c0_136] {strides = array<i32: 2, 1>} : memref<1024x16xf32, #tpu.memory_space<vmem>>, vector<8x16xf32>
    %c752 = arith.constant 752 : index
    %c0_137 = arith.constant 0 : index
    %194 = tpu.strided_load %arg5[%c752, %c0_137] {strides = array<i32: 2, 1>} : memref<1024x16xf32, #tpu.memory_space<vmem>>, vector<8x16xf32>
    %c753 = arith.constant 753 : index
    %c0_138 = arith.constant 0 : index
    %195 = tpu.strided_load %arg5[%c753, %c0_138] {strides = array<i32: 2, 1>} : memref<1024x16xf32, #tpu.memory_space<vmem>>, vector<8x16xf32>
    %196 = arith.maximumf %192, %193 : vector<8x16xf32>
    %197 = arith.maximumf %194, %195 : vector<8x16xf32>
    %198 = arith.maximumf %196, %197 : vector<8x16xf32>
    %c184 = arith.constant 184 : index
    %c0_139 = arith.constant 0 : index
    %199 = vector.load %arg3[%c184, %c0_139] : memref<256x16xf32, #tpu.memory_space<vmem>>, vector<8x16xf32>
    tpu.vector_store %arg3[%c184, %c0_139], %198 {strides = array<i32>} : memref<256x16xf32, #tpu.memory_space<vmem>>, vector<8x16xf32>,
    %c768 = arith.constant 768 : index
    %c0_140 = arith.constant 0 : index
    %200 = tpu.strided_load %arg5[%c768, %c0_140] {strides = array<i32: 2, 1>} : memref<1024x16xf32, #tpu.memory_space<vmem>>, vector<8x16xf32>
    %c769 = arith.constant 769 : index
    %c0_141 = arith.constant 0 : index
    %201 = tpu.strided_load %arg5[%c769, %c0_141] {strides = array<i32: 2, 1>} : memref<1024x16xf32, #tpu.memory_space<vmem>>, vector<8x16xf32>
    %c784 = arith.constant 784 : index
    %c0_142 = arith.constant 0 : index
    %202 = tpu.strided_load %arg5[%c784, %c0_142] {strides = array<i32: 2, 1>} : memref<1024x16xf32, #tpu.memory_space<vmem>>, vector<8x16xf32>
    %c785 = arith.constant 785 : index
    %c0_143 = arith.constant 0 : index
    %203 = tpu.strided_load %arg5[%c785, %c0_143] {strides = array<i32: 2, 1>} : memref<1024x16xf32, #tpu.memory_space<vmem>>, vector<8x16xf32>
    %204 = arith.maximumf %200, %201 : vector<8x16xf32>
    %205 = arith.maximumf %202, %203 : vector<8x16xf32>
    %206 = arith.maximumf %204, %205 : vector<8x16xf32>
    %c192_144 = arith.constant 192 : index
    %c0_145 = arith.constant 0 : index
    %207 = vector.load %arg3[%c192_144, %c0_145] : memref<256x16xf32, #tpu.memory_space<vmem>>, vector<8x16xf32>
    tpu.vector_store %arg3[%c192_144, %c0_145], %206 {strides = array<i32>} : memref<256x16xf32, #tpu.memory_space<vmem>>, vector<8x16xf32>,
    %c800 = arith.constant 800 : index
    %c0_146 = arith.constant 0 : index
    %208 = tpu.strided_load %arg5[%c800, %c0_146] {strides = array<i32: 2, 1>} : memref<1024x16xf32, #tpu.memory_space<vmem>>, vector<8x16xf32>
    %c801 = arith.constant 801 : index
    %c0_147 = arith.constant 0 : index
    %209 = tpu.strided_load %arg5[%c801, %c0_147] {strides = array<i32: 2, 1>} : memref<1024x16xf32, #tpu.memory_space<vmem>>, vector<8x16xf32>
    %c816 = arith.constant 816 : index
    %c0_148 = arith.constant 0 : index
    %210 = tpu.strided_load %arg5[%c816, %c0_148] {strides = array<i32: 2, 1>} : memref<1024x16xf32, #tpu.memory_space<vmem>>, vector<8x16xf32>
    %c817 = arith.constant 817 : index
    %c0_149 = arith.constant 0 : index
    %211 = tpu.strided_load %arg5[%c817, %c0_149] {strides = array<i32: 2, 1>} : memref<1024x16xf32, #tpu.memory_space<vmem>>, vector<8x16xf32>
    %212 = arith.maximumf %208, %209 : vector<8x16xf32>
    %213 = arith.maximumf %210, %211 : vector<8x16xf32>
    %214 = arith.maximumf %212, %213 : vector<8x16xf32>
    %c200 = arith.constant 200 : index
    %c0_150 = arith.constant 0 : index
    %215 = vector.load %arg3[%c200, %c0_150] : memref<256x16xf32, #tpu.memory_space<vmem>>, vector<8x16xf32>
    tpu.vector_store %arg3[%c200, %c0_150], %214 {strides = array<i32>} : memref<256x16xf32, #tpu.memory_space<vmem>>, vector<8x16xf32>,
    %c832 = arith.constant 832 : index
    %c0_151 = arith.constant 0 : index
    %216 = tpu.strided_load %arg5[%c832, %c0_151] {strides = array<i32: 2, 1>} : memref<1024x16xf32, #tpu.memory_space<vmem>>, vector<8x16xf32>
    %c833 = arith.constant 833 : index
    %c0_152 = arith.constant 0 : index
    %217 = tpu.strided_load %arg5[%c833, %c0_152] {strides = array<i32: 2, 1>} : memref<1024x16xf32, #tpu.memory_space<vmem>>, vector<8x16xf32>
    %c848 = arith.constant 848 : index
    %c0_153 = arith.constant 0 : index
    %218 = tpu.strided_load %arg5[%c848, %c0_153] {strides = array<i32: 2, 1>} : memref<1024x16xf32, #tpu.memory_space<vmem>>, vector<8x16xf32>
    %c849 = arith.constant 849 : index
    %c0_154 = arith.constant 0 : index
    %219 = tpu.strided_load %arg5[%c849, %c0_154] {strides = array<i32: 2, 1>} : memref<1024x16xf32, #tpu.memory_space<vmem>>, vector<8x16xf32>
    %220 = arith.maximumf %216, %217 : vector<8x16xf32>
    %221 = arith.maximumf %218, %219 : vector<8x16xf32>
    %222 = arith.maximumf %220, %221 : vector<8x16xf32>
    %c208_155 = arith.constant 208 : index
    %c0_156 = arith.constant 0 : index
    %223 = vector.load %arg3[%c208_155, %c0_156] : memref<256x16xf32, #tpu.memory_space<vmem>>, vector<8x16xf32>
    tpu.vector_store %arg3[%c208_155, %c0_156], %222 {strides = array<i32>} : memref<256x16xf32, #tpu.memory_space<vmem>>, vector<8x16xf32>,
    %c864 = arith.constant 864 : index
    %c0_157 = arith.constant 0 : index
    %224 = tpu.strided_load %arg5[%c864, %c0_157] {strides = array<i32: 2, 1>} : memref<1024x16xf32, #tpu.memory_space<vmem>>, vector<8x16xf32>
    %c865 = arith.constant 865 : index
    %c0_158 = arith.constant 0 : index
    %225 = tpu.strided_load %arg5[%c865, %c0_158] {strides = array<i32: 2, 1>} : memref<1024x16xf32, #tpu.memory_space<vmem>>, vector<8x16xf32>
    %c880 = arith.constant 880 : index
    %c0_159 = arith.constant 0 : index
    %226 = tpu.strided_load %arg5[%c880, %c0_159] {strides = array<i32: 2, 1>} : memref<1024x16xf32, #tpu.memory_space<vmem>>, vector<8x16xf32>
    %c881 = arith.constant 881 : index
    %c0_160 = arith.constant 0 : index
    %227 = tpu.strided_load %arg5[%c881, %c0_160] {strides = array<i32: 2, 1>} : memref<1024x16xf32, #tpu.memory_space<vmem>>, vector<8x16xf32>
    %228 = arith.maximumf %224, %225 : vector<8x16xf32>
    %229 = arith.maximumf %226, %227 : vector<8x16xf32>
    %230 = arith.maximumf %228, %229 : vector<8x16xf32>
    %c216 = arith.constant 216 : index
    %c0_161 = arith.constant 0 : index
    %231 = vector.load %arg3[%c216, %c0_161] : memref<256x16xf32, #tpu.memory_space<vmem>>, vector<8x16xf32>
    tpu.vector_store %arg3[%c216, %c0_161], %230 {strides = array<i32>} : memref<256x16xf32, #tpu.memory_space<vmem>>, vector<8x16xf32>,
    %c896 = arith.constant 896 : index
    %c0_162 = arith.constant 0 : index
    %232 = tpu.strided_load %arg5[%c896, %c0_162] {strides = array<i32: 2, 1>} : memref<1024x16xf32, #tpu.memory_space<vmem>>, vector<8x16xf32>
    %c897 = arith.constant 897 : index
    %c0_163 = arith.constant 0 : index
    %233 = tpu.strided_load %arg5[%c897, %c0_163] {strides = array<i32: 2, 1>} : memref<1024x16xf32, #tpu.memory_space<vmem>>, vector<8x16xf32>
    %c912 = arith.constant 912 : index
    %c0_164 = arith.constant 0 : index
    %234 = tpu.strided_load %arg5[%c912, %c0_164] {strides = array<i32: 2, 1>} : memref<1024x16xf32, #tpu.memory_space<vmem>>, vector<8x16xf32>
    %c913 = arith.constant 913 : index
    %c0_165 = arith.constant 0 : index
    %235 = tpu.strided_load %arg5[%c913, %c0_165] {strides = array<i32: 2, 1>} : memref<1024x16xf32, #tpu.memory_space<vmem>>, vector<8x16xf32>
    %236 = arith.maximumf %232, %233 : vector<8x16xf32>
    %237 = arith.maximumf %234, %235 : vector<8x16xf32>
    %238 = arith.maximumf %236, %237 : vector<8x16xf32>
    %c224_166 = arith.constant 224 : index
    %c0_167 = arith.constant 0 : index
    %239 = vector.load %arg3[%c224_166, %c0_167] : memref<256x16xf32, #tpu.memory_space<vmem>>, vector<8x16xf32>
    tpu.vector_store %arg3[%c224_166, %c0_167], %238 {strides = array<i32>} : memref<256x16xf32, #tpu.memory_space<vmem>>, vector<8x16xf32>,
    %c928 = arith.constant 928 : index
    %c0_168 = arith.constant 0 : index
    %240 = tpu.strided_load %arg5[%c928, %c0_168] {strides = array<i32: 2, 1>} : memref<1024x16xf32, #tpu.memory_space<vmem>>, vector<8x16xf32>
    %c929 = arith.constant 929 : index
    %c0_169 = arith.constant 0 : index
    %241 = tpu.strided_load %arg5[%c929, %c0_169] {strides = array<i32: 2, 1>} : memref<1024x16xf32, #tpu.memory_space<vmem>>, vector<8x16xf32>
    %c944 = arith.constant 944 : index
    %c0_170 = arith.constant 0 : index
    %242 = tpu.strided_load %arg5[%c944, %c0_170] {strides = array<i32: 2, 1>} : memref<1024x16xf32, #tpu.memory_space<vmem>>, vector<8x16xf32>
    %c945 = arith.constant 945 : index
    %c0_171 = arith.constant 0 : index
    %243 = tpu.strided_load %arg5[%c945, %c0_171] {strides = array<i32: 2, 1>} : memref<1024x16xf32, #tpu.memory_space<vmem>>, vector<8x16xf32>
    %244 = arith.maximumf %240, %241 : vector<8x16xf32>
    %245 = arith.maximumf %242, %243 : vector<8x16xf32>
    %246 = arith.maximumf %244, %245 : vector<8x16xf32>
    %c232 = arith.constant 232 : index
    %c0_172 = arith.constant 0 : index
    %247 = vector.load %arg3[%c232, %c0_172] : memref<256x16xf32, #tpu.memory_space<vmem>>, vector<8x16xf32>
    tpu.vector_store %arg3[%c232, %c0_172], %246 {strides = array<i32>} : memref<256x16xf32, #tpu.memory_space<vmem>>, vector<8x16xf32>,
    %c960 = arith.constant 960 : index
    %c0_173 = arith.constant 0 : index
    %248 = tpu.strided_load %arg5[%c960, %c0_173] {strides = array<i32: 2, 1>} : memref<1024x16xf32, #tpu.memory_space<vmem>>, vector<8x16xf32>
    %c961 = arith.constant 961 : index
    %c0_174 = arith.constant 0 : index
    %249 = tpu.strided_load %arg5[%c961, %c0_174] {strides = array<i32: 2, 1>} : memref<1024x16xf32, #tpu.memory_space<vmem>>, vector<8x16xf32>
    %c976 = arith.constant 976 : index
    %c0_175 = arith.constant 0 : index
    %250 = tpu.strided_load %arg5[%c976, %c0_175] {strides = array<i32: 2, 1>} : memref<1024x16xf32, #tpu.memory_space<vmem>>, vector<8x16xf32>
    %c977 = arith.constant 977 : index
    %c0_176 = arith.constant 0 : index
    %251 = tpu.strided_load %arg5[%c977, %c0_176] {strides = array<i32: 2, 1>} : memref<1024x16xf32, #tpu.memory_space<vmem>>, vector<8x16xf32>
    %252 = arith.maximumf %248, %249 : vector<8x16xf32>
    %253 = arith.maximumf %250, %251 : vector<8x16xf32>
    %254 = arith.maximumf %252, %253 : vector<8x16xf32>
    %c240_177 = arith.constant 240 : index
    %c0_178 = arith.constant 0 : index
    %255 = vector.load %arg3[%c240_177, %c0_178] : memref<256x16xf32, #tpu.memory_space<vmem>>, vector<8x16xf32>
    tpu.vector_store %arg3[%c240_177, %c0_178], %254 {strides = array<i32>} : memref<256x16xf32, #tpu.memory_space<vmem>>, vector<8x16xf32>,
    %c992 = arith.constant 992 : index
    %c0_179 = arith.constant 0 : index
    %256 = tpu.strided_load %arg5[%c992, %c0_179] {strides = array<i32: 2, 1>} : memref<1024x16xf32, #tpu.memory_space<vmem>>, vector<8x16xf32>
    %c993 = arith.constant 993 : index
    %c0_180 = arith.constant 0 : index
    %257 = tpu.strided_load %arg5[%c993, %c0_180] {strides = array<i32: 2, 1>} : memref<1024x16xf32, #tpu.memory_space<vmem>>, vector<8x16xf32>
    %c1008 = arith.constant 1008 : index
    %c0_181 = arith.constant 0 : index
    %258 = tpu.strided_load %arg5[%c1008, %c0_181] {strides = array<i32: 2, 1>} : memref<1024x16xf32, #tpu.memory_space<vmem>>, vector<8x16xf32>
    %c1009 = arith.constant 1009 : index
    %c0_182 = arith.constant 0 : index
    %259 = tpu.strided_load %arg5[%c1009, %c0_182] {strides = array<i32: 2, 1>} : memref<1024x16xf32, #tpu.memory_space<vmem>>, vector<8x16xf32>
    %260 = arith.maximumf %256, %257 : vector<8x16xf32>
    %261 = arith.maximumf %258, %259 : vector<8x16xf32>
    %262 = arith.maximumf %260, %261 : vector<8x16xf32>
    %c248 = arith.constant 248 : index
    %c0_183 = arith.constant 0 : index
    %263 = vector.load %arg3[%c248, %c0_183] : memref<256x16xf32, #tpu.memory_space<vmem>>, vector<8x16xf32>
    tpu.vector_store %arg3[%c248, %c0_183], %262 {strides = array<i32>} : memref<256x16xf32, #tpu.memory_space<vmem>>, vector<8x16xf32>,
    %c0_184 = arith.constant 0 : index
    %c0_185 = arith.constant 0 : index
    %264 = vector.load %arg3[%c0_184, %c0_185] : memref<256x16xf32, #tpu.memory_space<vmem>>, vector<256x16xf32>
    %cst_186 = arith.constant dense<0.000000e+00> : vector<16xf32>
    %265 = vector.multi_reduction <add>, %264, %cst_186 [0] : vector<256x16xf32> to vector<16xf32>
    %266 = vector.shape_cast %265 : vector<16xf32> to vector<1x16xf32>
    %267 = arith.mulf %264, %264 : vector<256x16xf32>
    %cst_187 = arith.constant dense<0.000000e+00> : vector<16xf32>
    %268 = vector.multi_reduction <add>, %267, %cst_187 [0] : vector<256x16xf32> to vector<16xf32>
    %269 = vector.shape_cast %268 : vector<16xf32> to vector<1x16xf32>
    %270 = vector.shape_cast %266 : vector<1x16xf32> to vector<1x1x16xf32>
    %c0_188 = arith.constant 0 : index
    %c0_189 = arith.constant 0 : index
    %c0_190 = arith.constant 0 : index
    %271 = vector.load %arg4[%c0_188, %c0_189, %c0_190] : memref<1x2x16xf32, #tpu.memory_space<vmem>>, vector<1x1x16xf32>
    tpu.vector_store %arg4[%c0_188, %c0_189, %c0_190], %270 {strides = array<i32>} : memref<1x2x16xf32, #tpu.memory_space<vmem>>, vector<1x1x16xf32>,
    %272 = vector.shape_cast %269 : vector<1x16xf32> to vector<1x1x16xf32>
    %c0_191 = arith.constant 0 : index
    %c1_192 = arith.constant 1 : index
    %c0_193 = arith.constant 0 : index
    %273 = vector.load %arg4[%c0_191, %c1_192, %c0_193] : memref<1x2x16xf32, #tpu.memory_space<vmem>>, vector<1x1x16xf32>
    tpu.vector_store %arg4[%c0_191, %c1_192, %c0_193], %272 {strides = array<i32>} : memref<1x2x16xf32, #tpu.memory_space<vmem>>, vector<1x1x16xf32>,
    return
  }
  func.func @transform_0(%arg0: i32) -> (i32, i32) {
    %c0_i32 = arith.constant 0 : i32
    %c0_i32_0 = arith.constant 0 : i32
    return %arg0, %c0_i32 : i32, i32
  }
  func.func @transform_1(%arg0: i32) -> (i32, i32) {
    %c0_i32 = arith.constant 0 : i32
    %c0_i32_0 = arith.constant 0 : i32
    %c0_i32_1 = arith.constant 0 : i32
    return %c0_i32, %c0_i32_0 : i32, i32
  }
  func.func @transform_2(%arg0: i32) -> (i32, i32) {
    %c0_i32 = arith.constant 0 : i32
    %c0_i32_0 = arith.constant 0 : i32
    return %arg0, %c0_i32 : i32, i32
  }
  func.func @transform_3(%arg0: i32) -> (i32, i32, i32) {
    %c0_i32 = arith.constant 0 : i32
    %c0_i32_0 = arith.constant 0 : i32
    %c0_i32_1 = arith.constant 0 : i32
    return %arg0, %c0_i32, %c0_i32_0 : i32, i32, i32
  }
}

module attributes {stable_mosaic.version = 11 : i64} {
  func.func @kernel(%arg0: i32, %arg1: memref<512x432xbf16, #tpu.memory_space<vmem>>, %arg2: memref<432x24xbf16, #tpu.memory_space<vmem>>, %arg3: memref<512x16xbf16, #tpu.memory_space<vmem>>, %arg4: memref<16x24xbf16, #tpu.memory_space<vmem>>, %arg5: memref<128x24xf32, #tpu.memory_space<vmem>>, %arg6: memref<1x2x24xf32, #tpu.memory_space<vmem>>, %arg7: memref<512x24xf32, #tpu.memory_space<vmem>>) attributes {dimension_semantics = [#tpu.dimension_semantics<parallel>], iteration_bounds = array<i64: 4>, scalar_prefetch = 0 : i64, scratch_operands = 1 : i64, tpu.core_type = #tpu.core_type<tc>, window_params = [{transform_indices = @transform_0, window_bounds = array<i64: 512, 432>}, {pipeline_mode = #tpu.pipeline_mode<synchronous>, transform_indices = @transform_1, window_bounds = array<i64: 432, 24>}, {transform_indices = @transform_2, window_bounds = array<i64: 512, 16>}, {pipeline_mode = #tpu.pipeline_mode<synchronous>, transform_indices = @transform_3, window_bounds = array<i64: 16, 24>}, {transform_indices = @transform_4, window_bounds = array<i64: 128, 24>}, {transform_indices = @transform_5, window_bounds = array<i64: 1, 2, 24>}]} {
    %c0 = arith.constant 0 : index
    %c0_0 = arith.constant 0 : index
    %0 = vector.load %arg1[%c0, %c0_0] : memref<512x432xbf16, #tpu.memory_space<vmem>>, vector<512x432xbf16>
    %c0_1 = arith.constant 0 : index
    %c0_2 = arith.constant 0 : index
    %1 = vector.load %arg2[%c0_1, %c0_2] : memref<432x24xbf16, #tpu.memory_space<vmem>>, vector<432x24xbf16>
    %cst = arith.constant dense<0.000000e+00> : vector<512x24xf32>
    %2 = tpu.matmul %0, %1, %cst {dimension_numbers = #tpu.dot_dimension_numbers<[1], [0], [0], [1], [0, 0, 1, 1], [], []>} : vector<512x432xbf16>, vector<432x24xbf16>, vector<512x24xf32> -> vector<512x24xf32>
    %cst_3 = arith.constant 1.000000e+00 : f32
    %3 = vector.broadcast %cst_3 : f32 to vector<512x24xf32>
    %4 = arith.addf %3, %2 : vector<512x24xf32>
    %cst_4 = arith.constant 0.000000e+00 : f32
    %5 = vector.broadcast %cst_4 : f32 to vector<512x24xf32>
    %6 = arith.maximumf %4, %5 : vector<512x24xf32>
    %c0_5 = arith.constant 0 : index
    %c0_6 = arith.constant 0 : index
    %7 = vector.load %arg3[%c0_5, %c0_6] : memref<512x16xbf16, #tpu.memory_space<vmem>>, vector<512x16xbf16>
    %c0_7 = arith.constant 0 : index
    %c0_8 = arith.constant 0 : index
    %8 = vector.load %arg4[%c0_7, %c0_8] : memref<16x24xbf16, #tpu.memory_space<vmem>>, vector<16x24xbf16>
    %cst_9 = arith.constant dense<0.000000e+00> : vector<512x24xf32>
    %9 = tpu.matmul %7, %8, %cst_9 {dimension_numbers = #tpu.dot_dimension_numbers<[1], [0], [0], [1], [0, 0, 1, 1], [], []>} : vector<512x16xbf16>, vector<16x24xbf16>, vector<512x24xf32> -> vector<512x24xf32>
    %10 = arith.addf %6, %9 : vector<512x24xf32>
    %c0_10 = arith.constant 0 : index
    %c0_11 = arith.constant 0 : index
    %11 = vector.load %arg7[%c0_10, %c0_11] : memref<512x24xf32, #tpu.memory_space<vmem>>, vector<512x24xf32>
    tpu.vector_store %arg7[%c0_10, %c0_11], %10 {strides = array<i32>} : memref<512x24xf32, #tpu.memory_space<vmem>>, vector<512x24xf32>,
    %c0_12 = arith.constant 0 : index
    %c0_13 = arith.constant 0 : index
    %12 = tpu.strided_load %arg7[%c0_12, %c0_13] {strides = array<i32: 2, 1>} : memref<512x24xf32, #tpu.memory_space<vmem>>, vector<4x24xf32>
    %c1 = arith.constant 1 : index
    %c0_14 = arith.constant 0 : index
    %13 = tpu.strided_load %arg7[%c1, %c0_14] {strides = array<i32: 2, 1>} : memref<512x24xf32, #tpu.memory_space<vmem>>, vector<4x24xf32>
    %c8 = arith.constant 8 : index
    %c0_15 = arith.constant 0 : index
    %14 = tpu.strided_load %arg7[%c8, %c0_15] {strides = array<i32: 2, 1>} : memref<512x24xf32, #tpu.memory_space<vmem>>, vector<4x24xf32>
    %c9 = arith.constant 9 : index
    %c0_16 = arith.constant 0 : index
    %15 = tpu.strided_load %arg7[%c9, %c0_16] {strides = array<i32: 2, 1>} : memref<512x24xf32, #tpu.memory_space<vmem>>, vector<4x24xf32>
    %16 = arith.maximumf %12, %13 : vector<4x24xf32>
    %17 = arith.maximumf %14, %15 : vector<4x24xf32>
    %18 = arith.maximumf %16, %17 : vector<4x24xf32>
    %c0_17 = arith.constant 0 : index
    %c0_18 = arith.constant 0 : index
    %19 = vector.load %arg5[%c0_17, %c0_18] : memref<128x24xf32, #tpu.memory_space<vmem>>, vector<4x24xf32>
    tpu.vector_store %arg5[%c0_17, %c0_18], %18 {strides = array<i32>} : memref<128x24xf32, #tpu.memory_space<vmem>>, vector<4x24xf32>,
    %c16 = arith.constant 16 : index
    %c0_19 = arith.constant 0 : index
    %20 = tpu.strided_load %arg7[%c16, %c0_19] {strides = array<i32: 2, 1>} : memref<512x24xf32, #tpu.memory_space<vmem>>, vector<4x24xf32>
    %c17 = arith.constant 17 : index
    %c0_20 = arith.constant 0 : index
    %21 = tpu.strided_load %arg7[%c17, %c0_20] {strides = array<i32: 2, 1>} : memref<512x24xf32, #tpu.memory_space<vmem>>, vector<4x24xf32>
    %c24 = arith.constant 24 : index
    %c0_21 = arith.constant 0 : index
    %22 = tpu.strided_load %arg7[%c24, %c0_21] {strides = array<i32: 2, 1>} : memref<512x24xf32, #tpu.memory_space<vmem>>, vector<4x24xf32>
    %c25 = arith.constant 25 : index
    %c0_22 = arith.constant 0 : index
    %23 = tpu.strided_load %arg7[%c25, %c0_22] {strides = array<i32: 2, 1>} : memref<512x24xf32, #tpu.memory_space<vmem>>, vector<4x24xf32>
    %24 = arith.maximumf %20, %21 : vector<4x24xf32>
    %25 = arith.maximumf %22, %23 : vector<4x24xf32>
    %26 = arith.maximumf %24, %25 : vector<4x24xf32>
    %c4 = arith.constant 4 : index
    %c0_23 = arith.constant 0 : index
    %27 = vector.load %arg5[%c4, %c0_23] : memref<128x24xf32, #tpu.memory_space<vmem>>, vector<4x24xf32>
    tpu.vector_store %arg5[%c4, %c0_23], %26 {strides = array<i32>} : memref<128x24xf32, #tpu.memory_space<vmem>>, vector<4x24xf32>,
    %c32 = arith.constant 32 : index
    %c0_24 = arith.constant 0 : index
    %28 = tpu.strided_load %arg7[%c32, %c0_24] {strides = array<i32: 2, 1>} : memref<512x24xf32, #tpu.memory_space<vmem>>, vector<4x24xf32>
    %c33 = arith.constant 33 : index
    %c0_25 = arith.constant 0 : index
    %29 = tpu.strided_load %arg7[%c33, %c0_25] {strides = array<i32: 2, 1>} : memref<512x24xf32, #tpu.memory_space<vmem>>, vector<4x24xf32>
    %c40 = arith.constant 40 : index
    %c0_26 = arith.constant 0 : index
    %30 = tpu.strided_load %arg7[%c40, %c0_26] {strides = array<i32: 2, 1>} : memref<512x24xf32, #tpu.memory_space<vmem>>, vector<4x24xf32>
    %c41 = arith.constant 41 : index
    %c0_27 = arith.constant 0 : index
    %31 = tpu.strided_load %arg7[%c41, %c0_27] {strides = array<i32: 2, 1>} : memref<512x24xf32, #tpu.memory_space<vmem>>, vector<4x24xf32>
    %32 = arith.maximumf %28, %29 : vector<4x24xf32>
    %33 = arith.maximumf %30, %31 : vector<4x24xf32>
    %34 = arith.maximumf %32, %33 : vector<4x24xf32>
    %c8_28 = arith.constant 8 : index
    %c0_29 = arith.constant 0 : index
    %35 = vector.load %arg5[%c8_28, %c0_29] : memref<128x24xf32, #tpu.memory_space<vmem>>, vector<4x24xf32>
    tpu.vector_store %arg5[%c8_28, %c0_29], %34 {strides = array<i32>} : memref<128x24xf32, #tpu.memory_space<vmem>>, vector<4x24xf32>,
    %c48 = arith.constant 48 : index
    %c0_30 = arith.constant 0 : index
    %36 = tpu.strided_load %arg7[%c48, %c0_30] {strides = array<i32: 2, 1>} : memref<512x24xf32, #tpu.memory_space<vmem>>, vector<4x24xf32>
    %c49 = arith.constant 49 : index
    %c0_31 = arith.constant 0 : index
    %37 = tpu.strided_load %arg7[%c49, %c0_31] {strides = array<i32: 2, 1>} : memref<512x24xf32, #tpu.memory_space<vmem>>, vector<4x24xf32>
    %c56 = arith.constant 56 : index
    %c0_32 = arith.constant 0 : index
    %38 = tpu.strided_load %arg7[%c56, %c0_32] {strides = array<i32: 2, 1>} : memref<512x24xf32, #tpu.memory_space<vmem>>, vector<4x24xf32>
    %c57 = arith.constant 57 : index
    %c0_33 = arith.constant 0 : index
    %39 = tpu.strided_load %arg7[%c57, %c0_33] {strides = array<i32: 2, 1>} : memref<512x24xf32, #tpu.memory_space<vmem>>, vector<4x24xf32>
    %40 = arith.maximumf %36, %37 : vector<4x24xf32>
    %41 = arith.maximumf %38, %39 : vector<4x24xf32>
    %42 = arith.maximumf %40, %41 : vector<4x24xf32>
    %c12 = arith.constant 12 : index
    %c0_34 = arith.constant 0 : index
    %43 = vector.load %arg5[%c12, %c0_34] : memref<128x24xf32, #tpu.memory_space<vmem>>, vector<4x24xf32>
    tpu.vector_store %arg5[%c12, %c0_34], %42 {strides = array<i32>} : memref<128x24xf32, #tpu.memory_space<vmem>>, vector<4x24xf32>,
    %c64 = arith.constant 64 : index
    %c0_35 = arith.constant 0 : index
    %44 = tpu.strided_load %arg7[%c64, %c0_35] {strides = array<i32: 2, 1>} : memref<512x24xf32, #tpu.memory_space<vmem>>, vector<4x24xf32>
    %c65 = arith.constant 65 : index
    %c0_36 = arith.constant 0 : index
    %45 = tpu.strided_load %arg7[%c65, %c0_36] {strides = array<i32: 2, 1>} : memref<512x24xf32, #tpu.memory_space<vmem>>, vector<4x24xf32>
    %c72 = arith.constant 72 : index
    %c0_37 = arith.constant 0 : index
    %46 = tpu.strided_load %arg7[%c72, %c0_37] {strides = array<i32: 2, 1>} : memref<512x24xf32, #tpu.memory_space<vmem>>, vector<4x24xf32>
    %c73 = arith.constant 73 : index
    %c0_38 = arith.constant 0 : index
    %47 = tpu.strided_load %arg7[%c73, %c0_38] {strides = array<i32: 2, 1>} : memref<512x24xf32, #tpu.memory_space<vmem>>, vector<4x24xf32>
    %48 = arith.maximumf %44, %45 : vector<4x24xf32>
    %49 = arith.maximumf %46, %47 : vector<4x24xf32>
    %50 = arith.maximumf %48, %49 : vector<4x24xf32>
    %c16_39 = arith.constant 16 : index
    %c0_40 = arith.constant 0 : index
    %51 = vector.load %arg5[%c16_39, %c0_40] : memref<128x24xf32, #tpu.memory_space<vmem>>, vector<4x24xf32>
    tpu.vector_store %arg5[%c16_39, %c0_40], %50 {strides = array<i32>} : memref<128x24xf32, #tpu.memory_space<vmem>>, vector<4x24xf32>,
    %c80 = arith.constant 80 : index
    %c0_41 = arith.constant 0 : index
    %52 = tpu.strided_load %arg7[%c80, %c0_41] {strides = array<i32: 2, 1>} : memref<512x24xf32, #tpu.memory_space<vmem>>, vector<4x24xf32>
    %c81 = arith.constant 81 : index
    %c0_42 = arith.constant 0 : index
    %53 = tpu.strided_load %arg7[%c81, %c0_42] {strides = array<i32: 2, 1>} : memref<512x24xf32, #tpu.memory_space<vmem>>, vector<4x24xf32>
    %c88 = arith.constant 88 : index
    %c0_43 = arith.constant 0 : index
    %54 = tpu.strided_load %arg7[%c88, %c0_43] {strides = array<i32: 2, 1>} : memref<512x24xf32, #tpu.memory_space<vmem>>, vector<4x24xf32>
    %c89 = arith.constant 89 : index
    %c0_44 = arith.constant 0 : index
    %55 = tpu.strided_load %arg7[%c89, %c0_44] {strides = array<i32: 2, 1>} : memref<512x24xf32, #tpu.memory_space<vmem>>, vector<4x24xf32>
    %56 = arith.maximumf %52, %53 : vector<4x24xf32>
    %57 = arith.maximumf %54, %55 : vector<4x24xf32>
    %58 = arith.maximumf %56, %57 : vector<4x24xf32>
    %c20 = arith.constant 20 : index
    %c0_45 = arith.constant 0 : index
    %59 = vector.load %arg5[%c20, %c0_45] : memref<128x24xf32, #tpu.memory_space<vmem>>, vector<4x24xf32>
    tpu.vector_store %arg5[%c20, %c0_45], %58 {strides = array<i32>} : memref<128x24xf32, #tpu.memory_space<vmem>>, vector<4x24xf32>,
    %c96 = arith.constant 96 : index
    %c0_46 = arith.constant 0 : index
    %60 = tpu.strided_load %arg7[%c96, %c0_46] {strides = array<i32: 2, 1>} : memref<512x24xf32, #tpu.memory_space<vmem>>, vector<4x24xf32>
    %c97 = arith.constant 97 : index
    %c0_47 = arith.constant 0 : index
    %61 = tpu.strided_load %arg7[%c97, %c0_47] {strides = array<i32: 2, 1>} : memref<512x24xf32, #tpu.memory_space<vmem>>, vector<4x24xf32>
    %c104 = arith.constant 104 : index
    %c0_48 = arith.constant 0 : index
    %62 = tpu.strided_load %arg7[%c104, %c0_48] {strides = array<i32: 2, 1>} : memref<512x24xf32, #tpu.memory_space<vmem>>, vector<4x24xf32>
    %c105 = arith.constant 105 : index
    %c0_49 = arith.constant 0 : index
    %63 = tpu.strided_load %arg7[%c105, %c0_49] {strides = array<i32: 2, 1>} : memref<512x24xf32, #tpu.memory_space<vmem>>, vector<4x24xf32>
    %64 = arith.maximumf %60, %61 : vector<4x24xf32>
    %65 = arith.maximumf %62, %63 : vector<4x24xf32>
    %66 = arith.maximumf %64, %65 : vector<4x24xf32>
    %c24_50 = arith.constant 24 : index
    %c0_51 = arith.constant 0 : index
    %67 = vector.load %arg5[%c24_50, %c0_51] : memref<128x24xf32, #tpu.memory_space<vmem>>, vector<4x24xf32>
    tpu.vector_store %arg5[%c24_50, %c0_51], %66 {strides = array<i32>} : memref<128x24xf32, #tpu.memory_space<vmem>>, vector<4x24xf32>,
    %c112 = arith.constant 112 : index
    %c0_52 = arith.constant 0 : index
    %68 = tpu.strided_load %arg7[%c112, %c0_52] {strides = array<i32: 2, 1>} : memref<512x24xf32, #tpu.memory_space<vmem>>, vector<4x24xf32>
    %c113 = arith.constant 113 : index
    %c0_53 = arith.constant 0 : index
    %69 = tpu.strided_load %arg7[%c113, %c0_53] {strides = array<i32: 2, 1>} : memref<512x24xf32, #tpu.memory_space<vmem>>, vector<4x24xf32>
    %c120 = arith.constant 120 : index
    %c0_54 = arith.constant 0 : index
    %70 = tpu.strided_load %arg7[%c120, %c0_54] {strides = array<i32: 2, 1>} : memref<512x24xf32, #tpu.memory_space<vmem>>, vector<4x24xf32>
    %c121 = arith.constant 121 : index
    %c0_55 = arith.constant 0 : index
    %71 = tpu.strided_load %arg7[%c121, %c0_55] {strides = array<i32: 2, 1>} : memref<512x24xf32, #tpu.memory_space<vmem>>, vector<4x24xf32>
    %72 = arith.maximumf %68, %69 : vector<4x24xf32>
    %73 = arith.maximumf %70, %71 : vector<4x24xf32>
    %74 = arith.maximumf %72, %73 : vector<4x24xf32>
    %c28 = arith.constant 28 : index
    %c0_56 = arith.constant 0 : index
    %75 = vector.load %arg5[%c28, %c0_56] : memref<128x24xf32, #tpu.memory_space<vmem>>, vector<4x24xf32>
    tpu.vector_store %arg5[%c28, %c0_56], %74 {strides = array<i32>} : memref<128x24xf32, #tpu.memory_space<vmem>>, vector<4x24xf32>,
    %c128 = arith.constant 128 : index
    %c0_57 = arith.constant 0 : index
    %76 = tpu.strided_load %arg7[%c128, %c0_57] {strides = array<i32: 2, 1>} : memref<512x24xf32, #tpu.memory_space<vmem>>, vector<4x24xf32>
    %c129 = arith.constant 129 : index
    %c0_58 = arith.constant 0 : index
    %77 = tpu.strided_load %arg7[%c129, %c0_58] {strides = array<i32: 2, 1>} : memref<512x24xf32, #tpu.memory_space<vmem>>, vector<4x24xf32>
    %c136 = arith.constant 136 : index
    %c0_59 = arith.constant 0 : index
    %78 = tpu.strided_load %arg7[%c136, %c0_59] {strides = array<i32: 2, 1>} : memref<512x24xf32, #tpu.memory_space<vmem>>, vector<4x24xf32>
    %c137 = arith.constant 137 : index
    %c0_60 = arith.constant 0 : index
    %79 = tpu.strided_load %arg7[%c137, %c0_60] {strides = array<i32: 2, 1>} : memref<512x24xf32, #tpu.memory_space<vmem>>, vector<4x24xf32>
    %80 = arith.maximumf %76, %77 : vector<4x24xf32>
    %81 = arith.maximumf %78, %79 : vector<4x24xf32>
    %82 = arith.maximumf %80, %81 : vector<4x24xf32>
    %c32_61 = arith.constant 32 : index
    %c0_62 = arith.constant 0 : index
    %83 = vector.load %arg5[%c32_61, %c0_62] : memref<128x24xf32, #tpu.memory_space<vmem>>, vector<4x24xf32>
    tpu.vector_store %arg5[%c32_61, %c0_62], %82 {strides = array<i32>} : memref<128x24xf32, #tpu.memory_space<vmem>>, vector<4x24xf32>,
    %c144 = arith.constant 144 : index
    %c0_63 = arith.constant 0 : index
    %84 = tpu.strided_load %arg7[%c144, %c0_63] {strides = array<i32: 2, 1>} : memref<512x24xf32, #tpu.memory_space<vmem>>, vector<4x24xf32>
    %c145 = arith.constant 145 : index
    %c0_64 = arith.constant 0 : index
    %85 = tpu.strided_load %arg7[%c145, %c0_64] {strides = array<i32: 2, 1>} : memref<512x24xf32, #tpu.memory_space<vmem>>, vector<4x24xf32>
    %c152 = arith.constant 152 : index
    %c0_65 = arith.constant 0 : index
    %86 = tpu.strided_load %arg7[%c152, %c0_65] {strides = array<i32: 2, 1>} : memref<512x24xf32, #tpu.memory_space<vmem>>, vector<4x24xf32>
    %c153 = arith.constant 153 : index
    %c0_66 = arith.constant 0 : index
    %87 = tpu.strided_load %arg7[%c153, %c0_66] {strides = array<i32: 2, 1>} : memref<512x24xf32, #tpu.memory_space<vmem>>, vector<4x24xf32>
    %88 = arith.maximumf %84, %85 : vector<4x24xf32>
    %89 = arith.maximumf %86, %87 : vector<4x24xf32>
    %90 = arith.maximumf %88, %89 : vector<4x24xf32>
    %c36 = arith.constant 36 : index
    %c0_67 = arith.constant 0 : index
    %91 = vector.load %arg5[%c36, %c0_67] : memref<128x24xf32, #tpu.memory_space<vmem>>, vector<4x24xf32>
    tpu.vector_store %arg5[%c36, %c0_67], %90 {strides = array<i32>} : memref<128x24xf32, #tpu.memory_space<vmem>>, vector<4x24xf32>,
    %c160 = arith.constant 160 : index
    %c0_68 = arith.constant 0 : index
    %92 = tpu.strided_load %arg7[%c160, %c0_68] {strides = array<i32: 2, 1>} : memref<512x24xf32, #tpu.memory_space<vmem>>, vector<4x24xf32>
    %c161 = arith.constant 161 : index
    %c0_69 = arith.constant 0 : index
    %93 = tpu.strided_load %arg7[%c161, %c0_69] {strides = array<i32: 2, 1>} : memref<512x24xf32, #tpu.memory_space<vmem>>, vector<4x24xf32>
    %c168 = arith.constant 168 : index
    %c0_70 = arith.constant 0 : index
    %94 = tpu.strided_load %arg7[%c168, %c0_70] {strides = array<i32: 2, 1>} : memref<512x24xf32, #tpu.memory_space<vmem>>, vector<4x24xf32>
    %c169 = arith.constant 169 : index
    %c0_71 = arith.constant 0 : index
    %95 = tpu.strided_load %arg7[%c169, %c0_71] {strides = array<i32: 2, 1>} : memref<512x24xf32, #tpu.memory_space<vmem>>, vector<4x24xf32>
    %96 = arith.maximumf %92, %93 : vector<4x24xf32>
    %97 = arith.maximumf %94, %95 : vector<4x24xf32>
    %98 = arith.maximumf %96, %97 : vector<4x24xf32>
    %c40_72 = arith.constant 40 : index
    %c0_73 = arith.constant 0 : index
    %99 = vector.load %arg5[%c40_72, %c0_73] : memref<128x24xf32, #tpu.memory_space<vmem>>, vector<4x24xf32>
    tpu.vector_store %arg5[%c40_72, %c0_73], %98 {strides = array<i32>} : memref<128x24xf32, #tpu.memory_space<vmem>>, vector<4x24xf32>,
    %c176 = arith.constant 176 : index
    %c0_74 = arith.constant 0 : index
    %100 = tpu.strided_load %arg7[%c176, %c0_74] {strides = array<i32: 2, 1>} : memref<512x24xf32, #tpu.memory_space<vmem>>, vector<4x24xf32>
    %c177 = arith.constant 177 : index
    %c0_75 = arith.constant 0 : index
    %101 = tpu.strided_load %arg7[%c177, %c0_75] {strides = array<i32: 2, 1>} : memref<512x24xf32, #tpu.memory_space<vmem>>, vector<4x24xf32>
    %c184 = arith.constant 184 : index
    %c0_76 = arith.constant 0 : index
    %102 = tpu.strided_load %arg7[%c184, %c0_76] {strides = array<i32: 2, 1>} : memref<512x24xf32, #tpu.memory_space<vmem>>, vector<4x24xf32>
    %c185 = arith.constant 185 : index
    %c0_77 = arith.constant 0 : index
    %103 = tpu.strided_load %arg7[%c185, %c0_77] {strides = array<i32: 2, 1>} : memref<512x24xf32, #tpu.memory_space<vmem>>, vector<4x24xf32>
    %104 = arith.maximumf %100, %101 : vector<4x24xf32>
    %105 = arith.maximumf %102, %103 : vector<4x24xf32>
    %106 = arith.maximumf %104, %105 : vector<4x24xf32>
    %c44 = arith.constant 44 : index
    %c0_78 = arith.constant 0 : index
    %107 = vector.load %arg5[%c44, %c0_78] : memref<128x24xf32, #tpu.memory_space<vmem>>, vector<4x24xf32>
    tpu.vector_store %arg5[%c44, %c0_78], %106 {strides = array<i32>} : memref<128x24xf32, #tpu.memory_space<vmem>>, vector<4x24xf32>,
    %c192 = arith.constant 192 : index
    %c0_79 = arith.constant 0 : index
    %108 = tpu.strided_load %arg7[%c192, %c0_79] {strides = array<i32: 2, 1>} : memref<512x24xf32, #tpu.memory_space<vmem>>, vector<4x24xf32>
    %c193 = arith.constant 193 : index
    %c0_80 = arith.constant 0 : index
    %109 = tpu.strided_load %arg7[%c193, %c0_80] {strides = array<i32: 2, 1>} : memref<512x24xf32, #tpu.memory_space<vmem>>, vector<4x24xf32>
    %c200 = arith.constant 200 : index
    %c0_81 = arith.constant 0 : index
    %110 = tpu.strided_load %arg7[%c200, %c0_81] {strides = array<i32: 2, 1>} : memref<512x24xf32, #tpu.memory_space<vmem>>, vector<4x24xf32>
    %c201 = arith.constant 201 : index
    %c0_82 = arith.constant 0 : index
    %111 = tpu.strided_load %arg7[%c201, %c0_82] {strides = array<i32: 2, 1>} : memref<512x24xf32, #tpu.memory_space<vmem>>, vector<4x24xf32>
    %112 = arith.maximumf %108, %109 : vector<4x24xf32>
    %113 = arith.maximumf %110, %111 : vector<4x24xf32>
    %114 = arith.maximumf %112, %113 : vector<4x24xf32>
    %c48_83 = arith.constant 48 : index
    %c0_84 = arith.constant 0 : index
    %115 = vector.load %arg5[%c48_83, %c0_84] : memref<128x24xf32, #tpu.memory_space<vmem>>, vector<4x24xf32>
    tpu.vector_store %arg5[%c48_83, %c0_84], %114 {strides = array<i32>} : memref<128x24xf32, #tpu.memory_space<vmem>>, vector<4x24xf32>,
    %c208 = arith.constant 208 : index
    %c0_85 = arith.constant 0 : index
    %116 = tpu.strided_load %arg7[%c208, %c0_85] {strides = array<i32: 2, 1>} : memref<512x24xf32, #tpu.memory_space<vmem>>, vector<4x24xf32>
    %c209 = arith.constant 209 : index
    %c0_86 = arith.constant 0 : index
    %117 = tpu.strided_load %arg7[%c209, %c0_86] {strides = array<i32: 2, 1>} : memref<512x24xf32, #tpu.memory_space<vmem>>, vector<4x24xf32>
    %c216 = arith.constant 216 : index
    %c0_87 = arith.constant 0 : index
    %118 = tpu.strided_load %arg7[%c216, %c0_87] {strides = array<i32: 2, 1>} : memref<512x24xf32, #tpu.memory_space<vmem>>, vector<4x24xf32>
    %c217 = arith.constant 217 : index
    %c0_88 = arith.constant 0 : index
    %119 = tpu.strided_load %arg7[%c217, %c0_88] {strides = array<i32: 2, 1>} : memref<512x24xf32, #tpu.memory_space<vmem>>, vector<4x24xf32>
    %120 = arith.maximumf %116, %117 : vector<4x24xf32>
    %121 = arith.maximumf %118, %119 : vector<4x24xf32>
    %122 = arith.maximumf %120, %121 : vector<4x24xf32>
    %c52 = arith.constant 52 : index
    %c0_89 = arith.constant 0 : index
    %123 = vector.load %arg5[%c52, %c0_89] : memref<128x24xf32, #tpu.memory_space<vmem>>, vector<4x24xf32>
    tpu.vector_store %arg5[%c52, %c0_89], %122 {strides = array<i32>} : memref<128x24xf32, #tpu.memory_space<vmem>>, vector<4x24xf32>,
    %c224 = arith.constant 224 : index
    %c0_90 = arith.constant 0 : index
    %124 = tpu.strided_load %arg7[%c224, %c0_90] {strides = array<i32: 2, 1>} : memref<512x24xf32, #tpu.memory_space<vmem>>, vector<4x24xf32>
    %c225 = arith.constant 225 : index
    %c0_91 = arith.constant 0 : index
    %125 = tpu.strided_load %arg7[%c225, %c0_91] {strides = array<i32: 2, 1>} : memref<512x24xf32, #tpu.memory_space<vmem>>, vector<4x24xf32>
    %c232 = arith.constant 232 : index
    %c0_92 = arith.constant 0 : index
    %126 = tpu.strided_load %arg7[%c232, %c0_92] {strides = array<i32: 2, 1>} : memref<512x24xf32, #tpu.memory_space<vmem>>, vector<4x24xf32>
    %c233 = arith.constant 233 : index
    %c0_93 = arith.constant 0 : index
    %127 = tpu.strided_load %arg7[%c233, %c0_93] {strides = array<i32: 2, 1>} : memref<512x24xf32, #tpu.memory_space<vmem>>, vector<4x24xf32>
    %128 = arith.maximumf %124, %125 : vector<4x24xf32>
    %129 = arith.maximumf %126, %127 : vector<4x24xf32>
    %130 = arith.maximumf %128, %129 : vector<4x24xf32>
    %c56_94 = arith.constant 56 : index
    %c0_95 = arith.constant 0 : index
    %131 = vector.load %arg5[%c56_94, %c0_95] : memref<128x24xf32, #tpu.memory_space<vmem>>, vector<4x24xf32>
    tpu.vector_store %arg5[%c56_94, %c0_95], %130 {strides = array<i32>} : memref<128x24xf32, #tpu.memory_space<vmem>>, vector<4x24xf32>,
    %c240 = arith.constant 240 : index
    %c0_96 = arith.constant 0 : index
    %132 = tpu.strided_load %arg7[%c240, %c0_96] {strides = array<i32: 2, 1>} : memref<512x24xf32, #tpu.memory_space<vmem>>, vector<4x24xf32>
    %c241 = arith.constant 241 : index
    %c0_97 = arith.constant 0 : index
    %133 = tpu.strided_load %arg7[%c241, %c0_97] {strides = array<i32: 2, 1>} : memref<512x24xf32, #tpu.memory_space<vmem>>, vector<4x24xf32>
    %c248 = arith.constant 248 : index
    %c0_98 = arith.constant 0 : index
    %134 = tpu.strided_load %arg7[%c248, %c0_98] {strides = array<i32: 2, 1>} : memref<512x24xf32, #tpu.memory_space<vmem>>, vector<4x24xf32>
    %c249 = arith.constant 249 : index
    %c0_99 = arith.constant 0 : index
    %135 = tpu.strided_load %arg7[%c249, %c0_99] {strides = array<i32: 2, 1>} : memref<512x24xf32, #tpu.memory_space<vmem>>, vector<4x24xf32>
    %136 = arith.maximumf %132, %133 : vector<4x24xf32>
    %137 = arith.maximumf %134, %135 : vector<4x24xf32>
    %138 = arith.maximumf %136, %137 : vector<4x24xf32>
    %c60 = arith.constant 60 : index
    %c0_100 = arith.constant 0 : index
    %139 = vector.load %arg5[%c60, %c0_100] : memref<128x24xf32, #tpu.memory_space<vmem>>, vector<4x24xf32>
    tpu.vector_store %arg5[%c60, %c0_100], %138 {strides = array<i32>} : memref<128x24xf32, #tpu.memory_space<vmem>>, vector<4x24xf32>,
    %c256 = arith.constant 256 : index
    %c0_101 = arith.constant 0 : index
    %140 = tpu.strided_load %arg7[%c256, %c0_101] {strides = array<i32: 2, 1>} : memref<512x24xf32, #tpu.memory_space<vmem>>, vector<4x24xf32>
    %c257 = arith.constant 257 : index
    %c0_102 = arith.constant 0 : index
    %141 = tpu.strided_load %arg7[%c257, %c0_102] {strides = array<i32: 2, 1>} : memref<512x24xf32, #tpu.memory_space<vmem>>, vector<4x24xf32>
    %c264 = arith.constant 264 : index
    %c0_103 = arith.constant 0 : index
    %142 = tpu.strided_load %arg7[%c264, %c0_103] {strides = array<i32: 2, 1>} : memref<512x24xf32, #tpu.memory_space<vmem>>, vector<4x24xf32>
    %c265 = arith.constant 265 : index
    %c0_104 = arith.constant 0 : index
    %143 = tpu.strided_load %arg7[%c265, %c0_104] {strides = array<i32: 2, 1>} : memref<512x24xf32, #tpu.memory_space<vmem>>, vector<4x24xf32>
    %144 = arith.maximumf %140, %141 : vector<4x24xf32>
    %145 = arith.maximumf %142, %143 : vector<4x24xf32>
    %146 = arith.maximumf %144, %145 : vector<4x24xf32>
    %c64_105 = arith.constant 64 : index
    %c0_106 = arith.constant 0 : index
    %147 = vector.load %arg5[%c64_105, %c0_106] : memref<128x24xf32, #tpu.memory_space<vmem>>, vector<4x24xf32>
    tpu.vector_store %arg5[%c64_105, %c0_106], %146 {strides = array<i32>} : memref<128x24xf32, #tpu.memory_space<vmem>>, vector<4x24xf32>,
    %c272 = arith.constant 272 : index
    %c0_107 = arith.constant 0 : index
    %148 = tpu.strided_load %arg7[%c272, %c0_107] {strides = array<i32: 2, 1>} : memref<512x24xf32, #tpu.memory_space<vmem>>, vector<4x24xf32>
    %c273 = arith.constant 273 : index
    %c0_108 = arith.constant 0 : index
    %149 = tpu.strided_load %arg7[%c273, %c0_108] {strides = array<i32: 2, 1>} : memref<512x24xf32, #tpu.memory_space<vmem>>, vector<4x24xf32>
    %c280 = arith.constant 280 : index
    %c0_109 = arith.constant 0 : index
    %150 = tpu.strided_load %arg7[%c280, %c0_109] {strides = array<i32: 2, 1>} : memref<512x24xf32, #tpu.memory_space<vmem>>, vector<4x24xf32>
    %c281 = arith.constant 281 : index
    %c0_110 = arith.constant 0 : index
    %151 = tpu.strided_load %arg7[%c281, %c0_110] {strides = array<i32: 2, 1>} : memref<512x24xf32, #tpu.memory_space<vmem>>, vector<4x24xf32>
    %152 = arith.maximumf %148, %149 : vector<4x24xf32>
    %153 = arith.maximumf %150, %151 : vector<4x24xf32>
    %154 = arith.maximumf %152, %153 : vector<4x24xf32>
    %c68 = arith.constant 68 : index
    %c0_111 = arith.constant 0 : index
    %155 = vector.load %arg5[%c68, %c0_111] : memref<128x24xf32, #tpu.memory_space<vmem>>, vector<4x24xf32>
    tpu.vector_store %arg5[%c68, %c0_111], %154 {strides = array<i32>} : memref<128x24xf32, #tpu.memory_space<vmem>>, vector<4x24xf32>,
    %c288 = arith.constant 288 : index
    %c0_112 = arith.constant 0 : index
    %156 = tpu.strided_load %arg7[%c288, %c0_112] {strides = array<i32: 2, 1>} : memref<512x24xf32, #tpu.memory_space<vmem>>, vector<4x24xf32>
    %c289 = arith.constant 289 : index
    %c0_113 = arith.constant 0 : index
    %157 = tpu.strided_load %arg7[%c289, %c0_113] {strides = array<i32: 2, 1>} : memref<512x24xf32, #tpu.memory_space<vmem>>, vector<4x24xf32>
    %c296 = arith.constant 296 : index
    %c0_114 = arith.constant 0 : index
    %158 = tpu.strided_load %arg7[%c296, %c0_114] {strides = array<i32: 2, 1>} : memref<512x24xf32, #tpu.memory_space<vmem>>, vector<4x24xf32>
    %c297 = arith.constant 297 : index
    %c0_115 = arith.constant 0 : index
    %159 = tpu.strided_load %arg7[%c297, %c0_115] {strides = array<i32: 2, 1>} : memref<512x24xf32, #tpu.memory_space<vmem>>, vector<4x24xf32>
    %160 = arith.maximumf %156, %157 : vector<4x24xf32>
    %161 = arith.maximumf %158, %159 : vector<4x24xf32>
    %162 = arith.maximumf %160, %161 : vector<4x24xf32>
    %c72_116 = arith.constant 72 : index
    %c0_117 = arith.constant 0 : index
    %163 = vector.load %arg5[%c72_116, %c0_117] : memref<128x24xf32, #tpu.memory_space<vmem>>, vector<4x24xf32>
    tpu.vector_store %arg5[%c72_116, %c0_117], %162 {strides = array<i32>} : memref<128x24xf32, #tpu.memory_space<vmem>>, vector<4x24xf32>,
    %c304 = arith.constant 304 : index
    %c0_118 = arith.constant 0 : index
    %164 = tpu.strided_load %arg7[%c304, %c0_118] {strides = array<i32: 2, 1>} : memref<512x24xf32, #tpu.memory_space<vmem>>, vector<4x24xf32>
    %c305 = arith.constant 305 : index
    %c0_119 = arith.constant 0 : index
    %165 = tpu.strided_load %arg7[%c305, %c0_119] {strides = array<i32: 2, 1>} : memref<512x24xf32, #tpu.memory_space<vmem>>, vector<4x24xf32>
    %c312 = arith.constant 312 : index
    %c0_120 = arith.constant 0 : index
    %166 = tpu.strided_load %arg7[%c312, %c0_120] {strides = array<i32: 2, 1>} : memref<512x24xf32, #tpu.memory_space<vmem>>, vector<4x24xf32>
    %c313 = arith.constant 313 : index
    %c0_121 = arith.constant 0 : index
    %167 = tpu.strided_load %arg7[%c313, %c0_121] {strides = array<i32: 2, 1>} : memref<512x24xf32, #tpu.memory_space<vmem>>, vector<4x24xf32>
    %168 = arith.maximumf %164, %165 : vector<4x24xf32>
    %169 = arith.maximumf %166, %167 : vector<4x24xf32>
    %170 = arith.maximumf %168, %169 : vector<4x24xf32>
    %c76 = arith.constant 76 : index
    %c0_122 = arith.constant 0 : index
    %171 = vector.load %arg5[%c76, %c0_122] : memref<128x24xf32, #tpu.memory_space<vmem>>, vector<4x24xf32>
    tpu.vector_store %arg5[%c76, %c0_122], %170 {strides = array<i32>} : memref<128x24xf32, #tpu.memory_space<vmem>>, vector<4x24xf32>,
    %c320 = arith.constant 320 : index
    %c0_123 = arith.constant 0 : index
    %172 = tpu.strided_load %arg7[%c320, %c0_123] {strides = array<i32: 2, 1>} : memref<512x24xf32, #tpu.memory_space<vmem>>, vector<4x24xf32>
    %c321 = arith.constant 321 : index
    %c0_124 = arith.constant 0 : index
    %173 = tpu.strided_load %arg7[%c321, %c0_124] {strides = array<i32: 2, 1>} : memref<512x24xf32, #tpu.memory_space<vmem>>, vector<4x24xf32>
    %c328 = arith.constant 328 : index
    %c0_125 = arith.constant 0 : index
    %174 = tpu.strided_load %arg7[%c328, %c0_125] {strides = array<i32: 2, 1>} : memref<512x24xf32, #tpu.memory_space<vmem>>, vector<4x24xf32>
    %c329 = arith.constant 329 : index
    %c0_126 = arith.constant 0 : index
    %175 = tpu.strided_load %arg7[%c329, %c0_126] {strides = array<i32: 2, 1>} : memref<512x24xf32, #tpu.memory_space<vmem>>, vector<4x24xf32>
    %176 = arith.maximumf %172, %173 : vector<4x24xf32>
    %177 = arith.maximumf %174, %175 : vector<4x24xf32>
    %178 = arith.maximumf %176, %177 : vector<4x24xf32>
    %c80_127 = arith.constant 80 : index
    %c0_128 = arith.constant 0 : index
    %179 = vector.load %arg5[%c80_127, %c0_128] : memref<128x24xf32, #tpu.memory_space<vmem>>, vector<4x24xf32>
    tpu.vector_store %arg5[%c80_127, %c0_128], %178 {strides = array<i32>} : memref<128x24xf32, #tpu.memory_space<vmem>>, vector<4x24xf32>,
    %c336 = arith.constant 336 : index
    %c0_129 = arith.constant 0 : index
    %180 = tpu.strided_load %arg7[%c336, %c0_129] {strides = array<i32: 2, 1>} : memref<512x24xf32, #tpu.memory_space<vmem>>, vector<4x24xf32>
    %c337 = arith.constant 337 : index
    %c0_130 = arith.constant 0 : index
    %181 = tpu.strided_load %arg7[%c337, %c0_130] {strides = array<i32: 2, 1>} : memref<512x24xf32, #tpu.memory_space<vmem>>, vector<4x24xf32>
    %c344 = arith.constant 344 : index
    %c0_131 = arith.constant 0 : index
    %182 = tpu.strided_load %arg7[%c344, %c0_131] {strides = array<i32: 2, 1>} : memref<512x24xf32, #tpu.memory_space<vmem>>, vector<4x24xf32>
    %c345 = arith.constant 345 : index
    %c0_132 = arith.constant 0 : index
    %183 = tpu.strided_load %arg7[%c345, %c0_132] {strides = array<i32: 2, 1>} : memref<512x24xf32, #tpu.memory_space<vmem>>, vector<4x24xf32>
    %184 = arith.maximumf %180, %181 : vector<4x24xf32>
    %185 = arith.maximumf %182, %183 : vector<4x24xf32>
    %186 = arith.maximumf %184, %185 : vector<4x24xf32>
    %c84 = arith.constant 84 : index
    %c0_133 = arith.constant 0 : index
    %187 = vector.load %arg5[%c84, %c0_133] : memref<128x24xf32, #tpu.memory_space<vmem>>, vector<4x24xf32>
    tpu.vector_store %arg5[%c84, %c0_133], %186 {strides = array<i32>} : memref<128x24xf32, #tpu.memory_space<vmem>>, vector<4x24xf32>,
    %c352 = arith.constant 352 : index
    %c0_134 = arith.constant 0 : index
    %188 = tpu.strided_load %arg7[%c352, %c0_134] {strides = array<i32: 2, 1>} : memref<512x24xf32, #tpu.memory_space<vmem>>, vector<4x24xf32>
    %c353 = arith.constant 353 : index
    %c0_135 = arith.constant 0 : index
    %189 = tpu.strided_load %arg7[%c353, %c0_135] {strides = array<i32: 2, 1>} : memref<512x24xf32, #tpu.memory_space<vmem>>, vector<4x24xf32>
    %c360 = arith.constant 360 : index
    %c0_136 = arith.constant 0 : index
    %190 = tpu.strided_load %arg7[%c360, %c0_136] {strides = array<i32: 2, 1>} : memref<512x24xf32, #tpu.memory_space<vmem>>, vector<4x24xf32>
    %c361 = arith.constant 361 : index
    %c0_137 = arith.constant 0 : index
    %191 = tpu.strided_load %arg7[%c361, %c0_137] {strides = array<i32: 2, 1>} : memref<512x24xf32, #tpu.memory_space<vmem>>, vector<4x24xf32>
    %192 = arith.maximumf %188, %189 : vector<4x24xf32>
    %193 = arith.maximumf %190, %191 : vector<4x24xf32>
    %194 = arith.maximumf %192, %193 : vector<4x24xf32>
    %c88_138 = arith.constant 88 : index
    %c0_139 = arith.constant 0 : index
    %195 = vector.load %arg5[%c88_138, %c0_139] : memref<128x24xf32, #tpu.memory_space<vmem>>, vector<4x24xf32>
    tpu.vector_store %arg5[%c88_138, %c0_139], %194 {strides = array<i32>} : memref<128x24xf32, #tpu.memory_space<vmem>>, vector<4x24xf32>,
    %c368 = arith.constant 368 : index
    %c0_140 = arith.constant 0 : index
    %196 = tpu.strided_load %arg7[%c368, %c0_140] {strides = array<i32: 2, 1>} : memref<512x24xf32, #tpu.memory_space<vmem>>, vector<4x24xf32>
    %c369 = arith.constant 369 : index
    %c0_141 = arith.constant 0 : index
    %197 = tpu.strided_load %arg7[%c369, %c0_141] {strides = array<i32: 2, 1>} : memref<512x24xf32, #tpu.memory_space<vmem>>, vector<4x24xf32>
    %c376 = arith.constant 376 : index
    %c0_142 = arith.constant 0 : index
    %198 = tpu.strided_load %arg7[%c376, %c0_142] {strides = array<i32: 2, 1>} : memref<512x24xf32, #tpu.memory_space<vmem>>, vector<4x24xf32>
    %c377 = arith.constant 377 : index
    %c0_143 = arith.constant 0 : index
    %199 = tpu.strided_load %arg7[%c377, %c0_143] {strides = array<i32: 2, 1>} : memref<512x24xf32, #tpu.memory_space<vmem>>, vector<4x24xf32>
    %200 = arith.maximumf %196, %197 : vector<4x24xf32>
    %201 = arith.maximumf %198, %199 : vector<4x24xf32>
    %202 = arith.maximumf %200, %201 : vector<4x24xf32>
    %c92 = arith.constant 92 : index
    %c0_144 = arith.constant 0 : index
    %203 = vector.load %arg5[%c92, %c0_144] : memref<128x24xf32, #tpu.memory_space<vmem>>, vector<4x24xf32>
    tpu.vector_store %arg5[%c92, %c0_144], %202 {strides = array<i32>} : memref<128x24xf32, #tpu.memory_space<vmem>>, vector<4x24xf32>,
    %c384 = arith.constant 384 : index
    %c0_145 = arith.constant 0 : index
    %204 = tpu.strided_load %arg7[%c384, %c0_145] {strides = array<i32: 2, 1>} : memref<512x24xf32, #tpu.memory_space<vmem>>, vector<4x24xf32>
    %c385 = arith.constant 385 : index
    %c0_146 = arith.constant 0 : index
    %205 = tpu.strided_load %arg7[%c385, %c0_146] {strides = array<i32: 2, 1>} : memref<512x24xf32, #tpu.memory_space<vmem>>, vector<4x24xf32>
    %c392 = arith.constant 392 : index
    %c0_147 = arith.constant 0 : index
    %206 = tpu.strided_load %arg7[%c392, %c0_147] {strides = array<i32: 2, 1>} : memref<512x24xf32, #tpu.memory_space<vmem>>, vector<4x24xf32>
    %c393 = arith.constant 393 : index
    %c0_148 = arith.constant 0 : index
    %207 = tpu.strided_load %arg7[%c393, %c0_148] {strides = array<i32: 2, 1>} : memref<512x24xf32, #tpu.memory_space<vmem>>, vector<4x24xf32>
    %208 = arith.maximumf %204, %205 : vector<4x24xf32>
    %209 = arith.maximumf %206, %207 : vector<4x24xf32>
    %210 = arith.maximumf %208, %209 : vector<4x24xf32>
    %c96_149 = arith.constant 96 : index
    %c0_150 = arith.constant 0 : index
    %211 = vector.load %arg5[%c96_149, %c0_150] : memref<128x24xf32, #tpu.memory_space<vmem>>, vector<4x24xf32>
    tpu.vector_store %arg5[%c96_149, %c0_150], %210 {strides = array<i32>} : memref<128x24xf32, #tpu.memory_space<vmem>>, vector<4x24xf32>,
    %c400 = arith.constant 400 : index
    %c0_151 = arith.constant 0 : index
    %212 = tpu.strided_load %arg7[%c400, %c0_151] {strides = array<i32: 2, 1>} : memref<512x24xf32, #tpu.memory_space<vmem>>, vector<4x24xf32>
    %c401 = arith.constant 401 : index
    %c0_152 = arith.constant 0 : index
    %213 = tpu.strided_load %arg7[%c401, %c0_152] {strides = array<i32: 2, 1>} : memref<512x24xf32, #tpu.memory_space<vmem>>, vector<4x24xf32>
    %c408 = arith.constant 408 : index
    %c0_153 = arith.constant 0 : index
    %214 = tpu.strided_load %arg7[%c408, %c0_153] {strides = array<i32: 2, 1>} : memref<512x24xf32, #tpu.memory_space<vmem>>, vector<4x24xf32>
    %c409 = arith.constant 409 : index
    %c0_154 = arith.constant 0 : index
    %215 = tpu.strided_load %arg7[%c409, %c0_154] {strides = array<i32: 2, 1>} : memref<512x24xf32, #tpu.memory_space<vmem>>, vector<4x24xf32>
    %216 = arith.maximumf %212, %213 : vector<4x24xf32>
    %217 = arith.maximumf %214, %215 : vector<4x24xf32>
    %218 = arith.maximumf %216, %217 : vector<4x24xf32>
    %c100 = arith.constant 100 : index
    %c0_155 = arith.constant 0 : index
    %219 = vector.load %arg5[%c100, %c0_155] : memref<128x24xf32, #tpu.memory_space<vmem>>, vector<4x24xf32>
    tpu.vector_store %arg5[%c100, %c0_155], %218 {strides = array<i32>} : memref<128x24xf32, #tpu.memory_space<vmem>>, vector<4x24xf32>,
    %c416 = arith.constant 416 : index
    %c0_156 = arith.constant 0 : index
    %220 = tpu.strided_load %arg7[%c416, %c0_156] {strides = array<i32: 2, 1>} : memref<512x24xf32, #tpu.memory_space<vmem>>, vector<4x24xf32>
    %c417 = arith.constant 417 : index
    %c0_157 = arith.constant 0 : index
    %221 = tpu.strided_load %arg7[%c417, %c0_157] {strides = array<i32: 2, 1>} : memref<512x24xf32, #tpu.memory_space<vmem>>, vector<4x24xf32>
    %c424 = arith.constant 424 : index
    %c0_158 = arith.constant 0 : index
    %222 = tpu.strided_load %arg7[%c424, %c0_158] {strides = array<i32: 2, 1>} : memref<512x24xf32, #tpu.memory_space<vmem>>, vector<4x24xf32>
    %c425 = arith.constant 425 : index
    %c0_159 = arith.constant 0 : index
    %223 = tpu.strided_load %arg7[%c425, %c0_159] {strides = array<i32: 2, 1>} : memref<512x24xf32, #tpu.memory_space<vmem>>, vector<4x24xf32>
    %224 = arith.maximumf %220, %221 : vector<4x24xf32>
    %225 = arith.maximumf %222, %223 : vector<4x24xf32>
    %226 = arith.maximumf %224, %225 : vector<4x24xf32>
    %c104_160 = arith.constant 104 : index
    %c0_161 = arith.constant 0 : index
    %227 = vector.load %arg5[%c104_160, %c0_161] : memref<128x24xf32, #tpu.memory_space<vmem>>, vector<4x24xf32>
    tpu.vector_store %arg5[%c104_160, %c0_161], %226 {strides = array<i32>} : memref<128x24xf32, #tpu.memory_space<vmem>>, vector<4x24xf32>,
    %c432 = arith.constant 432 : index
    %c0_162 = arith.constant 0 : index
    %228 = tpu.strided_load %arg7[%c432, %c0_162] {strides = array<i32: 2, 1>} : memref<512x24xf32, #tpu.memory_space<vmem>>, vector<4x24xf32>
    %c433 = arith.constant 433 : index
    %c0_163 = arith.constant 0 : index
    %229 = tpu.strided_load %arg7[%c433, %c0_163] {strides = array<i32: 2, 1>} : memref<512x24xf32, #tpu.memory_space<vmem>>, vector<4x24xf32>
    %c440 = arith.constant 440 : index
    %c0_164 = arith.constant 0 : index
    %230 = tpu.strided_load %arg7[%c440, %c0_164] {strides = array<i32: 2, 1>} : memref<512x24xf32, #tpu.memory_space<vmem>>, vector<4x24xf32>
    %c441 = arith.constant 441 : index
    %c0_165 = arith.constant 0 : index
    %231 = tpu.strided_load %arg7[%c441, %c0_165] {strides = array<i32: 2, 1>} : memref<512x24xf32, #tpu.memory_space<vmem>>, vector<4x24xf32>
    %232 = arith.maximumf %228, %229 : vector<4x24xf32>
    %233 = arith.maximumf %230, %231 : vector<4x24xf32>
    %234 = arith.maximumf %232, %233 : vector<4x24xf32>
    %c108 = arith.constant 108 : index
    %c0_166 = arith.constant 0 : index
    %235 = vector.load %arg5[%c108, %c0_166] : memref<128x24xf32, #tpu.memory_space<vmem>>, vector<4x24xf32>
    tpu.vector_store %arg5[%c108, %c0_166], %234 {strides = array<i32>} : memref<128x24xf32, #tpu.memory_space<vmem>>, vector<4x24xf32>,
    %c448 = arith.constant 448 : index
    %c0_167 = arith.constant 0 : index
    %236 = tpu.strided_load %arg7[%c448, %c0_167] {strides = array<i32: 2, 1>} : memref<512x24xf32, #tpu.memory_space<vmem>>, vector<4x24xf32>
    %c449 = arith.constant 449 : index
    %c0_168 = arith.constant 0 : index
    %237 = tpu.strided_load %arg7[%c449, %c0_168] {strides = array<i32: 2, 1>} : memref<512x24xf32, #tpu.memory_space<vmem>>, vector<4x24xf32>
    %c456 = arith.constant 456 : index
    %c0_169 = arith.constant 0 : index
    %238 = tpu.strided_load %arg7[%c456, %c0_169] {strides = array<i32: 2, 1>} : memref<512x24xf32, #tpu.memory_space<vmem>>, vector<4x24xf32>
    %c457 = arith.constant 457 : index
    %c0_170 = arith.constant 0 : index
    %239 = tpu.strided_load %arg7[%c457, %c0_170] {strides = array<i32: 2, 1>} : memref<512x24xf32, #tpu.memory_space<vmem>>, vector<4x24xf32>
    %240 = arith.maximumf %236, %237 : vector<4x24xf32>
    %241 = arith.maximumf %238, %239 : vector<4x24xf32>
    %242 = arith.maximumf %240, %241 : vector<4x24xf32>
    %c112_171 = arith.constant 112 : index
    %c0_172 = arith.constant 0 : index
    %243 = vector.load %arg5[%c112_171, %c0_172] : memref<128x24xf32, #tpu.memory_space<vmem>>, vector<4x24xf32>
    tpu.vector_store %arg5[%c112_171, %c0_172], %242 {strides = array<i32>} : memref<128x24xf32, #tpu.memory_space<vmem>>, vector<4x24xf32>,
    %c464 = arith.constant 464 : index
    %c0_173 = arith.constant 0 : index
    %244 = tpu.strided_load %arg7[%c464, %c0_173] {strides = array<i32: 2, 1>} : memref<512x24xf32, #tpu.memory_space<vmem>>, vector<4x24xf32>
    %c465 = arith.constant 465 : index
    %c0_174 = arith.constant 0 : index
    %245 = tpu.strided_load %arg7[%c465, %c0_174] {strides = array<i32: 2, 1>} : memref<512x24xf32, #tpu.memory_space<vmem>>, vector<4x24xf32>
    %c472 = arith.constant 472 : index
    %c0_175 = arith.constant 0 : index
    %246 = tpu.strided_load %arg7[%c472, %c0_175] {strides = array<i32: 2, 1>} : memref<512x24xf32, #tpu.memory_space<vmem>>, vector<4x24xf32>
    %c473 = arith.constant 473 : index
    %c0_176 = arith.constant 0 : index
    %247 = tpu.strided_load %arg7[%c473, %c0_176] {strides = array<i32: 2, 1>} : memref<512x24xf32, #tpu.memory_space<vmem>>, vector<4x24xf32>
    %248 = arith.maximumf %244, %245 : vector<4x24xf32>
    %249 = arith.maximumf %246, %247 : vector<4x24xf32>
    %250 = arith.maximumf %248, %249 : vector<4x24xf32>
    %c116 = arith.constant 116 : index
    %c0_177 = arith.constant 0 : index
    %251 = vector.load %arg5[%c116, %c0_177] : memref<128x24xf32, #tpu.memory_space<vmem>>, vector<4x24xf32>
    tpu.vector_store %arg5[%c116, %c0_177], %250 {strides = array<i32>} : memref<128x24xf32, #tpu.memory_space<vmem>>, vector<4x24xf32>,
    %c480 = arith.constant 480 : index
    %c0_178 = arith.constant 0 : index
    %252 = tpu.strided_load %arg7[%c480, %c0_178] {strides = array<i32: 2, 1>} : memref<512x24xf32, #tpu.memory_space<vmem>>, vector<4x24xf32>
    %c481 = arith.constant 481 : index
    %c0_179 = arith.constant 0 : index
    %253 = tpu.strided_load %arg7[%c481, %c0_179] {strides = array<i32: 2, 1>} : memref<512x24xf32, #tpu.memory_space<vmem>>, vector<4x24xf32>
    %c488 = arith.constant 488 : index
    %c0_180 = arith.constant 0 : index
    %254 = tpu.strided_load %arg7[%c488, %c0_180] {strides = array<i32: 2, 1>} : memref<512x24xf32, #tpu.memory_space<vmem>>, vector<4x24xf32>
    %c489 = arith.constant 489 : index
    %c0_181 = arith.constant 0 : index
    %255 = tpu.strided_load %arg7[%c489, %c0_181] {strides = array<i32: 2, 1>} : memref<512x24xf32, #tpu.memory_space<vmem>>, vector<4x24xf32>
    %256 = arith.maximumf %252, %253 : vector<4x24xf32>
    %257 = arith.maximumf %254, %255 : vector<4x24xf32>
    %258 = arith.maximumf %256, %257 : vector<4x24xf32>
    %c120_182 = arith.constant 120 : index
    %c0_183 = arith.constant 0 : index
    %259 = vector.load %arg5[%c120_182, %c0_183] : memref<128x24xf32, #tpu.memory_space<vmem>>, vector<4x24xf32>
    tpu.vector_store %arg5[%c120_182, %c0_183], %258 {strides = array<i32>} : memref<128x24xf32, #tpu.memory_space<vmem>>, vector<4x24xf32>,
    %c496 = arith.constant 496 : index
    %c0_184 = arith.constant 0 : index
    %260 = tpu.strided_load %arg7[%c496, %c0_184] {strides = array<i32: 2, 1>} : memref<512x24xf32, #tpu.memory_space<vmem>>, vector<4x24xf32>
    %c497 = arith.constant 497 : index
    %c0_185 = arith.constant 0 : index
    %261 = tpu.strided_load %arg7[%c497, %c0_185] {strides = array<i32: 2, 1>} : memref<512x24xf32, #tpu.memory_space<vmem>>, vector<4x24xf32>
    %c504 = arith.constant 504 : index
    %c0_186 = arith.constant 0 : index
    %262 = tpu.strided_load %arg7[%c504, %c0_186] {strides = array<i32: 2, 1>} : memref<512x24xf32, #tpu.memory_space<vmem>>, vector<4x24xf32>
    %c505 = arith.constant 505 : index
    %c0_187 = arith.constant 0 : index
    %263 = tpu.strided_load %arg7[%c505, %c0_187] {strides = array<i32: 2, 1>} : memref<512x24xf32, #tpu.memory_space<vmem>>, vector<4x24xf32>
    %264 = arith.maximumf %260, %261 : vector<4x24xf32>
    %265 = arith.maximumf %262, %263 : vector<4x24xf32>
    %266 = arith.maximumf %264, %265 : vector<4x24xf32>
    %c124 = arith.constant 124 : index
    %c0_188 = arith.constant 0 : index
    %267 = vector.load %arg5[%c124, %c0_188] : memref<128x24xf32, #tpu.memory_space<vmem>>, vector<4x24xf32>
    tpu.vector_store %arg5[%c124, %c0_188], %266 {strides = array<i32>} : memref<128x24xf32, #tpu.memory_space<vmem>>, vector<4x24xf32>,
    %c0_189 = arith.constant 0 : index
    %c0_190 = arith.constant 0 : index
    %268 = vector.load %arg5[%c0_189, %c0_190] : memref<128x24xf32, #tpu.memory_space<vmem>>, vector<128x24xf32>
    %cst_191 = arith.constant dense<0.000000e+00> : vector<24xf32>
    %269 = vector.multi_reduction <add>, %268, %cst_191 [0] : vector<128x24xf32> to vector<24xf32>
    %270 = vector.shape_cast %269 : vector<24xf32> to vector<1x24xf32>
    %271 = arith.mulf %268, %268 : vector<128x24xf32>
    %cst_192 = arith.constant dense<0.000000e+00> : vector<24xf32>
    %272 = vector.multi_reduction <add>, %271, %cst_192 [0] : vector<128x24xf32> to vector<24xf32>
    %273 = vector.shape_cast %272 : vector<24xf32> to vector<1x24xf32>
    %274 = vector.shape_cast %270 : vector<1x24xf32> to vector<1x1x24xf32>
    %c0_193 = arith.constant 0 : index
    %c0_194 = arith.constant 0 : index
    %c0_195 = arith.constant 0 : index
    %275 = vector.load %arg6[%c0_193, %c0_194, %c0_195] : memref<1x2x24xf32, #tpu.memory_space<vmem>>, vector<1x1x24xf32>
    tpu.vector_store %arg6[%c0_193, %c0_194, %c0_195], %274 {strides = array<i32>} : memref<1x2x24xf32, #tpu.memory_space<vmem>>, vector<1x1x24xf32>,
    %276 = vector.shape_cast %273 : vector<1x24xf32> to vector<1x1x24xf32>
    %c0_196 = arith.constant 0 : index
    %c1_197 = arith.constant 1 : index
    %c0_198 = arith.constant 0 : index
    %277 = vector.load %arg6[%c0_196, %c1_197, %c0_198] : memref<1x2x24xf32, #tpu.memory_space<vmem>>, vector<1x1x24xf32>
    tpu.vector_store %arg6[%c0_196, %c1_197, %c0_198], %276 {strides = array<i32>} : memref<1x2x24xf32, #tpu.memory_space<vmem>>, vector<1x1x24xf32>,
    return
  }
  func.func @transform_0(%arg0: i32) -> (i32, i32) {
    %c0_i32 = arith.constant 0 : i32
    %c0_i32_0 = arith.constant 0 : i32
    return %arg0, %c0_i32 : i32, i32
  }
  func.func @transform_1(%arg0: i32) -> (i32, i32) {
    %c0_i32 = arith.constant 0 : i32
    %c0_i32_0 = arith.constant 0 : i32
    %c0_i32_1 = arith.constant 0 : i32
    return %c0_i32, %c0_i32_0 : i32, i32
  }
  func.func @transform_2(%arg0: i32) -> (i32, i32) {
    %c0_i32 = arith.constant 0 : i32
    %c0_i32_0 = arith.constant 0 : i32
    return %arg0, %c0_i32 : i32, i32
  }
  func.func @transform_3(%arg0: i32) -> (i32, i32) {
    %c0_i32 = arith.constant 0 : i32
    %c0_i32_0 = arith.constant 0 : i32
    %c0_i32_1 = arith.constant 0 : i32
    return %c0_i32, %c0_i32_0 : i32, i32
  }
  func.func @transform_4(%arg0: i32) -> (i32, i32) {
    %c0_i32 = arith.constant 0 : i32
    %c0_i32_0 = arith.constant 0 : i32
    return %arg0, %c0_i32 : i32, i32
  }
  func.func @transform_5(%arg0: i32) -> (i32, i32, i32) {
    %c0_i32 = arith.constant 0 : i32
    %c0_i32_0 = arith.constant 0 : i32
    %c0_i32_1 = arith.constant 0 : i32
    return %arg0, %c0_i32, %c0_i32_0 : i32, i32, i32
  }
}

module attributes {stable_mosaic.version = 11 : i64} {
  func.func @kernel(%arg0: i32, %arg1: memref<256x648xbf16, #tpu.memory_space<vmem>>, %arg2: memref<648x48xbf16, #tpu.memory_space<vmem>>, %arg3: memref<256x24xbf16, #tpu.memory_space<vmem>>, %arg4: memref<24x48xbf16, #tpu.memory_space<vmem>>, %arg5: memref<64x48xf32, #tpu.memory_space<vmem>>, %arg6: memref<1x2x48xf32, #tpu.memory_space<vmem>>, %arg7: memref<256x48xf32, #tpu.memory_space<vmem>>) attributes {dimension_semantics = [#tpu.dimension_semantics<parallel>], iteration_bounds = array<i64: 2>, scalar_prefetch = 0 : i64, scratch_operands = 1 : i64, tpu.core_type = #tpu.core_type<tc>, window_params = [{transform_indices = @transform_0, window_bounds = array<i64: 256, 648>}, {pipeline_mode = #tpu.pipeline_mode<synchronous>, transform_indices = @transform_1, window_bounds = array<i64: 648, 48>}, {transform_indices = @transform_2, window_bounds = array<i64: 256, 24>}, {pipeline_mode = #tpu.pipeline_mode<synchronous>, transform_indices = @transform_3, window_bounds = array<i64: 24, 48>}, {transform_indices = @transform_4, window_bounds = array<i64: 64, 48>}, {transform_indices = @transform_5, window_bounds = array<i64: 1, 2, 48>}]} {
    %c0 = arith.constant 0 : index
    %c0_0 = arith.constant 0 : index
    %0 = vector.load %arg1[%c0, %c0_0] : memref<256x648xbf16, #tpu.memory_space<vmem>>, vector<256x648xbf16>
    %c0_1 = arith.constant 0 : index
    %c0_2 = arith.constant 0 : index
    %1 = vector.load %arg2[%c0_1, %c0_2] : memref<648x48xbf16, #tpu.memory_space<vmem>>, vector<648x48xbf16>
    %cst = arith.constant dense<0.000000e+00> : vector<256x48xf32>
    %2 = tpu.matmul %0, %1, %cst {dimension_numbers = #tpu.dot_dimension_numbers<[1], [0], [0], [1], [0, 0, 1, 1], [], []>} : vector<256x648xbf16>, vector<648x48xbf16>, vector<256x48xf32> -> vector<256x48xf32>
    %cst_3 = arith.constant 1.000000e+00 : f32
    %3 = vector.broadcast %cst_3 : f32 to vector<256x48xf32>
    %4 = arith.addf %3, %2 : vector<256x48xf32>
    %cst_4 = arith.constant 0.000000e+00 : f32
    %5 = vector.broadcast %cst_4 : f32 to vector<256x48xf32>
    %6 = arith.maximumf %4, %5 : vector<256x48xf32>
    %c0_5 = arith.constant 0 : index
    %c0_6 = arith.constant 0 : index
    %7 = vector.load %arg3[%c0_5, %c0_6] : memref<256x24xbf16, #tpu.memory_space<vmem>>, vector<256x24xbf16>
    %c0_7 = arith.constant 0 : index
    %c0_8 = arith.constant 0 : index
    %8 = vector.load %arg4[%c0_7, %c0_8] : memref<24x48xbf16, #tpu.memory_space<vmem>>, vector<24x48xbf16>
    %cst_9 = arith.constant dense<0.000000e+00> : vector<256x48xf32>
    %9 = tpu.matmul %7, %8, %cst_9 {dimension_numbers = #tpu.dot_dimension_numbers<[1], [0], [0], [1], [0, 0, 1, 1], [], []>} : vector<256x24xbf16>, vector<24x48xbf16>, vector<256x48xf32> -> vector<256x48xf32>
    %10 = arith.addf %6, %9 : vector<256x48xf32>
    %c0_10 = arith.constant 0 : index
    %c0_11 = arith.constant 0 : index
    %11 = vector.load %arg7[%c0_10, %c0_11] : memref<256x48xf32, #tpu.memory_space<vmem>>, vector<256x48xf32>
    tpu.vector_store %arg7[%c0_10, %c0_11], %10 {strides = array<i32>} : memref<256x48xf32, #tpu.memory_space<vmem>>, vector<256x48xf32>,
    %c0_12 = arith.constant 0 : index
    %c0_13 = arith.constant 0 : index
    %12 = tpu.strided_load %arg7[%c0_12, %c0_13] {strides = array<i32: 2, 1>} : memref<256x48xf32, #tpu.memory_space<vmem>>, vector<2x48xf32>
    %c1 = arith.constant 1 : index
    %c0_14 = arith.constant 0 : index
    %13 = tpu.strided_load %arg7[%c1, %c0_14] {strides = array<i32: 2, 1>} : memref<256x48xf32, #tpu.memory_space<vmem>>, vector<2x48xf32>
    %c4 = arith.constant 4 : index
    %c0_15 = arith.constant 0 : index
    %14 = tpu.strided_load %arg7[%c4, %c0_15] {strides = array<i32: 2, 1>} : memref<256x48xf32, #tpu.memory_space<vmem>>, vector<2x48xf32>
    %c5 = arith.constant 5 : index
    %c0_16 = arith.constant 0 : index
    %15 = tpu.strided_load %arg7[%c5, %c0_16] {strides = array<i32: 2, 1>} : memref<256x48xf32, #tpu.memory_space<vmem>>, vector<2x48xf32>
    %16 = arith.maximumf %12, %13 : vector<2x48xf32>
    %17 = arith.maximumf %14, %15 : vector<2x48xf32>
    %18 = arith.maximumf %16, %17 : vector<2x48xf32>
    %c0_17 = arith.constant 0 : index
    %c0_18 = arith.constant 0 : index
    %19 = vector.load %arg5[%c0_17, %c0_18] : memref<64x48xf32, #tpu.memory_space<vmem>>, vector<2x48xf32>
    tpu.vector_store %arg5[%c0_17, %c0_18], %18 {strides = array<i32>} : memref<64x48xf32, #tpu.memory_space<vmem>>, vector<2x48xf32>,
    %c8 = arith.constant 8 : index
    %c0_19 = arith.constant 0 : index
    %20 = tpu.strided_load %arg7[%c8, %c0_19] {strides = array<i32: 2, 1>} : memref<256x48xf32, #tpu.memory_space<vmem>>, vector<2x48xf32>
    %c9 = arith.constant 9 : index
    %c0_20 = arith.constant 0 : index
    %21 = tpu.strided_load %arg7[%c9, %c0_20] {strides = array<i32: 2, 1>} : memref<256x48xf32, #tpu.memory_space<vmem>>, vector<2x48xf32>
    %c12 = arith.constant 12 : index
    %c0_21 = arith.constant 0 : index
    %22 = tpu.strided_load %arg7[%c12, %c0_21] {strides = array<i32: 2, 1>} : memref<256x48xf32, #tpu.memory_space<vmem>>, vector<2x48xf32>
    %c13 = arith.constant 13 : index
    %c0_22 = arith.constant 0 : index
    %23 = tpu.strided_load %arg7[%c13, %c0_22] {strides = array<i32: 2, 1>} : memref<256x48xf32, #tpu.memory_space<vmem>>, vector<2x48xf32>
    %24 = arith.maximumf %20, %21 : vector<2x48xf32>
    %25 = arith.maximumf %22, %23 : vector<2x48xf32>
    %26 = arith.maximumf %24, %25 : vector<2x48xf32>
    %c2 = arith.constant 2 : index
    %c0_23 = arith.constant 0 : index
    %27 = vector.load %arg5[%c2, %c0_23] : memref<64x48xf32, #tpu.memory_space<vmem>>, vector<2x48xf32>
    tpu.vector_store %arg5[%c2, %c0_23], %26 {strides = array<i32>} : memref<64x48xf32, #tpu.memory_space<vmem>>, vector<2x48xf32>,
    %c16 = arith.constant 16 : index
    %c0_24 = arith.constant 0 : index
    %28 = tpu.strided_load %arg7[%c16, %c0_24] {strides = array<i32: 2, 1>} : memref<256x48xf32, #tpu.memory_space<vmem>>, vector<2x48xf32>
    %c17 = arith.constant 17 : index
    %c0_25 = arith.constant 0 : index
    %29 = tpu.strided_load %arg7[%c17, %c0_25] {strides = array<i32: 2, 1>} : memref<256x48xf32, #tpu.memory_space<vmem>>, vector<2x48xf32>
    %c20 = arith.constant 20 : index
    %c0_26 = arith.constant 0 : index
    %30 = tpu.strided_load %arg7[%c20, %c0_26] {strides = array<i32: 2, 1>} : memref<256x48xf32, #tpu.memory_space<vmem>>, vector<2x48xf32>
    %c21 = arith.constant 21 : index
    %c0_27 = arith.constant 0 : index
    %31 = tpu.strided_load %arg7[%c21, %c0_27] {strides = array<i32: 2, 1>} : memref<256x48xf32, #tpu.memory_space<vmem>>, vector<2x48xf32>
    %32 = arith.maximumf %28, %29 : vector<2x48xf32>
    %33 = arith.maximumf %30, %31 : vector<2x48xf32>
    %34 = arith.maximumf %32, %33 : vector<2x48xf32>
    %c4_28 = arith.constant 4 : index
    %c0_29 = arith.constant 0 : index
    %35 = vector.load %arg5[%c4_28, %c0_29] : memref<64x48xf32, #tpu.memory_space<vmem>>, vector<2x48xf32>
    tpu.vector_store %arg5[%c4_28, %c0_29], %34 {strides = array<i32>} : memref<64x48xf32, #tpu.memory_space<vmem>>, vector<2x48xf32>,
    %c24 = arith.constant 24 : index
    %c0_30 = arith.constant 0 : index
    %36 = tpu.strided_load %arg7[%c24, %c0_30] {strides = array<i32: 2, 1>} : memref<256x48xf32, #tpu.memory_space<vmem>>, vector<2x48xf32>
    %c25 = arith.constant 25 : index
    %c0_31 = arith.constant 0 : index
    %37 = tpu.strided_load %arg7[%c25, %c0_31] {strides = array<i32: 2, 1>} : memref<256x48xf32, #tpu.memory_space<vmem>>, vector<2x48xf32>
    %c28 = arith.constant 28 : index
    %c0_32 = arith.constant 0 : index
    %38 = tpu.strided_load %arg7[%c28, %c0_32] {strides = array<i32: 2, 1>} : memref<256x48xf32, #tpu.memory_space<vmem>>, vector<2x48xf32>
    %c29 = arith.constant 29 : index
    %c0_33 = arith.constant 0 : index
    %39 = tpu.strided_load %arg7[%c29, %c0_33] {strides = array<i32: 2, 1>} : memref<256x48xf32, #tpu.memory_space<vmem>>, vector<2x48xf32>
    %40 = arith.maximumf %36, %37 : vector<2x48xf32>
    %41 = arith.maximumf %38, %39 : vector<2x48xf32>
    %42 = arith.maximumf %40, %41 : vector<2x48xf32>
    %c6 = arith.constant 6 : index
    %c0_34 = arith.constant 0 : index
    %43 = vector.load %arg5[%c6, %c0_34] : memref<64x48xf32, #tpu.memory_space<vmem>>, vector<2x48xf32>
    tpu.vector_store %arg5[%c6, %c0_34], %42 {strides = array<i32>} : memref<64x48xf32, #tpu.memory_space<vmem>>, vector<2x48xf32>,
    %c32 = arith.constant 32 : index
    %c0_35 = arith.constant 0 : index
    %44 = tpu.strided_load %arg7[%c32, %c0_35] {strides = array<i32: 2, 1>} : memref<256x48xf32, #tpu.memory_space<vmem>>, vector<2x48xf32>
    %c33 = arith.constant 33 : index
    %c0_36 = arith.constant 0 : index
    %45 = tpu.strided_load %arg7[%c33, %c0_36] {strides = array<i32: 2, 1>} : memref<256x48xf32, #tpu.memory_space<vmem>>, vector<2x48xf32>
    %c36 = arith.constant 36 : index
    %c0_37 = arith.constant 0 : index
    %46 = tpu.strided_load %arg7[%c36, %c0_37] {strides = array<i32: 2, 1>} : memref<256x48xf32, #tpu.memory_space<vmem>>, vector<2x48xf32>
    %c37 = arith.constant 37 : index
    %c0_38 = arith.constant 0 : index
    %47 = tpu.strided_load %arg7[%c37, %c0_38] {strides = array<i32: 2, 1>} : memref<256x48xf32, #tpu.memory_space<vmem>>, vector<2x48xf32>
    %48 = arith.maximumf %44, %45 : vector<2x48xf32>
    %49 = arith.maximumf %46, %47 : vector<2x48xf32>
    %50 = arith.maximumf %48, %49 : vector<2x48xf32>
    %c8_39 = arith.constant 8 : index
    %c0_40 = arith.constant 0 : index
    %51 = vector.load %arg5[%c8_39, %c0_40] : memref<64x48xf32, #tpu.memory_space<vmem>>, vector<2x48xf32>
    tpu.vector_store %arg5[%c8_39, %c0_40], %50 {strides = array<i32>} : memref<64x48xf32, #tpu.memory_space<vmem>>, vector<2x48xf32>,
    %c40 = arith.constant 40 : index
    %c0_41 = arith.constant 0 : index
    %52 = tpu.strided_load %arg7[%c40, %c0_41] {strides = array<i32: 2, 1>} : memref<256x48xf32, #tpu.memory_space<vmem>>, vector<2x48xf32>
    %c41 = arith.constant 41 : index
    %c0_42 = arith.constant 0 : index
    %53 = tpu.strided_load %arg7[%c41, %c0_42] {strides = array<i32: 2, 1>} : memref<256x48xf32, #tpu.memory_space<vmem>>, vector<2x48xf32>
    %c44 = arith.constant 44 : index
    %c0_43 = arith.constant 0 : index
    %54 = tpu.strided_load %arg7[%c44, %c0_43] {strides = array<i32: 2, 1>} : memref<256x48xf32, #tpu.memory_space<vmem>>, vector<2x48xf32>
    %c45 = arith.constant 45 : index
    %c0_44 = arith.constant 0 : index
    %55 = tpu.strided_load %arg7[%c45, %c0_44] {strides = array<i32: 2, 1>} : memref<256x48xf32, #tpu.memory_space<vmem>>, vector<2x48xf32>
    %56 = arith.maximumf %52, %53 : vector<2x48xf32>
    %57 = arith.maximumf %54, %55 : vector<2x48xf32>
    %58 = arith.maximumf %56, %57 : vector<2x48xf32>
    %c10 = arith.constant 10 : index
    %c0_45 = arith.constant 0 : index
    %59 = vector.load %arg5[%c10, %c0_45] : memref<64x48xf32, #tpu.memory_space<vmem>>, vector<2x48xf32>
    tpu.vector_store %arg5[%c10, %c0_45], %58 {strides = array<i32>} : memref<64x48xf32, #tpu.memory_space<vmem>>, vector<2x48xf32>,
    %c48 = arith.constant 48 : index
    %c0_46 = arith.constant 0 : index
    %60 = tpu.strided_load %arg7[%c48, %c0_46] {strides = array<i32: 2, 1>} : memref<256x48xf32, #tpu.memory_space<vmem>>, vector<2x48xf32>
    %c49 = arith.constant 49 : index
    %c0_47 = arith.constant 0 : index
    %61 = tpu.strided_load %arg7[%c49, %c0_47] {strides = array<i32: 2, 1>} : memref<256x48xf32, #tpu.memory_space<vmem>>, vector<2x48xf32>
    %c52 = arith.constant 52 : index
    %c0_48 = arith.constant 0 : index
    %62 = tpu.strided_load %arg7[%c52, %c0_48] {strides = array<i32: 2, 1>} : memref<256x48xf32, #tpu.memory_space<vmem>>, vector<2x48xf32>
    %c53 = arith.constant 53 : index
    %c0_49 = arith.constant 0 : index
    %63 = tpu.strided_load %arg7[%c53, %c0_49] {strides = array<i32: 2, 1>} : memref<256x48xf32, #tpu.memory_space<vmem>>, vector<2x48xf32>
    %64 = arith.maximumf %60, %61 : vector<2x48xf32>
    %65 = arith.maximumf %62, %63 : vector<2x48xf32>
    %66 = arith.maximumf %64, %65 : vector<2x48xf32>
    %c12_50 = arith.constant 12 : index
    %c0_51 = arith.constant 0 : index
    %67 = vector.load %arg5[%c12_50, %c0_51] : memref<64x48xf32, #tpu.memory_space<vmem>>, vector<2x48xf32>
    tpu.vector_store %arg5[%c12_50, %c0_51], %66 {strides = array<i32>} : memref<64x48xf32, #tpu.memory_space<vmem>>, vector<2x48xf32>,
    %c56 = arith.constant 56 : index
    %c0_52 = arith.constant 0 : index
    %68 = tpu.strided_load %arg7[%c56, %c0_52] {strides = array<i32: 2, 1>} : memref<256x48xf32, #tpu.memory_space<vmem>>, vector<2x48xf32>
    %c57 = arith.constant 57 : index
    %c0_53 = arith.constant 0 : index
    %69 = tpu.strided_load %arg7[%c57, %c0_53] {strides = array<i32: 2, 1>} : memref<256x48xf32, #tpu.memory_space<vmem>>, vector<2x48xf32>
    %c60 = arith.constant 60 : index
    %c0_54 = arith.constant 0 : index
    %70 = tpu.strided_load %arg7[%c60, %c0_54] {strides = array<i32: 2, 1>} : memref<256x48xf32, #tpu.memory_space<vmem>>, vector<2x48xf32>
    %c61 = arith.constant 61 : index
    %c0_55 = arith.constant 0 : index
    %71 = tpu.strided_load %arg7[%c61, %c0_55] {strides = array<i32: 2, 1>} : memref<256x48xf32, #tpu.memory_space<vmem>>, vector<2x48xf32>
    %72 = arith.maximumf %68, %69 : vector<2x48xf32>
    %73 = arith.maximumf %70, %71 : vector<2x48xf32>
    %74 = arith.maximumf %72, %73 : vector<2x48xf32>
    %c14 = arith.constant 14 : index
    %c0_56 = arith.constant 0 : index
    %75 = vector.load %arg5[%c14, %c0_56] : memref<64x48xf32, #tpu.memory_space<vmem>>, vector<2x48xf32>
    tpu.vector_store %arg5[%c14, %c0_56], %74 {strides = array<i32>} : memref<64x48xf32, #tpu.memory_space<vmem>>, vector<2x48xf32>,
    %c64 = arith.constant 64 : index
    %c0_57 = arith.constant 0 : index
    %76 = tpu.strided_load %arg7[%c64, %c0_57] {strides = array<i32: 2, 1>} : memref<256x48xf32, #tpu.memory_space<vmem>>, vector<2x48xf32>
    %c65 = arith.constant 65 : index
    %c0_58 = arith.constant 0 : index
    %77 = tpu.strided_load %arg7[%c65, %c0_58] {strides = array<i32: 2, 1>} : memref<256x48xf32, #tpu.memory_space<vmem>>, vector<2x48xf32>
    %c68 = arith.constant 68 : index
    %c0_59 = arith.constant 0 : index
    %78 = tpu.strided_load %arg7[%c68, %c0_59] {strides = array<i32: 2, 1>} : memref<256x48xf32, #tpu.memory_space<vmem>>, vector<2x48xf32>
    %c69 = arith.constant 69 : index
    %c0_60 = arith.constant 0 : index
    %79 = tpu.strided_load %arg7[%c69, %c0_60] {strides = array<i32: 2, 1>} : memref<256x48xf32, #tpu.memory_space<vmem>>, vector<2x48xf32>
    %80 = arith.maximumf %76, %77 : vector<2x48xf32>
    %81 = arith.maximumf %78, %79 : vector<2x48xf32>
    %82 = arith.maximumf %80, %81 : vector<2x48xf32>
    %c16_61 = arith.constant 16 : index
    %c0_62 = arith.constant 0 : index
    %83 = vector.load %arg5[%c16_61, %c0_62] : memref<64x48xf32, #tpu.memory_space<vmem>>, vector<2x48xf32>
    tpu.vector_store %arg5[%c16_61, %c0_62], %82 {strides = array<i32>} : memref<64x48xf32, #tpu.memory_space<vmem>>, vector<2x48xf32>,
    %c72 = arith.constant 72 : index
    %c0_63 = arith.constant 0 : index
    %84 = tpu.strided_load %arg7[%c72, %c0_63] {strides = array<i32: 2, 1>} : memref<256x48xf32, #tpu.memory_space<vmem>>, vector<2x48xf32>
    %c73 = arith.constant 73 : index
    %c0_64 = arith.constant 0 : index
    %85 = tpu.strided_load %arg7[%c73, %c0_64] {strides = array<i32: 2, 1>} : memref<256x48xf32, #tpu.memory_space<vmem>>, vector<2x48xf32>
    %c76 = arith.constant 76 : index
    %c0_65 = arith.constant 0 : index
    %86 = tpu.strided_load %arg7[%c76, %c0_65] {strides = array<i32: 2, 1>} : memref<256x48xf32, #tpu.memory_space<vmem>>, vector<2x48xf32>
    %c77 = arith.constant 77 : index
    %c0_66 = arith.constant 0 : index
    %87 = tpu.strided_load %arg7[%c77, %c0_66] {strides = array<i32: 2, 1>} : memref<256x48xf32, #tpu.memory_space<vmem>>, vector<2x48xf32>
    %88 = arith.maximumf %84, %85 : vector<2x48xf32>
    %89 = arith.maximumf %86, %87 : vector<2x48xf32>
    %90 = arith.maximumf %88, %89 : vector<2x48xf32>
    %c18 = arith.constant 18 : index
    %c0_67 = arith.constant 0 : index
    %91 = vector.load %arg5[%c18, %c0_67] : memref<64x48xf32, #tpu.memory_space<vmem>>, vector<2x48xf32>
    tpu.vector_store %arg5[%c18, %c0_67], %90 {strides = array<i32>} : memref<64x48xf32, #tpu.memory_space<vmem>>, vector<2x48xf32>,
    %c80 = arith.constant 80 : index
    %c0_68 = arith.constant 0 : index
    %92 = tpu.strided_load %arg7[%c80, %c0_68] {strides = array<i32: 2, 1>} : memref<256x48xf32, #tpu.memory_space<vmem>>, vector<2x48xf32>
    %c81 = arith.constant 81 : index
    %c0_69 = arith.constant 0 : index
    %93 = tpu.strided_load %arg7[%c81, %c0_69] {strides = array<i32: 2, 1>} : memref<256x48xf32, #tpu.memory_space<vmem>>, vector<2x48xf32>
    %c84 = arith.constant 84 : index
    %c0_70 = arith.constant 0 : index
    %94 = tpu.strided_load %arg7[%c84, %c0_70] {strides = array<i32: 2, 1>} : memref<256x48xf32, #tpu.memory_space<vmem>>, vector<2x48xf32>
    %c85 = arith.constant 85 : index
    %c0_71 = arith.constant 0 : index
    %95 = tpu.strided_load %arg7[%c85, %c0_71] {strides = array<i32: 2, 1>} : memref<256x48xf32, #tpu.memory_space<vmem>>, vector<2x48xf32>
    %96 = arith.maximumf %92, %93 : vector<2x48xf32>
    %97 = arith.maximumf %94, %95 : vector<2x48xf32>
    %98 = arith.maximumf %96, %97 : vector<2x48xf32>
    %c20_72 = arith.constant 20 : index
    %c0_73 = arith.constant 0 : index
    %99 = vector.load %arg5[%c20_72, %c0_73] : memref<64x48xf32, #tpu.memory_space<vmem>>, vector<2x48xf32>
    tpu.vector_store %arg5[%c20_72, %c0_73], %98 {strides = array<i32>} : memref<64x48xf32, #tpu.memory_space<vmem>>, vector<2x48xf32>,
    %c88 = arith.constant 88 : index
    %c0_74 = arith.constant 0 : index
    %100 = tpu.strided_load %arg7[%c88, %c0_74] {strides = array<i32: 2, 1>} : memref<256x48xf32, #tpu.memory_space<vmem>>, vector<2x48xf32>
    %c89 = arith.constant 89 : index
    %c0_75 = arith.constant 0 : index
    %101 = tpu.strided_load %arg7[%c89, %c0_75] {strides = array<i32: 2, 1>} : memref<256x48xf32, #tpu.memory_space<vmem>>, vector<2x48xf32>
    %c92 = arith.constant 92 : index
    %c0_76 = arith.constant 0 : index
    %102 = tpu.strided_load %arg7[%c92, %c0_76] {strides = array<i32: 2, 1>} : memref<256x48xf32, #tpu.memory_space<vmem>>, vector<2x48xf32>
    %c93 = arith.constant 93 : index
    %c0_77 = arith.constant 0 : index
    %103 = tpu.strided_load %arg7[%c93, %c0_77] {strides = array<i32: 2, 1>} : memref<256x48xf32, #tpu.memory_space<vmem>>, vector<2x48xf32>
    %104 = arith.maximumf %100, %101 : vector<2x48xf32>
    %105 = arith.maximumf %102, %103 : vector<2x48xf32>
    %106 = arith.maximumf %104, %105 : vector<2x48xf32>
    %c22 = arith.constant 22 : index
    %c0_78 = arith.constant 0 : index
    %107 = vector.load %arg5[%c22, %c0_78] : memref<64x48xf32, #tpu.memory_space<vmem>>, vector<2x48xf32>
    tpu.vector_store %arg5[%c22, %c0_78], %106 {strides = array<i32>} : memref<64x48xf32, #tpu.memory_space<vmem>>, vector<2x48xf32>,
    %c96 = arith.constant 96 : index
    %c0_79 = arith.constant 0 : index
    %108 = tpu.strided_load %arg7[%c96, %c0_79] {strides = array<i32: 2, 1>} : memref<256x48xf32, #tpu.memory_space<vmem>>, vector<2x48xf32>
    %c97 = arith.constant 97 : index
    %c0_80 = arith.constant 0 : index
    %109 = tpu.strided_load %arg7[%c97, %c0_80] {strides = array<i32: 2, 1>} : memref<256x48xf32, #tpu.memory_space<vmem>>, vector<2x48xf32>
    %c100 = arith.constant 100 : index
    %c0_81 = arith.constant 0 : index
    %110 = tpu.strided_load %arg7[%c100, %c0_81] {strides = array<i32: 2, 1>} : memref<256x48xf32, #tpu.memory_space<vmem>>, vector<2x48xf32>
    %c101 = arith.constant 101 : index
    %c0_82 = arith.constant 0 : index
    %111 = tpu.strided_load %arg7[%c101, %c0_82] {strides = array<i32: 2, 1>} : memref<256x48xf32, #tpu.memory_space<vmem>>, vector<2x48xf32>
    %112 = arith.maximumf %108, %109 : vector<2x48xf32>
    %113 = arith.maximumf %110, %111 : vector<2x48xf32>
    %114 = arith.maximumf %112, %113 : vector<2x48xf32>
    %c24_83 = arith.constant 24 : index
    %c0_84 = arith.constant 0 : index
    %115 = vector.load %arg5[%c24_83, %c0_84] : memref<64x48xf32, #tpu.memory_space<vmem>>, vector<2x48xf32>
    tpu.vector_store %arg5[%c24_83, %c0_84], %114 {strides = array<i32>} : memref<64x48xf32, #tpu.memory_space<vmem>>, vector<2x48xf32>,
    %c104 = arith.constant 104 : index
    %c0_85 = arith.constant 0 : index
    %116 = tpu.strided_load %arg7[%c104, %c0_85] {strides = array<i32: 2, 1>} : memref<256x48xf32, #tpu.memory_space<vmem>>, vector<2x48xf32>
    %c105 = arith.constant 105 : index
    %c0_86 = arith.constant 0 : index
    %117 = tpu.strided_load %arg7[%c105, %c0_86] {strides = array<i32: 2, 1>} : memref<256x48xf32, #tpu.memory_space<vmem>>, vector<2x48xf32>
    %c108 = arith.constant 108 : index
    %c0_87 = arith.constant 0 : index
    %118 = tpu.strided_load %arg7[%c108, %c0_87] {strides = array<i32: 2, 1>} : memref<256x48xf32, #tpu.memory_space<vmem>>, vector<2x48xf32>
    %c109 = arith.constant 109 : index
    %c0_88 = arith.constant 0 : index
    %119 = tpu.strided_load %arg7[%c109, %c0_88] {strides = array<i32: 2, 1>} : memref<256x48xf32, #tpu.memory_space<vmem>>, vector<2x48xf32>
    %120 = arith.maximumf %116, %117 : vector<2x48xf32>
    %121 = arith.maximumf %118, %119 : vector<2x48xf32>
    %122 = arith.maximumf %120, %121 : vector<2x48xf32>
    %c26 = arith.constant 26 : index
    %c0_89 = arith.constant 0 : index
    %123 = vector.load %arg5[%c26, %c0_89] : memref<64x48xf32, #tpu.memory_space<vmem>>, vector<2x48xf32>
    tpu.vector_store %arg5[%c26, %c0_89], %122 {strides = array<i32>} : memref<64x48xf32, #tpu.memory_space<vmem>>, vector<2x48xf32>,
    %c112 = arith.constant 112 : index
    %c0_90 = arith.constant 0 : index
    %124 = tpu.strided_load %arg7[%c112, %c0_90] {strides = array<i32: 2, 1>} : memref<256x48xf32, #tpu.memory_space<vmem>>, vector<2x48xf32>
    %c113 = arith.constant 113 : index
    %c0_91 = arith.constant 0 : index
    %125 = tpu.strided_load %arg7[%c113, %c0_91] {strides = array<i32: 2, 1>} : memref<256x48xf32, #tpu.memory_space<vmem>>, vector<2x48xf32>
    %c116 = arith.constant 116 : index
    %c0_92 = arith.constant 0 : index
    %126 = tpu.strided_load %arg7[%c116, %c0_92] {strides = array<i32: 2, 1>} : memref<256x48xf32, #tpu.memory_space<vmem>>, vector<2x48xf32>
    %c117 = arith.constant 117 : index
    %c0_93 = arith.constant 0 : index
    %127 = tpu.strided_load %arg7[%c117, %c0_93] {strides = array<i32: 2, 1>} : memref<256x48xf32, #tpu.memory_space<vmem>>, vector<2x48xf32>
    %128 = arith.maximumf %124, %125 : vector<2x48xf32>
    %129 = arith.maximumf %126, %127 : vector<2x48xf32>
    %130 = arith.maximumf %128, %129 : vector<2x48xf32>
    %c28_94 = arith.constant 28 : index
    %c0_95 = arith.constant 0 : index
    %131 = vector.load %arg5[%c28_94, %c0_95] : memref<64x48xf32, #tpu.memory_space<vmem>>, vector<2x48xf32>
    tpu.vector_store %arg5[%c28_94, %c0_95], %130 {strides = array<i32>} : memref<64x48xf32, #tpu.memory_space<vmem>>, vector<2x48xf32>,
    %c120 = arith.constant 120 : index
    %c0_96 = arith.constant 0 : index
    %132 = tpu.strided_load %arg7[%c120, %c0_96] {strides = array<i32: 2, 1>} : memref<256x48xf32, #tpu.memory_space<vmem>>, vector<2x48xf32>
    %c121 = arith.constant 121 : index
    %c0_97 = arith.constant 0 : index
    %133 = tpu.strided_load %arg7[%c121, %c0_97] {strides = array<i32: 2, 1>} : memref<256x48xf32, #tpu.memory_space<vmem>>, vector<2x48xf32>
    %c124 = arith.constant 124 : index
    %c0_98 = arith.constant 0 : index
    %134 = tpu.strided_load %arg7[%c124, %c0_98] {strides = array<i32: 2, 1>} : memref<256x48xf32, #tpu.memory_space<vmem>>, vector<2x48xf32>
    %c125 = arith.constant 125 : index
    %c0_99 = arith.constant 0 : index
    %135 = tpu.strided_load %arg7[%c125, %c0_99] {strides = array<i32: 2, 1>} : memref<256x48xf32, #tpu.memory_space<vmem>>, vector<2x48xf32>
    %136 = arith.maximumf %132, %133 : vector<2x48xf32>
    %137 = arith.maximumf %134, %135 : vector<2x48xf32>
    %138 = arith.maximumf %136, %137 : vector<2x48xf32>
    %c30 = arith.constant 30 : index
    %c0_100 = arith.constant 0 : index
    %139 = vector.load %arg5[%c30, %c0_100] : memref<64x48xf32, #tpu.memory_space<vmem>>, vector<2x48xf32>
    tpu.vector_store %arg5[%c30, %c0_100], %138 {strides = array<i32>} : memref<64x48xf32, #tpu.memory_space<vmem>>, vector<2x48xf32>,
    %c128 = arith.constant 128 : index
    %c0_101 = arith.constant 0 : index
    %140 = tpu.strided_load %arg7[%c128, %c0_101] {strides = array<i32: 2, 1>} : memref<256x48xf32, #tpu.memory_space<vmem>>, vector<2x48xf32>
    %c129 = arith.constant 129 : index
    %c0_102 = arith.constant 0 : index
    %141 = tpu.strided_load %arg7[%c129, %c0_102] {strides = array<i32: 2, 1>} : memref<256x48xf32, #tpu.memory_space<vmem>>, vector<2x48xf32>
    %c132 = arith.constant 132 : index
    %c0_103 = arith.constant 0 : index
    %142 = tpu.strided_load %arg7[%c132, %c0_103] {strides = array<i32: 2, 1>} : memref<256x48xf32, #tpu.memory_space<vmem>>, vector<2x48xf32>
    %c133 = arith.constant 133 : index
    %c0_104 = arith.constant 0 : index
    %143 = tpu.strided_load %arg7[%c133, %c0_104] {strides = array<i32: 2, 1>} : memref<256x48xf32, #tpu.memory_space<vmem>>, vector<2x48xf32>
    %144 = arith.maximumf %140, %141 : vector<2x48xf32>
    %145 = arith.maximumf %142, %143 : vector<2x48xf32>
    %146 = arith.maximumf %144, %145 : vector<2x48xf32>
    %c32_105 = arith.constant 32 : index
    %c0_106 = arith.constant 0 : index
    %147 = vector.load %arg5[%c32_105, %c0_106] : memref<64x48xf32, #tpu.memory_space<vmem>>, vector<2x48xf32>
    tpu.vector_store %arg5[%c32_105, %c0_106], %146 {strides = array<i32>} : memref<64x48xf32, #tpu.memory_space<vmem>>, vector<2x48xf32>,
    %c136 = arith.constant 136 : index
    %c0_107 = arith.constant 0 : index
    %148 = tpu.strided_load %arg7[%c136, %c0_107] {strides = array<i32: 2, 1>} : memref<256x48xf32, #tpu.memory_space<vmem>>, vector<2x48xf32>
    %c137 = arith.constant 137 : index
    %c0_108 = arith.constant 0 : index
    %149 = tpu.strided_load %arg7[%c137, %c0_108] {strides = array<i32: 2, 1>} : memref<256x48xf32, #tpu.memory_space<vmem>>, vector<2x48xf32>
    %c140 = arith.constant 140 : index
    %c0_109 = arith.constant 0 : index
    %150 = tpu.strided_load %arg7[%c140, %c0_109] {strides = array<i32: 2, 1>} : memref<256x48xf32, #tpu.memory_space<vmem>>, vector<2x48xf32>
    %c141 = arith.constant 141 : index
    %c0_110 = arith.constant 0 : index
    %151 = tpu.strided_load %arg7[%c141, %c0_110] {strides = array<i32: 2, 1>} : memref<256x48xf32, #tpu.memory_space<vmem>>, vector<2x48xf32>
    %152 = arith.maximumf %148, %149 : vector<2x48xf32>
    %153 = arith.maximumf %150, %151 : vector<2x48xf32>
    %154 = arith.maximumf %152, %153 : vector<2x48xf32>
    %c34 = arith.constant 34 : index
    %c0_111 = arith.constant 0 : index
    %155 = vector.load %arg5[%c34, %c0_111] : memref<64x48xf32, #tpu.memory_space<vmem>>, vector<2x48xf32>
    tpu.vector_store %arg5[%c34, %c0_111], %154 {strides = array<i32>} : memref<64x48xf32, #tpu.memory_space<vmem>>, vector<2x48xf32>,
    %c144 = arith.constant 144 : index
    %c0_112 = arith.constant 0 : index
    %156 = tpu.strided_load %arg7[%c144, %c0_112] {strides = array<i32: 2, 1>} : memref<256x48xf32, #tpu.memory_space<vmem>>, vector<2x48xf32>
    %c145 = arith.constant 145 : index
    %c0_113 = arith.constant 0 : index
    %157 = tpu.strided_load %arg7[%c145, %c0_113] {strides = array<i32: 2, 1>} : memref<256x48xf32, #tpu.memory_space<vmem>>, vector<2x48xf32>
    %c148 = arith.constant 148 : index
    %c0_114 = arith.constant 0 : index
    %158 = tpu.strided_load %arg7[%c148, %c0_114] {strides = array<i32: 2, 1>} : memref<256x48xf32, #tpu.memory_space<vmem>>, vector<2x48xf32>
    %c149 = arith.constant 149 : index
    %c0_115 = arith.constant 0 : index
    %159 = tpu.strided_load %arg7[%c149, %c0_115] {strides = array<i32: 2, 1>} : memref<256x48xf32, #tpu.memory_space<vmem>>, vector<2x48xf32>
    %160 = arith.maximumf %156, %157 : vector<2x48xf32>
    %161 = arith.maximumf %158, %159 : vector<2x48xf32>
    %162 = arith.maximumf %160, %161 : vector<2x48xf32>
    %c36_116 = arith.constant 36 : index
    %c0_117 = arith.constant 0 : index
    %163 = vector.load %arg5[%c36_116, %c0_117] : memref<64x48xf32, #tpu.memory_space<vmem>>, vector<2x48xf32>
    tpu.vector_store %arg5[%c36_116, %c0_117], %162 {strides = array<i32>} : memref<64x48xf32, #tpu.memory_space<vmem>>, vector<2x48xf32>,
    %c152 = arith.constant 152 : index
    %c0_118 = arith.constant 0 : index
    %164 = tpu.strided_load %arg7[%c152, %c0_118] {strides = array<i32: 2, 1>} : memref<256x48xf32, #tpu.memory_space<vmem>>, vector<2x48xf32>
    %c153 = arith.constant 153 : index
    %c0_119 = arith.constant 0 : index
    %165 = tpu.strided_load %arg7[%c153, %c0_119] {strides = array<i32: 2, 1>} : memref<256x48xf32, #tpu.memory_space<vmem>>, vector<2x48xf32>
    %c156 = arith.constant 156 : index
    %c0_120 = arith.constant 0 : index
    %166 = tpu.strided_load %arg7[%c156, %c0_120] {strides = array<i32: 2, 1>} : memref<256x48xf32, #tpu.memory_space<vmem>>, vector<2x48xf32>
    %c157 = arith.constant 157 : index
    %c0_121 = arith.constant 0 : index
    %167 = tpu.strided_load %arg7[%c157, %c0_121] {strides = array<i32: 2, 1>} : memref<256x48xf32, #tpu.memory_space<vmem>>, vector<2x48xf32>
    %168 = arith.maximumf %164, %165 : vector<2x48xf32>
    %169 = arith.maximumf %166, %167 : vector<2x48xf32>
    %170 = arith.maximumf %168, %169 : vector<2x48xf32>
    %c38 = arith.constant 38 : index
    %c0_122 = arith.constant 0 : index
    %171 = vector.load %arg5[%c38, %c0_122] : memref<64x48xf32, #tpu.memory_space<vmem>>, vector<2x48xf32>
    tpu.vector_store %arg5[%c38, %c0_122], %170 {strides = array<i32>} : memref<64x48xf32, #tpu.memory_space<vmem>>, vector<2x48xf32>,
    %c160 = arith.constant 160 : index
    %c0_123 = arith.constant 0 : index
    %172 = tpu.strided_load %arg7[%c160, %c0_123] {strides = array<i32: 2, 1>} : memref<256x48xf32, #tpu.memory_space<vmem>>, vector<2x48xf32>
    %c161 = arith.constant 161 : index
    %c0_124 = arith.constant 0 : index
    %173 = tpu.strided_load %arg7[%c161, %c0_124] {strides = array<i32: 2, 1>} : memref<256x48xf32, #tpu.memory_space<vmem>>, vector<2x48xf32>
    %c164 = arith.constant 164 : index
    %c0_125 = arith.constant 0 : index
    %174 = tpu.strided_load %arg7[%c164, %c0_125] {strides = array<i32: 2, 1>} : memref<256x48xf32, #tpu.memory_space<vmem>>, vector<2x48xf32>
    %c165 = arith.constant 165 : index
    %c0_126 = arith.constant 0 : index
    %175 = tpu.strided_load %arg7[%c165, %c0_126] {strides = array<i32: 2, 1>} : memref<256x48xf32, #tpu.memory_space<vmem>>, vector<2x48xf32>
    %176 = arith.maximumf %172, %173 : vector<2x48xf32>
    %177 = arith.maximumf %174, %175 : vector<2x48xf32>
    %178 = arith.maximumf %176, %177 : vector<2x48xf32>
    %c40_127 = arith.constant 40 : index
    %c0_128 = arith.constant 0 : index
    %179 = vector.load %arg5[%c40_127, %c0_128] : memref<64x48xf32, #tpu.memory_space<vmem>>, vector<2x48xf32>
    tpu.vector_store %arg5[%c40_127, %c0_128], %178 {strides = array<i32>} : memref<64x48xf32, #tpu.memory_space<vmem>>, vector<2x48xf32>,
    %c168 = arith.constant 168 : index
    %c0_129 = arith.constant 0 : index
    %180 = tpu.strided_load %arg7[%c168, %c0_129] {strides = array<i32: 2, 1>} : memref<256x48xf32, #tpu.memory_space<vmem>>, vector<2x48xf32>
    %c169 = arith.constant 169 : index
    %c0_130 = arith.constant 0 : index
    %181 = tpu.strided_load %arg7[%c169, %c0_130] {strides = array<i32: 2, 1>} : memref<256x48xf32, #tpu.memory_space<vmem>>, vector<2x48xf32>
    %c172 = arith.constant 172 : index
    %c0_131 = arith.constant 0 : index
    %182 = tpu.strided_load %arg7[%c172, %c0_131] {strides = array<i32: 2, 1>} : memref<256x48xf32, #tpu.memory_space<vmem>>, vector<2x48xf32>
    %c173 = arith.constant 173 : index
    %c0_132 = arith.constant 0 : index
    %183 = tpu.strided_load %arg7[%c173, %c0_132] {strides = array<i32: 2, 1>} : memref<256x48xf32, #tpu.memory_space<vmem>>, vector<2x48xf32>
    %184 = arith.maximumf %180, %181 : vector<2x48xf32>
    %185 = arith.maximumf %182, %183 : vector<2x48xf32>
    %186 = arith.maximumf %184, %185 : vector<2x48xf32>
    %c42 = arith.constant 42 : index
    %c0_133 = arith.constant 0 : index
    %187 = vector.load %arg5[%c42, %c0_133] : memref<64x48xf32, #tpu.memory_space<vmem>>, vector<2x48xf32>
    tpu.vector_store %arg5[%c42, %c0_133], %186 {strides = array<i32>} : memref<64x48xf32, #tpu.memory_space<vmem>>, vector<2x48xf32>,
    %c176 = arith.constant 176 : index
    %c0_134 = arith.constant 0 : index
    %188 = tpu.strided_load %arg7[%c176, %c0_134] {strides = array<i32: 2, 1>} : memref<256x48xf32, #tpu.memory_space<vmem>>, vector<2x48xf32>
    %c177 = arith.constant 177 : index
    %c0_135 = arith.constant 0 : index
    %189 = tpu.strided_load %arg7[%c177, %c0_135] {strides = array<i32: 2, 1>} : memref<256x48xf32, #tpu.memory_space<vmem>>, vector<2x48xf32>
    %c180 = arith.constant 180 : index
    %c0_136 = arith.constant 0 : index
    %190 = tpu.strided_load %arg7[%c180, %c0_136] {strides = array<i32: 2, 1>} : memref<256x48xf32, #tpu.memory_space<vmem>>, vector<2x48xf32>
    %c181 = arith.constant 181 : index
    %c0_137 = arith.constant 0 : index
    %191 = tpu.strided_load %arg7[%c181, %c0_137] {strides = array<i32: 2, 1>} : memref<256x48xf32, #tpu.memory_space<vmem>>, vector<2x48xf32>
    %192 = arith.maximumf %188, %189 : vector<2x48xf32>
    %193 = arith.maximumf %190, %191 : vector<2x48xf32>
    %194 = arith.maximumf %192, %193 : vector<2x48xf32>
    %c44_138 = arith.constant 44 : index
    %c0_139 = arith.constant 0 : index
    %195 = vector.load %arg5[%c44_138, %c0_139] : memref<64x48xf32, #tpu.memory_space<vmem>>, vector<2x48xf32>
    tpu.vector_store %arg5[%c44_138, %c0_139], %194 {strides = array<i32>} : memref<64x48xf32, #tpu.memory_space<vmem>>, vector<2x48xf32>,
    %c184 = arith.constant 184 : index
    %c0_140 = arith.constant 0 : index
    %196 = tpu.strided_load %arg7[%c184, %c0_140] {strides = array<i32: 2, 1>} : memref<256x48xf32, #tpu.memory_space<vmem>>, vector<2x48xf32>
    %c185 = arith.constant 185 : index
    %c0_141 = arith.constant 0 : index
    %197 = tpu.strided_load %arg7[%c185, %c0_141] {strides = array<i32: 2, 1>} : memref<256x48xf32, #tpu.memory_space<vmem>>, vector<2x48xf32>
    %c188 = arith.constant 188 : index
    %c0_142 = arith.constant 0 : index
    %198 = tpu.strided_load %arg7[%c188, %c0_142] {strides = array<i32: 2, 1>} : memref<256x48xf32, #tpu.memory_space<vmem>>, vector<2x48xf32>
    %c189 = arith.constant 189 : index
    %c0_143 = arith.constant 0 : index
    %199 = tpu.strided_load %arg7[%c189, %c0_143] {strides = array<i32: 2, 1>} : memref<256x48xf32, #tpu.memory_space<vmem>>, vector<2x48xf32>
    %200 = arith.maximumf %196, %197 : vector<2x48xf32>
    %201 = arith.maximumf %198, %199 : vector<2x48xf32>
    %202 = arith.maximumf %200, %201 : vector<2x48xf32>
    %c46 = arith.constant 46 : index
    %c0_144 = arith.constant 0 : index
    %203 = vector.load %arg5[%c46, %c0_144] : memref<64x48xf32, #tpu.memory_space<vmem>>, vector<2x48xf32>
    tpu.vector_store %arg5[%c46, %c0_144], %202 {strides = array<i32>} : memref<64x48xf32, #tpu.memory_space<vmem>>, vector<2x48xf32>,
    %c192 = arith.constant 192 : index
    %c0_145 = arith.constant 0 : index
    %204 = tpu.strided_load %arg7[%c192, %c0_145] {strides = array<i32: 2, 1>} : memref<256x48xf32, #tpu.memory_space<vmem>>, vector<2x48xf32>
    %c193 = arith.constant 193 : index
    %c0_146 = arith.constant 0 : index
    %205 = tpu.strided_load %arg7[%c193, %c0_146] {strides = array<i32: 2, 1>} : memref<256x48xf32, #tpu.memory_space<vmem>>, vector<2x48xf32>
    %c196 = arith.constant 196 : index
    %c0_147 = arith.constant 0 : index
    %206 = tpu.strided_load %arg7[%c196, %c0_147] {strides = array<i32: 2, 1>} : memref<256x48xf32, #tpu.memory_space<vmem>>, vector<2x48xf32>
    %c197 = arith.constant 197 : index
    %c0_148 = arith.constant 0 : index
    %207 = tpu.strided_load %arg7[%c197, %c0_148] {strides = array<i32: 2, 1>} : memref<256x48xf32, #tpu.memory_space<vmem>>, vector<2x48xf32>
    %208 = arith.maximumf %204, %205 : vector<2x48xf32>
    %209 = arith.maximumf %206, %207 : vector<2x48xf32>
    %210 = arith.maximumf %208, %209 : vector<2x48xf32>
    %c48_149 = arith.constant 48 : index
    %c0_150 = arith.constant 0 : index
    %211 = vector.load %arg5[%c48_149, %c0_150] : memref<64x48xf32, #tpu.memory_space<vmem>>, vector<2x48xf32>
    tpu.vector_store %arg5[%c48_149, %c0_150], %210 {strides = array<i32>} : memref<64x48xf32, #tpu.memory_space<vmem>>, vector<2x48xf32>,
    %c200 = arith.constant 200 : index
    %c0_151 = arith.constant 0 : index
    %212 = tpu.strided_load %arg7[%c200, %c0_151] {strides = array<i32: 2, 1>} : memref<256x48xf32, #tpu.memory_space<vmem>>, vector<2x48xf32>
    %c201 = arith.constant 201 : index
    %c0_152 = arith.constant 0 : index
    %213 = tpu.strided_load %arg7[%c201, %c0_152] {strides = array<i32: 2, 1>} : memref<256x48xf32, #tpu.memory_space<vmem>>, vector<2x48xf32>
    %c204 = arith.constant 204 : index
    %c0_153 = arith.constant 0 : index
    %214 = tpu.strided_load %arg7[%c204, %c0_153] {strides = array<i32: 2, 1>} : memref<256x48xf32, #tpu.memory_space<vmem>>, vector<2x48xf32>
    %c205 = arith.constant 205 : index
    %c0_154 = arith.constant 0 : index
    %215 = tpu.strided_load %arg7[%c205, %c0_154] {strides = array<i32: 2, 1>} : memref<256x48xf32, #tpu.memory_space<vmem>>, vector<2x48xf32>
    %216 = arith.maximumf %212, %213 : vector<2x48xf32>
    %217 = arith.maximumf %214, %215 : vector<2x48xf32>
    %218 = arith.maximumf %216, %217 : vector<2x48xf32>
    %c50 = arith.constant 50 : index
    %c0_155 = arith.constant 0 : index
    %219 = vector.load %arg5[%c50, %c0_155] : memref<64x48xf32, #tpu.memory_space<vmem>>, vector<2x48xf32>
    tpu.vector_store %arg5[%c50, %c0_155], %218 {strides = array<i32>} : memref<64x48xf32, #tpu.memory_space<vmem>>, vector<2x48xf32>,
    %c208 = arith.constant 208 : index
    %c0_156 = arith.constant 0 : index
    %220 = tpu.strided_load %arg7[%c208, %c0_156] {strides = array<i32: 2, 1>} : memref<256x48xf32, #tpu.memory_space<vmem>>, vector<2x48xf32>
    %c209 = arith.constant 209 : index
    %c0_157 = arith.constant 0 : index
    %221 = tpu.strided_load %arg7[%c209, %c0_157] {strides = array<i32: 2, 1>} : memref<256x48xf32, #tpu.memory_space<vmem>>, vector<2x48xf32>
    %c212 = arith.constant 212 : index
    %c0_158 = arith.constant 0 : index
    %222 = tpu.strided_load %arg7[%c212, %c0_158] {strides = array<i32: 2, 1>} : memref<256x48xf32, #tpu.memory_space<vmem>>, vector<2x48xf32>
    %c213 = arith.constant 213 : index
    %c0_159 = arith.constant 0 : index
    %223 = tpu.strided_load %arg7[%c213, %c0_159] {strides = array<i32: 2, 1>} : memref<256x48xf32, #tpu.memory_space<vmem>>, vector<2x48xf32>
    %224 = arith.maximumf %220, %221 : vector<2x48xf32>
    %225 = arith.maximumf %222, %223 : vector<2x48xf32>
    %226 = arith.maximumf %224, %225 : vector<2x48xf32>
    %c52_160 = arith.constant 52 : index
    %c0_161 = arith.constant 0 : index
    %227 = vector.load %arg5[%c52_160, %c0_161] : memref<64x48xf32, #tpu.memory_space<vmem>>, vector<2x48xf32>
    tpu.vector_store %arg5[%c52_160, %c0_161], %226 {strides = array<i32>} : memref<64x48xf32, #tpu.memory_space<vmem>>, vector<2x48xf32>,
    %c216 = arith.constant 216 : index
    %c0_162 = arith.constant 0 : index
    %228 = tpu.strided_load %arg7[%c216, %c0_162] {strides = array<i32: 2, 1>} : memref<256x48xf32, #tpu.memory_space<vmem>>, vector<2x48xf32>
    %c217 = arith.constant 217 : index
    %c0_163 = arith.constant 0 : index
    %229 = tpu.strided_load %arg7[%c217, %c0_163] {strides = array<i32: 2, 1>} : memref<256x48xf32, #tpu.memory_space<vmem>>, vector<2x48xf32>
    %c220 = arith.constant 220 : index
    %c0_164 = arith.constant 0 : index
    %230 = tpu.strided_load %arg7[%c220, %c0_164] {strides = array<i32: 2, 1>} : memref<256x48xf32, #tpu.memory_space<vmem>>, vector<2x48xf32>
    %c221 = arith.constant 221 : index
    %c0_165 = arith.constant 0 : index
    %231 = tpu.strided_load %arg7[%c221, %c0_165] {strides = array<i32: 2, 1>} : memref<256x48xf32, #tpu.memory_space<vmem>>, vector<2x48xf32>
    %232 = arith.maximumf %228, %229 : vector<2x48xf32>
    %233 = arith.maximumf %230, %231 : vector<2x48xf32>
    %234 = arith.maximumf %232, %233 : vector<2x48xf32>
    %c54 = arith.constant 54 : index
    %c0_166 = arith.constant 0 : index
    %235 = vector.load %arg5[%c54, %c0_166] : memref<64x48xf32, #tpu.memory_space<vmem>>, vector<2x48xf32>
    tpu.vector_store %arg5[%c54, %c0_166], %234 {strides = array<i32>} : memref<64x48xf32, #tpu.memory_space<vmem>>, vector<2x48xf32>,
    %c224 = arith.constant 224 : index
    %c0_167 = arith.constant 0 : index
    %236 = tpu.strided_load %arg7[%c224, %c0_167] {strides = array<i32: 2, 1>} : memref<256x48xf32, #tpu.memory_space<vmem>>, vector<2x48xf32>
    %c225 = arith.constant 225 : index
    %c0_168 = arith.constant 0 : index
    %237 = tpu.strided_load %arg7[%c225, %c0_168] {strides = array<i32: 2, 1>} : memref<256x48xf32, #tpu.memory_space<vmem>>, vector<2x48xf32>
    %c228 = arith.constant 228 : index
    %c0_169 = arith.constant 0 : index
    %238 = tpu.strided_load %arg7[%c228, %c0_169] {strides = array<i32: 2, 1>} : memref<256x48xf32, #tpu.memory_space<vmem>>, vector<2x48xf32>
    %c229 = arith.constant 229 : index
    %c0_170 = arith.constant 0 : index
    %239 = tpu.strided_load %arg7[%c229, %c0_170] {strides = array<i32: 2, 1>} : memref<256x48xf32, #tpu.memory_space<vmem>>, vector<2x48xf32>
    %240 = arith.maximumf %236, %237 : vector<2x48xf32>
    %241 = arith.maximumf %238, %239 : vector<2x48xf32>
    %242 = arith.maximumf %240, %241 : vector<2x48xf32>
    %c56_171 = arith.constant 56 : index
    %c0_172 = arith.constant 0 : index
    %243 = vector.load %arg5[%c56_171, %c0_172] : memref<64x48xf32, #tpu.memory_space<vmem>>, vector<2x48xf32>
    tpu.vector_store %arg5[%c56_171, %c0_172], %242 {strides = array<i32>} : memref<64x48xf32, #tpu.memory_space<vmem>>, vector<2x48xf32>,
    %c232 = arith.constant 232 : index
    %c0_173 = arith.constant 0 : index
    %244 = tpu.strided_load %arg7[%c232, %c0_173] {strides = array<i32: 2, 1>} : memref<256x48xf32, #tpu.memory_space<vmem>>, vector<2x48xf32>
    %c233 = arith.constant 233 : index
    %c0_174 = arith.constant 0 : index
    %245 = tpu.strided_load %arg7[%c233, %c0_174] {strides = array<i32: 2, 1>} : memref<256x48xf32, #tpu.memory_space<vmem>>, vector<2x48xf32>
    %c236 = arith.constant 236 : index
    %c0_175 = arith.constant 0 : index
    %246 = tpu.strided_load %arg7[%c236, %c0_175] {strides = array<i32: 2, 1>} : memref<256x48xf32, #tpu.memory_space<vmem>>, vector<2x48xf32>
    %c237 = arith.constant 237 : index
    %c0_176 = arith.constant 0 : index
    %247 = tpu.strided_load %arg7[%c237, %c0_176] {strides = array<i32: 2, 1>} : memref<256x48xf32, #tpu.memory_space<vmem>>, vector<2x48xf32>
    %248 = arith.maximumf %244, %245 : vector<2x48xf32>
    %249 = arith.maximumf %246, %247 : vector<2x48xf32>
    %250 = arith.maximumf %248, %249 : vector<2x48xf32>
    %c58 = arith.constant 58 : index
    %c0_177 = arith.constant 0 : index
    %251 = vector.load %arg5[%c58, %c0_177] : memref<64x48xf32, #tpu.memory_space<vmem>>, vector<2x48xf32>
    tpu.vector_store %arg5[%c58, %c0_177], %250 {strides = array<i32>} : memref<64x48xf32, #tpu.memory_space<vmem>>, vector<2x48xf32>,
    %c240 = arith.constant 240 : index
    %c0_178 = arith.constant 0 : index
    %252 = tpu.strided_load %arg7[%c240, %c0_178] {strides = array<i32: 2, 1>} : memref<256x48xf32, #tpu.memory_space<vmem>>, vector<2x48xf32>
    %c241 = arith.constant 241 : index
    %c0_179 = arith.constant 0 : index
    %253 = tpu.strided_load %arg7[%c241, %c0_179] {strides = array<i32: 2, 1>} : memref<256x48xf32, #tpu.memory_space<vmem>>, vector<2x48xf32>
    %c244 = arith.constant 244 : index
    %c0_180 = arith.constant 0 : index
    %254 = tpu.strided_load %arg7[%c244, %c0_180] {strides = array<i32: 2, 1>} : memref<256x48xf32, #tpu.memory_space<vmem>>, vector<2x48xf32>
    %c245 = arith.constant 245 : index
    %c0_181 = arith.constant 0 : index
    %255 = tpu.strided_load %arg7[%c245, %c0_181] {strides = array<i32: 2, 1>} : memref<256x48xf32, #tpu.memory_space<vmem>>, vector<2x48xf32>
    %256 = arith.maximumf %252, %253 : vector<2x48xf32>
    %257 = arith.maximumf %254, %255 : vector<2x48xf32>
    %258 = arith.maximumf %256, %257 : vector<2x48xf32>
    %c60_182 = arith.constant 60 : index
    %c0_183 = arith.constant 0 : index
    %259 = vector.load %arg5[%c60_182, %c0_183] : memref<64x48xf32, #tpu.memory_space<vmem>>, vector<2x48xf32>
    tpu.vector_store %arg5[%c60_182, %c0_183], %258 {strides = array<i32>} : memref<64x48xf32, #tpu.memory_space<vmem>>, vector<2x48xf32>,
    %c248 = arith.constant 248 : index
    %c0_184 = arith.constant 0 : index
    %260 = tpu.strided_load %arg7[%c248, %c0_184] {strides = array<i32: 2, 1>} : memref<256x48xf32, #tpu.memory_space<vmem>>, vector<2x48xf32>
    %c249 = arith.constant 249 : index
    %c0_185 = arith.constant 0 : index
    %261 = tpu.strided_load %arg7[%c249, %c0_185] {strides = array<i32: 2, 1>} : memref<256x48xf32, #tpu.memory_space<vmem>>, vector<2x48xf32>
    %c252 = arith.constant 252 : index
    %c0_186 = arith.constant 0 : index
    %262 = tpu.strided_load %arg7[%c252, %c0_186] {strides = array<i32: 2, 1>} : memref<256x48xf32, #tpu.memory_space<vmem>>, vector<2x48xf32>
    %c253 = arith.constant 253 : index
    %c0_187 = arith.constant 0 : index
    %263 = tpu.strided_load %arg7[%c253, %c0_187] {strides = array<i32: 2, 1>} : memref<256x48xf32, #tpu.memory_space<vmem>>, vector<2x48xf32>
    %264 = arith.maximumf %260, %261 : vector<2x48xf32>
    %265 = arith.maximumf %262, %263 : vector<2x48xf32>
    %266 = arith.maximumf %264, %265 : vector<2x48xf32>
    %c62 = arith.constant 62 : index
    %c0_188 = arith.constant 0 : index
    %267 = vector.load %arg5[%c62, %c0_188] : memref<64x48xf32, #tpu.memory_space<vmem>>, vector<2x48xf32>
    tpu.vector_store %arg5[%c62, %c0_188], %266 {strides = array<i32>} : memref<64x48xf32, #tpu.memory_space<vmem>>, vector<2x48xf32>,
    %c0_189 = arith.constant 0 : index
    %c0_190 = arith.constant 0 : index
    %268 = vector.load %arg5[%c0_189, %c0_190] : memref<64x48xf32, #tpu.memory_space<vmem>>, vector<64x48xf32>
    %cst_191 = arith.constant dense<0.000000e+00> : vector<48xf32>
    %269 = vector.multi_reduction <add>, %268, %cst_191 [0] : vector<64x48xf32> to vector<48xf32>
    %270 = vector.shape_cast %269 : vector<48xf32> to vector<1x48xf32>
    %271 = arith.mulf %268, %268 : vector<64x48xf32>
    %cst_192 = arith.constant dense<0.000000e+00> : vector<48xf32>
    %272 = vector.multi_reduction <add>, %271, %cst_192 [0] : vector<64x48xf32> to vector<48xf32>
    %273 = vector.shape_cast %272 : vector<48xf32> to vector<1x48xf32>
    %274 = vector.shape_cast %270 : vector<1x48xf32> to vector<1x1x48xf32>
    %c0_193 = arith.constant 0 : index
    %c0_194 = arith.constant 0 : index
    %c0_195 = arith.constant 0 : index
    %275 = vector.load %arg6[%c0_193, %c0_194, %c0_195] : memref<1x2x48xf32, #tpu.memory_space<vmem>>, vector<1x1x48xf32>
    tpu.vector_store %arg6[%c0_193, %c0_194, %c0_195], %274 {strides = array<i32>} : memref<1x2x48xf32, #tpu.memory_space<vmem>>, vector<1x1x48xf32>,
    %276 = vector.shape_cast %273 : vector<1x48xf32> to vector<1x1x48xf32>
    %c0_196 = arith.constant 0 : index
    %c1_197 = arith.constant 1 : index
    %c0_198 = arith.constant 0 : index
    %277 = vector.load %arg6[%c0_196, %c1_197, %c0_198] : memref<1x2x48xf32, #tpu.memory_space<vmem>>, vector<1x1x48xf32>
    tpu.vector_store %arg6[%c0_196, %c1_197, %c0_198], %276 {strides = array<i32>} : memref<1x2x48xf32, #tpu.memory_space<vmem>>, vector<1x1x48xf32>,
    return
  }
  func.func @transform_0(%arg0: i32) -> (i32, i32) {
    %c0_i32 = arith.constant 0 : i32
    %c0_i32_0 = arith.constant 0 : i32
    return %arg0, %c0_i32 : i32, i32
  }
  func.func @transform_1(%arg0: i32) -> (i32, i32) {
    %c0_i32 = arith.constant 0 : i32
    %c0_i32_0 = arith.constant 0 : i32
    %c0_i32_1 = arith.constant 0 : i32
    return %c0_i32, %c0_i32_0 : i32, i32
  }
  func.func @transform_2(%arg0: i32) -> (i32, i32) {
    %c0_i32 = arith.constant 0 : i32
    %c0_i32_0 = arith.constant 0 : i32
    return %arg0, %c0_i32 : i32, i32
  }
  func.func @transform_3(%arg0: i32) -> (i32, i32) {
    %c0_i32 = arith.constant 0 : i32
    %c0_i32_0 = arith.constant 0 : i32
    %c0_i32_1 = arith.constant 0 : i32
    return %c0_i32, %c0_i32_0 : i32, i32
  }
  func.func @transform_4(%arg0: i32) -> (i32, i32) {
    %c0_i32 = arith.constant 0 : i32
    %c0_i32_0 = arith.constant 0 : i32
    return %arg0, %c0_i32 : i32, i32
  }
  func.func @transform_5(%arg0: i32) -> (i32, i32, i32) {
    %c0_i32 = arith.constant 0 : i32
    %c0_i32_0 = arith.constant 0 : i32
    %c0_i32_1 = arith.constant 0 : i32
    return %arg0, %c0_i32, %c0_i32_0 : i32, i32, i32
  }
}

</mosaic_0001>

<bundles_post_ra>
// kernel: rkhs_vnn_forward.3
= control target key start
LH: loop header
LB: loop body
LE: loop exit
PB: predicated region body
PF: predicated region fallthrough
CT: control target
= control target key end

     0   :  { %s2615_s12 = smov 0   ;;  %s3082_s0 = inlined_call_operand.vmem [shape: bf16[8192,81], index: 0, kind: input, shape index: {}]   ;;  %s3083_s1 = inlined_call_operand.vmem [shape: bf16[81,16], index: 1, kind: input, shape index: {}]   ;;  %s3084_s2 = inlined_call_operand.vmem [shape: f32[2048,16], index: 2, kind: output, shape index: {0}]   ;;  %s3085_s3 = inlined_call_operand.vmem [shape: f32[8,2,16], index: 3, kind: output, shape index: {1}]  }
   0x1 LB: > { %s2621_s13 = sadd.s32 4294967295, %s2592_s12   ;;  %p2142_p0 = scmp.ge.s32.totalorder %s2592_s12, 1  ;;  %s2592_s12 = sphi %s2615_s12, %s14_s12  }
   0x2   : > { %p141_p1 = scmp.lt.s32.totalorder %s2592_s12, 9 }
   0x4   : > { %p142_p2 = pnand %p2142_p0, %p141_p1 }
   0x5   : > { %s2143_s18 = sshll.u32 (!%p142_p2), %s2621_s13, 7  ;;  %s2145_s4 = sshll.u32 (!%p142_p2), %s2621_s13, 5 }
   0x6   : > { %145 = sbr.rel (%p142_p2) target bundleno = 505 (0x1f9), region = 28  ;;  %p170_p3 = scmp.lt.s32.totalorder (!%p142_p2), %s2143_s18, 1023 }
   0x7   : > { %p176_p4 = scmp.lt.s32.totalorder (!%p142_p2), %s2145_s4, 255  ;;  %p181_p5 = scmp.lt.s32.totalorder (!%p142_p2), %s2621_s13, 7 }
   0xb   : > { %v324_v0 = vld [vmem:[%s3083_s1 + $0x28] sm:$0x1]  ;;  %vm871_vm0 = vcmask 1040384   ;;  %v2594_v2 = vmov 0   ;;  %v2558_v6 = vld [vmem:[%s3083_s1 + $0x20] sm:$0xff]  ;;  %v2557_v7 = vld [vmem:[%s3083_s1 + $0x18] sm:$0xff] }
   0xc   : > { %v666_v1 = vunpack.c.l.b16 %v324_v0  ;;  %v873_v3 = vsel %vm871_vm0, 65535, %v2594_v2  ;;  %v2556_v8 = vld [vmem:[%s3083_s1 + $0x10] sm:$0xff]  ;;  %s3087_s18 = smov (!%p170_p3, %s2143_s18), 1023  ;;  %v2555_v9 = vld [vmem:[%s3083_s1 + $0x8] sm:$0xff]  ;;  %v2554_v10 = vld [vmem:[%s3083_s1] sm:$0xff]  ;;  %vm678_vm1 = vcmask 662528  }
   0xd   : > { %s2144_s25 = sshll.u32 %s3087_s18, 2  ;;  %vm1334_vm2 = vcmask 130048   ;;  %s3089_s4 = smov (!%p176_p4, %s2145_s4), 255  ;;  %vm2048_vm3 = vcmask 122880  }
   0xe   : > { %v672_v4 = vpack.c.b16 %v666_v1, %v666_v1  ;;  %s2647_s30 = scalar_lea.vmem %s3082_s0, %s2144_s25  ;;  %s2146_s5 = sshll.u32 %s3089_s4, 3 }
   0xf   : > { %v2490_v11 = vld [vmem:[%s2647_s30] sm:$0xff]  ;;  %v2491_v15 = vld [vmem:[%s2647_s30 + $0x8] sm:$0xff]  ;;  %v2492_v19 = vld [vmem:[%s2647_s30 + $0x10] sm:$0xff]  ;;  %s2760_s8 = scalar_lea.vmem %s3084_s2, %s2146_s5  ;;  %s3091_s13 = smov (!%p181_p5, %s2621_s13), 7 }
  0x10   : > { %v875_v5 = vand.u32 %v873_v3, %v672_v4  ;;  %v2506_v12 = vld [vmem:[%s2647_s30 + $0x80] sm:$0xff]  ;;  %v2507_v16 = vld [vmem:[%s2647_s30 + $0x88] sm:$0xff]  ;;  %v2508_v20 = vld [vmem:[%s2647_s30 + $0x90] sm:$0xff]  ;;  %s2147_s9 = sshll.u32 %s3091_s13, 1 }
  0x11   : > { %v2522_v13 = vld [vmem:[%s2647_s30 + $0x100] sm:$0xff]  ;;  %v2523_v17 = vld [vmem:[%s2647_s30 + $0x108] sm:$0xff]  ;;  %v2524_v21 = vld [vmem:[%s2647_s30 + $0x110] sm:$0xff]  ;;  %s184_s14 = scalar_lea.vmem %s3085_s3, %s2147_s9 }
  0x12   : > { %879 = vmatpush.bf16.msra.mxu0 %v875_v5  ;;  %2559 = vmatpush.bf16.msra.mxu1 %v875_v5  ;;  %v2538_v14 = vld [vmem:[%s2647_s30 + $0x180] sm:$0xff]  ;;  %v2539_v18 = vld [vmem:[%s2647_s30 + $0x188] sm:$0xff]  ;;  %v2540_v22 = vld [vmem:[%s2647_s30 + $0x190] sm:$0xff] }
  0x13   : > { %2560 = vmatpush.bf16.msra.mxu2 %v875_v5  ;;  %2561 = vmatpush.bf16.msra.mxu3 %v875_v5  ;;  %v2493_v23 = vld [vmem:[%s2647_s30 + $0x18] sm:$0xff]  ;;  %v2494_v27 = vld [vmem:[%s2647_s30 + $0x20] sm:$0xff]  ;;  %v2495_v31 = vld [vmem:[%s2647_s30 + $0x28] sm:$0xff] }
  0x14   : > { %v2509_v24 = vld [vmem:[%s2647_s30 + $0x98] sm:$0xff]  ;;  %v2510_v28 = vld [vmem:[%s2647_s30 + $0xa0] sm:$0xff]  ;;  %v2511_v32 = vld [vmem:[%s2647_s30 + $0xa8] sm:$0xff] }
  0x15   : > { %v2525_v25 = vld [vmem:[%s2647_s30 + $0x118] sm:$0xff]  ;;  %v2526_v29 = vld [vmem:[%s2647_s30 + $0x120] sm:$0xff]  ;;  %v2527_v33 = vld [vmem:[%s2647_s30 + $0x128] sm:$0xff] }
  0x16   : > { %880 = vmatpush.bf16.msra.mxu0 %v2558_v6  ;;  %2562 = vmatpush.bf16.msra.mxu1 %v2558_v6  ;;  %v2541_v26 = vld [vmem:[%s2647_s30 + $0x198] sm:$0xff]  ;;  %v2542_v30 = vld [vmem:[%s2647_s30 + $0x1a0] sm:$0xff]  ;;  %v2543_v34 = vld [vmem:[%s2647_s30 + $0x1a8] sm:$0xff] }
  0x17   : > { %2563 = vmatpush.bf16.msra.mxu2 %v2558_v6  ;;  %2564 = vmatpush.bf16.msra.mxu3 %v2558_v6  ;;  %v2496_v35 = vld [vmem:[%s2647_s30 + $0x30] sm:$0xff]  ;;  %v2497_v39 = vld [vmem:[%s2647_s30 + $0x38] sm:$0xff]  ;;  %v2498_v43 = vld [vmem:[%s2647_s30 + $0x40] sm:$0xff] }
  0x18   : > { %v2512_v36 = vld [vmem:[%s2647_s30 + $0xb0] sm:$0xff]  ;;  %v2513_v40 = vld [vmem:[%s2647_s30 + $0xb8] sm:$0xff]  ;;  %v2514_v44 = vld [vmem:[%s2647_s30 + $0xc0] sm:$0xff] }
  0x19   : > { %v2528_v37 = vld [vmem:[%s2647_s30 + $0x130] sm:$0xff]  ;;  %v2529_v41 = vld [vmem:[%s2647_s30 + $0x138] sm:$0xff]  ;;  %v2530_v47 = vld [vmem:[%s2647_s30 + $0x140] sm:$0xff] }
  0x1a   : > { %881 = vmatpush.bf16.msra.mxu0 %v2557_v7  ;;  %2565 = vmatpush.bf16.msra.mxu1 %v2557_v7  ;;  %v2544_v38 = vld [vmem:[%s2647_s30 + $0x1b0] sm:$0xff]  ;;  %v2545_v42 = vld [vmem:[%s2647_s30 + $0x1b8] sm:$0xff]  ;;  %v2546_v48 = vld [vmem:[%s2647_s30 + $0x1c0] sm:$0xff] }
  0x1b   : > { %2566 = vmatpush.bf16.msra.mxu2 %v2557_v7  ;;  %2567 = vmatpush.bf16.msra.mxu3 %v2557_v7  ;;  %v2499_v0 = vld [vmem:[%s2647_s30 + $0x48] sm:$0xff] }
  0x1c   : > { %v2515_v1 = vld [vmem:[%s2647_s30 + $0xc8] sm:$0xff] }
  0x1d   : > { %v2531_v6 = vld [vmem:[%s2647_s30 + $0x148] sm:$0xff] }
  0x1e   : > { %882 = vmatpush.bf16.msra.mxu0 %v2556_v8  ;;  %2568 = vmatpush.bf16.msra.mxu1 %v2556_v8  ;;  %v2547_v7 = vld [vmem:[%s2647_s30 + $0x1c8] sm:$0xff] }
  0x1f   : > { %2569 = vmatpush.bf16.msra.mxu2 %v2556_v8  ;;  %2570 = vmatpush.bf16.msra.mxu3 %v2556_v8 }
  0x22   : > { %883 = vmatpush.bf16.msra.mxu0 %v2555_v9  ;;  %2571 = vmatpush.bf16.msra.mxu1 %v2555_v9 }
  0x23   : > { %2572 = vmatpush.bf16.msra.mxu2 %v2555_v9  ;;  %2573 = vmatpush.bf16.msra.mxu3 %v2555_v9 }
  0x26   : > { %884 = vmatpush.bf16.msra.mxu0 %v2554_v10  ;;  %2574 = vmatpush.bf16.msra.mxu1 %v2554_v10 }
  0x27   : > { %2575 = vmatpush.bf16.msra.mxu2 %v2554_v10  ;;  %2576 = vmatpush.bf16.msra.mxu3 %v2554_v10 }
  0x29   : > { %2424 = vmatmul.msk.bf16.vlgmr.msra.gmra.mxu0 %vm678_vm1, %v2490_v11  ;;  %2440 = vmatmul.msk.bf16.vlgmr.msra.gmra.mxu1 %vm678_vm1, %v2506_v12 }
  0x2a   : > { %2456 = vmatmul.msk.bf16.vlgmr.msra.gmra.mxu2 %vm678_vm1, %v2522_v13  ;;  %2472 = vmatmul.msk.bf16.vlgmr.msra.gmra.mxu3 %vm678_vm1, %v2538_v14 }
  0x39   : > { %2425 = vmatmul.msk.bf16.gmra.mxu0 %vm678_vm1, %v2491_v15  ;;  %2441 = vmatmul.msk.bf16.gmra.mxu1 %vm678_vm1, %v2507_v16 }
  0x3a   : > { %2457 = vmatmul.msk.bf16.gmra.mxu2 %vm678_vm1, %v2523_v17  ;;  %2473 = vmatmul.msk.bf16.gmra.mxu3 %vm678_vm1, %v2539_v18 }
  0x49   : > { %2426 = vmatmul.msk.bf16.gmra.mxu0 %vm678_vm1, %v2492_v19  ;;  %2442 = vmatmul.msk.bf16.gmra.mxu1 %vm678_vm1, %v2508_v20 }
  0x4a   : > { %2458 = vmatmul.msk.bf16.gmra.mxu2 %vm678_vm1, %v2524_v21  ;;  %2474 = vmatmul.msk.bf16.gmra.mxu3 %vm678_vm1, %v2540_v22 }
  0x59   : > { %2427 = vmatmul.msk.bf16.gmra.mxu0 %vm678_vm1, %v2493_v23  ;;  %2443 = vmatmul.msk.bf16.gmra.mxu1 %vm678_vm1, %v2509_v24 }
  0x5a   : > { %2459 = vmatmul.msk.bf16.gmra.mxu2 %vm678_vm1, %v2525_v25  ;;  %2475 = vmatmul.msk.bf16.gmra.mxu3 %vm678_vm1, %v2541_v26 }
  0x69   : > { %2428 = vmatmul.msk.bf16.gmra.mxu0 %vm678_vm1, %v2494_v27  ;;  %2444 = vmatmul.msk.bf16.gmra.mxu1 %vm678_vm1, %v2510_v28 }
  0x6a   : > { %2460 = vmatmul.msk.bf16.gmra.mxu2 %vm678_vm1, %v2526_v29  ;;  %2476 = vmatmul.msk.bf16.gmra.mxu3 %vm678_vm1, %v2542_v30  ;;  %v2500_v30 = vld [vmem:[%s2647_s30 + $0x50] sm:$0xff] }
  0x79   : > { %2429 = vmatmul.msk.bf16.gmra.mxu0 %vm678_vm1, %v2495_v31  ;;  %2445 = vmatmul.msk.bf16.gmra.mxu1 %vm678_vm1, %v2511_v32  ;;  %v2516_v31 = vld [vmem:[%s2647_s30 + $0xd0] sm:$0xff] }
  0x7a   : > { %2461 = vmatmul.msk.bf16.gmra.mxu2 %vm678_vm1, %v2527_v33  ;;  %2477 = vmatmul.msk.bf16.gmra.mxu3 %vm678_vm1, %v2543_v34 }
  0x89   : > { %2430 = vmatmul.msk.bf16.gmra.mxu0 %vm678_vm1, %v2496_v35  ;;  %2446 = vmatmul.msk.bf16.gmra.mxu1 %vm678_vm1, %v2512_v36  ;;  %v2532_v36 = vld [vmem:[%s2647_s30 + $0x150] sm:$0xff] }
  0x8a   : > { %2462 = vmatmul.msk.bf16.gmra.mxu2 %vm678_vm1, %v2528_v37  ;;  %2478 = vmatmul.msk.bf16.gmra.mxu3 %vm678_vm1, %v2544_v38  ;;  %v2548_v38 = vld [vmem:[%s2647_s30 + $0x1d0] sm:$0xff] }
  0x99   : > { %2431 = vmatmul.msk.bf16.gmra.mxu0 %vm678_vm1, %v2497_v39  ;;  %2447 = vmatmul.msk.bf16.gmra.mxu1 %vm678_vm1, %v2513_v40 }
  0x9a   : > { %2463 = vmatmul.msk.bf16.gmra.mxu2 %vm678_vm1, %v2529_v41  ;;  %2479 = vmatmul.msk.bf16.gmra.mxu3 %vm678_vm1, %v2545_v42 }
  0xa6   : > { %v886_v45 = vpop.f32.mrf.mxu0  ;;  %v966_v46 = vpop.f32.mrf.mxu1 }
  0xa7   : > { %v887_v49 = vadd.f32 1.0, %v886_v45  ;;  %v967_v50 = vadd.f32 1.0, %v966_v46 }
  0xa9   : > { %v1206_v51 = vmax.f32 %v887_v49, 0.0  ;;  %v1238_v52 = vmax.f32 %v967_v50, 0.0  ;;  %2432 = vmatmul.msk.bf16.gmra.mxu0 %vm678_vm1, %v2498_v43  ;;  %2448 = vmatmul.msk.bf16.gmra.mxu1 %vm678_vm1, %v2514_v44 }
  0xaa   : > { %2464 = vmatmul.msk.bf16.gmra.mxu2 %vm678_vm1, %v2530_v47  ;;  %2480 = vmatmul.msk.bf16.gmra.mxu3 %vm678_vm1, %v2546_v48 }
  0xab   : > { %1335 = vst.msk [vmem:[#allocation2] sm:$0xff] %vm1334_vm2, %v1206_v51 }
  0xac   : > { %1367 = vst.msk [vmem:[#allocation2 + $0x100] sm:$0xff] %vm1334_vm2, %v1238_v52 }
  0xad   : > { %v1046_v53 = vpop.f32.mrf.mxu2  ;;  %v1126_v54 = vpop.f32.mrf.mxu3 }
  0xae   : > { %v888_v55 = vpop.f32.mrf.mxu0  ;;  %v968_v56 = vpop.f32.mrf.mxu1  ;;  %v1047_v57 = vadd.f32 1.0, %v1046_v53  ;;  %v1127_v11 = vadd.f32 1.0, %v1126_v54 }
  0xaf   : > { %v889_v58 = vadd.f32 1.0, %v888_v55  ;;  %v969_v59 = vadd.f32 1.0, %v968_v56 }
  0xb0   : > { %v1270_v60 = vmax.f32 %v1047_v57, 0.0  ;;  %v1302_v15 = vmax.f32 %v1127_v11, 0.0 }
  0xb1   : > { %v1207_v61 = vmax.f32 %v889_v58, 0.0  ;;  %v1239_v62 = vmax.f32 %v969_v59, 0.0 }
  0xb2   : > { %1399 = vst.msk [vmem:[#allocation2 + $0x200] sm:$0xff] %vm1334_vm2, %v1270_v60 }
  0xb3   : > { %1336 = vst.msk [vmem:[#allocation2 + $0x8] sm:$0xff] %vm1334_vm2, %v1207_v61 }
  0xb4   : > { %1368 = vst.msk [vmem:[#allocation2 + $0x108] sm:$0xff] %vm1334_vm2, %v1239_v62 }
  0xb5   : > { %v1048_v63 = vpop.f32.mrf.mxu2  ;;  %v1128_v2 = vpop.f32.mrf.mxu3  ;;  %1431 = vst.msk [vmem:[#allocation2 + $0x300] sm:$0xff] %vm1334_vm2, %v1302_v15 }
  0xb6   : > { %v891_v3 = vpop.f32.mrf.mxu0  ;;  %v971_v4 = vpop.f32.mrf.mxu1  ;;  %v1049_v5 = vadd.f32 1.0, %v1048_v63  ;;  %v1129_v12 = vadd.f32 1.0, %v1128_v2 }
  0xb7   : > { %v892_v8 = vadd.f32 1.0, %v891_v3  ;;  %v972_v9 = vadd.f32 1.0, %v971_v4 }
  0xb8   : > { %v1271_v10 = vmax.f32 %v1049_v5, 0.0  ;;  %v1303_v16 = vmax.f32 %v1129_v12, 0.0 }
  0xb9   : > { %v1208_v13 = vmax.f32 %v892_v8, 0.0  ;;  %v1240_v14 = vmax.f32 %v972_v9, 0.0  ;;  %2433 = vmatmul.msk.bf16.gmra.mxu0 %vm678_vm1, %v2499_v0  ;;  %2449 = vmatmul.msk.bf16.gmra.mxu1 %vm678_vm1, %v2515_v1 }
  0xba   : > { %1400 = vst.msk [vmem:[#allocation2 + $0x208] sm:$0xff] %vm1334_vm2, %v1271_v10  ;;  %2465 = vmatmul.msk.bf16.gmra.mxu2 %vm678_vm1, %v2531_v6  ;;  %2481 = vmatmul.msk.bf16.gmra.mxu3 %vm678_vm1, %v2547_v7  ;;  %v1463_v39 = vld [vmem:[#allocation2] ss:$2 sm:$0xff]  ;;  %v1465_v42 = vld [vmem:[#allocation2 + $0x1] ss:$2 sm:$0xff] }
  0xbb   : > { %1337 = vst.msk [vmem:[#allocation2 + $0x10] sm:$0xff] %vm1334_vm2, %v1208_v13  ;;  %v1559_v43 = vld [vmem:[#allocation2 + $0x100] ss:$2 sm:$0xff]  ;;  %v1561_v45 = vld [vmem:[#allocation2 + $0x101] ss:$2 sm:$0xff]  ;;  %v1470_v51 = vmax.f32 %v1463_v39, %v1465_v42 }
  0xbc   : > { %1369 = vst.msk [vmem:[#allocation2 + $0x110] sm:$0xff] %vm1334_vm2, %v1240_v14  ;;  %v1566_v55 = vmax.f32 %v1559_v43, %v1561_v45 }
  0xbd   : > { %v1051_v17 = vpop.f32.mrf.mxu2  ;;  %v1131_v18 = vpop.f32.mrf.mxu3  ;;  %1432 = vst.msk [vmem:[#allocation2 + $0x308] sm:$0xff] %vm1334_vm2, %v1303_v16 }
  0xbe   : > { %v893_v19 = vpop.f32.mrf.mxu0  ;;  %v973_v20 = vpop.f32.mrf.mxu1  ;;  %v1052_v21 = vadd.f32 1.0, %v1051_v17  ;;  %v1132_v22 = vadd.f32 1.0, %v1131_v18 }
  0xbf   : > { %v894_v23 = vadd.f32 1.0, %v893_v19  ;;  %v974_v24 = vadd.f32 1.0, %v973_v20  ;;  %v2501_v19 = vld [vmem:[%s2647_s30 + $0x58] sm:$0xff] }
  0xc0   : > { %v1272_v25 = vmax.f32 %v1052_v21, 0.0  ;;  %v1304_v28 = vmax.f32 %v1132_v22, 0.0  ;;  %v2517_v20 = vld [vmem:[%s2647_s30 + $0xd8] sm:$0xff] }
  0xc1   : > { %v1209_v26 = vmax.f32 %v894_v23, 0.0  ;;  %v1241_v27 = vmax.f32 %v974_v24, 0.0  ;;  %v1655_v57 = vld [vmem:[#allocation2 + $0x200] ss:$2 sm:$0xff]  ;;  %v1657_v58 = vld [vmem:[#allocation2 + $0x201] ss:$2 sm:$0xff] }
  0xc2   : > { %1401 = vst.msk [vmem:[#allocation2 + $0x210] sm:$0xff] %vm1334_vm2, %v1272_v25  ;;  %v1662_v4 = vmax.f32 %v1655_v57, %v1657_v58  ;;  %v2533_v25 = vld [vmem:[%s2647_s30 + $0x158] sm:$0xff]  ;;  %v2550_v58 = vld [vmem:[%s2647_s30 + $0x1e0] sm:$0xff] }
  0xc3   : > { %1338 = vst.msk [vmem:[#allocation2 + $0x18] sm:$0xff] %vm1334_vm2, %v1209_v26  ;;  %v2549_v26 = vld [vmem:[%s2647_s30 + $0x1d8] sm:$0xff] }
  0xc4   : > { %1370 = vst.msk [vmem:[#allocation2 + $0x118] sm:$0xff] %vm1334_vm2, %v1241_v27  ;;  %v1751_v11 = vld [vmem:[#allocation2 + $0x300] ss:$2 sm:$0xff]  ;;  %v1753_v12 = vld [vmem:[#allocation2 + $0x301] ss:$2 sm:$0xff] }
  0xc5   : > { %v1053_v29 = vpop.f32.mrf.mxu2  ;;  %1433 = vst.msk [vmem:[#allocation2 + $0x310] sm:$0xff] %vm1334_vm2, %v1304_v28  ;;  %v1133_v32 = vpop.f32.mrf.mxu3  ;;  %v1758_v16 = vmax.f32 %v1751_v11, %v1753_v12 }
  0xc6   : > { %v896_v33 = vpop.f32.mrf.mxu0  ;;  %v976_v34 = vpop.f32.mrf.mxu1  ;;  %v1054_v35 = vadd.f32 1.0, %v1053_v29  ;;  %v1134_v37 = vadd.f32 1.0, %v1133_v32 }
  0xc7   : > { %v897_v40 = vadd.f32 1.0, %v896_v33  ;;  %v977_v41 = vadd.f32 1.0, %v976_v34 }
  0xc8   : > { %v1273_v44 = vmax.f32 %v1054_v35, 0.0  ;;  %v1305_v48 = vmax.f32 %v1134_v37, 0.0 }
  0xc9   : > { %v1210_v46 = vmax.f32 %v897_v40, 0.0  ;;  %v1242_v47 = vmax.f32 %v977_v41, 0.0  ;;  %2434 = vmatmul.msk.bf16.gmra.mxu0 %vm678_vm1, %v2500_v30  ;;  %2450 = vmatmul.msk.bf16.gmra.mxu1 %vm678_vm1, %v2516_v31 }
  0xca   : > { %v1467_v49 = vld [vmem:[#allocation2 + $0x10] ss:$2 sm:$0xff]  ;;  %v1469_v50 = vld [vmem:[#allocation2 + $0x11] ss:$2 sm:$0xff]  ;;  %1402 = vst.msk [vmem:[#allocation2 + $0x218] sm:$0xff] %vm1334_vm2, %v1273_v44  ;;  %2466 = vmatmul.msk.bf16.gmra.mxu2 %vm678_vm1, %v2532_v36  ;;  %2482 = vmatmul.msk.bf16.gmra.mxu3 %vm678_vm1, %v2548_v38 }
  0xcb   : > { %v1471_v52 = vmax.f32 %v1467_v49, %v1469_v50  ;;  %v1563_v53 = vld [vmem:[#allocation2 + $0x110] ss:$2 sm:$0xff]  ;;  %v1565_v54 = vld [vmem:[#allocation2 + $0x111] ss:$2 sm:$0xff]  ;;  %1339 = vst.msk [vmem:[#allocation2 + $0x20] sm:$0xff] %vm1334_vm2, %v1210_v46  ;;  %v2502_v50 = vld [vmem:[%s2647_s30 + $0x60] sm:$0xff] }
  0xcc   : > { %v1567_v56 = vmax.f32 %v1563_v53, %v1565_v54  ;;  %1371 = vst.msk [vmem:[#allocation2 + $0x120] sm:$0xff] %vm1334_vm2, %v1242_v47 }
  0xcd   : > { %v1472_v59 = vmax.f32 %v1470_v51, %v1471_v52  ;;  %v1056_v60 = vpop.f32.mrf.mxu2  ;;  %1434 = vst.msk [vmem:[#allocation2 + $0x318] sm:$0xff] %vm1334_vm2, %v1305_v48  ;;  %v1136_v61 = vpop.f32.mrf.mxu3  ;;  %v2518_v51 = vld [vmem:[%s2647_s30 + $0xe0] sm:$0xff] }
  0xce   : > { %v1568_v62 = vmax.f32 %v1566_v55, %v1567_v56  ;;  %v898_v63 = vpop.f32.mrf.mxu0  ;;  %v978_v0 = vpop.f32.mrf.mxu1  ;;  %v1057_v1 = vadd.f32 1.0, %v1056_v60  ;;  %v1137_v33 = vadd.f32 1.0, %v1136_v61  ;;  %v2534_v56 = vld [vmem:[%s2647_s30 + $0x160] sm:$0xff] }
  0xcf   : > { %1473 = vst.msk [vmem:[%s2760_s8] sm:$0xff] %vm1334_vm2, %v1472_v59  ;;  %v899_v2 = vadd.f32 1.0, %v898_v63  ;;  %v979_v3 = vadd.f32 1.0, %v978_v0 }
  0xd0   : > { %1569 = vst.msk [vmem:[%s2760_s8 + $0x40] sm:$0xff] %vm1334_vm2, %v1568_v62  ;;  %v1274_v5 = vmax.f32 %v1057_v1, 0.0  ;;  %v1306_v34 = vmax.f32 %v1137_v33, 0.0 }
  0xd1   : > { %v1659_v6 = vld [vmem:[#allocation2 + $0x210] ss:$2 sm:$0xff]  ;;  %v1661_v7 = vld [vmem:[#allocation2 + $0x211] ss:$2 sm:$0xff]  ;;  %v1211_v8 = vmax.f32 %v899_v2, 0.0  ;;  %v1243_v9 = vmax.f32 %v979_v3, 0.0 }
  0xd2   : > { %v1663_v10 = vmax.f32 %v1659_v6, %v1661_v7  ;;  %1403 = vst.msk [vmem:[#allocation2 + $0x220] sm:$0xff] %vm1334_vm2, %v1274_v5 }
  0xd3   : > { %1340 = vst.msk [vmem:[#allocation2 + $0x28] sm:$0xff] %vm1334_vm2, %v1211_v8 }
  0xd4   : > { %v1664_v13 = vmax.f32 %v1662_v4, %v1663_v10  ;;  %1372 = vst.msk [vmem:[#allocation2 + $0x128] sm:$0xff] %vm1334_vm2, %v1243_v9  ;;  %v1755_v14 = vld [vmem:[#allocation2 + $0x310] ss:$2 sm:$0xff]  ;;  %v1757_v15 = vld [vmem:[#allocation2 + $0x311] ss:$2 sm:$0xff] }
  0xd5   : > { %v1058_v17 = vpop.f32.mrf.mxu2  ;;  %v1759_v18 = vmax.f32 %v1755_v14, %v1757_v15  ;;  %v1138_v21 = vpop.f32.mrf.mxu3  ;;  %1435 = vst.msk [vmem:[#allocation2 + $0x320] sm:$0xff] %vm1334_vm2, %v1306_v34 }
  0xd6   : > { %1665 = vst.msk [vmem:[%s2760_s8 + $0x80] sm:$0xff] %vm1334_vm2, %v1664_v13  ;;  %v901_v22 = vpop.f32.mrf.mxu0  ;;  %v981_v23 = vpop.f32.mrf.mxu1  ;;  %v1059_v24 = vadd.f32 1.0, %v1058_v17  ;;  %v1139_v35 = vadd.f32 1.0, %v1138_v21 }
  0xd7   : > { %v902_v27 = vadd.f32 1.0, %v901_v22  ;;  %v982_v28 = vadd.f32 1.0, %v981_v23  ;;  %v1760_v32 = vmax.f32 %v1758_v16, %v1759_v18 }
  0xd8   : > { %v1275_v29 = vmax.f32 %v1059_v24, 0.0  ;;  %v1307_v41 = vmax.f32 %v1139_v35, 0.0 }
  0xd9   : > { %v1212_v30 = vmax.f32 %v902_v27, 0.0  ;;  %v1244_v31 = vmax.f32 %v982_v28, 0.0  ;;  %2435 = vmatmul.msk.bf16.gmra.mxu0 %vm678_vm1, %v2501_v19  ;;  %2451 = vmatmul.msk.bf16.gmra.mxu1 %vm678_vm1, %v2517_v20  ;;  %1761 = vst.msk [vmem:[%s2760_s8 + $0xc0] sm:$0xff] %vm1334_vm2, %v1760_v32 }
  0xda   : > { %1404 = vst.msk [vmem:[#allocation2 + $0x228] sm:$0xff] %vm1334_vm2, %v1275_v29  ;;  %2467 = vmatmul.msk.bf16.gmra.mxu2 %vm678_vm1, %v2533_v25  ;;  %2483 = vmatmul.msk.bf16.gmra.mxu3 %vm678_vm1, %v2549_v26  ;;  %v1475_v59 = vld [vmem:[#allocation2 + $0x20] ss:$2 sm:$0xff]  ;;  %v1477_v62 = vld [vmem:[#allocation2 + $0x21] ss:$2 sm:$0xff] }
  0xdb   : > { %1341 = vst.msk [vmem:[#allocation2 + $0x30] sm:$0xff] %vm1334_vm2, %v1212_v30  ;;  %v1571_v63 = vld [vmem:[#allocation2 + $0x120] ss:$2 sm:$0xff]  ;;  %v1573_v1 = vld [vmem:[#allocation2 + $0x121] ss:$2 sm:$0xff]  ;;  %v1482_v7 = vmax.f32 %v1475_v59, %v1477_v62 }
  0xdc   : > { %1373 = vst.msk [vmem:[#allocation2 + $0x130] sm:$0xff] %vm1334_vm2, %v1244_v31  ;;  %v1578_v11 = vmax.f32 %v1571_v63, %v1573_v1 }
  0xdd   : > { %v1061_v36 = vpop.f32.mrf.mxu2  ;;  %v1141_v37 = vpop.f32.mrf.mxu3  ;;  %1436 = vst.msk [vmem:[#allocation2 + $0x328] sm:$0xff] %vm1334_vm2, %v1307_v41 }
  0xde   : > { %v903_v38 = vpop.f32.mrf.mxu0  ;;  %v983_v39 = vpop.f32.mrf.mxu1  ;;  %v1062_v40 = vadd.f32 1.0, %v1061_v36  ;;  %v1142_v44 = vadd.f32 1.0, %v1141_v37 }
  0xdf   : > { %v904_v42 = vadd.f32 1.0, %v903_v38  ;;  %v984_v43 = vadd.f32 1.0, %v983_v39  ;;  %v2503_v39 = vld [vmem:[%s2647_s30 + $0x68] sm:$0xff] }
  0xe0   : > { %v1276_v45 = vmax.f32 %v1062_v40, 0.0  ;;  %v1308_v48 = vmax.f32 %v1142_v44, 0.0  ;;  %v2519_v40 = vld [vmem:[%s2647_s30 + $0xe8] sm:$0xff] }
  0xe1   : > { %v1213_v46 = vmax.f32 %v904_v42, 0.0  ;;  %v1245_v47 = vmax.f32 %v984_v43, 0.0  ;;  %v1667_v13 = vld [vmem:[#allocation2 + $0x220] ss:$2 sm:$0xff]  ;;  %v1669_v14 = vld [vmem:[#allocation2 + $0x221] ss:$2 sm:$0xff] }
  0xe2   : > { %1405 = vst.msk [vmem:[#allocation2 + $0x230] sm:$0xff] %vm1334_vm2, %v1276_v45  ;;  %v1674_v24 = vmax.f32 %v1667_v13, %v1669_v14  ;;  %v2535_v45 = vld [vmem:[%s2647_s30 + $0x168] sm:$0xff]  ;;  %v2552_v14 = vld [vmem:[%s2647_s30 + $0x1f0] sm:$0xff] }
  0xe3   : > { %1342 = vst.msk [vmem:[#allocation2 + $0x38] sm:$0xff] %vm1334_vm2, %v1213_v46  ;;  %v2551_v46 = vld [vmem:[%s2647_s30 + $0x1e8] sm:$0xff] }
  0xe4   : > { %1374 = vst.msk [vmem:[#allocation2 + $0x138] sm:$0xff] %vm1334_vm2, %v1245_v47  ;;  %v1763_v31 = vld [vmem:[#allocation2 + $0x320] ss:$2 sm:$0xff]  ;;  %v1765_v32 = vld [vmem:[#allocation2 + $0x321] ss:$2 sm:$0xff] }
  0xe5   : > { %v1063_v49 = vpop.f32.mrf.mxu2  ;;  %1437 = vst.msk [vmem:[#allocation2 + $0x330] sm:$0xff] %vm1334_vm2, %v1308_v48  ;;  %v1143_v52 = vpop.f32.mrf.mxu3  ;;  %v1770_v36 = vmax.f32 %v1763_v31, %v1765_v32 }
  0xe6   : > { %v906_v53 = vpop.f32.mrf.mxu0  ;;  %v986_v54 = vpop.f32.mrf.mxu1  ;;  %v1064_v55 = vadd.f32 1.0, %v1063_v49  ;;  %v1144_v57 = vadd.f32 1.0, %v1143_v52 }
  0xe7   : > { %v907_v60 = vadd.f32 1.0, %v906_v53  ;;  %v987_v61 = vadd.f32 1.0, %v986_v54 }
  0xe8   : > { %v1277_v0 = vmax.f32 %v1064_v55, 0.0  ;;  %v1309_v4 = vmax.f32 %v1144_v57, 0.0 }
  0xe9   : > { %v1214_v2 = vmax.f32 %v907_v60, 0.0  ;;  %v1246_v3 = vmax.f32 %v987_v61, 0.0  ;;  %2436 = vmatmul.msk.bf16.gmra.mxu0 %vm678_vm1, %v2502_v50  ;;  %2452 = vmatmul.msk.bf16.gmra.mxu1 %vm678_vm1, %v2518_v51 }
  0xea   : > { %v1479_v5 = vld [vmem:[#allocation2 + $0x30] ss:$2 sm:$0xff]  ;;  %v1481_v6 = vld [vmem:[#allocation2 + $0x31] ss:$2 sm:$0xff]  ;;  %1406 = vst.msk [vmem:[#allocation2 + $0x238] sm:$0xff] %vm1334_vm2, %v1277_v0  ;;  %2468 = vmatmul.msk.bf16.gmra.mxu2 %vm678_vm1, %v2534_v56  ;;  %2484 = vmatmul.msk.bf16.gmra.mxu3 %vm678_vm1, %v2550_v58 }
  0xeb   : > { %v1483_v8 = vmax.f32 %v1479_v5, %v1481_v6  ;;  %v1575_v9 = vld [vmem:[#allocation2 + $0x130] ss:$2 sm:$0xff]  ;;  %v1577_v10 = vld [vmem:[#allocation2 + $0x131] ss:$2 sm:$0xff]  ;;  %1343 = vst.msk [vmem:[#allocation2 + $0x40] sm:$0xff] %vm1334_vm2, %v1214_v2 }
  0xec   : > { %v1579_v12 = vmax.f32 %v1575_v9, %v1577_v10  ;;  %1375 = vst.msk [vmem:[#allocation2 + $0x140] sm:$0xff] %vm1334_vm2, %v1246_v3  ;;  %v2504_v6 = vld [vmem:[%s2647_s30 + $0x70] sm:$0xff] }
  0xed   : > { %v1484_v15 = vmax.f32 %v1482_v7, %v1483_v8  ;;  %v1066_v16 = vpop.f32.mrf.mxu2  ;;  %1438 = vst.msk [vmem:[#allocation2 + $0x338] sm:$0xff] %vm1334_vm2, %v1309_v4  ;;  %v1146_v17 = vpop.f32.mrf.mxu3  ;;  %v2520_v7 = vld [vmem:[%s2647_s30 + $0xf0] sm:$0xff] }
  0xee   : > { %v1580_v18 = vmax.f32 %v1578_v11, %v1579_v12  ;;  %v908_v19 = vpop.f32.mrf.mxu0  ;;  %v988_v20 = vpop.f32.mrf.mxu1  ;;  %v1067_v21 = vadd.f32 1.0, %v1066_v16  ;;  %v1147_v53 = vadd.f32 1.0, %v1146_v17  ;;  %v2536_v12 = vld [vmem:[%s2647_s30 + $0x170] sm:$0xff] }
  0xef   : > { %1485 = vst.msk [vmem:[%s2760_s8 + $0x8] sm:$0xff] %vm1334_vm2, %v1484_v15  ;;  %v909_v22 = vadd.f32 1.0, %v908_v19  ;;  %v989_v23 = vadd.f32 1.0, %v988_v20 }
  0xf0   : > { %1581 = vst.msk [vmem:[%s2760_s8 + $0x48] sm:$0xff] %vm1334_vm2, %v1580_v18  ;;  %v1278_v25 = vmax.f32 %v1067_v21, 0.0  ;;  %v1310_v56 = vmax.f32 %v1147_v53, 0.0 }
  0xf1   : > { %v1671_v26 = vld [vmem:[#allocation2 + $0x230] ss:$2 sm:$0xff]  ;;  %v1673_v27 = vld [vmem:[#allocation2 + $0x231] ss:$2 sm:$0xff]  ;;  %v1215_v28 = vmax.f32 %v909_v22, 0.0  ;;  %v1247_v29 = vmax.f32 %v989_v23, 0.0 }
  0xf2   : > { %v1675_v30 = vmax.f32 %v1671_v26, %v1673_v27  ;;  %1407 = vst.msk [vmem:[#allocation2 + $0x240] sm:$0xff] %vm1334_vm2, %v1278_v25 }
  0xf3   : > { %1344 = vst.msk [vmem:[#allocation2 + $0x48] sm:$0xff] %vm1334_vm2, %v1215_v28 }
  0xf4   : > { %v1676_v33 = vmax.f32 %v1674_v24, %v1675_v30  ;;  %1376 = vst.msk [vmem:[#allocation2 + $0x148] sm:$0xff] %vm1334_vm2, %v1247_v29  ;;  %v1767_v34 = vld [vmem:[#allocation2 + $0x330] ss:$2 sm:$0xff]  ;;  %v1769_v35 = vld [vmem:[#allocation2 + $0x331] ss:$2 sm:$0xff] }
  0xf5   : > { %v1068_v37 = vpop.f32.mrf.mxu2  ;;  %v1771_v38 = vmax.f32 %v1767_v34, %v1769_v35  ;;  %v1148_v41 = vpop.f32.mrf.mxu3  ;;  %1439 = vst.msk [vmem:[#allocation2 + $0x340] sm:$0xff] %vm1334_vm2, %v1310_v56 }
  0xf6   : > { %1677 = vst.msk [vmem:[%s2760_s8 + $0x88] sm:$0xff] %vm1334_vm2, %v1676_v33  ;;  %v911_v42 = vpop.f32.mrf.mxu0  ;;  %v991_v43 = vpop.f32.mrf.mxu1  ;;  %v1069_v44 = vadd.f32 1.0, %v1068_v37  ;;  %v1149_v54 = vadd.f32 1.0, %v1148_v41 }
  0xf7   : > { %v912_v47 = vadd.f32 1.0, %v911_v42  ;;  %v992_v48 = vadd.f32 1.0, %v991_v43  ;;  %v1772_v52 = vmax.f32 %v1770_v36, %v1771_v38 }
  0xf8   : > { %v1279_v49 = vmax.f32 %v1069_v44, 0.0  ;;  %v1311_v61 = vmax.f32 %v1149_v54, 0.0 }
  0xf9   : > { %v1216_v50 = vmax.f32 %v912_v47, 0.0  ;;  %v1248_v51 = vmax.f32 %v992_v48, 0.0  ;;  %2437 = vmatmul.msk.bf16.gmra.mxu0 %vm678_vm1, %v2503_v39  ;;  %2453 = vmatmul.msk.bf16.gmra.mxu1 %vm678_vm1, %v2519_v40  ;;  %1773 = vst.msk [vmem:[%s2760_s8 + $0xc8] sm:$0xff] %vm1334_vm2, %v1772_v52 }
  0xfa   : > { %1408 = vst.msk [vmem:[#allocation2 + $0x248] sm:$0xff] %vm1334_vm2, %v1279_v49  ;;  %2469 = vmatmul.msk.bf16.gmra.mxu2 %vm678_vm1, %v2535_v45  ;;  %2485 = vmatmul.msk.bf16.gmra.mxu3 %vm678_vm1, %v2551_v46  ;;  %v1487_v15 = vld [vmem:[#allocation2 + $0x40] ss:$2 sm:$0xff]  ;;  %v1489_v18 = vld [vmem:[#allocation2 + $0x41] ss:$2 sm:$0xff] }
  0xfb   : > { %1345 = vst.msk [vmem:[#allocation2 + $0x50] sm:$0xff] %vm1334_vm2, %v1216_v50  ;;  %v1583_v19 = vld [vmem:[#allocation2 + $0x140] ss:$2 sm:$0xff]  ;;  %v1585_v21 = vld [vmem:[#allocation2 + $0x141] ss:$2 sm:$0xff]  ;;  %v1494_v27 = vmax.f32 %v1487_v15, %v1489_v18 }
  0xfc   : > { %1377 = vst.msk [vmem:[#allocation2 + $0x150] sm:$0xff] %vm1334_vm2, %v1248_v51  ;;  %v1590_v31 = vmax.f32 %v1583_v19, %v1585_v21 }
  0xfd   : > { %v1071_v55 = vpop.f32.mrf.mxu2  ;;  %v1151_v57 = vpop.f32.mrf.mxu3  ;;  %1440 = vst.msk [vmem:[#allocation2 + $0x348] sm:$0xff] %vm1334_vm2, %v1311_v61 }
  0xfe   : > { %v913_v58 = vpop.f32.mrf.mxu0  ;;  %v993_v59 = vpop.f32.mrf.mxu1  ;;  %v1072_v60 = vadd.f32 1.0, %v1071_v55  ;;  %v1152_v0 = vadd.f32 1.0, %v1151_v57 }
  0xff   : > { %v914_v62 = vadd.f32 1.0, %v913_v58  ;;  %v994_v63 = vadd.f32 1.0, %v993_v59  ;;  %v2505_v59 = vld [vmem:[%s2647_s30 + $0x78] sm:$0xff] }
 0x100   : > { %v1280_v1 = vmax.f32 %v1072_v60, 0.0  ;;  %v1312_v4 = vmax.f32 %v1152_v0, 0.0  ;;  %v2521_v60 = vld [vmem:[%s2647_s30 + $0xf8] sm:$0xff] }
 0x101   : > { %v1217_v2 = vmax.f32 %v914_v62, 0.0  ;;  %v1249_v3 = vmax.f32 %v994_v63, 0.0  ;;  %v1679_v33 = vld [vmem:[#allocation2 + $0x240] ss:$2 sm:$0xff]  ;;  %v1681_v34 = vld [vmem:[#allocation2 + $0x241] ss:$2 sm:$0xff] }
 0x102   : > { %1409 = vst.msk [vmem:[#allocation2 + $0x250] sm:$0xff] %vm1334_vm2, %v1280_v1  ;;  %v1686_v44 = vmax.f32 %v1679_v33, %v1681_v34  ;;  %v2537_v1 = vld [vmem:[%s2647_s30 + $0x178] sm:$0xff] }
 0x103   : > { %1346 = vst.msk [vmem:[#allocation2 + $0x58] sm:$0xff] %vm1334_vm2, %v1217_v2  ;;  %v2553_v2 = vld [vmem:[%s2647_s30 + $0x1f8] sm:$0xff] }
 0x104   : > { %1378 = vst.msk [vmem:[#allocation2 + $0x158] sm:$0xff] %vm1334_vm2, %v1249_v3  ;;  %v1775_v51 = vld [vmem:[#allocation2 + $0x340] ss:$2 sm:$0xff]  ;;  %v1777_v52 = vld [vmem:[#allocation2 + $0x341] ss:$2 sm:$0xff] }
 0x105   : > { %v1073_v5 = vpop.f32.mrf.mxu2  ;;  %1441 = vst.msk [vmem:[#allocation2 + $0x350] sm:$0xff] %vm1334_vm2, %v1312_v4  ;;  %v1153_v8 = vpop.f32.mrf.mxu3  ;;  %v1782_v56 = vmax.f32 %v1775_v51, %v1777_v52 }
 0x106   : > { %v916_v9 = vpop.f32.mrf.mxu0  ;;  %v996_v10 = vpop.f32.mrf.mxu1  ;;  %v1074_v11 = vadd.f32 1.0, %v1073_v5  ;;  %v1154_v13 = vadd.f32 1.0, %v1153_v8 }
 0x107   : > { %v917_v16 = vadd.f32 1.0, %v916_v9  ;;  %v997_v17 = vadd.f32 1.0, %v996_v10 }
 0x108   : > { %v1281_v20 = vmax.f32 %v1074_v11, 0.0  ;;  %v1313_v24 = vmax.f32 %v1154_v13, 0.0 }
 0x109   : > { %v1218_v22 = vmax.f32 %v917_v16, 0.0  ;;  %v1250_v23 = vmax.f32 %v997_v17, 0.0  ;;  %2438 = vmatmul.msk.bf16.gmra.mxu0 %vm678_vm1, %v2504_v6  ;;  %2454 = vmatmul.msk.bf16.gmra.mxu1 %vm678_vm1, %v2520_v7 }
 0x10a   : > { %v1491_v25 = vld [vmem:[#allocation2 + $0x50] ss:$2 sm:$0xff]  ;;  %v1493_v26 = vld [vmem:[#allocation2 + $0x51] ss:$2 sm:$0xff]  ;;  %1410 = vst.msk [vmem:[#allocation2 + $0x258] sm:$0xff] %vm1334_vm2, %v1281_v20  ;;  %2470 = vmatmul.msk.bf16.gmra.mxu2 %vm678_vm1, %v2536_v12  ;;  %2486 = vmatmul.msk.bf16.gmra.mxu3 %vm678_vm1, %v2552_v14 }
 0x10b   : > { %v1495_v28 = vmax.f32 %v1491_v25, %v1493_v26  ;;  %v1587_v29 = vld [vmem:[#allocation2 + $0x150] ss:$2 sm:$0xff]  ;;  %v1589_v30 = vld [vmem:[#allocation2 + $0x151] ss:$2 sm:$0xff]  ;;  %1347 = vst.msk [vmem:[#allocation2 + $0x60] sm:$0xff] %vm1334_vm2, %v1218_v22 }
 0x10c   : > { %v1591_v32 = vmax.f32 %v1587_v29, %v1589_v30  ;;  %1379 = vst.msk [vmem:[#allocation2 + $0x160] sm:$0xff] %vm1334_vm2, %v1250_v23 }
 0x10d   : > { %v1496_v35 = vmax.f32 %v1494_v27, %v1495_v28  ;;  %v1076_v36 = vpop.f32.mrf.mxu2  ;;  %1442 = vst.msk [vmem:[#allocation2 + $0x358] sm:$0xff] %vm1334_vm2, %v1313_v24  ;;  %v1156_v37 = vpop.f32.mrf.mxu3 }
 0x10e   : > { %v1592_v38 = vmax.f32 %v1590_v31, %v1591_v32  ;;  %v918_v39 = vpop.f32.mrf.mxu0  ;;  %v998_v40 = vpop.f32.mrf.mxu1  ;;  %v1077_v41 = vadd.f32 1.0, %v1076_v36  ;;  %v1157_v9 = vadd.f32 1.0, %v1156_v37 }
 0x10f   : > { %1497 = vst.msk [vmem:[%s2760_s8 + $0x10] sm:$0xff] %vm1334_vm2, %v1496_v35  ;;  %v919_v42 = vadd.f32 1.0, %v918_v39  ;;  %v999_v43 = vadd.f32 1.0, %v998_v40 }
 0x110   : > { %1593 = vst.msk [vmem:[%s2760_s8 + $0x50] sm:$0xff] %vm1334_vm2, %v1592_v38  ;;  %v1282_v45 = vmax.f32 %v1077_v41, 0.0  ;;  %v1314_v12 = vmax.f32 %v1157_v9, 0.0 }
 0x111   : > { %v1683_v46 = vld [vmem:[#allocation2 + $0x250] ss:$2 sm:$0xff]  ;;  %v1685_v47 = vld [vmem:[#allocation2 + $0x251] ss:$2 sm:$0xff]  ;;  %v1219_v48 = vmax.f32 %v919_v42, 0.0  ;;  %v1251_v49 = vmax.f32 %v999_v43, 0.0 }
 0x112   : > { %v1687_v50 = vmax.f32 %v1683_v46, %v1685_v47  ;;  %1411 = vst.msk [vmem:[#allocation2 + $0x260] sm:$0xff] %vm1334_vm2, %v1282_v45 }
 0x113   : > { %1348 = vst.msk [vmem:[#allocation2 + $0x68] sm:$0xff] %vm1334_vm2, %v1219_v48 }
 0x114   : > { %v1688_v53 = vmax.f32 %v1686_v44, %v1687_v50  ;;  %1380 = vst.msk [vmem:[#allocation2 + $0x168] sm:$0xff] %vm1334_vm2, %v1251_v49  ;;  %v1779_v54 = vld [vmem:[#allocation2 + $0x350] ss:$2 sm:$0xff]  ;;  %v1781_v55 = vld [vmem:[#allocation2 + $0x351] ss:$2 sm:$0xff] }
 0x115   : > { %v1078_v57 = vpop.f32.mrf.mxu2  ;;  %v1783_v58 = vmax.f32 %v1779_v54, %v1781_v55  ;;  %v1158_v61 = vpop.f32.mrf.mxu3  ;;  %1443 = vst.msk [vmem:[#allocation2 + $0x360] sm:$0xff] %vm1334_vm2, %v1314_v12 }
 0x116   : > { %1689 = vst.msk [vmem:[%s2760_s8 + $0x90] sm:$0xff] %vm1334_vm2, %v1688_v53  ;;  %v921_v62 = vpop.f32.mrf.mxu0  ;;  %v1001_v63 = vpop.f32.mrf.mxu1  ;;  %v1079_v0 = vadd.f32 1.0, %v1078_v57  ;;  %v1159_v10 = vadd.f32 1.0, %v1158_v61 }
 0x117   : > { %v922_v3 = vadd.f32 1.0, %v921_v62  ;;  %v1002_v4 = vadd.f32 1.0, %v1001_v63  ;;  %v1784_v8 = vmax.f32 %v1782_v56, %v1783_v58 }
 0x118   : > { %v1283_v5 = vmax.f32 %v1079_v0, 0.0  ;;  %v1315_v17 = vmax.f32 %v1159_v10, 0.0 }
 0x119   : > { %v1220_v6 = vmax.f32 %v922_v3, 0.0  ;;  %v1252_v7 = vmax.f32 %v1002_v4, 0.0  ;;  %2439 = vmatmul.msk.bf16.gmra.mxu0 %vm678_vm1, %v2505_v59  ;;  %2455 = vmatmul.msk.bf16.gmra.mxu1 %vm678_vm1, %v2521_v60  ;;  %1785 = vst.msk [vmem:[%s2760_s8 + $0xd0] sm:$0xff] %vm1334_vm2, %v1784_v8 }
 0x11a   : > { %1412 = vst.msk [vmem:[#allocation2 + $0x268] sm:$0xff] %vm1334_vm2, %v1283_v5  ;;  %2471 = vmatmul.msk.bf16.gmra.mxu2 %vm678_vm1, %v2537_v1  ;;  %2487 = vmatmul.msk.bf16.gmra.mxu3 %vm678_vm1, %v2553_v2  ;;  %v1499_v31 = vld [vmem:[#allocation2 + $0x60] ss:$2 sm:$0xff]  ;;  %v1501_v34 = vld [vmem:[#allocation2 + $0x61] ss:$2 sm:$0xff] }
 0x11b   : > { %1349 = vst.msk [vmem:[#allocation2 + $0x70] sm:$0xff] %vm1334_vm2, %v1220_v6  ;;  %v1595_v35 = vld [vmem:[#allocation2 + $0x160] ss:$2 sm:$0xff]  ;;  %v1597_v37 = vld [vmem:[#allocation2 + $0x161] ss:$2 sm:$0xff]  ;;  %v1506_v43 = vmax.f32 %v1499_v31, %v1501_v34 }
 0x11c   : > { %1381 = vst.msk [vmem:[#allocation2 + $0x170] sm:$0xff] %vm1334_vm2, %v1252_v7  ;;  %v1602_v47 = vmax.f32 %v1595_v35, %v1597_v37 }
 0x11d   : > { %v1081_v11 = vpop.f32.mrf.mxu2  ;;  %v1161_v13 = vpop.f32.mrf.mxu3  ;;  %1444 = vst.msk [vmem:[#allocation2 + $0x368] sm:$0xff] %vm1334_vm2, %v1315_v17 }
 0x11e   : > { %v923_v14 = vpop.f32.mrf.mxu0  ;;  %v1003_v15 = vpop.f32.mrf.mxu1  ;;  %v1082_v16 = vadd.f32 1.0, %v1081_v11  ;;  %v1162_v20 = vadd.f32 1.0, %v1161_v13 }
 0x11f   : > { %v924_v18 = vadd.f32 1.0, %v923_v14  ;;  %v1004_v19 = vadd.f32 1.0, %v1003_v15 }
 0x120   : > { %v1284_v21 = vmax.f32 %v1082_v16, 0.0  ;;  %v1316_v24 = vmax.f32 %v1162_v20, 0.0 }
 0x121   : > { %v1221_v22 = vmax.f32 %v924_v18, 0.0  ;;  %v1253_v23 = vmax.f32 %v1004_v19, 0.0  ;;  %v1691_v49 = vld [vmem:[#allocation2 + $0x260] ss:$2 sm:$0xff]  ;;  %v1693_v50 = vld [vmem:[#allocation2 + $0x261] ss:$2 sm:$0xff] }
 0x122   : > { %1413 = vst.msk [vmem:[#allocation2 + $0x270] sm:$0xff] %vm1334_vm2, %v1284_v21  ;;  %v1698_v60 = vmax.f32 %v1691_v49, %v1693_v50 }
 0x123   : > { %1350 = vst.msk [vmem:[#allocation2 + $0x78] sm:$0xff] %vm1334_vm2, %v1221_v22 }
 0x124   : > { %1382 = vst.msk [vmem:[#allocation2 + $0x178] sm:$0xff] %vm1334_vm2, %v1253_v23  ;;  %v1787_v3 = vld [vmem:[#allocation2 + $0x360] ss:$2 sm:$0xff]  ;;  %v1789_v4 = vld [vmem:[#allocation2 + $0x361] ss:$2 sm:$0xff] }
 0x125   : > { %v1083_v25 = vpop.f32.mrf.mxu2  ;;  %1445 = vst.msk [vmem:[#allocation2 + $0x370] sm:$0xff] %vm1334_vm2, %v1316_v24  ;;  %v1163_v26 = vpop.f32.mrf.mxu3  ;;  %v1794_v8 = vmax.f32 %v1787_v3, %v1789_v4 }
 0x126   : > { %v926_v27 = vpop.f32.mrf.mxu0  ;;  %v1006_v28 = vpop.f32.mrf.mxu1  ;;  %v1084_v29 = vadd.f32 1.0, %v1083_v25  ;;  %v1164_v30 = vadd.f32 1.0, %v1163_v26 }
 0x127   : > { %v927_v32 = vadd.f32 1.0, %v926_v27  ;;  %v1007_v33 = vadd.f32 1.0, %v1006_v28 }
 0x128   : > { %v1285_v36 = vmax.f32 %v1084_v29, 0.0  ;;  %v1317_v40 = vmax.f32 %v1164_v30, 0.0 }
 0x129   : > { %v1222_v38 = vmax.f32 %v927_v32, 0.0  ;;  %v1254_v39 = vmax.f32 %v1007_v33, 0.0 }
 0x12a   : > { %v1503_v41 = vld [vmem:[#allocation2 + $0x70] ss:$2 sm:$0xff]  ;;  %v1505_v42 = vld [vmem:[#allocation2 + $0x71] ss:$2 sm:$0xff]  ;;  %1414 = vst.msk [vmem:[#allocation2 + $0x278] sm:$0xff] %vm1334_vm2, %v1285_v36 }
 0x12b   : > { %v1507_v44 = vmax.f32 %v1503_v41, %v1505_v42  ;;  %v1599_v45 = vld [vmem:[#allocation2 + $0x170] ss:$2 sm:$0xff]  ;;  %v1601_v46 = vld [vmem:[#allocation2 + $0x171] ss:$2 sm:$0xff]  ;;  %1351 = vst.msk [vmem:[#allocation2 + $0x80] sm:$0xff] %vm1334_vm2, %v1222_v38 }
 0x12c   : > { %v1603_v48 = vmax.f32 %v1599_v45, %v1601_v46  ;;  %1383 = vst.msk [vmem:[#allocation2 + $0x180] sm:$0xff] %vm1334_vm2, %v1254_v39 }
 0x12d   : > { %v1508_v51 = vmax.f32 %v1506_v43, %v1507_v44  ;;  %v1086_v52 = vpop.f32.mrf.mxu2  ;;  %1446 = vst.msk [vmem:[#allocation2 + $0x378] sm:$0xff] %vm1334_vm2, %v1317_v40  ;;  %v1166_v53 = vpop.f32.mrf.mxu3 }
 0x12e   : > { %v1604_v54 = vmax.f32 %v1602_v47, %v1603_v48  ;;  %v928_v55 = vpop.f32.mrf.mxu0  ;;  %v1008_v56 = vpop.f32.mrf.mxu1  ;;  %v1087_v57 = vadd.f32 1.0, %v1086_v52  ;;  %v1167_v21 = vadd.f32 1.0, %v1166_v53 }
 0x12f   : > { %1509 = vst.msk [vmem:[%s2760_s8 + $0x18] sm:$0xff] %vm1334_vm2, %v1508_v51  ;;  %v929_v58 = vadd.f32 1.0, %v928_v55  ;;  %v1009_v59 = vadd.f32 1.0, %v1008_v56 }
 0x130   : > { %1605 = vst.msk [vmem:[%s2760_s8 + $0x58] sm:$0xff] %vm1334_vm2, %v1604_v54  ;;  %v1286_v61 = vmax.f32 %v1087_v57, 0.0  ;;  %v1318_v24 = vmax.f32 %v1167_v21, 0.0 }
 0x131   : > { %v1695_v62 = vld [vmem:[#allocation2 + $0x270] ss:$2 sm:$0xff]  ;;  %v1697_v63 = vld [vmem:[#allocation2 + $0x271] ss:$2 sm:$0xff]  ;;  %v1223_v0 = vmax.f32 %v929_v58, 0.0  ;;  %v1255_v1 = vmax.f32 %v1009_v59, 0.0 }
 0x132   : > { %v1699_v2 = vmax.f32 %v1695_v62, %v1697_v63  ;;  %1415 = vst.msk [vmem:[#allocation2 + $0x280] sm:$0xff] %vm1334_vm2, %v1286_v61 }
 0x133   : > { %1352 = vst.msk [vmem:[#allocation2 + $0x88] sm:$0xff] %vm1334_vm2, %v1223_v0 }
 0x134   : > { %v1700_v5 = vmax.f32 %v1698_v60, %v1699_v2  ;;  %1384 = vst.msk [vmem:[#allocation2 + $0x188] sm:$0xff] %vm1334_vm2, %v1255_v1  ;;  %v1791_v6 = vld [vmem:[#allocation2 + $0x370] ss:$2 sm:$0xff]  ;;  %v1793_v7 = vld [vmem:[#allocation2 + $0x371] ss:$2 sm:$0xff] }
 0x135   : > { %v1088_v9 = vpop.f32.mrf.mxu2  ;;  %v1795_v10 = vmax.f32 %v1791_v6, %v1793_v7  ;;  %v1168_v11 = vpop.f32.mrf.mxu3  ;;  %1447 = vst.msk [vmem:[#allocation2 + $0x380] sm:$0xff] %vm1334_vm2, %v1318_v24 }
 0x136   : > { %1701 = vst.msk [vmem:[%s2760_s8 + $0x98] sm:$0xff] %vm1334_vm2, %v1700_v5  ;;  %v931_v12 = vpop.f32.mrf.mxu0  ;;  %v1011_v13 = vpop.f32.mrf.mxu1  ;;  %v1089_v14 = vadd.f32 1.0, %v1088_v9  ;;  %v1169_v22 = vadd.f32 1.0, %v1168_v11 }
 0x137   : > { %v932_v15 = vadd.f32 1.0, %v931_v12  ;;  %v1012_v16 = vadd.f32 1.0, %v1011_v13  ;;  %v1796_v20 = vmax.f32 %v1794_v8, %v1795_v10 }
 0x138   : > { %v1287_v17 = vmax.f32 %v1089_v14, 0.0  ;;  %v1319_v29 = vmax.f32 %v1169_v22, 0.0 }
 0x139   : > { %v1224_v18 = vmax.f32 %v932_v15, 0.0  ;;  %v1256_v19 = vmax.f32 %v1012_v16, 0.0  ;;  %1797 = vst.msk [vmem:[%s2760_s8 + $0xd8] sm:$0xff] %vm1334_vm2, %v1796_v20 }
 0x13a   : > { %1416 = vst.msk [vmem:[#allocation2 + $0x288] sm:$0xff] %vm1334_vm2, %v1287_v17  ;;  %v1511_v43 = vld [vmem:[#allocation2 + $0x80] ss:$2 sm:$0xff]  ;;  %v1513_v46 = vld [vmem:[#allocation2 + $0x81] ss:$2 sm:$0xff] }
 0x13b   : > { %1353 = vst.msk [vmem:[#allocation2 + $0x90] sm:$0xff] %vm1334_vm2, %v1224_v18  ;;  %v1607_v47 = vld [vmem:[#allocation2 + $0x180] ss:$2 sm:$0xff]  ;;  %v1609_v49 = vld [vmem:[#allocation2 + $0x181] ss:$2 sm:$0xff]  ;;  %v1518_v55 = vmax.f32 %v1511_v43, %v1513_v46 }
 0x13c   : > { %1385 = vst.msk [vmem:[#allocation2 + $0x190] sm:$0xff] %vm1334_vm2, %v1256_v19  ;;  %v1614_v59 = vmax.f32 %v1607_v47, %v1609_v49 }
 0x13d   : > { %v1091_v23 = vpop.f32.mrf.mxu2  ;;  %v1171_v25 = vpop.f32.mrf.mxu3  ;;  %1448 = vst.msk [vmem:[#allocation2 + $0x388] sm:$0xff] %vm1334_vm2, %v1319_v29 }
 0x13e   : > { %v933_v26 = vpop.f32.mrf.mxu0  ;;  %v1013_v27 = vpop.f32.mrf.mxu1  ;;  %v1092_v28 = vadd.f32 1.0, %v1091_v23  ;;  %v1172_v32 = vadd.f32 1.0, %v1171_v25 }
 0x13f   : > { %v934_v30 = vadd.f32 1.0, %v933_v26  ;;  %v1014_v31 = vadd.f32 1.0, %v1013_v27 }
 0x140   : > { %v1288_v33 = vmax.f32 %v1092_v28, 0.0  ;;  %v1320_v36 = vmax.f32 %v1172_v32, 0.0 }
 0x141   : > { %v1225_v34 = vmax.f32 %v934_v30, 0.0  ;;  %v1257_v35 = vmax.f32 %v1014_v31, 0.0  ;;  %v1703_v61 = vld [vmem:[#allocation2 + $0x280] ss:$2 sm:$0xff]  ;;  %v1705_v62 = vld [vmem:[#allocation2 + $0x281] ss:$2 sm:$0xff] }
 0x142   : > { %1417 = vst.msk [vmem:[#allocation2 + $0x290] sm:$0xff] %vm1334_vm2, %v1288_v33  ;;  %v1710_v8 = vmax.f32 %v1703_v61, %v1705_v62 }
 0x143   : > { %1354 = vst.msk [vmem:[#allocation2 + $0x98] sm:$0xff] %vm1334_vm2, %v1225_v34 }
 0x144   : > { %1386 = vst.msk [vmem:[#allocation2 + $0x198] sm:$0xff] %vm1334_vm2, %v1257_v35  ;;  %v1799_v15 = vld [vmem:[#allocation2 + $0x380] ss:$2 sm:$0xff]  ;;  %v1801_v16 = vld [vmem:[#allocation2 + $0x381] ss:$2 sm:$0xff] }
 0x145   : > { %v1093_v37 = vpop.f32.mrf.mxu2  ;;  %1449 = vst.msk [vmem:[#allocation2 + $0x390] sm:$0xff] %vm1334_vm2, %v1320_v36  ;;  %v1173_v38 = vpop.f32.mrf.mxu3  ;;  %v1806_v20 = vmax.f32 %v1799_v15, %v1801_v16 }
 0x146   : > { %v936_v39 = vpop.f32.mrf.mxu0  ;;  %v1016_v40 = vpop.f32.mrf.mxu1  ;;  %v1094_v41 = vadd.f32 1.0, %v1093_v37  ;;  %v1174_v42 = vadd.f32 1.0, %v1173_v38 }
 0x147   : > { %v937_v44 = vadd.f32 1.0, %v936_v39  ;;  %v1017_v45 = vadd.f32 1.0, %v1016_v40 }
 0x148   : > { %v1289_v48 = vmax.f32 %v1094_v41, 0.0  ;;  %v1321_v52 = vmax.f32 %v1174_v42, 0.0 }
 0x149   : > { %v1226_v50 = vmax.f32 %v937_v44, 0.0  ;;  %v1258_v51 = vmax.f32 %v1017_v45, 0.0 }
 0x14a   : > { %v1515_v53 = vld [vmem:[#allocation2 + $0x90] ss:$2 sm:$0xff]  ;;  %v1517_v54 = vld [vmem:[#allocation2 + $0x91] ss:$2 sm:$0xff]  ;;  %1418 = vst.msk [vmem:[#allocation2 + $0x298] sm:$0xff] %vm1334_vm2, %v1289_v48 }
 0x14b   : > { %v1519_v56 = vmax.f32 %v1515_v53, %v1517_v54  ;;  %v1611_v57 = vld [vmem:[#allocation2 + $0x190] ss:$2 sm:$0xff]  ;;  %v1613_v58 = vld [vmem:[#allocation2 + $0x191] ss:$2 sm:$0xff]  ;;  %1355 = vst.msk [vmem:[#allocation2 + $0xa0] sm:$0xff] %vm1334_vm2, %v1226_v50 }
 0x14c   : > { %v1615_v60 = vmax.f32 %v1611_v57, %v1613_v58  ;;  %1387 = vst.msk [vmem:[#allocation2 + $0x1a0] sm:$0xff] %vm1334_vm2, %v1258_v51 }
 0x14d   : > { %v1520_v63 = vmax.f32 %v1518_v55, %v1519_v56  ;;  %v1096_v0 = vpop.f32.mrf.mxu2  ;;  %1450 = vst.msk [vmem:[#allocation2 + $0x398] sm:$0xff] %vm1334_vm2, %v1321_v52  ;;  %v1176_v1 = vpop.f32.mrf.mxu3 }
 0x14e   : > { %v1616_v2 = vmax.f32 %v1614_v59, %v1615_v60  ;;  %v938_v3 = vpop.f32.mrf.mxu0  ;;  %v1018_v4 = vpop.f32.mrf.mxu1  ;;  %v1097_v5 = vadd.f32 1.0, %v1096_v0  ;;  %v1177_v33 = vadd.f32 1.0, %v1176_v1 }
 0x14f   : > { %1521 = vst.msk [vmem:[%s2760_s8 + $0x20] sm:$0xff] %vm1334_vm2, %v1520_v63  ;;  %v939_v6 = vadd.f32 1.0, %v938_v3  ;;  %v1019_v7 = vadd.f32 1.0, %v1018_v4 }
 0x150   : > { %1617 = vst.msk [vmem:[%s2760_s8 + $0x60] sm:$0xff] %vm1334_vm2, %v1616_v2  ;;  %v1290_v9 = vmax.f32 %v1097_v5, 0.0  ;;  %v1322_v36 = vmax.f32 %v1177_v33, 0.0 }
 0x151   : > { %v1707_v10 = vld [vmem:[#allocation2 + $0x290] ss:$2 sm:$0xff]  ;;  %v1709_v11 = vld [vmem:[#allocation2 + $0x291] ss:$2 sm:$0xff]  ;;  %v1227_v12 = vmax.f32 %v939_v6, 0.0  ;;  %v1259_v13 = vmax.f32 %v1019_v7, 0.0 }
 0x152   : > { %v1711_v14 = vmax.f32 %v1707_v10, %v1709_v11  ;;  %1419 = vst.msk [vmem:[#allocation2 + $0x2a0] sm:$0xff] %vm1334_vm2, %v1290_v9 }
 0x153   : > { %1356 = vst.msk [vmem:[#allocation2 + $0xa8] sm:$0xff] %vm1334_vm2, %v1227_v12 }
 0x154   : > { %v1712_v17 = vmax.f32 %v1710_v8, %v1711_v14  ;;  %1388 = vst.msk [vmem:[#allocation2 + $0x1a8] sm:$0xff] %vm1334_vm2, %v1259_v13  ;;  %v1803_v18 = vld [vmem:[#allocation2 + $0x390] ss:$2 sm:$0xff]  ;;  %v1805_v19 = vld [vmem:[#allocation2 + $0x391] ss:$2 sm:$0xff] }
 0x155   : > { %v1098_v21 = vpop.f32.mrf.mxu2  ;;  %v1807_v22 = vmax.f32 %v1803_v18, %v1805_v19  ;;  %v1178_v23 = vpop.f32.mrf.mxu3  ;;  %1451 = vst.msk [vmem:[#allocation2 + $0x3a0] sm:$0xff] %vm1334_vm2, %v1322_v36 }
 0x156   : > { %1713 = vst.msk [vmem:[%s2760_s8 + $0xa0] sm:$0xff] %vm1334_vm2, %v1712_v17  ;;  %v941_v24 = vpop.f32.mrf.mxu0  ;;  %v1021_v25 = vpop.f32.mrf.mxu1  ;;  %v1099_v26 = vadd.f32 1.0, %v1098_v21  ;;  %v1179_v34 = vadd.f32 1.0, %v1178_v23 }
 0x157   : > { %v942_v27 = vadd.f32 1.0, %v941_v24  ;;  %v1022_v28 = vadd.f32 1.0, %v1021_v25  ;;  %v1808_v32 = vmax.f32 %v1806_v20, %v1807_v22 }
 0x158   : > { %v1291_v29 = vmax.f32 %v1099_v26, 0.0  ;;  %v1323_v41 = vmax.f32 %v1179_v34, 0.0 }
 0x159   : > { %v1228_v30 = vmax.f32 %v942_v27, 0.0  ;;  %v1260_v31 = vmax.f32 %v1022_v28, 0.0  ;;  %1809 = vst.msk [vmem:[%s2760_s8 + $0xe0] sm:$0xff] %vm1334_vm2, %v1808_v32 }
 0x15a   : > { %1420 = vst.msk [vmem:[#allocation2 + $0x2a8] sm:$0xff] %vm1334_vm2, %v1291_v29  ;;  %v1523_v55 = vld [vmem:[#allocation2 + $0xa0] ss:$2 sm:$0xff]  ;;  %v1525_v58 = vld [vmem:[#allocation2 + $0xa1] ss:$2 sm:$0xff] }
 0x15b   : > { %1357 = vst.msk [vmem:[#allocation2 + $0xb0] sm:$0xff] %vm1334_vm2, %v1228_v30  ;;  %v1619_v59 = vld [vmem:[#allocation2 + $0x1a0] ss:$2 sm:$0xff]  ;;  %v1621_v61 = vld [vmem:[#allocation2 + $0x1a1] ss:$2 sm:$0xff]  ;;  %v1530_v3 = vmax.f32 %v1523_v55, %v1525_v58 }
 0x15c   : > { %1389 = vst.msk [vmem:[#allocation2 + $0x1b0] sm:$0xff] %vm1334_vm2, %v1260_v31  ;;  %v1626_v7 = vmax.f32 %v1619_v59, %v1621_v61 }
 0x15d   : > { %v1101_v35 = vpop.f32.mrf.mxu2  ;;  %v1181_v37 = vpop.f32.mrf.mxu3  ;;  %1452 = vst.msk [vmem:[#allocation2 + $0x3a8] sm:$0xff] %vm1334_vm2, %v1323_v41 }
 0x15e   : > { %v943_v38 = vpop.f32.mrf.mxu0  ;;  %v1023_v39 = vpop.f32.mrf.mxu1  ;;  %v1102_v40 = vadd.f32 1.0, %v1101_v35  ;;  %v1182_v44 = vadd.f32 1.0, %v1181_v37 }
 0x15f   : > { %v944_v42 = vadd.f32 1.0, %v943_v38  ;;  %v1024_v43 = vadd.f32 1.0, %v1023_v39 }
 0x160   : > { %v1292_v45 = vmax.f32 %v1102_v40, 0.0  ;;  %v1324_v48 = vmax.f32 %v1182_v44, 0.0 }
 0x161   : > { %v1229_v46 = vmax.f32 %v944_v42, 0.0  ;;  %v1261_v47 = vmax.f32 %v1024_v43, 0.0  ;;  %v1715_v9 = vld [vmem:[#allocation2 + $0x2a0] ss:$2 sm:$0xff]  ;;  %v1717_v10 = vld [vmem:[#allocation2 + $0x2a1] ss:$2 sm:$0xff] }
 0x162   : > { %1421 = vst.msk [vmem:[#allocation2 + $0x2b0] sm:$0xff] %vm1334_vm2, %v1292_v45  ;;  %v1722_v20 = vmax.f32 %v1715_v9, %v1717_v10 }
 0x163   : > { %1358 = vst.msk [vmem:[#allocation2 + $0xb8] sm:$0xff] %vm1334_vm2, %v1229_v46 }
 0x164   : > { %1390 = vst.msk [vmem:[#allocation2 + $0x1b8] sm:$0xff] %vm1334_vm2, %v1261_v47  ;;  %v1811_v27 = vld [vmem:[#allocation2 + $0x3a0] ss:$2 sm:$0xff]  ;;  %v1813_v28 = vld [vmem:[#allocation2 + $0x3a1] ss:$2 sm:$0xff] }
 0x165   : > { %v1103_v49 = vpop.f32.mrf.mxu2  ;;  %1453 = vst.msk [vmem:[#allocation2 + $0x3b0] sm:$0xff] %vm1334_vm2, %v1324_v48  ;;  %v1183_v50 = vpop.f32.mrf.mxu3  ;;  %v1818_v32 = vmax.f32 %v1811_v27, %v1813_v28 }
 0x166   : > { %v946_v51 = vpop.f32.mrf.mxu0  ;;  %v1026_v52 = vpop.f32.mrf.mxu1  ;;  %v1104_v53 = vadd.f32 1.0, %v1103_v49  ;;  %v1184_v54 = vadd.f32 1.0, %v1183_v50 }
 0x167   : > { %v947_v56 = vadd.f32 1.0, %v946_v51  ;;  %v1027_v57 = vadd.f32 1.0, %v1026_v52 }
 0x168   : > { %v1293_v60 = vmax.f32 %v1104_v53, 0.0  ;;  %v1325_v0 = vmax.f32 %v1184_v54, 0.0 }
 0x169   : > { %v1230_v62 = vmax.f32 %v947_v56, 0.0  ;;  %v1262_v63 = vmax.f32 %v1027_v57, 0.0 }
 0x16a   : > { %v1527_v1 = vld [vmem:[#allocation2 + $0xb0] ss:$2 sm:$0xff]  ;;  %v1529_v2 = vld [vmem:[#allocation2 + $0xb1] ss:$2 sm:$0xff]  ;;  %1422 = vst.msk [vmem:[#allocation2 + $0x2b8] sm:$0xff] %vm1334_vm2, %v1293_v60 }
 0x16b   : > { %v1531_v4 = vmax.f32 %v1527_v1, %v1529_v2  ;;  %v1623_v5 = vld [vmem:[#allocation2 + $0x1b0] ss:$2 sm:$0xff]  ;;  %v1625_v6 = vld [vmem:[#allocation2 + $0x1b1] ss:$2 sm:$0xff]  ;;  %1359 = vst.msk [vmem:[#allocation2 + $0xc0] sm:$0xff] %vm1334_vm2, %v1230_v62 }
 0x16c   : > { %v1627_v8 = vmax.f32 %v1623_v5, %v1625_v6  ;;  %1391 = vst.msk [vmem:[#allocation2 + $0x1c0] sm:$0xff] %vm1334_vm2, %v1262_v63 }
 0x16d   : > { %v1532_v11 = vmax.f32 %v1530_v3, %v1531_v4  ;;  %v1106_v12 = vpop.f32.mrf.mxu2  ;;  %1454 = vst.msk [vmem:[#allocation2 + $0x3b8] sm:$0xff] %vm1334_vm2, %v1325_v0  ;;  %v1186_v13 = vpop.f32.mrf.mxu3 }
 0x16e   : > { %v1628_v14 = vmax.f32 %v1626_v7, %v1627_v8  ;;  %v948_v15 = vpop.f32.mrf.mxu0  ;;  %v1028_v16 = vpop.f32.mrf.mxu1  ;;  %v1107_v17 = vadd.f32 1.0, %v1106_v12  ;;  %v1187_v45 = vadd.f32 1.0, %v1186_v13 }
 0x16f   : > { %1533 = vst.msk [vmem:[%s2760_s8 + $0x28] sm:$0xff] %vm1334_vm2, %v1532_v11  ;;  %v949_v18 = vadd.f32 1.0, %v948_v15  ;;  %v1029_v19 = vadd.f32 1.0, %v1028_v16 }
 0x170   : > { %1629 = vst.msk [vmem:[%s2760_s8 + $0x68] sm:$0xff] %vm1334_vm2, %v1628_v14  ;;  %v1294_v21 = vmax.f32 %v1107_v17, 0.0  ;;  %v1326_v48 = vmax.f32 %v1187_v45, 0.0 }
 0x171   : > { %v1719_v22 = vld [vmem:[#allocation2 + $0x2b0] ss:$2 sm:$0xff]  ;;  %v1721_v23 = vld [vmem:[#allocation2 + $0x2b1] ss:$2 sm:$0xff]  ;;  %v1231_v24 = vmax.f32 %v949_v18, 0.0  ;;  %v1263_v25 = vmax.f32 %v1029_v19, 0.0 }
 0x172   : > { %v1723_v26 = vmax.f32 %v1719_v22, %v1721_v23  ;;  %1423 = vst.msk [vmem:[#allocation2 + $0x2c0] sm:$0xff] %vm1334_vm2, %v1294_v21 }
 0x173   : > { %1360 = vst.msk [vmem:[#allocation2 + $0xc8] sm:$0xff] %vm1334_vm2, %v1231_v24 }
 0x174   : > { %v1724_v29 = vmax.f32 %v1722_v20, %v1723_v26  ;;  %1392 = vst.msk [vmem:[#allocation2 + $0x1c8] sm:$0xff] %vm1334_vm2, %v1263_v25  ;;  %v1815_v30 = vld [vmem:[#allocation2 + $0x3b0] ss:$2 sm:$0xff]  ;;  %v1817_v31 = vld [vmem:[#allocation2 + $0x3b1] ss:$2 sm:$0xff] }
 0x175   : > { %v1108_v33 = vpop.f32.mrf.mxu2  ;;  %v1819_v34 = vmax.f32 %v1815_v30, %v1817_v31  ;;  %v1188_v35 = vpop.f32.mrf.mxu3  ;;  %1455 = vst.msk [vmem:[#allocation2 + $0x3c0] sm:$0xff] %vm1334_vm2, %v1326_v48 }
 0x176   : > { %1725 = vst.msk [vmem:[%s2760_s8 + $0xa8] sm:$0xff] %vm1334_vm2, %v1724_v29  ;;  %v951_v36 = vpop.f32.mrf.mxu0  ;;  %v1031_v37 = vpop.f32.mrf.mxu1  ;;  %v1109_v38 = vadd.f32 1.0, %v1108_v33  ;;  %v1189_v46 = vadd.f32 1.0, %v1188_v35 }
 0x177   : > { %v952_v39 = vadd.f32 1.0, %v951_v36  ;;  %v1032_v40 = vadd.f32 1.0, %v1031_v37  ;;  %v1820_v44 = vmax.f32 %v1818_v32, %v1819_v34 }
 0x178   : > { %v1295_v41 = vmax.f32 %v1109_v38, 0.0  ;;  %v1327_v53 = vmax.f32 %v1189_v46, 0.0 }
 0x179   : > { %v1232_v42 = vmax.f32 %v952_v39, 0.0  ;;  %v1264_v43 = vmax.f32 %v1032_v40, 0.0  ;;  %1821 = vst.msk [vmem:[%s2760_s8 + $0xe8] sm:$0xff] %vm1334_vm2, %v1820_v44 }
 0x17a   : > { %1424 = vst.msk [vmem:[#allocation2 + $0x2c8] sm:$0xff] %vm1334_vm2, %v1295_v41  ;;  %v1535_v3 = vld [vmem:[#allocation2 + $0xc0] ss:$2 sm:$0xff]  ;;  %v1537_v6 = vld [vmem:[#allocation2 + $0xc1] ss:$2 sm:$0xff] }
 0x17b   : > { %1361 = vst.msk [vmem:[#allocation2 + $0xd0] sm:$0xff] %vm1334_vm2, %v1232_v42  ;;  %v1631_v7 = vld [vmem:[#allocation2 + $0x1c0] ss:$2 sm:$0xff]  ;;  %v1633_v9 = vld [vmem:[#allocation2 + $0x1c1] ss:$2 sm:$0xff]  ;;  %v1542_v15 = vmax.f32 %v1535_v3, %v1537_v6 }
 0x17c   : > { %1393 = vst.msk [vmem:[#allocation2 + $0x1d0] sm:$0xff] %vm1334_vm2, %v1264_v43  ;;  %v1638_v19 = vmax.f32 %v1631_v7, %v1633_v9 }
 0x17d   : > { %v1111_v47 = vpop.f32.mrf.mxu2  ;;  %v1191_v49 = vpop.f32.mrf.mxu3  ;;  %1456 = vst.msk [vmem:[#allocation2 + $0x3c8] sm:$0xff] %vm1334_vm2, %v1327_v53 }
 0x17e   : > { %v953_v50 = vpop.f32.mrf.mxu0  ;;  %v1033_v51 = vpop.f32.mrf.mxu1  ;;  %v1112_v52 = vadd.f32 1.0, %v1111_v47  ;;  %v1192_v56 = vadd.f32 1.0, %v1191_v49 }
 0x17f   : > { %v954_v54 = vadd.f32 1.0, %v953_v50  ;;  %v1034_v55 = vadd.f32 1.0, %v1033_v51 }
 0x180   : > { %v1296_v57 = vmax.f32 %v1112_v52, 0.0  ;;  %v1328_v60 = vmax.f32 %v1192_v56, 0.0 }
 0x181   : > { %v1233_v58 = vmax.f32 %v954_v54, 0.0  ;;  %v1265_v59 = vmax.f32 %v1034_v55, 0.0  ;;  %v1727_v21 = vld [vmem:[#allocation2 + $0x2c0] ss:$2 sm:$0xff]  ;;  %v1729_v22 = vld [vmem:[#allocation2 + $0x2c1] ss:$2 sm:$0xff] }
 0x182   : > { %1425 = vst.msk [vmem:[#allocation2 + $0x2d0] sm:$0xff] %vm1334_vm2, %v1296_v57  ;;  %v1734_v32 = vmax.f32 %v1727_v21, %v1729_v22 }
 0x183   : > { %1362 = vst.msk [vmem:[#allocation2 + $0xd8] sm:$0xff] %vm1334_vm2, %v1233_v58 }
 0x184   : > { %1394 = vst.msk [vmem:[#allocation2 + $0x1d8] sm:$0xff] %vm1334_vm2, %v1265_v59  ;;  %v1823_v39 = vld [vmem:[#allocation2 + $0x3c0] ss:$2 sm:$0xff]  ;;  %v1825_v40 = vld [vmem:[#allocation2 + $0x3c1] ss:$2 sm:$0xff] }
 0x185   : > { %v1113_v61 = vpop.f32.mrf.mxu2  ;;  %1457 = vst.msk [vmem:[#allocation2 + $0x3d0] sm:$0xff] %vm1334_vm2, %v1328_v60  ;;  %v1193_v62 = vpop.f32.mrf.mxu3  ;;  %v1830_v44 = vmax.f32 %v1823_v39, %v1825_v40  ;;  %v1851_v40 = vld [vmem:[%s2760_s8 + $0x28] sm:$0xff] }
 0x186   : > { %v956_v63 = vpop.f32.mrf.mxu0  ;;  %v1036_v0 = vpop.f32.mrf.mxu1  ;;  %v1114_v1 = vadd.f32 1.0, %v1113_v61  ;;  %v1194_v2 = vadd.f32 1.0, %v1193_v62 }
 0x187   : > { %v957_v4 = vadd.f32 1.0, %v956_v63  ;;  %v1037_v5 = vadd.f32 1.0, %v1036_v0 }
 0x188   : > { %v1297_v8 = vmax.f32 %v1114_v1, 0.0  ;;  %v1329_v12 = vmax.f32 %v1194_v2, 0.0 }
 0x189   : > { %v1234_v10 = vmax.f32 %v957_v4, 0.0  ;;  %v1266_v11 = vmax.f32 %v1037_v5, 0.0 }
 0x18a   : > { %v1539_v13 = vld [vmem:[#allocation2 + $0xd0] ss:$2 sm:$0xff]  ;;  %v1541_v14 = vld [vmem:[#allocation2 + $0xd1] ss:$2 sm:$0xff]  ;;  %1426 = vst.msk [vmem:[#allocation2 + $0x2d8] sm:$0xff] %vm1334_vm2, %v1297_v8  ;;  %v1847_v8 = vld [vmem:[%s2760_s8 + $0x8] sm:$0xff] }
 0x18b   : > { %v1543_v16 = vmax.f32 %v1539_v13, %v1541_v14  ;;  %v1635_v17 = vld [vmem:[#allocation2 + $0x1d0] ss:$2 sm:$0xff]  ;;  %v1637_v18 = vld [vmem:[#allocation2 + $0x1d1] ss:$2 sm:$0xff]  ;;  %1363 = vst.msk [vmem:[#allocation2 + $0xe0] sm:$0xff] %vm1334_vm2, %v1234_v10  ;;  %v1846_v10 = vld [vmem:[%s2760_s8] sm:$0xff] }
 0x18c   : > { %v1639_v20 = vmax.f32 %v1635_v17, %v1637_v18  ;;  %1395 = vst.msk [vmem:[#allocation2 + $0x1e0] sm:$0xff] %vm1334_vm2, %v1266_v11  ;;  %v1948_v11 = vmul.f32 %v1847_v8, %v1847_v8  ;;  %v1848_v14 = vld [vmem:[%s2760_s8 + $0x10] sm:$0xff]  ;;  %v1878_v17 = vsel %vm1334_vm2, %v1846_v10, 0.0  ;;  %v1849_v18 = vld [vmem:[%s2760_s8 + $0x18] sm:$0xff] }
 0x18d   : > { %v1544_v23 = vmax.f32 %v1542_v15, %v1543_v16  ;;  %v1116_v24 = vpop.f32.mrf.mxu2  ;;  %1458 = vst.msk [vmem:[#allocation2 + $0x3d8] sm:$0xff] %vm1334_vm2, %v1329_v12  ;;  %v1196_v25 = vpop.f32.mrf.mxu3 }
 0x18e   : > { %v1640_v26 = vmax.f32 %v1638_v19, %v1639_v20  ;;  %v958_v27 = vpop.f32.mrf.mxu0  ;;  %v1038_v28 = vpop.f32.mrf.mxu1  ;;  %v1117_v29 = vadd.f32 1.0, %v1116_v24  ;;  %v1197_v57 = vadd.f32 1.0, %v1196_v25  ;;  %v1947_v19 = vmul.f32 %v1846_v10, %v1846_v10 }
 0x18f   : > { %1545 = vst.msk [vmem:[%s2760_s8 + $0x30] sm:$0xff] %vm1334_vm2, %v1544_v23  ;;  %v959_v30 = vadd.f32 1.0, %v958_v27  ;;  %v1039_v31 = vadd.f32 1.0, %v1038_v28  ;;  %v1879_v24 = vsel %vm1334_vm2, %v1847_v8, 0.0  ;;  %v1980_v25 = vsel %vm1334_vm2, %v1948_v11, 0.0  ;;  %v1854_v11 = vld [vmem:[%s2760_s8 + $0x40] sm:$0xff] }
 0x190   : > { %1641 = vst.msk [vmem:[%s2760_s8 + $0x70] sm:$0xff] %vm1334_vm2, %v1640_v26  ;;  %v1298_v33 = vmax.f32 %v1117_v29, 0.0  ;;  %v1330_v60 = vmax.f32 %v1197_v57, 0.0  ;;  %v1949_v26 = vmul.f32 %v1848_v14, %v1848_v14  ;;  %v1850_v29 = vld [vmem:[%s2760_s8 + $0x20] sm:$0xff]  ;;  %v1880_v39 = vadd.f32 %v1879_v24, %v1878_v17  ;;  %v1855_v17 = vld [vmem:[%s2760_s8 + $0x48] sm:$0xff]  ;;  %v1856_v24 = vld [vmem:[%s2760_s8 + $0x50] sm:$0xff] }
 0x191   : > { %v1731_v34 = vld [vmem:[#allocation2 + $0x2d0] ss:$2 sm:$0xff]  ;;  %v1733_v35 = vld [vmem:[#allocation2 + $0x2d1] ss:$2 sm:$0xff]  ;;  %v1235_v36 = vmax.f32 %v959_v30, 0.0  ;;  %v1267_v37 = vmax.f32 %v1039_v31, 0.0  ;;  %v1952_v57 = vmul.f32 %v1851_v40, %v1851_v40 }
 0x192   : > { %v1735_v38 = vmax.f32 %v1731_v34, %v1733_v35  ;;  %1427 = vst.msk [vmem:[#allocation2 + $0x2e0] sm:$0xff] %vm1334_vm2, %v1298_v33  ;;  %v1950_v33 = vmul.f32 %v1849_v18, %v1849_v18 }
 0x193   : > { %1364 = vst.msk [vmem:[#allocation2 + $0xe8] sm:$0xff] %vm1334_vm2, %v1235_v36  ;;  %v1988_v8 = vsel %vm1334_vm2, %v1952_v57, 0.0 }
 0x194   : > { %v1736_v41 = vmax.f32 %v1734_v32, %v1735_v38  ;;  %1396 = vst.msk [vmem:[#allocation2 + $0x1e8] sm:$0xff] %vm1334_vm2, %v1267_v37  ;;  %v1827_v42 = vld [vmem:[#allocation2 + $0x3d0] ss:$2 sm:$0xff]  ;;  %v1829_v43 = vld [vmem:[#allocation2 + $0x3d1] ss:$2 sm:$0xff]  ;;  %v1881_v32 = vsel %vm1334_vm2, %v1848_v14, 0.0 }
 0x195   : > { %v1118_v45 = vpop.f32.mrf.mxu2  ;;  %v1831_v46 = vmax.f32 %v1827_v42, %v1829_v43  ;;  %v1198_v47 = vpop.f32.mrf.mxu3  ;;  %1459 = vst.msk [vmem:[#allocation2 + $0x3e0] sm:$0xff] %vm1334_vm2, %v1330_v60  ;;  %v1979_v38 = vsel %vm1334_vm2, %v1947_v19, 0.0  ;;  %v1982_v43 = vsel %vm1334_vm2, %v1949_v26, 0.0 }
 0x196   : > { %1737 = vst.msk [vmem:[%s2760_s8 + $0xb0] sm:$0xff] %vm1334_vm2, %v1736_v41  ;;  %v961_v48 = vpop.f32.mrf.mxu0  ;;  %v1041_v49 = vpop.f32.mrf.mxu1  ;;  %v1119_v50 = vadd.f32 1.0, %v1118_v45  ;;  %v1199_v58 = vadd.f32 1.0, %v1198_v47  ;;  %v1951_v45 = vmul.f32 %v1850_v29, %v1850_v29 }
 0x197   : > { %v962_v51 = vadd.f32 1.0, %v961_v48  ;;  %v1042_v52 = vadd.f32 1.0, %v1041_v49  ;;  %v1832_v56 = vmax.f32 %v1830_v44, %v1831_v46  ;;  %v1883_v44 = vsel %vm1334_vm2, %v1849_v18, 0.0 }
 0x198   : > { %v1299_v53 = vmax.f32 %v1119_v50, 0.0  ;;  %v1331_v1 = vmax.f32 %v1199_v58, 0.0  ;;  %v1981_v49 = vadd.f32 %v1980_v25, %v1979_v38  ;;  %v1882_v50 = vadd.f32 %v1881_v32, %v1880_v39 }
 0x199   : > { %v1236_v54 = vmax.f32 %v962_v51, 0.0  ;;  %v1268_v55 = vmax.f32 %v1042_v52, 0.0  ;;  %1833 = vst.msk [vmem:[%s2760_s8 + $0xf0] sm:$0xff] %vm1334_vm2, %v1832_v56  ;;  %v1852_v51 = vld [vmem:[%s2760_s8 + $0x30] sm:$0xff]  ;;  %v1885_v56 = vsel %vm1334_vm2, %v1850_v29, 0.0 }
 0x19a   : > { %1428 = vst.msk [vmem:[#allocation2 + $0x2e8] sm:$0xff] %vm1334_vm2, %v1299_v53  ;;  %v1547_v20 = vld [vmem:[#allocation2 + $0xe0] ss:$2 sm:$0xff]  ;;  %v1549_v21 = vld [vmem:[#allocation2 + $0xe1] ss:$2 sm:$0xff]  ;;  %v1983_v58 = vadd.f32 %v1982_v43, %v1981_v49 }
 0x19b   : > { %1365 = vst.msk [vmem:[#allocation2 + $0xf0] sm:$0xff] %vm1334_vm2, %v1236_v54  ;;  %v1643_v27 = vld [vmem:[#allocation2 + $0x1e0] ss:$2 sm:$0xff]  ;;  %v1645_v28 = vld [vmem:[#allocation2 + $0x1e1] ss:$2 sm:$0xff]  ;;  %v1554_v34 = vmax.f32 %v1547_v20, %v1549_v21  ;;  %v1955_v21 = vmul.f32 %v1854_v11, %v1854_v11 }
 0x19c   : > { %1397 = vst.msk [vmem:[#allocation2 + $0x1f0] sm:$0xff] %vm1334_vm2, %v1268_v55  ;;  %v1650_v41 = vmax.f32 %v1643_v27, %v1645_v28  ;;  %v1984_v55 = vsel %vm1334_vm2, %v1950_v33, 0.0  ;;  %v1893_v27 = vsel %vm1334_vm2, %v1854_v11, 0.0  ;;  %v1956_v28 = vmul.f32 %v1855_v17, %v1855_v17 }
 0x19d   : > { %v1121_v59 = vpop.f32.mrf.mxu2  ;;  %v1201_v61 = vpop.f32.mrf.mxu3  ;;  %1460 = vst.msk [vmem:[#allocation2 + $0x3e8] sm:$0xff] %vm1334_vm2, %v1331_v1  ;;  %v1994_v33 = vsel %vm1334_vm2, %v1955_v21, 0.0 }
 0x19e   : > { %v963_v62 = vpop.f32.mrf.mxu0  ;;  %v1043_v63 = vpop.f32.mrf.mxu1  ;;  %v1122_v0 = vadd.f32 1.0, %v1121_v59  ;;  %v1202_v4 = vadd.f32 1.0, %v1201_v61  ;;  %v1884_v59 = vadd.f32 %v1883_v44, %v1882_v50  ;;  %v1986_v61 = vsel %vm1334_vm2, %v1951_v45, 0.0 }
 0x19f   : > { %v964_v2 = vadd.f32 1.0, %v963_v62  ;;  %v1044_v3 = vadd.f32 1.0, %v1043_v63  ;;  %v1887_v62 = vsel %vm1334_vm2, %v1851_v40, 0.0  ;;  %v1953_v63 = vmul.f32 %v1852_v51, %v1852_v51 }
 0x1a0   : > { %v1300_v5 = vmax.f32 %v1122_v0, 0.0  ;;  %v1332_v9 = vmax.f32 %v1202_v4, 0.0  ;;  %v1886_v4 = vadd.f32 %v1885_v56, %v1884_v59  ;;  %v1996_v39 = vsel %vm1334_vm2, %v1956_v28, 0.0 }
 0x1a1   : > { %v1237_v6 = vmax.f32 %v964_v2, 0.0  ;;  %v1269_v7 = vmax.f32 %v1044_v3, 0.0  ;;  %v1739_v46 = vld [vmem:[#allocation2 + $0x2e0] ss:$2 sm:$0xff]  ;;  %v1741_v47 = vld [vmem:[#allocation2 + $0x2e1] ss:$2 sm:$0xff]  ;;  %v1985_v3 = vadd.f32 %v1984_v55, %v1983_v58 }
 0x1a2   : > { %1429 = vst.msk [vmem:[#allocation2 + $0x2f0] sm:$0xff] %vm1334_vm2, %v1300_v5  ;;  %v1746_v60 = vmax.f32 %v1739_v46, %v1741_v47  ;;  %v1897_v40 = vsel %vm1334_vm2, %v1856_v24, 0.0 }
 0x1a3   : > { %1366 = vst.msk [vmem:[#allocation2 + $0xf8] sm:$0xff] %vm1334_vm2, %v1237_v6 }
 0x1a4   : > { %1398 = vst.msk [vmem:[#allocation2 + $0x1f8] sm:$0xff] %vm1334_vm2, %v1269_v7  ;;  %v1835_v53 = vld [vmem:[#allocation2 + $0x3e0] ss:$2 sm:$0xff]  ;;  %v1837_v54 = vld [vmem:[#allocation2 + $0x3e1] ss:$2 sm:$0xff] }
 0x1a5   : > { %v1123_v12 = vpop.f32.mrf.mxu2  ;;  %1461 = vst.msk [vmem:[#allocation2 + $0x3f0] sm:$0xff] %vm1334_vm2, %v1332_v9  ;;  %v1203_v13 = vpop.f32.mrf.mxu3  ;;  %v1842_v2 = vmax.f32 %v1835_v53, %v1837_v54  ;;  %v1889_v9 = vsel %vm1334_vm2, %v1852_v51, 0.0 }
 0x1a6   : > { %v1124_v15 = vadd.f32 1.0, %v1123_v12  ;;  %v1204_v16 = vadd.f32 1.0, %v1203_v13  ;;  %v1987_v12 = vadd.f32 %v1986_v61, %v1985_v3  ;;  %v1888_v13 = vadd.f32 %v1887_v62, %v1886_v4 }
 0x1a8   : > { %v1301_v22 = vmax.f32 %v1124_v15, 0.0  ;;  %v1333_v23 = vmax.f32 %v1204_v16, 0.0  ;;  %v1990_v15 = vsel %vm1334_vm2, %v1953_v63, 0.0  ;;  %v1989_v18 = vadd.f32 %v1988_v8, %v1987_v12  ;;  %v1864_v8 = vld [vmem:[%s2760_s8 + $0x90] sm:$0xff] }
 0x1a9   : > { %v1890_v19 = vadd.f32 %v1889_v9, %v1888_v13 }
 0x1aa   : > { %v1551_v30 = vld [vmem:[#allocation2 + $0xf0] ss:$2 sm:$0xff]  ;;  %v1553_v31 = vld [vmem:[#allocation2 + $0xf1] ss:$2 sm:$0xff]  ;;  %1430 = vst.msk [vmem:[#allocation2 + $0x2f8] sm:$0xff] %vm1334_vm2, %v1301_v22  ;;  %v1991_v25 = vadd.f32 %v1990_v15, %v1989_v18 }
 0x1ab   : > { %v1555_v35 = vmax.f32 %v1551_v30, %v1553_v31  ;;  %v1647_v36 = vld [vmem:[#allocation2 + $0x1f0] ss:$2 sm:$0xff]  ;;  %v1649_v37 = vld [vmem:[#allocation2 + $0x1f1] ss:$2 sm:$0xff]  ;;  %1462 = vst.msk [vmem:[#allocation2 + $0x3f8] sm:$0xff] %vm1334_vm2, %v1333_v23 }
 0x1ac   : > { %v1651_v42 = vmax.f32 %v1647_v36, %v1649_v37  ;;  %v1857_v30 = vld [vmem:[%s2760_s8 + $0x58] sm:$0xff]  ;;  %v1858_v36 = vld [vmem:[%s2760_s8 + $0x60] sm:$0xff] }
 0x1ad   : > { %v1556_v48 = vmax.f32 %v1554_v34, %v1555_v35  ;;  %v1895_v34 = vsel %vm1334_vm2, %v1855_v17, 0.0  ;;  %v1957_v35 = vmul.f32 %v1856_v24, %v1856_v24  ;;  %v1899_v46 = vsel %vm1334_vm2, %v1857_v30, 0.0 }
 0x1ae   : > { %v1652_v52 = vmax.f32 %v1650_v41, %v1651_v42  ;;  %v1958_v41 = vmul.f32 %v1857_v30, %v1857_v30  ;;  %v1859_v42 = vld [vmem:[%s2760_s8 + $0x68] sm:$0xff]  ;;  %v1959_v47 = vmul.f32 %v1858_v36, %v1858_v36  ;;  %v1913_v24 = vsel %vm1334_vm2, %v1864_v8, 0.0 }
 0x1af   : > { %1557 = vst.msk [vmem:[%s2760_s8 + $0x38] sm:$0xff] %vm1334_vm2, %v1556_v48  ;;  %v1998_v45 = vsel %vm1334_vm2, %v1957_v35, 0.0  ;;  %v1860_v48 = vld [vmem:[%s2760_s8 + $0x70] sm:$0xff]  ;;  %v1960_v53 = vmul.f32 %v1859_v42, %v1859_v42  ;;  %v1903_v58 = vsel %vm1334_vm2, %v1859_v42, 0.0 }
 0x1b0   : > { %1653 = vst.msk [vmem:[%s2760_s8 + $0x78] sm:$0xff] %vm1334_vm2, %v1652_v52  ;;  %v2000_v51 = vsel %vm1334_vm2, %v1958_v41, 0.0  ;;  %v1901_v52 = vsel %vm1334_vm2, %v1858_v36, 0.0  ;;  %v2002_v57 = vsel %vm1334_vm2, %v1959_v47, 0.0  ;;  %v1961_v59 = vmul.f32 %v1860_v48, %v1860_v48 }
 0x1b1   : > { %v1743_v0 = vld [vmem:[#allocation2 + $0x2f0] ss:$2 sm:$0xff]  ;;  %v1745_v1 = vld [vmem:[#allocation2 + $0x2f1] ss:$2 sm:$0xff]  ;;  %v2004_v63 = vsel %vm1334_vm2, %v1960_v53, 0.0 }
 0x1b2   : > { %v1747_v5 = vmax.f32 %v1743_v0, %v1745_v1  ;;  %v1839_v6 = vld [vmem:[#allocation2 + $0x3f0] ss:$2 sm:$0xff]  ;;  %v1841_v7 = vld [vmem:[#allocation2 + $0x3f1] ss:$2 sm:$0xff]  ;;  %v1905_v0 = vsel %vm1334_vm2, %v1860_v48, 0.0 }
 0x1b3   : > { %v1843_v10 = vmax.f32 %v1839_v6, %v1841_v7  ;;  %v2006_v6 = vsel %vm1334_vm2, %v1961_v59, 0.0 }
 0x1b4   : > { %v1748_v14 = vmax.f32 %v1746_v60, %v1747_v5  ;;  %v1862_v60 = vld [vmem:[%s2760_s8 + $0x80] sm:$0xff] }
 0x1b5   : > { %v1844_v16 = vmax.f32 %v1842_v2, %v1843_v10  ;;  %v1863_v2 = vld [vmem:[%s2760_s8 + $0x88] sm:$0xff]  ;;  %v1963_v5 = vmul.f32 %v1862_v60, %v1862_v60  ;;  %v1909_v11 = vsel %vm1334_vm2, %v1862_v60, 0.0 }
 0x1b6   : > { %v1853_v20 = vld [vmem:[%s2760_s8 + $0x38] sm:$0xff]  ;;  %1749 = vst.msk [vmem:[%s2760_s8 + $0xb8] sm:$0xff] %vm1334_vm2, %v1748_v14  ;;  %v1964_v12 = vmul.f32 %v1863_v2, %v1863_v2  ;;  %v1911_v18 = vsel %vm1334_vm2, %v1863_v2, 0.0 }
 0x1b7   : > { %v1891_v22 = vsel %vm1334_vm2, %v1853_v20, 0.0  ;;  %v1954_v23 = vmul.f32 %v1853_v20, %v1853_v20  ;;  %1845 = vst.msk [vmem:[%s2760_s8 + $0xf8] sm:$0xff] %vm1334_vm2, %v1844_v16  ;;  %v1861_v54 = vld [vmem:[%s2760_s8 + $0x78] sm:$0xff]  ;;  %v2010_v17 = vsel %vm1334_vm2, %v1963_v5, 0.0  ;;  %v1866_v20 = vld [vmem:[%s2760_s8 + $0xa0] sm:$0xff] }
 0x1b8   : > { %v1892_v26 = vadd.f32 %v1891_v22, %v1890_v19  ;;  %v1962_v1 = vmul.f32 %v1861_v54, %v1861_v54  ;;  %v1907_v7 = vsel %vm1334_vm2, %v1861_v54, 0.0  ;;  %v1865_v14 = vld [vmem:[%s2760_s8 + $0x98] sm:$0xff]  ;;  %v1965_v19 = vmul.f32 %v1864_v8, %v1864_v8 }
 0x1b9   : > { %v1992_v29 = vsel %vm1334_vm2, %v1954_v23, 0.0  ;;  %v2012_v23 = vsel %vm1334_vm2, %v1964_v12, 0.0  ;;  %v1915_v30 = vsel %vm1334_vm2, %v1865_v14, 0.0  ;;  %v1917_v36 = vsel %vm1334_vm2, %v1866_v20, 0.0 }
 0x1ba   : > { %v1894_v31 = vadd.f32 %v1893_v27, %v1892_v26  ;;  %v1993_v32 = vadd.f32 %v1992_v29, %v1991_v25  ;;  %v2008_v13 = vsel %vm1334_vm2, %v1962_v1, 0.0  ;;  %v1966_v25 = vmul.f32 %v1865_v14, %v1865_v14  ;;  %v1867_v26 = vld [vmem:[%s2760_s8 + $0xa8] sm:$0xff] }
 0x1bb   : > { %v2014_v29 = vsel %vm1334_vm2, %v1965_v19, 0.0  ;;  %v1919_v42 = vsel %vm1334_vm2, %v1867_v26, 0.0 }
 0x1bc   : > { %v1896_v37 = vadd.f32 %v1895_v34, %v1894_v31  ;;  %v1995_v38 = vadd.f32 %v1994_v33, %v1993_v32  ;;  %v1967_v31 = vmul.f32 %v1866_v20, %v1866_v20  ;;  %v1868_v32 = vld [vmem:[%s2760_s8 + $0xb0] sm:$0xff]  ;;  %v2016_v35 = vsel %vm1334_vm2, %v1966_v25, 0.0 }
 0x1bd   : > { %v1921_v48 = vsel %vm1334_vm2, %v1868_v32, 0.0 }
 0x1be   : > { %v1898_v43 = vadd.f32 %v1897_v40, %v1896_v37  ;;  %v1997_v44 = vadd.f32 %v1996_v39, %v1995_v38  ;;  %v1968_v37 = vmul.f32 %v1867_v26, %v1867_v26  ;;  %v1869_v38 = vld [vmem:[%s2760_s8 + $0xb8] sm:$0xff]  ;;  %v2018_v41 = vsel %vm1334_vm2, %v1967_v31, 0.0 }
 0x1c0   : > { %v1999_v49 = vadd.f32 %v1998_v45, %v1997_v44  ;;  %v1900_v50 = vadd.f32 %v1899_v46, %v1898_v43  ;;  %v1969_v43 = vmul.f32 %v1868_v32, %v1868_v32  ;;  %v1870_v44 = vld [vmem:[%s2760_s8 + $0xc0] sm:$0xff]  ;;  %v2020_v47 = vsel %vm1334_vm2, %v1968_v37, 0.0 }
 0x1c1   : > { %v1971_v53 = vmul.f32 %v1870_v44, %v1870_v44  ;;  %v1925_v59 = vsel %vm1334_vm2, %v1870_v44, 0.0 }
 0x1c2   : > { %v1902_v55 = vadd.f32 %v1901_v52, %v1900_v50  ;;  %v2001_v56 = vadd.f32 %v2000_v51, %v1999_v49  ;;  %v1970_v49 = vmul.f32 %v1869_v38, %v1869_v38  ;;  %v1871_v50 = vld [vmem:[%s2760_s8 + $0xc8] sm:$0xff]  ;;  %v2022_v54 = vsel %vm1334_vm2, %v1969_v43, 0.0 }
 0x1c3   : > { %v1972_v60 = vmul.f32 %v1871_v50, %v1871_v50  ;;  %v2026_v1 = vsel %vm1334_vm2, %v1971_v53, 0.0  ;;  %v1927_v2 = vsel %vm1334_vm2, %v1871_v50, 0.0 }
 0x1c4   : > { %v1904_v61 = vadd.f32 %v1903_v58, %v1902_v55  ;;  %v2003_v62 = vadd.f32 %v2002_v57, %v2001_v56  ;;  %v1923_v55 = vsel %vm1334_vm2, %v1869_v38, 0.0  ;;  %v1872_v56 = vld [vmem:[%s2760_s8 + $0xd0] sm:$0xff] }
 0x1c5   : > { %v1929_v8 = vsel %vm1334_vm2, %v1872_v56, 0.0 }
 0x1c6   : > { %v1906_v3 = vadd.f32 %v1905_v0, %v1904_v61  ;;  %v2005_v4 = vadd.f32 %v2004_v63, %v2003_v62  ;;  %v2024_v61 = vsel %vm1334_vm2, %v1970_v49, 0.0  ;;  %v1873_v62 = vld [vmem:[%s2760_s8 + $0xd8] sm:$0xff] }
 0x1c7   : > { %v1931_v14 = vsel %vm1334_vm2, %v1873_v62, 0.0 }
 0x1c8   : > { %v1908_v9 = vadd.f32 %v1907_v7, %v1906_v3  ;;  %v2007_v10 = vadd.f32 %v2006_v6, %v2005_v4  ;;  %v1973_v3 = vmul.f32 %v1872_v56, %v1872_v56  ;;  %v1874_v4 = vld [vmem:[%s2760_s8 + $0xe0] sm:$0xff]  ;;  %v2028_v7 = vsel %vm1334_vm2, %v1972_v60, 0.0 }
 0x1c9   : > { %v1933_v20 = vsel %vm1334_vm2, %v1874_v4, 0.0 }
 0x1ca   : > { %v1910_v15 = vadd.f32 %v1909_v11, %v1908_v9  ;;  %v2009_v16 = vadd.f32 %v2008_v13, %v2007_v10  ;;  %v1974_v9 = vmul.f32 %v1873_v62, %v1873_v62  ;;  %v1875_v10 = vld [vmem:[%s2760_s8 + $0xe8] sm:$0xff]  ;;  %v2030_v13 = vsel %vm1334_vm2, %v1973_v3, 0.0 }
 0x1cb   : > { %v1935_v26 = vsel %vm1334_vm2, %v1875_v10, 0.0 }
 0x1cc   : > { %v1912_v21 = vadd.f32 %v1911_v18, %v1910_v15  ;;  %v2011_v22 = vadd.f32 %v2010_v17, %v2009_v16  ;;  %v1975_v15 = vmul.f32 %v1874_v4, %v1874_v4  ;;  %v1876_v16 = vld [vmem:[%s2760_s8 + $0xf0] sm:$0xff]  ;;  %v2032_v19 = vsel %vm1334_vm2, %v1974_v9, 0.0 }
 0x1cd   : > { %v1937_v31 = vsel %vm1334_vm2, %v1876_v16, 0.0 }
 0x1ce   : > { %v1914_v27 = vadd.f32 %v1913_v24, %v1912_v21  ;;  %v2013_v28 = vadd.f32 %v2012_v23, %v2011_v22  ;;  %v1976_v21 = vmul.f32 %v1875_v10, %v1875_v10  ;;  %v1877_v22 = vld [vmem:[%s2760_s8 + $0xf8] sm:$0xff]  ;;  %v2034_v25 = vsel %vm1334_vm2, %v1975_v15, 0.0 }
 0x1cf   : > { %v1978_v32 = vmul.f32 %v1877_v22, %v1877_v22 }
 0x1d0   : > { %v2015_v33 = vadd.f32 %v2014_v29, %v2013_v28  ;;  %v1916_v34 = vadd.f32 %v1915_v30, %v1914_v27  ;;  %v1977_v27 = vmul.f32 %v1876_v16, %v1876_v16  ;;  %v2036_v30 = vsel %vm1334_vm2, %v1976_v21, 0.0 }
 0x1d2   : > { %v1918_v39 = vadd.f32 %v1917_v36, %v1916_v34  ;;  %v2017_v40 = vadd.f32 %v2016_v35, %v2015_v33  ;;  %v2038_v35 = vsel %vm1334_vm2, %v1977_v27, 0.0  ;;  %v1939_v36 = vsel %vm1334_vm2, %v1877_v22, 0.0 }
 0x1d4   : > { %v1920_v45 = vadd.f32 %v1919_v42, %v1918_v39  ;;  %v2019_v46 = vadd.f32 %v2018_v41, %v2017_v40  ;;  %v2040_v39 = vsel %vm1334_vm2, %v1978_v32, 0.0 }
 0x1d6   : > { %v1922_v51 = vadd.f32 %v1921_v48, %v1920_v45  ;;  %v2021_v52 = vadd.f32 %v2020_v47, %v2019_v46 }
 0x1d8   : > { %v1924_v57 = vadd.f32 %v1923_v55, %v1922_v51  ;;  %v2023_v58 = vadd.f32 %v2022_v54, %v2021_v52 }
 0x1da   : > { %v1926_v63 = vadd.f32 %v1925_v59, %v1924_v57  ;;  %v2025_v0 = vadd.f32 %v2024_v61, %v2023_v58 }
 0x1dc   : > { %v1928_v5 = vadd.f32 %v1927_v2, %v1926_v63  ;;  %v2027_v6 = vadd.f32 %v2026_v1, %v2025_v0 }
 0x1de   : > { %v1930_v11 = vadd.f32 %v1929_v8, %v1928_v5  ;;  %v2029_v12 = vadd.f32 %v2028_v7, %v2027_v6 }
 0x1e0   : > { %v2031_v17 = vadd.f32 %v2030_v13, %v2029_v12  ;;  %v1932_v18 = vadd.f32 %v1931_v14, %v1930_v11 }
 0x1e2   : > { %v1934_v23 = vadd.f32 %v1933_v20, %v1932_v18  ;;  %v2033_v24 = vadd.f32 %v2032_v19, %v2031_v17 }
 0x1e4   : > { %v1936_v28 = vadd.f32 %v1935_v26, %v1934_v23  ;;  %v2035_v29 = vadd.f32 %v2034_v25, %v2033_v24 }
 0x1e6   : > { %v1938_v33 = vadd.f32 %v1937_v31, %v1936_v28  ;;  %v2037_v34 = vadd.f32 %v2036_v30, %v2035_v29 }
 0x1e8   : > { %v1940_v37 = vadd.f32 %v1939_v36, %v1938_v33  ;;  %v2039_v38 = vadd.f32 %v2038_v35, %v2037_v34 }
 0x1ea   : > { %v1941_v40 = vrot.slane %v1940_v37, 4  ;;  %v2041_v41 = vadd.f32 %v2040_v39, %v2039_v38 }
 0x1ec   : > { %v1942_v42 = vadd.f32 %v1941_v40, %v1940_v37  ;;  %v2042_v43 = vrot.slane %v2041_v41, 4 }
 0x1ee   : > { %v1943_v44 = vrot.slane %v1942_v42, 2  ;;  %v2043_v45 = vadd.f32 %v2042_v43, %v2041_v41 }
 0x1f0   : > { %v1944_v46 = vadd.f32 %v1943_v44, %v1942_v42  ;;  %v2044_v47 = vrot.slane %v2043_v45, 2 }
 0x1f2   : > { %v1945_v48 = vrot.slane %v1944_v46, 1  ;;  %v2045_v49 = vadd.f32 %v2044_v47, %v2043_v45 }
 0x1f4   : > { %v1946_v50 = vadd.f32 %v1945_v48, %v1944_v46  ;;  %v2046_v51 = vrot.slane %v2045_v49, 1 }
 0x1f6   : > { %v2047_v52 = vadd.f32 %v2046_v51, %v2045_v49  ;;  %2049 = vst.msk [vmem:[%s184_s14] sm:$0x1] %vm2048_vm3, %v1946_v50 }
 0x1f8   : > { %2050 = vst.msk [vmem:[%s184_s14 + $0x1] sm:$0x1] %vm2048_vm3, %v2047_v52 }
 0x1f9 PF: > { %s14_s12 = sadd.s32 1, %s2592_s12  }
 0x1fa   : > { %p11_p6 = scmp.ge.s32.totalorder %s14_s12, 10  }
 0x1fc   :  { %13 = sbr.rel (!%p11_p6) target bundleno = 1 (0x1), region = 197 }

// kernel: rkhs_vnn_forward.4
= control target key start
LH: loop header
LB: loop body
LE: loop exit
PB: predicated region body
PF: predicated region fallthrough
CT: control target
= control target key end

     0   :  { %s4358_s18 = smov 0   ;;  %s5535_s0 = inlined_call_operand.vmem [shape: bf16[2048,432], index: 0, kind: input, shape index: {}]   ;;  %s5536_s1 = inlined_call_operand.vmem [shape: bf16[432,24], index: 1, kind: input, shape index: {}]   ;;  %s5537_s2 = inlined_call_operand.vmem [shape: bf16[2048,16], index: 2, kind: input, shape index: {}]   ;;  %s5538_s3 = inlined_call_operand.vmem [shape: bf16[16,24], index: 3, kind: input, shape index: {}]   ;;  %s5539_s4 = inlined_call_operand.vmem [shape: f32[512,24], index: 4, kind: output, shape index: {0}]   ;;  %s5540_s5 = inlined_call_operand.vmem [shape: f32[4,2,24], index: 5, kind: output, shape index: {1}]  }
   0x1 LB: > { %s4364_s19 = sadd.s32 4294967295, %s4326_s18   ;;  %p3277_p0 = scmp.ge.s32.totalorder %s4326_s18, 1  ;;  %s4326_s18 = sphi %s4358_s18, %s16_s18  }
   0x2   : > { %p203_p1 = scmp.lt.s32.totalorder %s4326_s18, 5 }
   0x4   : > { %p204_p2 = pnand %p3277_p0, %p203_p1 }
   0x6   : > { %207 = sbr.rel (%p204_p2) target bundleno = 854 (0x356), region = 36 }
   0xb   : > { %v4240_v0 = vld [vmem:[%s5536_s1 + $0x38] sm:$0xff]  ;;  %v4259_v1 = vld [vmem:[%s5536_s1 + $0xd0] sm:$0xff]  ;;  %s3278_s24 = sshll.u32 %s4364_s19, 6  ;;  %v4381_v3 = vld [vmem:[%s5536_s1 + $0xc8] sm:$0xff]  ;;  %vm1217_vm0 = vcmask 392192   ;;  %vm2286_vm1 = vcmask 130048  }
   0xc   : > { %p242_p3 = scmp.lt.s32.totalorder %s3278_s24, 255  ;;  %1314 = vmatpush.bf16.msra.mxu0 %v4240_v0  ;;  %4293 = vmatpush.bf16.msra.mxu1 %v4240_v0  ;;  %v4239_v2 = vld [vmem:[%s5536_s1 + $0x30] sm:$0xff]  ;;  %v4238_v4 = vld [vmem:[%s5536_s1 + $0x28] sm:$0xff]  ;;  %v4257_v5 = vld [vmem:[%s5536_s1 + $0xc0] sm:$0xff]  ;;  %vm2616_vm2 = vcmask 195584   ;;  %vm2691_vm3 = vcmask 191488  }
   0xd   : > { %4309 = vmatpush.bf16.msra.mxu3 %v4259_v1  ;;  %4294 = vmatpush.bf16.msra.mxu2 %v4240_v0  ;;  %v4292_v8 = vld [vmem:[%s5538_s3] sm:$0xff]  ;;  %v4236_v11 = vld [vmem:[%s5536_s1 + $0x18] sm:$0xff]  ;;  %v4235_v12 = vld [vmem:[%s5536_s1 + $0x10] sm:$0xff]  ;;  %p260_p5 = scmp.lt.s32.totalorder %s4364_s19, 3  ;;  %vm3171_vm4 = vcmask 188416  }
   0xe   : > { %s5652_s24 = smov (!%p242_p3, %s3278_s24), 255  ;;  %v4237_v9 = vld [vmem:[%s5536_s1 + $0x20] sm:$0xff]  ;;  %v4234_v13 = vld [vmem:[%s5536_s1 + $0x8] sm:$0xff]  ;;  %v4248_v22 = vld [vmem:[%s5536_s1 + $0x78] sm:$0xff] }
   0xf   : > { %s4104_s29 = sshll.u32 %s5652_s24, 4  ;;  %v4233_v16 = vld [vmem:[%s5536_s1] sm:$0xff]  ;;  %v4256_v27 = vld [vmem:[%s5536_s1 + $0xb8] sm:$0xff]  ;;  %v4247_v29 = vld [vmem:[%s5536_s1 + $0x70] sm:$0xff]  ;;  %s3282_s14 = sshll.u32 %s5652_s24, 2 }
  0x10   : > { %1315 = vmatpush.bf16.msra.mxu0 %v4239_v2  ;;  %4295 = vmatpush.bf16.msra.mxu1 %v4239_v2  ;;  %s4392_s9 = scalar_lea.vmem %s5535_s0, %s4104_s29  ;;  %v4255_v30 = vld [vmem:[%s5536_s1 + $0xb0] sm:$0xff]  ;;  %v4246_v31 = vld [vmem:[%s5536_s1 + $0x68] sm:$0xff]  ;;  %v4245_v45 = vld [vmem:[%s5536_s1 + $0x60] sm:$0xff]  ;;  %s4546_s17 = scalar_lea.vmem %s5537_s2, %s3282_s14 }
  0x11   : > { %4310 = vmatpush.bf16.msra.mxu3 %v4381_v3  ;;  %4296 = vmatpush.bf16.msra.mxu2 %v4239_v2  ;;  %v4198_v6 = vld [vmem:[%s4392_s9 + $0x2ec] sm:$0xf]  ;;  %v3666_v7 = vld [vmem:[%s4392_s9 + $0x2f8] sm:$0xf0]  ;;  %v3288_v17 = vld [vmem:[%s4392_s9] sm:$0xf] }
  0x12   : > { %v3669_v10 = vor.u32 %v4198_v6, %v3666_v7  ;;  %v4202_v14 = vld [vmem:[%s4392_s9 + $0x30c] sm:$0xf]  ;;  %v3682_v15 = vld [vmem:[%s4392_s9 + $0x318] sm:$0xf0]  ;;  %v4107_v18 = vld [vmem:[%s4392_s9 + $0xc] sm:$0xf0] }
  0x13   : > { %v3560_v19 = vld [vmem:[%s4392_s9 + $0x220] sm:$0xf]  ;;  %v4175_v20 = vld [vmem:[%s4392_s9 + $0x22c] sm:$0xf0]  ;;  %v3685_v21 = vor.u32 %v4202_v14, %v3682_v15  ;;  %v3289_v25 = vor.u32 %v4107_v18, %v3288_v17  ;;  %v4254_v32 = vld [vmem:[%s5536_s1 + $0xa8] sm:$0xff]  ;;  %s3283_s24 = sshll.u32 %s4364_s19, 4 }
  0x14   : > { %1316 = vmatpush.bf16.msra.mxu0 %v4238_v4  ;;  %4297 = vmatpush.bf16.msra.mxu1 %v4238_v4  ;;  %v3688_v23 = vld [vmem:[%s4392_s9 + $0x320] sm:$0xf]  ;;  %v4207_v24 = vld [vmem:[%s4392_s9 + $0x32c] sm:$0xf0]  ;;  %v3561_v26 = vor.u32 %v4175_v20, %v3560_v19  ;;  %v4206_v33 = vld [vmem:[%s4392_s9 + $0x32c] sm:$0xf] }
  0x15   : > { %4311 = vmatpush.bf16.msra.mxu3 %v4257_v5  ;;  %4298 = vmatpush.bf16.msra.mxu2 %v4238_v4  ;;  %v3689_v28 = vor.u32 %v4207_v24, %v3688_v23  ;;  %v3698_v34 = vld [vmem:[%s4392_s9 + $0x338] sm:$0xf0]  ;;  %v3304_v35 = vld [vmem:[%s4392_s9 + $0x20] sm:$0xf]  ;;  %v4111_v36 = vld [vmem:[%s4392_s9 + $0x2c] sm:$0xf0] }
  0x16   : > { %v3576_v37 = vld [vmem:[%s4392_s9 + $0x240] sm:$0xf]  ;;  %v4179_v38 = vld [vmem:[%s4392_s9 + $0x24c] sm:$0xf0]  ;;  %v3701_v39 = vor.u32 %v4206_v33, %v3698_v34  ;;  %v3305_v42 = vor.u32 %v4111_v36, %v3304_v35  ;;  %v4210_v47 = vld [vmem:[%s4392_s9 + $0x34c] sm:$0xf] }
  0x17   : > { %v3704_v40 = vld [vmem:[%s4392_s9 + $0x340] sm:$0xf]  ;;  %v4211_v41 = vld [vmem:[%s4392_s9 + $0x34c] sm:$0xf0]  ;;  %v3577_v43 = vor.u32 %v4179_v38, %v3576_v37  ;;  %v3714_v48 = vld [vmem:[%s4392_s9 + $0x358] sm:$0xf0] }
  0x18   : > { %1317 = vmatpush.bf16.msra.mxu0 %v4237_v9  ;;  %4299 = vmatpush.bf16.msra.mxu1 %v4237_v9  ;;  %v3705_v44 = vor.u32 %v4211_v41, %v3704_v40  ;;  %v4253_v46 = vld [vmem:[%s5536_s1 + $0xa0] sm:$0xff]  ;;  %v4115_v50 = vld [vmem:[%s4392_s9 + $0x4c] sm:$0xf0]  ;;  %v3717_v53 = vor.u32 %v4210_v47, %v3714_v48  ;;  %v4244_v59 = vld [vmem:[%s5536_s1 + $0x58] sm:$0xff]  ;;  %p255_p4 = scmp.lt.s32.totalorder %s3283_s24, 63  ;;  %s5656_s19 = smov (!%p260_p5, %s4364_s19), 3 }
  0x19   : > { %2390 = vmatpush.bf16.msrb.mxu3 %v4292_v8  ;;  %4300 = vmatpush.bf16.msra.mxu2 %v4237_v9  ;;  %v3320_v49 = vld [vmem:[%s4392_s9 + $0x40] sm:$0xf]  ;;  %v4183_v52 = vld [vmem:[%s4392_s9 + $0x26c] sm:$0xf0]  ;;  %v4252_v60 = vld [vmem:[%s5536_s1 + $0x98] sm:$0xff] }
  0x1a   : > { %3929 = vmatmul.msk.bf16.vlgmr.msra.gmra.mxu3 %vm1217_vm0, %v3669_v10  ;;  %v3592_v51 = vld [vmem:[%s4392_s9 + $0x260] sm:$0xf]  ;;  %v4215_v55 = vld [vmem:[%s4392_s9 + $0x36c] sm:$0xf0]  ;;  %v3321_v56 = vor.u32 %v4115_v50, %v3320_v49  ;;  %v4214_v61 = vld [vmem:[%s4392_s9 + $0x36c] sm:$0xf] }
  0x1b   : > { %v3720_v54 = vld [vmem:[%s4392_s9 + $0x360] sm:$0xf]  ;;  %v3593_v57 = vor.u32 %v4183_v52, %v3592_v51  ;;  %v3730_v62 = vld [vmem:[%s4392_s9 + $0x378] sm:$0xf0]  ;;  %v4119_v0 = vld [vmem:[%s4392_s9 + $0x6c] sm:$0xf0] }
  0x1c   : > { %1318 = vmatpush.bf16.msra.mxu0 %v4236_v11  ;;  %4301 = vmatpush.bf16.msra.mxu1 %v4236_v11  ;;  %v3721_v58 = vor.u32 %v4215_v55, %v3720_v54  ;;  %v3336_v63 = vld [vmem:[%s4392_s9 + $0x60] sm:$0xf]  ;;  %v4187_v2 = vld [vmem:[%s4392_s9 + $0x28c] sm:$0xf0]  ;;  %v4242_v23 = vld [vmem:[%s5536_s1 + $0x48] sm:$0xff]  ;;  %s5654_s24 = smov (!%p255_p4, %s3283_s24), 63 }
  0x1d   : > { %4302 = vmatpush.bf16.msra.mxu2 %v4236_v11  ;;  %v3736_v4 = vld [vmem:[%s4392_s9 + $0x380] sm:$0xf]  ;;  %v3337_v6 = vor.u32 %v4119_v0, %v3336_v63  ;;  %v4243_v9 = vld [vmem:[%s5536_s1 + $0x50] sm:$0xff]  ;;  %v4218_v11 = vld [vmem:[%s4392_s9 + $0x38c] sm:$0xf]  ;;  %s3284_s20 = sshll.u32 %s5654_s24, 3 }
  0x1e   : > { %v4251_v10 = vld [vmem:[%s5536_s1 + $0x90] sm:$0xff]  ;;  %v3624_v15 = vld [vmem:[%s4392_s9 + $0x2a0] sm:$0xf]  ;;  %v4250_v24 = vld [vmem:[%s5536_s1 + $0x88] sm:$0xff]  ;;  %s4991_s23 = scalar_lea.vmem %s5539_s4, %s3284_s20 }
  0x1f   : > { %v4123_v14 = vld [vmem:[%s4392_s9 + $0x8c] sm:$0xf0]  ;;  %v3752_v18 = vld [vmem:[%s4392_s9 + $0x3a0] sm:$0xf]  ;;  %v3778_v40 = vld [vmem:[%s4392_s9 + $0x3d8] sm:$0xf0] }
  0x20   : > { %1319 = vmatpush.bf16.msra.mxu0 %v4235_v12  ;;  %4303 = vmatpush.bf16.msra.mxu1 %v4235_v12  ;;  %v4223_v19 = vld [vmem:[%s4392_s9 + $0x3ac] sm:$0xf0]  ;;  %v4249_v37 = vld [vmem:[%s5536_s1 + $0x80] sm:$0xff]  ;;  %v4230_v51 = vld [vmem:[%s4392_s9 + $0x3ec] sm:$0xf] }
  0x21   : > { %4304 = vmatpush.bf16.msra.mxu2 %v4235_v12  ;;  %v3746_v12 = vld [vmem:[%s4392_s9 + $0x398] sm:$0xf0]  ;;  %v4227_v33 = vld [vmem:[%s4392_s9 + $0x3cc] sm:$0xf0]  ;;  %v4241_v38 = vld [vmem:[%s5536_s1 + $0x40] sm:$0xff] }
  0x22   : > { %v3749_v17 = vor.u32 %v4218_v11, %v3746_v12  ;;  %v3384_v41 = vld [vmem:[%s4392_s9 + $0xc0] sm:$0xf]  ;;  %v4231_v47 = vld [vmem:[%s4392_s9 + $0x3ec] sm:$0xf0]  ;;  %v3794_v52 = vld [vmem:[%s4392_s9 + $0x3f8] sm:$0xf0] }
  0x23   : > { %v4135_v54 = vld [vmem:[%s4392_s9 + $0xec] sm:$0xf0]  ;;  %v3672_v55 = vld [vmem:[%s4392_s9 + $0x300] sm:$0xf] }
  0x24   : > { %1320 = vmatpush.bf16.msra.mxu0 %v4234_v13  ;;  %4305 = vmatpush.bf16.msra.mxu1 %v4234_v13  ;;  %v3416_v0 = vld [vmem:[%s4392_s9 + $0x100] sm:$0xf] }
  0x25   : > { %4306 = vmatpush.bf16.msra.mxu2 %v4234_v13  ;;  %v3352_v13 = vld [vmem:[%s4392_s9 + $0x80] sm:$0xf] }
  0x26   : > { %v3353_v20 = vor.u32 %v4123_v14, %v3352_v13 }
  0x28   : > { %1321 = vmatpush.bf16.msra.mxu0 %v4233_v16  ;;  %4307 = vmatpush.bf16.msra.mxu1 %v4233_v16 }
  0x29   : > { %4308 = vmatpush.bf16.msra.mxu2 %v4233_v16  ;;  %v4191_v16 = vld [vmem:[%s4392_s9 + $0x2ac] sm:$0xf0] }
  0x2a   : > { %3930 = vmatmul.msk.bf16.gmra.mxu3 %vm1217_vm0, %v3685_v21  ;;  %v3625_v21 = vor.u32 %v4191_v16, %v3624_v15 }
  0x2b   : > { %1322 = vmatmul.bf16.vlgmr.msra.gmra.mxu0 %v3289_v25  ;;  %1407 = vmatmul.bf16.vlgmr.msra.gmra.mxu1 %v3561_v26  ;;  %v4222_v25 = vld [vmem:[%s4392_s9 + $0x3ac] sm:$0xf]  ;;  %v3762_v26 = vld [vmem:[%s4392_s9 + $0x3b8] sm:$0xf0] }
  0x2c   : > { %1826 = vmatpush.bf16.msrb.mxu0 %v4259_v1  ;;  %1483 = vmatpush.bf16.msrb.mxu1 %v4248_v22  ;;  %v3608_v1 = vld [vmem:[%s4392_s9 + $0x280] sm:$0xf]  ;;  %v3753_v22 = vor.u32 %v4223_v19, %v3752_v18  ;;  %v4143_v19 = vld [vmem:[%s4392_s9 + $0x12c] sm:$0xf0] }
  0x2d   : > { %1652 = vmatpush.bf16.msrb.mxu2 %v4256_v27  ;;  %v3609_v7 = vor.u32 %v4187_v2, %v3608_v1  ;;  %v3368_v27 = vld [vmem:[%s4392_s9 + $0xa0] sm:$0xf]  ;;  %v4139_v2 = vld [vmem:[%s4392_s9 + $0x10c] sm:$0xf0] }
  0x2e   : > { %1447 = vmatmul.bf16.vlgmr.msra.gmra.mxu2 %v3689_v28  ;;  %v4127_v28 = vld [vmem:[%s4392_s9 + $0xac] sm:$0xf0] }
  0x2f   : > { %v3369_v34 = vor.u32 %v4127_v28, %v3368_v27 }
  0x30   : > { %1827 = vmatpush.bf16.msrb.mxu0 %v4381_v3  ;;  %1484 = vmatpush.bf16.msrb.mxu1 %v4247_v29  ;;  %v3733_v3 = vor.u32 %v4214_v61, %v3730_v62  ;;  %v3640_v29 = vld [vmem:[%s4392_s9 + $0x2c0] sm:$0xf] }
  0x31   : > { %1653 = vmatpush.bf16.msrb.mxu2 %v4255_v30  ;;  %v4195_v30 = vld [vmem:[%s4392_s9 + $0x2cc] sm:$0xf0] }
  0x32   : > { %v3641_v35 = vor.u32 %v4195_v30, %v3640_v29 }
  0x34   : > { %1828 = vmatpush.bf16.msrb.mxu0 %v4257_v5  ;;  %1485 = vmatpush.bf16.msrb.mxu1 %v4246_v31  ;;  %v4219_v5 = vld [vmem:[%s4392_s9 + $0x38c] sm:$0xf0]  ;;  %v3765_v31 = vor.u32 %v4222_v25, %v3762_v26 }
  0x35   : > { %1654 = vmatpush.bf16.msrb.mxu2 %v4254_v32  ;;  %v3737_v8 = vor.u32 %v4219_v5, %v3736_v4  ;;  %v3768_v32 = vld [vmem:[%s4392_s9 + $0x3c0] sm:$0xf]  ;;  %v3290_v4 = vld [vmem:[%s4392_s9 + $0x10] sm:$0xf0] }
  0x36   : > { %v3769_v36 = vor.u32 %v4227_v33, %v3768_v32  ;;  %v4260_v5 = vld [vmem:[%s4546_s17] sm:$0xff] }
  0x38   : > { %1486 = vmatpush.bf16.msrb.mxu1 %v4245_v45 }
  0x39   : > { %1655 = vmatpush.bf16.msrb.mxu2 %v4253_v46  ;;  %v3784_v46 = vld [vmem:[%s4392_s9 + $0x3e0] sm:$0xf] }
  0x3a   : > { %3931 = vmatmul.msk.bf16.gmra.mxu3 %vm1217_vm0, %v3701_v39  ;;  %v4226_v39 = vld [vmem:[%s4392_s9 + $0x3cc] sm:$0xf]  ;;  %v3785_v50 = vor.u32 %v4231_v47, %v3784_v46 }
  0x3b   : > { %1327 = vmatmul.bf16.gmra.mxu0 %v3305_v42  ;;  %1412 = vmatmul.bf16.gmra.mxu1 %v3577_v43  ;;  %v4131_v42 = vld [vmem:[%s4392_s9 + $0xcc] sm:$0xf0]  ;;  %v3656_v43 = vld [vmem:[%s4392_s9 + $0x2e0] sm:$0xf]  ;;  %v3781_v45 = vor.u32 %v4226_v39, %v3778_v40  ;;  %v3322_v39 = vld [vmem:[%s4392_s9 + $0x50] sm:$0xf0] }
  0x3c   : > { %1487 = vmatpush.bf16.msrb.mxu1 %v4244_v59  ;;  %v3385_v48 = vor.u32 %v4131_v42, %v3384_v41  ;;  %v4108_v59 = vld [vmem:[%s4392_s9 + $0x14] sm:$0xf0]  ;;  %v4262_v40 = vld [vmem:[%s4546_s17 + $0x10] sm:$0xff]  ;;  %v3344_v41 = vld [vmem:[%s4392_s9 + $0x68] sm:$0xf] }
  0x3d   : > { %1656 = vmatpush.bf16.msrb.mxu2 %v4252_v60  ;;  %v4120_v42 = vld [vmem:[%s4392_s9 + $0x74] sm:$0xf0] }
  0x3e   : > { %1452 = vmatmul.bf16.gmra.mxu2 %v3705_v44  ;;  %v4199_v44 = vld [vmem:[%s4392_s9 + $0x2ec] sm:$0xf0] }
  0x3f   : > { %v3657_v49 = vor.u32 %v4199_v44, %v3656_v43 }
  0x40   : > { %1488 = vmatpush.bf16.msrb.mxu1 %v4243_v9 }
  0x41   : > { %1657 = vmatpush.bf16.msrb.mxu2 %v4251_v10 }
  0x44   : > { %1489 = vmatpush.bf16.msrb.mxu1 %v4242_v23  ;;  %v3328_v23 = vld [vmem:[%s4392_s9 + $0x48] sm:$0xf] }
  0x45   : > { %1658 = vmatpush.bf16.msrb.mxu2 %v4250_v24  ;;  %v4116_v24 = vld [vmem:[%s4392_s9 + $0x54] sm:$0xf0] }
  0x46   : > { %v3329_v30 = vor.u32 %v4116_v24, %v3328_v23  ;;  %v4128_v23 = vld [vmem:[%s4392_s9 + $0xb4] sm:$0xf0] }
  0x48   : > { %1490 = vmatpush.bf16.msrb.mxu1 %v4241_v38  ;;  %v4113_v38 = vld [vmem:[%s4392_s9 + $0x44] sm:$0xf] }
  0x49   : > { %1659 = vmatpush.bf16.msrb.mxu2 %v4249_v37  ;;  %v4147_v37 = vld [vmem:[%s4392_s9 + $0x14c] sm:$0xf0]  ;;  %v3325_v44 = vor.u32 %v4113_v38, %v3322_v39 }
  0x4a   : > { %3932 = vmatmul.msk.bf16.gmra.mxu3 %vm1217_vm0, %v3717_v53  ;;  %v3400_v53 = vld [vmem:[%s4392_s9 + $0xe0] sm:$0xf] }
  0x4b   : > { %1332 = vmatmul.bf16.gmra.mxu0 %v3321_v56  ;;  %1417 = vmatmul.bf16.gmra.mxu1 %v3593_v57  ;;  %v4203_v56 = vld [vmem:[%s4392_s9 + $0x30c] sm:$0xf0]  ;;  %v3797_v57 = vor.u32 %v4230_v51, %v3794_v52  ;;  %v3401_v60 = vor.u32 %v4135_v54, %v3400_v53  ;;  %v3464_v53 = vld [vmem:[%s4392_s9 + $0x160] sm:$0xf] }
  0x4c   : > { %v3673_v61 = vor.u32 %v4203_v56, %v3672_v55  ;;  %v4151_v55 = vld [vmem:[%s4392_s9 + $0x16c] sm:$0xf0]  ;;  %v4117_v56 = vld [vmem:[%s4392_s9 + $0x64] sm:$0xf] }
  0x4e   : > { %1457 = vmatmul.bf16.gmra.mxu2 %v3721_v58  ;;  %v3296_v58 = vld [vmem:[%s4392_s9 + $0x8] sm:$0xf] }
  0x4f   : > { %v3297_v62 = vor.u32 %v4108_v59, %v3296_v58  ;;  %v4263_v58 = vld [vmem:[%s4546_s17 + $0x18] sm:$0xff]  ;;  %v3360_v59 = vld [vmem:[%s4392_s9 + $0x88] sm:$0xf] }
  0x5a   : > { %3933 = vmatmul.msk.bf16.gmra.mxu3 %vm1217_vm0, %v3733_v3  ;;  %v4105_v3 = vld [vmem:[%s4392_s9 + $0x4] sm:$0xf] }
  0x5b   : > { %1337 = vmatmul.bf16.gmra.mxu0 %v3337_v6  ;;  %1422 = vmatmul.bf16.gmra.mxu1 %v3609_v7  ;;  %v3312_v6 = vld [vmem:[%s4392_s9 + $0x28] sm:$0xf]  ;;  %v4112_v7 = vld [vmem:[%s4392_s9 + $0x34] sm:$0xf0]  ;;  %v3293_v9 = vor.u32 %v4105_v3, %v3290_v4 }
  0x5c   : > { %v3313_v12 = vor.u32 %v4112_v7, %v3312_v6 }
  0x5e   : > { %1462 = vmatmul.bf16.gmra.mxu2 %v3737_v8  ;;  %v3417_v8 = vor.u32 %v4139_v2, %v3416_v0 }
  0x6a   : > { %3934 = vmatmul.msk.bf16.gmra.mxu3 %vm1217_vm0, %v3749_v17  ;;  %v3432_v17 = vld [vmem:[%s4392_s9 + $0x120] sm:$0xf] }
  0x6b   : > { %1342 = vmatmul.bf16.gmra.mxu0 %v3353_v20  ;;  %1427 = vmatmul.bf16.gmra.mxu1 %v3625_v21  ;;  %v4109_v20 = vld [vmem:[%s4392_s9 + $0x24] sm:$0xf]  ;;  %v3306_v21 = vld [vmem:[%s4392_s9 + $0x30] sm:$0xf0]  ;;  %v3433_v25 = vor.u32 %v4143_v19, %v3432_v17  ;;  %v4155_v17 = vld [vmem:[%s4392_s9 + $0x18c] sm:$0xf0] }
  0x6c   : > { %v3309_v26 = vor.u32 %v4109_v20, %v3306_v21  ;;  %v4121_v19 = vld [vmem:[%s4392_s9 + $0x84] sm:$0xf]  ;;  %v3354_v20 = vld [vmem:[%s4392_s9 + $0x90] sm:$0xf0] }
  0x6d   : > { %v4264_v21 = vld [vmem:[%s4546_s17 + $0x20] sm:$0xff] }
  0x6e   : > { %1467 = vmatmul.bf16.gmra.mxu2 %v3753_v22  ;;  %v4261_v22 = vld [vmem:[%s4546_s17 + $0x8] sm:$0xff] }
  0x7a   : > { %3935 = vmatmul.msk.bf16.gmra.mxu3 %vm1217_vm0, %v3765_v31 }
  0x7b   : > { %1347 = vmatmul.bf16.gmra.mxu0 %v3369_v34  ;;  %1432 = vmatmul.bf16.gmra.mxu1 %v3641_v35  ;;  %v3448_v35 = vld [vmem:[%s4392_s9 + $0x140] sm:$0xf] }
  0x7c   : > { %v3449_v43 = vor.u32 %v4147_v37, %v3448_v35 }
  0x7e   : > { %1472 = vmatmul.bf16.gmra.mxu2 %v3769_v36 }
  0x8a   : > { %3936 = vmatmul.msk.bf16.gmra.mxu3 %vm1217_vm0, %v3781_v45 }
  0x8b   : > { %1352 = vmatmul.bf16.gmra.mxu0 %v3385_v48  ;;  %1437 = vmatmul.bf16.gmra.mxu1 %v3657_v49  ;;  %v3345_v48 = vor.u32 %v4120_v42, %v3344_v41  ;;  %v3496_v42 = vld [vmem:[%s4392_s9 + $0x1a0] sm:$0xf] }
  0x8e   : > { %1477 = vmatmul.bf16.gmra.mxu2 %v3785_v50 }
  0x9a   : > { %3937 = vmatmul.msk.bf16.gmra.mxu3 %vm1217_vm0, %v3797_v57  ;;  %v3338_v57 = vld [vmem:[%s4392_s9 + $0x70] sm:$0xf0] }
  0x9b   : > { %1357 = vmatmul.bf16.gmra.mxu0 %v3401_v60  ;;  %1442 = vmatmul.bf16.gmra.mxu1 %v3673_v61  ;;  %v4124_v60 = vld [vmem:[%s4392_s9 + $0x94] sm:$0xf0]  ;;  %v3465_v61 = vor.u32 %v4151_v55, %v3464_v53  ;;  %v3370_v53 = vld [vmem:[%s4392_s9 + $0xb0] sm:$0xf0]  ;;  %v4265_v55 = vld [vmem:[%s4546_s17 + $0x28] sm:$0xff] }
  0x9c   : > { %v3361_v4 = vor.u32 %v4124_v60, %v3360_v59 }
  0x9d   : > { %v4540_v63 = vpop.f32.mrf.mxu3 }
  0x9e   : > { %5541 = vst [vmem:[#allocation3_spill] sm:$0xff] %v4540_v63  ;;  %1660 = vmatmul.bf16.vlgmr.msrb.gmra.mxu2 %v3297_v62  ;;  %v3341_v62 = vor.u32 %v4117_v56, %v3338_v57  ;;  %v3392_v56 = vld [vmem:[%s4392_s9 + $0xc8] sm:$0xf]  ;;  %v4132_v57 = vld [vmem:[%s4392_s9 + $0xd4] sm:$0xf0] }
  0xa5   : > { %v4549_v1 = vpop.f32.mrf.mxu3 }
  0xa6   : > { %5542 = vst [vmem:[#allocation4_spill] sm:$0xff] %v4549_v1  ;;  %v3520_v1 = vld [vmem:[%s4392_s9 + $0x1c8] sm:$0xf] }
  0xa8   : > { %v4557_v10 = vpop.f32.mrf.mxu0  ;;  %v4559_v11 = vpop.f32.mrf.mxu1 }
  0xa9   : > { %5543 = vst [vmem:[#allocation5_spill] sm:$0xff] %v4559_v11 }
  0xaa   : > { %4070 = vmatmul.msk.bf16.vlgmr.msrb.gmra.mxu3 %vm2286_vm1, %v4260_v5 }
  0xab   : > { %1362 = vmatmul.bf16.gmra.mxu0 %v3417_v8  ;;  %1491 = vmatmul.bf16.vlgmr.msrb.gmra.mxu1 %v3293_v9  ;;  %v3480_v9 = vld [vmem:[%s4392_s9 + $0x180] sm:$0xf] }
  0xac   : > { %v3481_v24 = vor.u32 %v4155_v17, %v3480_v9 }
  0xad   : > { %v4562_v13 = vpop.f32.mrf.mxu3 }
  0xae   : > { %5544 = vst [vmem:[#allocation6_spill] sm:$0xff] %v4562_v13  ;;  %1665 = vmatmul.bf16.gmra.mxu2 %v3313_v12 }
  0xb0   : > { %v4564_v14 = vpop.f32.mrf.mxu0  ;;  %v4566_v15 = vpop.f32.mrf.mxu1 }
  0xb1   : > { %5545 = vst [vmem:[#allocation7_spill] sm:$0xff] %v4566_v15  ;;  %v4568_v16 = vpop.f32.mrf.mxu2 }
  0xb2   : > { %5546 = vst [vmem:[#allocation8_spill] sm:$0xff] %v4568_v16 }
  0xb5   : > { %v4571_v18 = vpop.f32.mrf.mxu3 }
  0xb6   : > { %5547 = vst [vmem:[#allocation9_spill] sm:$0xff] %v4571_v18  ;;  %v3504_v18 = vld [vmem:[%s4392_s9 + $0x1a8] sm:$0xf] }
  0xb8   : > { %v4579_v27 = vpop.f32.mrf.mxu0  ;;  %v4581_v28 = vpop.f32.mrf.mxu1 }
  0xb9   : > { %5548 = vst [vmem:[#allocation10_spill] sm:$0xff] %v4581_v28  ;;  %v4584_v29 = vpop.f32.mrf.mxu2  ;;  %v4176_v28 = vld [vmem:[%s4392_s9 + $0x234] sm:$0xf0] }
  0xba   : > { %4071 = vmatmul.msk.bf16.gmra.mxu3 %vm2286_vm1, %v4261_v22  ;;  %5549 = vst [vmem:[#allocation11_spill] sm:$0xff] %v4584_v29  ;;  %v3376_v22 = vld [vmem:[%s4392_s9 + $0xa8] sm:$0xf]  ;;  %v4156_v29 = vld [vmem:[%s4392_s9 + $0x194] sm:$0xf0] }
  0xbb   : > { %1367 = vmatmul.bf16.gmra.mxu0 %v3433_v25  ;;  %1496 = vmatmul.bf16.gmra.mxu1 %v3309_v26  ;;  %v3357_v25 = vor.u32 %v4121_v19, %v3354_v20  ;;  %v3377_v37 = vor.u32 %v4128_v23, %v3376_v22  ;;  %v4163_v23 = vld [vmem:[%s4392_s9 + $0x1cc] sm:$0xf0] }
  0xbd   : > { %v4586_v31 = vpop.f32.mrf.mxu3 }
  0xbe   : > { %5550 = vst [vmem:[#allocation12_spill] sm:$0xff] %v4586_v31  ;;  %1670 = vmatmul.bf16.gmra.mxu2 %v3329_v30 }
  0xc0   : > { %v4588_v32 = vpop.f32.mrf.mxu0  ;;  %v4590_v33 = vpop.f32.mrf.mxu1 }
  0xc1   : > { %5551 = vst [vmem:[#allocation13_spill] sm:$0xff] %v4590_v33  ;;  %v4592_v34 = vpop.f32.mrf.mxu2  ;;  %v3568_v33 = vld [vmem:[%s4392_s9 + $0x228] sm:$0xf] }
  0xc2   : > { %5552 = vst [vmem:[#allocation14_spill] sm:$0xff] %v4592_v34 }
  0xc5   : > { %v4595_v36 = vpop.f32.mrf.mxu3 }
  0xc6   : > { %5553 = vst [vmem:[#allocation15_spill] sm:$0xff] %v4595_v36  ;;  %v3488_v36 = vld [vmem:[%s4392_s9 + $0x188] sm:$0xf] }
  0xc8   : > { %v4603_v45 = vpop.f32.mrf.mxu0  ;;  %v4605_v46 = vpop.f32.mrf.mxu1 }
  0xc9   : > { %5554 = vst [vmem:[#allocation16_spill] sm:$0xff] %v4605_v46  ;;  %v4608_v47 = vpop.f32.mrf.mxu2 }
  0xca   : > { %4072 = vmatmul.msk.bf16.gmra.mxu3 %vm2286_vm1, %v4262_v40  ;;  %5555 = vst [vmem:[#allocation17_spill] sm:$0xff] %v4608_v47  ;;  %v4152_v47 = vld [vmem:[%s4392_s9 + $0x174] sm:$0xf0] }
  0xcb   : > { %1372 = vmatmul.bf16.gmra.mxu0 %v3449_v43  ;;  %1501 = vmatmul.bf16.gmra.mxu1 %v3325_v44  ;;  %v4159_v44 = vld [vmem:[%s4392_s9 + $0x1ac] sm:$0xf0] }
  0xcd   : > { %v4610_v49 = vpop.f32.mrf.mxu3 }
  0xce   : > { %5556 = vst [vmem:[#allocation18_spill] sm:$0xff] %v4610_v49  ;;  %1675 = vmatmul.bf16.gmra.mxu2 %v3345_v48  ;;  %v4125_v48 = vld [vmem:[%s4392_s9 + $0xa4] sm:$0xf] }
  0xcf   : > { %v3373_v59 = vor.u32 %v4125_v48, %v3370_v53 }
  0xd0   : > { %v4612_v50 = vpop.f32.mrf.mxu0  ;;  %v4614_v51 = vpop.f32.mrf.mxu1 }
  0xd1   : > { %5557 = vst [vmem:[#allocation19_spill] sm:$0xff] %v4614_v51  ;;  %v4616_v52 = vpop.f32.mrf.mxu2 }
  0xd2   : > { %5558 = vst [vmem:[#allocation20_spill] sm:$0xff] %v4616_v52 }
  0xd5   : > { %v4619_v54 = vpop.f32.mrf.mxu3 }
  0xd6   : > { %5559 = vst [vmem:[#allocation21_spill] sm:$0xff] %v4619_v54  ;;  %v3472_v54 = vld [vmem:[%s4392_s9 + $0x168] sm:$0xf] }
  0xd8   : > { %v4627_v0 = vpop.f32.mrf.mxu0  ;;  %v4629_v2 = vpop.f32.mrf.mxu1 }
  0xd9   : > { %5560 = vst [vmem:[#allocation22_spill] sm:$0xff] %v4629_v2  ;;  %v4632_v3 = vpop.f32.mrf.mxu2  ;;  %v4172_v2 = vld [vmem:[%s4392_s9 + $0x214] sm:$0xf0] }
  0xda   : > { %4073 = vmatmul.msk.bf16.gmra.mxu3 %vm2286_vm1, %v4263_v58  ;;  %5561 = vst [vmem:[#allocation23_spill] sm:$0xff] %v4632_v3  ;;  %v3497_v58 = vor.u32 %v4159_v44, %v3496_v42  ;;  %v3408_v42 = vld [vmem:[%s4392_s9 + $0xe8] sm:$0xf]  ;;  %v4136_v44 = vld [vmem:[%s4392_s9 + $0xf4] sm:$0xf0] }
  0xdb   : > { %1377 = vmatmul.bf16.gmra.mxu0 %v3465_v61  ;;  %1506 = vmatmul.bf16.gmra.mxu1 %v3341_v62  ;;  %v4148_v3 = vld [vmem:[%s4392_s9 + $0x154] sm:$0xf0] }
  0xdd   : > { %v4634_v5 = vpop.f32.mrf.mxu3 }
  0xde   : > { %5562 = vst [vmem:[#allocation24_spill] sm:$0xff] %v4634_v5  ;;  %1680 = vmatmul.bf16.gmra.mxu2 %v3361_v4  ;;  %v3393_v4 = vor.u32 %v4132_v57, %v3392_v56 }
  0xe0   : > { %v4636_v6 = vpop.f32.mrf.mxu0  ;;  %v4638_v7 = vpop.f32.mrf.mxu1 }
  0xe1   : > { %5563 = vst [vmem:[#allocation25_spill] sm:$0xff] %v4638_v7  ;;  %v4640_v8 = vpop.f32.mrf.mxu2  ;;  %v3552_v7 = vld [vmem:[%s4392_s9 + $0x208] sm:$0xf] }
  0xe2   : > { %5564 = vst [vmem:[#allocation26_spill] sm:$0xff] %v4640_v8 }
  0xe5   : > { %v4643_v12 = vpop.f32.mrf.mxu3 }
  0xe6   : > { %5565 = vst [vmem:[#allocation27_spill] sm:$0xff] %v4643_v12 }
  0xe8   : > { %v4651_v26 = vpop.f32.mrf.mxu0  ;;  %v4653_v30 = vpop.f32.mrf.mxu1 }
  0xe9   : > { %5566 = vst [vmem:[#allocation28_spill] sm:$0xff] %v4653_v30  ;;  %v4656_v35 = vpop.f32.mrf.mxu2 }
  0xea   : > { %4074 = vmatmul.msk.bf16.gmra.mxu3 %vm2286_vm1, %v4264_v21  ;;  %5567 = vst [vmem:[#allocation29_spill] sm:$0xff] %v4656_v35  ;;  %v3512_v21 = vld [vmem:[%s4392_s9 + $0x1c0] sm:$0xf] }
  0xeb   : > { %1382 = vmatmul.bf16.gmra.mxu0 %v3481_v24  ;;  %1511 = vmatmul.bf16.gmra.mxu1 %v3357_v25  ;;  %v4129_v24 = vld [vmem:[%s4392_s9 + $0xc4] sm:$0xf]  ;;  %v3386_v25 = vld [vmem:[%s4392_s9 + $0xd0] sm:$0xf0]  ;;  %v3513_v48 = vor.u32 %v4163_v23, %v3512_v21 }
  0xec   : > { %v3389_v53 = vor.u32 %v4129_v24, %v3386_v25  ;;  %v3528_v24 = vld [vmem:[%s4392_s9 + $0x1e0] sm:$0xf] }
  0xed   : > { %v4658_v38 = vpop.f32.mrf.mxu3  ;;  %v4268_v35 = vld [vmem:[%s4546_s17 + $0x40] sm:$0xff] }
  0xee   : > { %5568 = vst [vmem:[#allocation30_spill] sm:$0xff] %v4658_v38  ;;  %1685 = vmatmul.bf16.gmra.mxu2 %v3377_v37  ;;  %v4266_v37 = vld [vmem:[%s4546_s17 + $0x30] sm:$0xff]  ;;  %v4144_v38 = vld [vmem:[%s4392_s9 + $0x134] sm:$0xf0] }
  0xf0   : > { %v4660_v39 = vpop.f32.mrf.mxu0  ;;  %v4662_v40 = vpop.f32.mrf.mxu1 }
  0xf1   : > { %5569 = vst [vmem:[#allocation31_spill] sm:$0xff] %v4662_v40  ;;  %v4664_v41 = vpop.f32.mrf.mxu2 }
  0xf2   : > { %5570 = vst [vmem:[#allocation32_spill] sm:$0xff] %v4664_v41  ;;  %v4171_v41 = vld [vmem:[%s4392_s9 + $0x20c] sm:$0xf0] }
  0xf5   : > { %v4667_v43 = vpop.f32.mrf.mxu3 }
  0xf6   : > { %5571 = vst [vmem:[#allocation33_spill] sm:$0xff] %v4667_v43  ;;  %v3418_v43 = vld [vmem:[%s4392_s9 + $0x110] sm:$0xf0] }
  0xf8   : > { %v4675_v60 = vpop.f32.mrf.mxu0  ;;  %v4677_v61 = vpop.f32.mrf.mxu1 }
  0xf9   : > { %5572 = vst [vmem:[#allocation34_spill] sm:$0xff] %v4677_v61  ;;  %v4680_v62 = vpop.f32.mrf.mxu2  ;;  %v4168_v61 = vld [vmem:[%s4392_s9 + $0x1f4] sm:$0xf0] }
  0xfa   : > { %4075 = vmatmul.msk.bf16.gmra.mxu3 %vm2286_vm1, %v4265_v55  ;;  %5573 = vst [vmem:[#allocation35_spill] sm:$0xff] %v4680_v62  ;;  %v3424_v62 = vld [vmem:[%s4392_s9 + $0x108] sm:$0xf] }
  0xfb   : > { %1387 = vmatmul.bf16.gmra.mxu0 %v3497_v58  ;;  %1516 = vmatmul.bf16.gmra.mxu1 %v3373_v59  ;;  %v3409_v58 = vor.u32 %v4136_v44, %v3408_v42  ;;  %v4140_v42 = vld [vmem:[%s4392_s9 + $0x114] sm:$0xf0] }
  0xfd   : > { %v4682_v9 = vpop.f32.mrf.mxu3 }
  0xfe   : > { %5574 = vst [vmem:[#allocation36_spill] sm:$0xff] %v4682_v9  ;;  %1690 = vmatmul.bf16.gmra.mxu2 %v3393_v4 }
 0x100   : > { %v4684_v17 = vpop.f32.mrf.mxu0  ;;  %v4686_v19 = vpop.f32.mrf.mxu1 }
 0x101   : > { %5575 = vst [vmem:[#allocation37_spill] sm:$0xff] %v4686_v19  ;;  %v4688_v20 = vpop.f32.mrf.mxu2  ;;  %v3536_v19 = vld [vmem:[%s4392_s9 + $0x1e8] sm:$0xf] }
 0x102   : > { %5576 = vst [vmem:[#allocation38_spill] sm:$0xff] %v4688_v20  ;;  %v4133_v20 = vld [vmem:[%s4392_s9 + $0xe4] sm:$0xf] }
 0x105   : > { %v4691_v22 = vpop.f32.mrf.mxu3 }
 0x106   : > { %5577 = vst [vmem:[#allocation39_spill] sm:$0xff] %v4691_v22  ;;  %v3402_v22 = vld [vmem:[%s4392_s9 + $0xf0] sm:$0xf0] }
 0x108   : > { %v4699_v55 = vpop.f32.mrf.mxu0  ;;  %v4701_v56 = vpop.f32.mrf.mxu1 }
 0x109   : > { %5578 = vst [vmem:[#allocation40_spill] sm:$0xff] %v4701_v56  ;;  %v4704_v57 = vpop.f32.mrf.mxu2 }
 0x10a   : > { %4076 = vmatmul.msk.bf16.gmra.mxu3 %vm2286_vm1, %v4266_v37  ;;  %5579 = vst [vmem:[#allocation41_spill] sm:$0xff] %v4704_v57  ;;  %v4167_v37 = vld [vmem:[%s4392_s9 + $0x1ec] sm:$0xf0]  ;;  %v4267_v57 = vld [vmem:[%s4546_s17 + $0x38] sm:$0xff] }
 0x10b   : > { %1392 = vmatmul.bf16.gmra.mxu0 %v3513_v48  ;;  %1521 = vmatmul.bf16.gmra.mxu1 %v3389_v53  ;;  %v3529_v44 = vor.u32 %v4167_v37, %v3528_v24  ;;  %v3405_v48 = vor.u32 %v4133_v20, %v3402_v22  ;;  %v3544_v37 = vld [vmem:[%s4392_s9 + $0x200] sm:$0xf] }
 0x10d   : > { %v4706_v59 = vpop.f32.mrf.mxu3 }
 0x10e   : > { %5580 = vst [vmem:[#allocation42_spill] sm:$0xff] %v4706_v59  ;;  %1695 = vmatmul.bf16.gmra.mxu2 %v3409_v58 }
 0x110   : > { %v4708_v4 = vpop.f32.mrf.mxu0  ;;  %v4710_v21 = vpop.f32.mrf.mxu1 }
 0x111   : > { %5581 = vst [vmem:[#allocation43_spill] sm:$0xff] %v4710_v21  ;;  %v4712_v23 = vpop.f32.mrf.mxu2  ;;  %v4164_v21 = vld [vmem:[%s4392_s9 + $0x1d4] sm:$0xf0] }
 0x112   : > { %5582 = vst [vmem:[#allocation44_spill] sm:$0xff] %v4712_v23 }
 0x115   : > { %v4715_v25 = vpop.f32.mrf.mxu3 }
 0x116   : > { %5583 = vst [vmem:[#allocation45_spill] sm:$0xff] %v4715_v25  ;;  %v3425_v25 = vor.u32 %v4140_v42, %v3424_v62  ;;  %v1324_v62 = vadd.f32 1.0, %v4557_v10  ;;  %v3545_v42 = vor.u32 %v4171_v41, %v3544_v37  ;;  %v1326_v41 = vadd.f32 1.0, %v4564_v14 }
 0x118   : > { %v4723_v53 = vpop.f32.mrf.mxu0  ;;  %v4725_v58 = vpop.f32.mrf.mxu1 }
 0x119   : > { %5584 = vst [vmem:[#allocation46_spill] sm:$0xff] %v4725_v58  ;;  %v4728_v23 = vpop.f32.mrf.mxu2 }
 0x11a   : > { %4077 = vmatmul.msk.bf16.gmra.mxu3 %vm2286_vm1, %v4267_v57  ;;  %5585 = vst [vmem:[#allocation47_spill] sm:$0xff] %v4728_v23  ;;  %v4137_v57 = vld [vmem:[%s4392_s9 + $0x104] sm:$0xf]  ;;  %v3440_v23 = vld [vmem:[%s4392_s9 + $0x128] sm:$0xf] }
 0x11b   : > { %1397 = vmatmul.bf16.gmra.mxu0 %v3529_v44  ;;  %1526 = vmatmul.bf16.gmra.mxu1 %v3405_v48  ;;  %v3421_v44 = vor.u32 %v4137_v57, %v3418_v43 }
 0x11d   : > { %v4730_v59 = vpop.f32.mrf.mxu3 }
 0x11e   : > { %5586 = vst [vmem:[#allocation48_spill] sm:$0xff] %v4730_v59  ;;  %1700 = vmatmul.bf16.gmra.mxu2 %v3425_v25 }
 0x120   : > { %v4732_v20 = vpop.f32.mrf.mxu0  ;;  %v4734_v22 = vpop.f32.mrf.mxu1 }
 0x121   : > { %5587 = vst [vmem:[#allocation49_spill] sm:$0xff] %v4734_v22  ;;  %v1661_v24 = vpop.f32.mrf.mxu2  ;;  %v4160_v22 = vld [vmem:[%s4392_s9 + $0x1b4] sm:$0xf0] }
 0x125   : > { %v4737_v9 = vpop.f32.mrf.mxu3 }
 0x126   : > { %5588 = vst [vmem:[#allocation50_spill] sm:$0xff] %v4737_v9  ;;  %v3441_v9 = vor.u32 %v4144_v38, %v3440_v23 }
 0x128   : > { %v4746_v48 = vpop.f32.mrf.mxu0  ;;  %v1492_v25 = vpop.f32.mrf.mxu1 }
 0x129   : > { %v1493_v59 = vadd.f32 %v1492_v25, %v1324_v62  ;;  %v1663_v8 = vpop.f32.mrf.mxu2  ;;  %v4141_v62 = vld [vmem:[%s4392_s9 + $0x124] sm:$0xf]  ;;  %v3456_v25 = vld [vmem:[%s4392_s9 + $0x148] sm:$0xf] }
 0x12a   : > { %4078 = vmatmul.msk.bf16.gmra.mxu3 %vm2286_vm1, %v4268_v35 }
 0x12b   : > { %1402 = vmatmul.bf16.gmra.mxu0 %v3545_v42  ;;  %1531 = vmatmul.bf16.gmra.mxu1 %v3421_v44  ;;  %v4749_v12 = vadd.f32 %v1661_v24, %v1493_v59  ;;  %v3434_v42 = vld [vmem:[%s4392_s9 + $0x130] sm:$0xf0]  ;;  %v4106_v44 = vld [vmem:[%s4392_s9 + $0xc] sm:$0xf]  ;;  %v3298_v59 = vld [vmem:[%s4392_s9 + $0x18] sm:$0xf0] }
 0x12c   : > { %v4269_v24 = vld [vmem:[%s4546_s17 + $0x48] sm:$0xff]  ;;  %v3437_v5 = vor.u32 %v4141_v62, %v3434_v42  ;;  %v3301_v14 = vor.u32 %v4106_v44, %v3298_v59  ;;  %v1331_v42 = vadd.f32 1.0, %v4588_v32 }
 0x12d   : > { %v4751_v10 = vpop.f32.mrf.mxu3 }
 0x12e   : > { %1705 = vmatmul.bf16.gmra.mxu2 %v3441_v9  ;;  %v1329_v9 = vadd.f32 1.0, %v4579_v27 }
 0x130   : > { %v4754_v43 = vpop.f32.mrf.mxu0  ;;  %v1494_v35 = vpop.f32.mrf.mxu1 }
 0x131   : > { %v1495_v37 = vadd.f32 %v1494_v35, %v1326_v41  ;;  %v1666_v57 = vpop.f32.mrf.mxu2 }
 0x133   : > { %v4757_v38 = vadd.f32 %v1663_v8, %v1495_v37  ;;  %v3457_v37 = vor.u32 %v4148_v3, %v3456_v25  ;;  %v4145_v3 = vld [vmem:[%s4392_s9 + $0x144] sm:$0xf] }
 0x135   : > { %v4759_v23 = vpop.f32.mrf.mxu3 }
 0x138   : > { %v4768_v52 = vpop.f32.mrf.mxu0  ;;  %v1497_v41 = vpop.f32.mrf.mxu1 }
 0x139   : > { %v1498_v35 = vadd.f32 %v1497_v41, %v1329_v9  ;;  %v1668_v8 = vpop.f32.mrf.mxu2  ;;  %v4110_v41 = vld [vmem:[%s4392_s9 + $0x2c] sm:$0xf] }
 0x13a   : > { %4079 = vmatmul.msk.bf16.gmra.mxu3 %vm2286_vm1, %v4269_v24 }
 0x13b   : > { %1536 = vmatmul.bf16.gmra.mxu1 %v3437_v5  ;;  %3906 = vmatmul.msk.bf16.vlgmr.msrb.gmra.mxu0 %vm1217_vm0, %v3301_v14  ;;  %v4772_v27 = vadd.f32 %v1666_v57, %v1498_v35  ;;  %v3450_v14 = vld [vmem:[%s4392_s9 + $0x150] sm:$0xf0]  ;;  %v3314_v57 = vld [vmem:[%s4392_s9 + $0x38] sm:$0xf0] }
 0x13c   : > { %v4270_v35 = vld [vmem:[%s4546_s17 + $0x50] sm:$0xff]  ;;  %v3453_v49 = vor.u32 %v4145_v3, %v3450_v14  ;;  %v3317_v32 = vor.u32 %v4110_v41, %v3314_v57  ;;  %v1336_v14 = vadd.f32 1.0, %v4612_v50 }
 0x13d   : > { %v4774_v62 = vpop.f32.mrf.mxu3 }
 0x13e   : > { %1710 = vmatmul.bf16.gmra.mxu2 %v3457_v37  ;;  %v1334_v37 = vadd.f32 1.0, %v4603_v45 }
 0x140   : > { %v4777_v44 = vpop.f32.mrf.mxu0  ;;  %v1499_v59 = vpop.f32.mrf.mxu1 }
 0x141   : > { %v1500_v24 = vadd.f32 %v1499_v59, %v1331_v42  ;;  %v1671_v9 = vpop.f32.mrf.mxu2 }
 0x143   : > { %v4780_v25 = vadd.f32 %v1668_v8, %v1500_v24  ;;  %v3473_v24 = vor.u32 %v4152_v47, %v3472_v54  ;;  %v4149_v47 = vld [vmem:[%s4392_s9 + $0x164] sm:$0xf] }
 0x145   : > { %v4782_v5 = vpop.f32.mrf.mxu3 }
 0x148   : > { %v4791_v34 = vpop.f32.mrf.mxu0  ;;  %v1502_v42 = vpop.f32.mrf.mxu1 }
 0x149   : > { %v1503_v59 = vadd.f32 %v1502_v42, %v1334_v37  ;;  %v1673_v8 = vpop.f32.mrf.mxu2  ;;  %v4114_v42 = vld [vmem:[%s4392_s9 + $0x4c] sm:$0xf] }
 0x14a   : > { %4080 = vmatmul.msk.bf16.gmra.mxu3 %vm2286_vm1, %v4270_v35 }
 0x14b   : > { %1541 = vmatmul.bf16.gmra.mxu1 %v3453_v49  ;;  %3907 = vmatmul.msk.bf16.gmra.mxu0 %vm1217_vm0, %v3317_v32  ;;  %v4795_v45 = vadd.f32 %v1671_v9, %v1503_v59  ;;  %v3466_v32 = vld [vmem:[%s4392_s9 + $0x170] sm:$0xf0]  ;;  %v3330_v9 = vld [vmem:[%s4392_s9 + $0x58] sm:$0xf0] }
 0x14c   : > { %v4271_v59 = vld [vmem:[%s4546_s17 + $0x58] sm:$0xff]  ;;  %v3469_v31 = vor.u32 %v4149_v47, %v3466_v32  ;;  %v3333_v50 = vor.u32 %v4114_v42, %v3330_v9  ;;  %v1341_v32 = vadd.f32 1.0, %v4636_v6 }
 0x14d   : > { %v4797_v3 = vpop.f32.mrf.mxu3 }
 0x14e   : > { %1715 = vmatmul.bf16.gmra.mxu2 %v3473_v24  ;;  %v1339_v24 = vadd.f32 1.0, %v4627_v0 }
 0x150   : > { %v4800_v41 = vpop.f32.mrf.mxu0  ;;  %v1504_v57 = vpop.f32.mrf.mxu1 }
 0x151   : > { %v1505_v35 = vadd.f32 %v1504_v57, %v1336_v14  ;;  %v1676_v37 = vpop.f32.mrf.mxu2 }
 0x153   : > { %v4803_v54 = vadd.f32 %v1673_v8, %v1505_v35  ;;  %v3489_v35 = vor.u32 %v4156_v29, %v3488_v36  ;;  %v4153_v29 = vld [vmem:[%s4392_s9 + $0x184] sm:$0xf] }
 0x155   : > { %v4805_v49 = vpop.f32.mrf.mxu3 }
 0x158   : > { %v4814_v16 = vpop.f32.mrf.mxu0  ;;  %v1507_v14 = vpop.f32.mrf.mxu1 }
 0x159   : > { %v1508_v57 = vadd.f32 %v1507_v14, %v1339_v24  ;;  %v1678_v8 = vpop.f32.mrf.mxu2  ;;  %v4118_v14 = vld [vmem:[%s4392_s9 + $0x6c] sm:$0xf] }
 0x15a   : > { %4081 = vmatmul.msk.bf16.gmra.mxu3 %vm2286_vm1, %v4271_v59 }
 0x15b   : > { %1546 = vmatmul.bf16.gmra.mxu1 %v3469_v31  ;;  %3908 = vmatmul.msk.bf16.gmra.mxu0 %vm1217_vm0, %v3333_v50  ;;  %v4818_v0 = vadd.f32 %v1676_v37, %v1508_v57  ;;  %v3482_v50 = vld [vmem:[%s4392_s9 + $0x190] sm:$0xf0]  ;;  %v3346_v37 = vld [vmem:[%s4392_s9 + $0x78] sm:$0xf0]  ;;  %v4272_v57 = vld [vmem:[%s4546_s17 + $0x60] sm:$0xff] }
 0x15c   : > { %v3485_v13 = vor.u32 %v4153_v29, %v3482_v50  ;;  %v3349_v6 = vor.u32 %v4118_v14, %v3346_v37  ;;  %v1346_v50 = vadd.f32 1.0, %v4660_v39 }
 0x15d   : > { %v4820_v47 = vpop.f32.mrf.mxu3 }
 0x15e   : > { %1720 = vmatmul.bf16.gmra.mxu2 %v3489_v35  ;;  %v1344_v35 = vadd.f32 1.0, %v4651_v26 }
 0x160   : > { %v4823_v42 = vpop.f32.mrf.mxu0  ;;  %v1509_v9 = vpop.f32.mrf.mxu1 }
 0x161   : > { %v1510_v59 = vadd.f32 %v1509_v9, %v1341_v32  ;;  %v1681_v24 = vpop.f32.mrf.mxu2 }
 0x163   : > { %v4826_v36 = vadd.f32 %v1678_v8, %v1510_v59  ;;  %v3505_v59 = vor.u32 %v4160_v22, %v3504_v18  ;;  %v4157_v18 = vld [vmem:[%s4392_s9 + $0x1a4] sm:$0xf] }
 0x165   : > { %v4828_v31 = vpop.f32.mrf.mxu3 }
 0x168   : > { %v4837_v58 = vpop.f32.mrf.mxu0  ;;  %v1512_v32 = vpop.f32.mrf.mxu1 }
 0x169   : > { %v1513_v9 = vadd.f32 %v1512_v32, %v1344_v35  ;;  %v1683_v8 = vpop.f32.mrf.mxu2  ;;  %v4122_v32 = vld [vmem:[%s4392_s9 + $0x8c] sm:$0xf] }
 0x16a   : > { %4082 = vmatmul.msk.bf16.gmra.mxu3 %vm2286_vm1, %v4272_v57 }
 0x16b   : > { %1551 = vmatmul.bf16.gmra.mxu1 %v3485_v13  ;;  %3909 = vmatmul.msk.bf16.gmra.mxu0 %vm1217_vm0, %v3349_v6  ;;  %v4841_v26 = vadd.f32 %v1681_v24, %v1513_v9  ;;  %v3498_v6 = vld [vmem:[%s4392_s9 + $0x1b0] sm:$0xf0]  ;;  %v3362_v24 = vld [vmem:[%s4392_s9 + $0x98] sm:$0xf0]  ;;  %v4273_v9 = vld [vmem:[%s4546_s17 + $0x68] sm:$0xff] }
 0x16c   : > { %v3501_v63 = vor.u32 %v4157_v18, %v3498_v6  ;;  %v3365_v39 = vor.u32 %v4122_v32, %v3362_v24  ;;  %v1351_v6 = vadd.f32 1.0, %v4684_v17 }
 0x16d   : > { %v4843_v29 = vpop.f32.mrf.mxu3 }
 0x16e   : > { %1725 = vmatmul.bf16.gmra.mxu2 %v3505_v59  ;;  %v1349_v59 = vadd.f32 1.0, %v4675_v60 }
 0x170   : > { %v4846_v14 = vpop.f32.mrf.mxu0  ;;  %v1514_v37 = vpop.f32.mrf.mxu1 }
 0x171   : > { %v1515_v57 = vadd.f32 %v1514_v37, %v1346_v50  ;;  %v1686_v35 = vpop.f32.mrf.mxu2 }
 0x173   : > { %v4849_v22 = vadd.f32 %v1683_v8, %v1515_v57  ;;  %v3521_v57 = vor.u32 %v4164_v21, %v3520_v1  ;;  %v4161_v1 = vld [vmem:[%s4392_s9 + $0x1c4] sm:$0xf] }
 0x175   : > { %v4851_v13 = vpop.f32.mrf.mxu3 }
 0x178   : > { %v4860_v56 = vpop.f32.mrf.mxu0  ;;  %v1517_v50 = vpop.f32.mrf.mxu1 }
 0x179   : > { %v1518_v37 = vadd.f32 %v1517_v50, %v1349_v59  ;;  %v1688_v8 = vpop.f32.mrf.mxu2  ;;  %v4126_v50 = vld [vmem:[%s4392_s9 + $0xac] sm:$0xf] }
 0x17a   : > { %4083 = vmatmul.msk.bf16.gmra.mxu3 %vm2286_vm1, %v4273_v9 }
 0x17b   : > { %1556 = vmatmul.bf16.gmra.mxu1 %v3501_v63  ;;  %3910 = vmatmul.msk.bf16.gmra.mxu0 %vm1217_vm0, %v3365_v39  ;;  %v4864_v60 = vadd.f32 %v1686_v35, %v1518_v37  ;;  %v3514_v39 = vld [vmem:[%s4392_s9 + $0x1d0] sm:$0xf0]  ;;  %v3378_v35 = vld [vmem:[%s4392_s9 + $0xb8] sm:$0xf0] }
 0x17c   : > { %v4274_v37 = vld [vmem:[%s4546_s17 + $0x70] sm:$0xff]  ;;  %v3517_v40 = vor.u32 %v4161_v1, %v3514_v39  ;;  %v3381_v17 = vor.u32 %v4126_v50, %v3378_v35  ;;  %v1356_v39 = vadd.f32 1.0, %v4708_v4 }
 0x17d   : > { %v4866_v18 = vpop.f32.mrf.mxu3 }
 0x17e   : > { %1730 = vmatmul.bf16.gmra.mxu2 %v3521_v57  ;;  %v1354_v57 = vadd.f32 1.0, %v4699_v55 }
 0x180   : > { %v4869_v32 = vpop.f32.mrf.mxu0  ;;  %v1519_v24 = vpop.f32.mrf.mxu1 }
 0x181   : > { %v1520_v9 = vadd.f32 %v1519_v24, %v1351_v6  ;;  %v1691_v59 = vpop.f32.mrf.mxu2 }
 0x183   : > { %v4872_v21 = vadd.f32 %v1688_v8, %v1520_v9  ;;  %v3537_v9 = vor.u32 %v4168_v61, %v3536_v19  ;;  %v4165_v61 = vld [vmem:[%s4392_s9 + $0x1e4] sm:$0xf] }
 0x185   : > { %v4874_v63 = vpop.f32.mrf.mxu3 }
 0x188   : > { %v4883_v30 = vpop.f32.mrf.mxu0  ;;  %v1522_v6 = vpop.f32.mrf.mxu1 }
 0x189   : > { %v1523_v24 = vadd.f32 %v1522_v6, %v1354_v57  ;;  %v1693_v8 = vpop.f32.mrf.mxu2  ;;  %v4130_v6 = vld [vmem:[%s4392_s9 + $0xcc] sm:$0xf] }
 0x18a   : > { %4084 = vmatmul.msk.bf16.gmra.mxu3 %vm2286_vm1, %v4274_v37 }
 0x18b   : > { %1561 = vmatmul.bf16.gmra.mxu1 %v3517_v40  ;;  %3911 = vmatmul.msk.bf16.gmra.mxu0 %vm1217_vm0, %v3381_v17  ;;  %v4887_v55 = vadd.f32 %v1691_v59, %v1523_v24  ;;  %v3530_v17 = vld [vmem:[%s4392_s9 + $0x1f0] sm:$0xf0]  ;;  %v3394_v59 = vld [vmem:[%s4392_s9 + $0xd8] sm:$0xf0] }
 0x18c   : > { %v4275_v24 = vld [vmem:[%s4546_s17 + $0x78] sm:$0xff]  ;;  %v3533_v51 = vor.u32 %v4165_v61, %v3530_v17  ;;  %v3397_v4 = vor.u32 %v4130_v6, %v3394_v59  ;;  %v1361_v17 = vadd.f32 1.0, %v4732_v20 }
 0x18d   : > { %v4889_v1 = vpop.f32.mrf.mxu3 }
 0x18e   : > { %1735 = vmatmul.bf16.gmra.mxu2 %v3537_v9  ;;  %v1359_v9 = vadd.f32 1.0, %v4723_v53 }
 0x190   : > { %v4892_v50 = vpop.f32.mrf.mxu0  ;;  %v1524_v35 = vpop.f32.mrf.mxu1 }
 0x191   : > { %v1525_v37 = vadd.f32 %v1524_v35, %v1356_v39  ;;  %v1696_v57 = vpop.f32.mrf.mxu2 }
 0x193   : > { %v4895_v19 = vadd.f32 %v1693_v8, %v1525_v37  ;;  %v3553_v37 = vor.u32 %v4172_v2, %v3552_v7  ;;  %v4169_v2 = vld [vmem:[%s4392_s9 + $0x204] sm:$0xf] }
 0x195   : > { %v4897_v40 = vpop.f32.mrf.mxu3 }
 0x198   : > { %v4906_v46 = vpop.f32.mrf.mxu0  ;;  %v1527_v39 = vpop.f32.mrf.mxu1 }
 0x199   : > { %v1528_v35 = vadd.f32 %v1527_v39, %v1359_v9  ;;  %v1698_v8 = vpop.f32.mrf.mxu2  ;;  %v4134_v39 = vld [vmem:[%s4392_s9 + $0xec] sm:$0xf] }
 0x19a   : > { %4085 = vmatmul.msk.bf16.gmra.mxu3 %vm2286_vm1, %v4275_v24 }
 0x19b   : > { %1566 = vmatmul.bf16.gmra.mxu1 %v3533_v51  ;;  %3912 = vmatmul.msk.bf16.gmra.mxu0 %vm1217_vm0, %v3397_v4  ;;  %v4910_v53 = vadd.f32 %v1696_v57, %v1528_v35  ;;  %v3546_v4 = vld [vmem:[%s4392_s9 + $0x210] sm:$0xf0]  ;;  %v3410_v57 = vld [vmem:[%s4392_s9 + $0xf8] sm:$0xf0]  ;;  %v4276_v35 = vld [vmem:[%s4546_s17 + $0x80] sm:$0xff] }
 0x19c   : > { %v3549_v15 = vor.u32 %v4169_v2, %v3546_v4  ;;  %v3413_v20 = vor.u32 %v4134_v39, %v3410_v57  ;;  %v1366_v4 = vadd.f32 1.0, %v4754_v43 }
 0x19d   : > { %v4912_v61 = vpop.f32.mrf.mxu3 }
 0x19e   : > { %5589 = vst [vmem:[#allocation51_spill] sm:$0xff] %v4912_v61  ;;  %1740 = vmatmul.bf16.gmra.mxu2 %v3553_v37  ;;  %v1364_v37 = vadd.f32 1.0, %v4746_v48 }
 0x1a0   : > { %v4915_v6 = vpop.f32.mrf.mxu0  ;;  %v1529_v59 = vpop.f32.mrf.mxu1 }
 0x1a1   : > { %v1530_v24 = vadd.f32 %v1529_v59, %v1361_v17  ;;  %v1701_v9 = vpop.f32.mrf.mxu2 }
 0x1a3   : > { %v4918_v7 = vadd.f32 %v1698_v8, %v1530_v24  ;;  %v3569_v24 = vor.u32 %v4176_v28, %v3568_v33  ;;  %v4173_v28 = vld [vmem:[%s4392_s9 + $0x224] sm:$0xf] }
 0x1a5   : > { %5590 = vst [vmem:[#allocation52_spill] sm:$0xff] %v4918_v7  ;;  %v4920_v51 = vpop.f32.mrf.mxu3 }
 0x1a6   : > { %5591 = vst [vmem:[#allocation53_spill] sm:$0xff] %v4920_v51  ;;  %v4180_v51 = vld [vmem:[%s4392_s9 + $0x254] sm:$0xf0] }
 0x1a8   : > { %v4929_v11 = vpop.f32.mrf.mxu0  ;;  %v1532_v17 = vpop.f32.mrf.mxu1 }
 0x1a9   : > { %v1533_v59 = vadd.f32 %v1532_v17, %v1364_v37  ;;  %v1703_v8 = vpop.f32.mrf.mxu2  ;;  %v4138_v17 = vld [vmem:[%s4392_s9 + $0x10c] sm:$0xf] }
 0x1aa   : > { %4086 = vmatmul.msk.bf16.gmra.mxu3 %vm2286_vm1, %v4276_v35 }
 0x1ab   : > { %1571 = vmatmul.bf16.gmra.mxu1 %v3549_v15  ;;  %3913 = vmatmul.msk.bf16.gmra.mxu0 %vm1217_vm0, %v3413_v20  ;;  %v4933_v48 = vadd.f32 %v1701_v9, %v1533_v59  ;;  %v3562_v20 = vld [vmem:[%s4392_s9 + $0x230] sm:$0xf0]  ;;  %v3426_v9 = vld [vmem:[%s4392_s9 + $0x118] sm:$0xf0]  ;;  %v4277_v59 = vld [vmem:[%s4546_s17 + $0x88] sm:$0xff] }
 0x1ac   : > { %v3429_v43 = vor.u32 %v4138_v17, %v3426_v9  ;;  %v3578_v17 = vld [vmem:[%s4392_s9 + $0x250] sm:$0xf0]  ;;  %v3442_v9 = vld [vmem:[%s4392_s9 + $0x138] sm:$0xf0] }
 0x1ad   : > { %5592 = vst [vmem:[#allocation54_spill] sm:$0xff] %v4933_v48  ;;  %v4935_v2 = vpop.f32.mrf.mxu3  ;;  %v3584_v48 = vld [vmem:[%s4392_s9 + $0x248] sm:$0xf] }
 0x1ae   : > { %5593 = vst [vmem:[#allocation55_spill] sm:$0xff] %v4935_v2  ;;  %1745 = vmatmul.bf16.gmra.mxu2 %v3569_v24  ;;  %v1369_v24 = vadd.f32 1.0, %v4768_v52  ;;  %v3565_v2 = vor.u32 %v4173_v28, %v3562_v20  ;;  %v4177_v28 = vld [vmem:[%s4392_s9 + $0x244] sm:$0xf] }
 0x1b0   : > { %v4938_v39 = vpop.f32.mrf.mxu0  ;;  %v1534_v57 = vpop.f32.mrf.mxu1 }
 0x1b1   : > { %5594 = vst [vmem:[#allocation56_spill] sm:$0xff] %v4938_v39  ;;  %v1535_v35 = vadd.f32 %v1534_v57, %v1366_v4  ;;  %v1706_v37 = vpop.f32.mrf.mxu2  ;;  %v3585_v57 = vor.u32 %v4180_v51, %v3584_v48 }
 0x1b3   : > { %v4941_v33 = vadd.f32 %v1703_v8, %v1535_v35 }
 0x1b5   : > { %v4943_v15 = vpop.f32.mrf.mxu3 }
 0x1b6   : > { %5595 = vst [vmem:[#allocation57_spill] sm:$0xff] %v4943_v15 }
 0x1b8   : > { %v1537_v7 = vpop.f32.mrf.mxu1  ;;  %v1830_v39 = vpop.f32.mrf.mxu0 }
 0x1b9   : > { %v1538_v61 = vadd.f32 %v1537_v7, %v1369_v24  ;;  %v1831_v4 = vadd.f32 %v1830_v39, %v4749_v12  ;;  %v1708_v8 = vpop.f32.mrf.mxu2  ;;  %v1371_v12 = vadd.f32 1.0, %v4777_v44  ;;  %v4142_v44 = vld [vmem:[%s4392_s9 + $0x12c] sm:$0xf]  ;;  %v4278_v24 = vld [vmem:[%s4546_s17 + $0x90] sm:$0xff] }
 0x1ba   : > { %4087 = vmatmul.msk.bf16.gmra.mxu3 %vm2286_vm1, %v4277_v59 }
 0x1bb   : > { %v1990_v35 = vmax.f32 %v1831_v4, 0.0  ;;  %1576 = vmatmul.bf16.gmra.mxu1 %v3565_v2  ;;  %3914 = vmatmul.msk.bf16.gmra.mxu0 %vm1217_vm0, %v3429_v43  ;;  %v4955_v15 = vadd.f32 %v1706_v37, %v1538_v61  ;;  %v3600_v43 = vld [vmem:[%s4392_s9 + $0x268] sm:$0xf]  ;;  %v4184_v4 = vld [vmem:[%s4392_s9 + $0x274] sm:$0xf0] }
 0x1bd   : > { %v4957_v52 = vpop.f32.mrf.mxu3  ;;  %v2552_v7 = vadd.f32 %v4751_v10, %v1990_v35  ;;  %v3445_v35 = vor.u32 %v4142_v44, %v3442_v9  ;;  %v1376_v9 = vadd.f32 1.0, %v4800_v41 }
 0x1be   : > { %1750 = vmatmul.bf16.gmra.mxu2 %v3585_v57  ;;  %v1374_v57 = vadd.f32 1.0, %v4791_v34 }
 0x1bf   : > { %2617 = vst.msk [vmem:[#allocation2] sm:$0xff] %vm2616_vm2, %v2552_v7 }
 0x1c0   : > { %v1539_v51 = vpop.f32.mrf.mxu1  ;;  %v1832_v48 = vpop.f32.mrf.mxu0 }
 0x1c1   : > { %v1540_v61 = vadd.f32 %v1539_v51, %v1371_v12  ;;  %v1833_v2 = vadd.f32 %v1832_v48, %v4757_v38  ;;  %v1711_v39 = vpop.f32.mrf.mxu2  ;;  %v3581_v38 = vor.u32 %v4177_v28, %v3578_v17 }
 0x1c3   : > { %v1991_v37 = vmax.f32 %v1833_v2, 0.0  ;;  %v4965_v20 = vadd.f32 %v1708_v8, %v1540_v61  ;;  %v3601_v61 = vor.u32 %v4184_v4, %v3600_v43 }
 0x1c5   : > { %v4967_v10 = vpop.f32.mrf.mxu3  ;;  %v2553_v59 = vadd.f32 %v4759_v23, %v1991_v37 }
 0x1c6   : > { %v2681_v34 = vld [vmem:[#allocation2] ss:$2 sm:$0xf]  ;;  %v2683_v37 = vld [vmem:[#allocation2 + $0x1] ss:$2 sm:$0xf] }
 0x1c7   : > { %2618 = vst.msk [vmem:[#allocation2 + $0x8] sm:$0xff] %vm2616_vm2, %v2553_v59  ;;  %v2688_v59 = vmax.f32 %v2681_v34, %v2683_v37  ;;  %v4279_v34 = vld [vmem:[%s4546_s17 + $0x98] sm:$0xff]  ;;  %v3616_v37 = vld [vmem:[%s4392_s9 + $0x288] sm:$0xf] }
 0x1c8   : > { %v1542_v7 = vpop.f32.mrf.mxu1  ;;  %v1835_v8 = vpop.f32.mrf.mxu0 }
 0x1c9   : > { %v1543_v12 = vadd.f32 %v1542_v7, %v1374_v57  ;;  %v1836_v51 = vadd.f32 %v1835_v8, %v4772_v27  ;;  %v1713_v48 = vpop.f32.mrf.mxu2 }
 0x1ca   : > { %4088 = vmatmul.msk.bf16.gmra.mxu3 %vm2286_vm1, %v4278_v24 }
 0x1cb   : > { %v1992_v23 = vmax.f32 %v1836_v51, 0.0  ;;  %1581 = vmatmul.bf16.gmra.mxu1 %v3581_v38  ;;  %3915 = vmatmul.msk.bf16.gmra.mxu0 %vm1217_vm0, %v3445_v35  ;;  %v4981_v2 = vadd.f32 %v1711_v39, %v1543_v12  ;;  %v4181_v35 = vld [vmem:[%s4392_s9 + $0x264] sm:$0xf]  ;;  %v3594_v12 = vld [vmem:[%s4392_s9 + $0x270] sm:$0xf0] }
 0x1cc   : > { %v4146_v51 = vld [vmem:[%s4392_s9 + $0x14c] sm:$0xf] }
 0x1cd   : > { %v4983_v28 = vpop.f32.mrf.mxu3  ;;  %v2554_v17 = vadd.f32 %v4774_v62, %v1992_v23 }
 0x1ce   : > { %1755 = vmatmul.bf16.gmra.mxu2 %v3601_v61  ;;  %v2685_v44 = vld [vmem:[#allocation2 + $0x8] ss:$2 sm:$0xf]  ;;  %v2687_v27 = vld [vmem:[#allocation2 + $0x9] ss:$2 sm:$0xf] }
 0x1cf   : > { %v2689_v24 = vmax.f32 %v2685_v44, %v2687_v27  ;;  %2619 = vst.msk [vmem:[#allocation2 + $0x10] sm:$0xff] %vm2616_vm2, %v2554_v17  ;;  %v3458_v61 = vld [vmem:[%s4392_s9 + $0x158] sm:$0xf0]  ;;  %v4188_v17 = vld [vmem:[%s4392_s9 + $0x294] sm:$0xf0]  ;;  %v1379_v44 = vadd.f32 1.0, %v4814_v16 }
 0x1d0   : > { %v1544_v62 = vpop.f32.mrf.mxu1  ;;  %v1837_v39 = vpop.f32.mrf.mxu0  ;;  %v3461_v27 = vor.u32 %v4146_v51, %v3458_v61 }
 0x1d1   : > { %v2690_v41 = vmax.f32 %v2688_v59, %v2689_v24  ;;  %v1545_v43 = vadd.f32 %v1544_v62, %v1376_v9  ;;  %v1838_v4 = vadd.f32 %v1837_v39, %v4780_v25  ;;  %v1716_v57 = vpop.f32.mrf.mxu2  ;;  %v3597_v25 = vor.u32 %v4181_v35, %v3594_v12 }
 0x1d2   : > { %v3617_v39 = vor.u32 %v4188_v17, %v3616_v37  ;;  %v1381_v12 = vadd.f32 1.0, %v4823_v42  ;;  %v4185_v42 = vld [vmem:[%s4392_s9 + $0x284] sm:$0xf] }
 0x1d3   : > { %2692 = vst.msk [vmem:[%s4991_s23] sm:$0xf] %vm2691_vm3, %v2690_v41  ;;  %v1993_v38 = vmax.f32 %v1838_v4, 0.0  ;;  %v4997_v7 = vadd.f32 %v1713_v48, %v1545_v43 }
 0x1d5   : > { %v4999_v8 = vpop.f32.mrf.mxu3  ;;  %v2555_v23 = vadd.f32 %v4782_v5, %v1993_v38 }
 0x1d6   : > { %v2694_v16 = vld [vmem:[#allocation2 + $0x10] ss:$2 sm:$0xf]  ;;  %v2696_v43 = vld [vmem:[#allocation2 + $0x11] ss:$2 sm:$0xf] }
 0x1d7   : > { %2620 = vst.msk [vmem:[#allocation2 + $0x18] sm:$0xff] %vm2616_vm2, %v2555_v23  ;;  %v2701_v51 = vmax.f32 %v2694_v16, %v2696_v43  ;;  %v4192_v16 = vld [vmem:[%s4392_s9 + $0x2b4] sm:$0xf0]  ;;  %v1384_v43 = vadd.f32 1.0, %v4837_v58 }
 0x1d8   : > { %v1547_v9 = vpop.f32.mrf.mxu1  ;;  %v1840_v59 = vpop.f32.mrf.mxu0 }
 0x1d9   : > { %v1548_v48 = vadd.f32 %v1547_v9, %v1379_v44  ;;  %v1841_v24 = vadd.f32 %v1840_v59, %v4795_v45  ;;  %v1718_v62 = vpop.f32.mrf.mxu2  ;;  %v3610_v9 = vld [vmem:[%s4392_s9 + $0x290] sm:$0xf0]  ;;  %v4150_v59 = vld [vmem:[%s4392_s9 + $0x16c] sm:$0xf] }
 0x1da   : > { %4089 = vmatmul.msk.bf16.gmra.mxu3 %vm2286_vm1, %v4279_v34 }
 0x1db   : > { %v1994_v41 = vmax.f32 %v1841_v24, 0.0  ;;  %1586 = vmatmul.bf16.gmra.mxu1 %v3597_v25  ;;  %3916 = vmatmul.msk.bf16.gmra.mxu0 %vm1217_vm0, %v3461_v27  ;;  %v5013_v5 = vadd.f32 %v1716_v57, %v1548_v48  ;;  %v3474_v48 = vld [vmem:[%s4392_s9 + $0x178] sm:$0xf0] }
 0x1dd   : > { %v5015_v4 = vpop.f32.mrf.mxu3  ;;  %v2556_v38 = vadd.f32 %v4797_v3, %v1994_v41  ;;  %v3632_v41 = vld [vmem:[%s4392_s9 + $0x2a8] sm:$0xf] }
 0x1de   : > { %1760 = vmatmul.bf16.gmra.mxu2 %v3617_v39  ;;  %v2698_v45 = vld [vmem:[#allocation2 + $0x18] ss:$2 sm:$0xf]  ;;  %v2700_v35 = vld [vmem:[#allocation2 + $0x19] ss:$2 sm:$0xf] }
 0x1df   : > { %v2702_v61 = vmax.f32 %v2698_v45, %v2700_v35  ;;  %2621 = vst.msk [vmem:[#allocation2 + $0x20] sm:$0xff] %vm2616_vm2, %v2556_v38  ;;  %v4280_v39 = vld [vmem:[%s4546_s17 + $0xa0] sm:$0xff]  ;;  %v3477_v38 = vor.u32 %v4150_v59, %v3474_v48 }
 0x1e0   : > { %v1549_v57 = vpop.f32.mrf.mxu1  ;;  %v1842_v23 = vpop.f32.mrf.mxu0 }
 0x1e1   : > { %v2703_v34 = vmax.f32 %v2701_v51, %v2702_v61  ;;  %v1550_v3 = vadd.f32 %v1549_v57, %v1381_v12  ;;  %v1843_v37 = vadd.f32 %v1842_v23, %v4803_v54  ;;  %v1721_v17 = vpop.f32.mrf.mxu2  ;;  %v3613_v54 = vor.u32 %v4185_v42, %v3610_v9 }
 0x1e2   : > { %v3633_v61 = vor.u32 %v4192_v16, %v3632_v41 }
 0x1e3   : > { %2704 = vst.msk [vmem:[%s4991_s23 + $0x4] sm:$0xf] %vm2691_vm3, %v2703_v34  ;;  %v1995_v44 = vmax.f32 %v1843_v37, 0.0  ;;  %v5024_v25 = vadd.f32 %v1718_v62, %v1550_v3 }
 0x1e5   : > { %v5026_v27 = vpop.f32.mrf.mxu3  ;;  %v2557_v24 = vadd.f32 %v4805_v49, %v1995_v44  ;;  %v1386_v44 = vadd.f32 1.0, %v4846_v14  ;;  %v4189_v14 = vld [vmem:[%s4392_s9 + $0x2a4] sm:$0xf] }
 0x1e6   : > { %v2706_v58 = vld [vmem:[#allocation2 + $0x20] ss:$2 sm:$0xf]  ;;  %v2708_v23 = vld [vmem:[#allocation2 + $0x21] ss:$2 sm:$0xf] }
 0x1e7   : > { %2622 = vst.msk [vmem:[#allocation2 + $0x28] sm:$0xff] %vm2616_vm2, %v2557_v24  ;;  %v2713_v42 = vmax.f32 %v2706_v58, %v2708_v23 }
 0x1e8   : > { %v1552_v45 = vpop.f32.mrf.mxu1  ;;  %v1845_v35 = vpop.f32.mrf.mxu0 }
 0x1e9   : > { %v1553_v62 = vadd.f32 %v1552_v45, %v1384_v43  ;;  %v1846_v12 = vadd.f32 %v1845_v35, %v4818_v0  ;;  %v1723_v51 = vpop.f32.mrf.mxu2  ;;  %v3490_v45 = vld [vmem:[%s4392_s9 + $0x198] sm:$0xf0] }
 0x1ea   : > { %4090 = vmatmul.msk.bf16.gmra.mxu3 %vm2286_vm1, %v4280_v39 }
 0x1eb   : > { %v1996_v57 = vmax.f32 %v1846_v12, 0.0  ;;  %1591 = vmatmul.bf16.gmra.mxu1 %v3613_v54  ;;  %3917 = vmatmul.msk.bf16.gmra.mxu0 %vm1217_vm0, %v3477_v38  ;;  %v5040_v49 = vadd.f32 %v1721_v17, %v1553_v62  ;;  %v3626_v54 = vld [vmem:[%s4392_s9 + $0x2b0] sm:$0xf0]  ;;  %v4154_v38 = vld [vmem:[%s4392_s9 + $0x18c] sm:$0xf] }
 0x1ec   : > { %v4281_v62 = vld [vmem:[%s4546_s17 + $0xa8] sm:$0xff]  ;;  %v3493_v58 = vor.u32 %v4154_v38, %v3490_v45 }
 0x1ed   : > { %v5042_v34 = vpop.f32.mrf.mxu3  ;;  %v2558_v3 = vadd.f32 %v4820_v47, %v1996_v57  ;;  %v3648_v12 = vld [vmem:[%s4392_s9 + $0x2c8] sm:$0xf]  ;;  %v1389_v57 = vadd.f32 1.0, %v4860_v56 }
 0x1ee   : > { %1765 = vmatmul.bf16.gmra.mxu2 %v3633_v61  ;;  %v2710_v0 = vld [vmem:[#allocation2 + $0x28] ss:$2 sm:$0xf]  ;;  %v2712_v37 = vld [vmem:[#allocation2 + $0x29] ss:$2 sm:$0xf] }
 0x1ef   : > { %v2714_v9 = vmax.f32 %v2710_v0, %v2712_v37  ;;  %2623 = vst.msk [vmem:[#allocation2 + $0x30] sm:$0xff] %vm2616_vm2, %v2558_v3  ;;  %v4196_v61 = vld [vmem:[%s4392_s9 + $0x2d4] sm:$0xf0] }
 0x1f0   : > { %v1554_v17 = vpop.f32.mrf.mxu1  ;;  %v1847_v59 = vpop.f32.mrf.mxu0 }
 0x1f1   : > { %v2715_v48 = vmax.f32 %v2713_v42, %v2714_v9  ;;  %v1555_v47 = vadd.f32 %v1554_v17, %v1386_v44  ;;  %v1848_v24 = vadd.f32 %v1847_v59, %v4826_v36  ;;  %v1726_v39 = vpop.f32.mrf.mxu2  ;;  %v3629_v36 = vor.u32 %v4189_v14, %v3626_v54 }
 0x1f2   : > { %v3649_v44 = vor.u32 %v4196_v61, %v3648_v12  ;;  %v3642_v61 = vld [vmem:[%s4392_s9 + $0x2d0] sm:$0xf0] }
 0x1f3   : > { %2716 = vst.msk [vmem:[%s4991_s23 + $0x8] sm:$0xf] %vm2691_vm3, %v2715_v48  ;;  %v1997_v41 = vmax.f32 %v1848_v24, 0.0  ;;  %v5051_v16 = vadd.f32 %v1723_v51, %v1555_v47  ;;  %v1391_v47 = vadd.f32 1.0, %v4869_v32  ;;  %v4193_v32 = vld [vmem:[%s4392_s9 + $0x2c4] sm:$0xf] }
 0x1f5   : > { %v5053_v43 = vpop.f32.mrf.mxu3  ;;  %v2559_v35 = vadd.f32 %v4828_v31, %v1997_v41 }
 0x1f6   : > { %v2718_v56 = vld [vmem:[#allocation2 + $0x30] ss:$2 sm:$0xf]  ;;  %v2720_v9 = vld [vmem:[#allocation2 + $0x31] ss:$2 sm:$0xf] }
 0x1f7   : > { %2624 = vst.msk [vmem:[#allocation2 + $0x38] sm:$0xff] %vm2616_vm2, %v2559_v35  ;;  %v2725_v24 = vmax.f32 %v2718_v56, %v2720_v9 }
 0x1f8   : > { %v1557_v23 = vpop.f32.mrf.mxu1  ;;  %v1850_v3 = vpop.f32.mrf.mxu0 }
 0x1f9   : > { %v1558_v51 = vadd.f32 %v1557_v23, %v1389_v57  ;;  %v1851_v0 = vadd.f32 %v1850_v3, %v4841_v26  ;;  %v1728_v37 = vpop.f32.mrf.mxu2  ;;  %v4158_v57 = vld [vmem:[%s4392_s9 + $0x1ac] sm:$0xf]  ;;  %v4282_v23 = vld [vmem:[%s4546_s17 + $0xb0] sm:$0xff]  ;;  %v3664_v3 = vld [vmem:[%s4392_s9 + $0x2e8] sm:$0xf] }
 0x1fa   : > { %4091 = vmatmul.msk.bf16.gmra.mxu3 %vm2286_vm1, %v4281_v62 }
 0x1fb   : > { %v1998_v42 = vmax.f32 %v1851_v0, 0.0  ;;  %1596 = vmatmul.bf16.gmra.mxu1 %v3629_v36  ;;  %3918 = vmatmul.msk.bf16.gmra.mxu0 %vm1217_vm0, %v3493_v58  ;;  %v5067_v31 = vadd.f32 %v1726_v39, %v1558_v51  ;;  %v3506_v36 = vld [vmem:[%s4392_s9 + $0x1b8] sm:$0xf0]  ;;  %v4200_v51 = vld [vmem:[%s4392_s9 + $0x2f4] sm:$0xf0]  ;;  %v1394_v0 = vadd.f32 1.0, %v4883_v30 }
 0x1fd   : > { %v5069_v17 = vpop.f32.mrf.mxu3  ;;  %v2560_v59 = vadd.f32 %v4843_v29, %v1998_v42 }
 0x1fe   : > { %1770 = vmatmul.bf16.gmra.mxu2 %v3649_v44  ;;  %v2722_v26 = vld [vmem:[#allocation2 + $0x38] ss:$2 sm:$0xf]  ;;  %v2724_v48 = vld [vmem:[#allocation2 + $0x39] ss:$2 sm:$0xf]  ;;  %v3509_v44 = vor.u32 %v4158_v57, %v3506_v36 }
 0x1ff   : > { %v2726_v41 = vmax.f32 %v2722_v26, %v2724_v48  ;;  %2625 = vst.msk [vmem:[#allocation2 + $0x40] sm:$0xff] %vm2616_vm2, %v2560_v59  ;;  %v3665_v26 = vor.u32 %v4200_v51, %v3664_v3  ;;  %v4162_v3 = vld [vmem:[%s4392_s9 + $0x1cc] sm:$0xf]  ;;  %v3522_v51 = vld [vmem:[%s4392_s9 + $0x1d8] sm:$0xf0] }
 0x200   : > { %v1559_v39 = vpop.f32.mrf.mxu1  ;;  %v1852_v14 = vpop.f32.mrf.mxu0 }
 0x201   : > { %v2727_v54 = vmax.f32 %v2725_v24, %v2726_v41  ;;  %v1560_v29 = vadd.f32 %v1559_v39, %v1391_v47  ;;  %v1853_v38 = vadd.f32 %v1852_v14, %v4849_v22  ;;  %v1731_v45 = vpop.f32.mrf.mxu2  ;;  %v3645_v22 = vor.u32 %v4193_v32, %v3642_v61 }
 0x202   : > { %v1396_v14 = vadd.f32 1.0, %v4892_v50  ;;  %v4197_v50 = vld [vmem:[%s4392_s9 + $0x2e4] sm:$0xf] }
 0x203   : > { %2728 = vst.msk [vmem:[%s4991_s23 + $0xc] sm:$0xf] %vm2691_vm3, %v2727_v54  ;;  %v1999_v35 = vmax.f32 %v1853_v38, 0.0  ;;  %v5078_v62 = vadd.f32 %v1728_v37, %v1560_v29 }
 0x205   : > { %v5080_v12 = vpop.f32.mrf.mxu3  ;;  %v2561_v58 = vadd.f32 %v4851_v13, %v1999_v35 }
 0x206   : > { %v2730_v30 = vld [vmem:[#allocation2 + $0x40] ss:$2 sm:$0xf]  ;;  %v2732_v47 = vld [vmem:[#allocation2 + $0x41] ss:$2 sm:$0xf] }
 0x207   : > { %2626 = vst.msk [vmem:[#allocation2 + $0x48] sm:$0xff] %vm2616_vm2, %v2561_v58  ;;  %v2737_v54 = vmax.f32 %v2730_v30, %v2732_v47 }
 0x208   : > { %v1562_v42 = vpop.f32.mrf.mxu1  ;;  %v1855_v56 = vpop.f32.mrf.mxu0 }
 0x209   : > { %v1563_v37 = vadd.f32 %v1562_v42, %v1394_v0  ;;  %v1856_v9 = vadd.f32 %v1855_v56, %v4864_v60  ;;  %v1733_v59 = vpop.f32.mrf.mxu2  ;;  %v4204_v42 = vld [vmem:[%s4392_s9 + $0x314] sm:$0xf0]  ;;  %v1399_v56 = vadd.f32 1.0, %v4906_v46 }
 0x20a   : > { %4092 = vmatmul.msk.bf16.gmra.mxu3 %vm2286_vm1, %v4282_v23  ;;  %v3658_v23 = vld [vmem:[%s4392_s9 + $0x2f0] sm:$0xf0] }
 0x20b   : > { %v2000_v48 = vmax.f32 %v1856_v9, 0.0  ;;  %1601 = vmatmul.bf16.gmra.mxu1 %v3645_v22  ;;  %3919 = vmatmul.msk.bf16.gmra.mxu0 %vm1217_vm0, %v3509_v44  ;;  %v5094_v13 = vadd.f32 %v1731_v45, %v1563_v37  ;;  %v4283_v22 = vld [vmem:[%s4546_s17 + $0xb8] sm:$0xff]  ;;  %v3680_v44 = vld [vmem:[%s4392_s9 + $0x308] sm:$0xf]  ;;  %v3525_v37 = vor.u32 %v4162_v3, %v3522_v51  ;;  %v3674_v51 = vld [vmem:[%s4392_s9 + $0x310] sm:$0xf0] }
 0x20c   : > { %v3681_v47 = vor.u32 %v4204_v42, %v3680_v44  ;;  %v4284_v42 = vld [vmem:[%s4546_s17 + $0xc0] sm:$0xff] }
 0x20d   : > { %v5096_v24 = vpop.f32.mrf.mxu3  ;;  %v2562_v41 = vadd.f32 %v4866_v18, %v2000_v48 }
 0x20e   : > { %1775 = vmatmul.bf16.gmra.mxu2 %v3665_v26  ;;  %v2734_v60 = vld [vmem:[#allocation2 + $0x48] ss:$2 sm:$0xf]  ;;  %v2736_v39 = vld [vmem:[#allocation2 + $0x49] ss:$2 sm:$0xf] }
 0x20f   : > { %v2738_v29 = vmax.f32 %v2734_v60, %v2736_v39  ;;  %2627 = vst.msk [vmem:[#allocation2 + $0x50] sm:$0xff] %vm2616_vm2, %v2562_v41 }
 0x210   : > { %v1564_v38 = vpop.f32.mrf.mxu1  ;;  %v1857_v45 = vpop.f32.mrf.mxu0 }
 0x211   : > { %v2739_v35 = vmax.f32 %v2737_v54, %v2738_v29  ;;  %v1565_v18 = vadd.f32 %v1564_v38, %v1396_v14  ;;  %v1858_v32 = vadd.f32 %v1857_v45, %v4872_v21  ;;  %v1736_v61 = vpop.f32.mrf.mxu2  ;;  %v3661_v21 = vor.u32 %v4197_v50, %v3658_v23 }
 0x212   : > { %v1401_v29 = vadd.f32 1.0, %v4915_v6  ;;  %v4201_v6 = vld [vmem:[%s4392_s9 + $0x304] sm:$0xf] }
 0x213   : > { %2740 = vst.msk [vmem:[%s4991_s23 + $0x10] sm:$0xf] %vm2691_vm3, %v2739_v35  ;;  %v2001_v57 = vmax.f32 %v1858_v32, 0.0  ;;  %v5105_v36 = vadd.f32 %v1733_v59, %v1565_v18 }
 0x215   : > { %v5107_v58 = vpop.f32.mrf.mxu3  ;;  %v2563_v0 = vadd.f32 %v4874_v63, %v2001_v57 }
 0x216   : > { %v2742_v46 = vld [vmem:[#allocation2 + $0x50] ss:$2 sm:$0xf]  ;;  %v2744_v60 = vld [vmem:[#allocation2 + $0x51] ss:$2 sm:$0xf] }
 0x217   : > { %2628 = vst.msk [vmem:[#allocation2 + $0x58] sm:$0xff] %vm2616_vm2, %v2563_v0  ;;  %v2749_v38 = vmax.f32 %v2742_v46, %v2744_v60  ;;  %v4166_v0 = vld [vmem:[%s4392_s9 + $0x1ec] sm:$0xf] }
 0x218   : > { %v1567_v9 = vpop.f32.mrf.mxu1  ;;  %v1860_v26 = vpop.f32.mrf.mxu0 }
 0x219   : > { %v1568_v59 = vadd.f32 %v1567_v9, %v1399_v56  ;;  %v1861_v48 = vadd.f32 %v1860_v26, %v4887_v55  ;;  %v1738_v30 = vpop.f32.mrf.mxu2  ;;  %v3696_v56 = vld [vmem:[%s4392_s9 + $0x328] sm:$0xf] }
 0x21a   : > { %4093 = vmatmul.msk.bf16.gmra.mxu3 %vm2286_vm1, %v4283_v22  ;;  %v3538_v22 = vld [vmem:[%s4392_s9 + $0x1f8] sm:$0xf0] }
 0x21b   : > { %v2002_v41 = vmax.f32 %v1861_v48, 0.0  ;;  %1606 = vmatmul.bf16.gmra.mxu1 %v3661_v21  ;;  %3920 = vmatmul.msk.bf16.gmra.mxu0 %vm1217_vm0, %v3525_v37  ;;  %v5121_v63 = vadd.f32 %v1736_v61, %v1568_v59  ;;  %v4208_v21 = vld [vmem:[%s4392_s9 + $0x334] sm:$0xf0]  ;;  %v1404_v37 = vadd.f32 1.0, %v4929_v11  ;;  %v3541_v9 = vor.u32 %v4166_v0, %v3538_v22  ;;  %v4205_v22 = vld [vmem:[%s4392_s9 + $0x324] sm:$0xf] }
 0x21d   : > { %v5123_v39 = vpop.f32.mrf.mxu3  ;;  %v2564_v14 = vadd.f32 %v4889_v1, %v2002_v41  ;;  %v3697_v41 = vor.u32 %v4208_v21, %v3696_v56  ;;  %v3690_v56 = vld [vmem:[%s4392_s9 + $0x330] sm:$0xf0]  ;;  %v4170_v21 = vld [vmem:[%s4392_s9 + $0x20c] sm:$0xf] }
 0x21e   : > { %1780 = vmatmul.bf16.gmra.mxu2 %v3681_v47  ;;  %v2746_v55 = vld [vmem:[#allocation2 + $0x58] ss:$2 sm:$0xf]  ;;  %v2748_v54 = vld [vmem:[#allocation2 + $0x59] ss:$2 sm:$0xf] }
 0x21f   : > { %v2750_v45 = vmax.f32 %v2746_v55, %v2748_v54  ;;  %2629 = vst.msk [vmem:[#allocation2 + $0x60] sm:$0xff] %vm2616_vm2, %v2564_v14  ;;  %v5596_v55 = vld [vmem:[#allocation51_spill] sm:$0xff] }
 0x220   : > { %v1569_v35 = vpop.f32.mrf.mxu1  ;;  %v1862_v18 = vpop.f32.mrf.mxu0 }
 0x221   : > { %v2751_v32 = vmax.f32 %v2749_v38, %v2750_v45  ;;  %v1570_v1 = vadd.f32 %v1569_v35, %v1401_v29  ;;  %v1863_v61 = vadd.f32 %v1862_v18, %v4895_v19  ;;  %v1741_v57 = vpop.f32.mrf.mxu2  ;;  %v3677_v19 = vor.u32 %v4201_v6, %v3674_v51  ;;  %v5597_v38 = vld [vmem:[#allocation56_spill] sm:$0xff] }
 0x222   : > { %v1406_v45 = vadd.f32 1.0, %v5597_v38 }
 0x223   : > { %2752 = vst.msk [vmem:[%s4991_s23 + $0x14] sm:$0xf] %vm2691_vm3, %v2751_v32  ;;  %v2003_v50 = vmax.f32 %v1863_v61, 0.0  ;;  %v5132_v23 = vadd.f32 %v1738_v30, %v1570_v1 }
 0x225   : > { %v5134_v3 = vpop.f32.mrf.mxu3  ;;  %v2565_v44 = vadd.f32 %v4897_v40, %v2003_v50  ;;  %v5598_v50 = vld [vmem:[#allocation52_spill] sm:$0xff] }
 0x226   : > { %v2754_v11 = vld [vmem:[#allocation2 + $0x60] ss:$2 sm:$0xf]  ;;  %v2756_v60 = vld [vmem:[#allocation2 + $0x61] ss:$2 sm:$0xf] }
 0x227   : > { %2630 = vst.msk [vmem:[#allocation2 + $0x68] sm:$0xff] %vm2616_vm2, %v2565_v44  ;;  %v2761_v35 = vmax.f32 %v2754_v11, %v2756_v60 }
 0x228   : > { %v1572_v26 = vpop.f32.mrf.mxu1  ;;  %v1865_v59 = vpop.f32.mrf.mxu0 }
 0x229   : > { %v1573_v48 = vadd.f32 %v1572_v26, %v1404_v37  ;;  %v1866_v30 = vadd.f32 %v1865_v59, %v4910_v53  ;;  %v1743_v47 = vpop.f32.mrf.mxu2  ;;  %v3554_v37 = vld [vmem:[%s4392_s9 + $0x218] sm:$0xf0]  ;;  %v4285_v26 = vld [vmem:[%s4546_s17 + $0xc8] sm:$0xff] }
 0x22a   : > { %4094 = vmatmul.msk.bf16.gmra.mxu3 %vm2286_vm1, %v4284_v42  ;;  %v3712_v59 = vld [vmem:[%s4392_s9 + $0x348] sm:$0xf]  ;;  %v3557_v11 = vor.u32 %v4170_v21, %v3554_v37 }
 0x22b   : > { %v2004_v46 = vmax.f32 %v1866_v30, 0.0  ;;  %1611 = vmatmul.bf16.gmra.mxu1 %v3677_v19  ;;  %3921 = vmatmul.msk.bf16.gmra.mxu0 %vm1217_vm0, %v3541_v9  ;;  %v5148_v40 = vadd.f32 %v1741_v57, %v1573_v48  ;;  %v5599_v19 = vld [vmem:[#allocation53_spill] sm:$0xff]  ;;  %v4212_v48 = vld [vmem:[%s4392_s9 + $0x354] sm:$0xf0] }
 0x22c   : > { %v5600_v30 = vld [vmem:[#allocation5_spill] sm:$0xff]  ;;  %v3713_v38 = vor.u32 %v4212_v48, %v3712_v59 }
 0x22d   : > { %v5150_v14 = vpop.f32.mrf.mxu3  ;;  %v2566_v54 = vadd.f32 %v5596_v55, %v2004_v46  ;;  %v3693_v46 = vor.u32 %v4205_v22, %v3690_v56 }
 0x22e   : > { %1785 = vmatmul.bf16.gmra.mxu2 %v3697_v41  ;;  %v2758_v53 = vld [vmem:[#allocation2 + $0x68] ss:$2 sm:$0xf]  ;;  %v2760_v29 = vld [vmem:[#allocation2 + $0x69] ss:$2 sm:$0xf] }
 0x22f   : > { %v2762_v18 = vmax.f32 %v2758_v53, %v2760_v29  ;;  %2631 = vst.msk [vmem:[#allocation2 + $0x70] sm:$0xff] %vm2616_vm2, %v2566_v54  ;;  %v1409_v41 = vadd.f32 1.0, %v5600_v30  ;;  %v5601_v54 = vld [vmem:[#allocation54_spill] sm:$0xff]  ;;  %v4209_v30 = vld [vmem:[%s4392_s9 + $0x344] sm:$0xf] }
 0x230   : > { %v1574_v32 = vpop.f32.mrf.mxu1  ;;  %v1867_v1 = vpop.f32.mrf.mxu0 }
 0x231   : > { %v2763_v61 = vmax.f32 %v2761_v35, %v2762_v18  ;;  %v1575_v57 = vadd.f32 %v1574_v32, %v1406_v45  ;;  %v1868_v6 = vadd.f32 %v1867_v1, %v5598_v50  ;;  %v1746_v51 = vpop.f32.mrf.mxu2 }
 0x233   : > { %2764 = vst.msk [vmem:[%s4991_s23 + $0x18] sm:$0xf] %vm2691_vm3, %v2763_v61  ;;  %v2005_v0 = vmax.f32 %v1868_v6, 0.0  ;;  %v5159_v44 = vadd.f32 %v1743_v47, %v1575_v57  ;;  %v5602_v61 = vld [vmem:[#allocation55_spill] sm:$0xff] }
 0x235   : > { %v5161_v42 = vpop.f32.mrf.mxu3  ;;  %v2567_v9 = vadd.f32 %v5599_v19, %v2005_v0  ;;  %v5603_v0 = vld [vmem:[#allocation7_spill] sm:$0xff] }
 0x236   : > { %v2766_v18 = vld [vmem:[#allocation2 + $0x70] ss:$2 sm:$0xf]  ;;  %v2768_v32 = vld [vmem:[#allocation2 + $0x71] ss:$2 sm:$0xf] }
 0x237   : > { %2632 = vst.msk [vmem:[#allocation2 + $0x78] sm:$0xff] %vm2616_vm2, %v2567_v9  ;;  %v1411_v22 = vadd.f32 1.0, %v5603_v0  ;;  %v2773_v56 = vmax.f32 %v2766_v18, %v2768_v32  ;;  %v5605_v18 = vld [vmem:[#allocation10_spill] sm:$0xff] }
 0x238   : > { %v1577_v60 = vpop.f32.mrf.mxu1  ;;  %v1870_v55 = vpop.f32.mrf.mxu0  ;;  %v1414_v32 = vadd.f32 1.0, %v5605_v18 }
 0x239   : > { %v1578_v47 = vadd.f32 %v1577_v60, %v1409_v41  ;;  %v1871_v53 = vadd.f32 %v1870_v55, %v5601_v54  ;;  %v1748_v29 = vpop.f32.mrf.mxu2  ;;  %v4174_v60 = vld [vmem:[%s4392_s9 + $0x22c] sm:$0xf]  ;;  %v3570_v55 = vld [vmem:[%s4392_s9 + $0x238] sm:$0xf0] }
 0x23a   : > { %4095 = vmatmul.msk.bf16.gmra.mxu3 %vm2286_vm1, %v4285_v26 }
 0x23b   : > { %v2006_v45 = vmax.f32 %v1871_v53, 0.0  ;;  %1616 = vmatmul.bf16.gmra.mxu1 %v3693_v46  ;;  %3922 = vmatmul.msk.bf16.gmra.mxu0 %vm1217_vm0, %v3557_v11  ;;  %v5175_v35 = vadd.f32 %v1746_v51, %v1578_v47  ;;  %v3706_v11 = vld [vmem:[%s4392_s9 + $0x350] sm:$0xf0] }
 0x23c   : > { %v5604_v47 = vld [vmem:[#allocation57_spill] sm:$0xff] }
 0x23d   : > { %v5177_v1 = vpop.f32.mrf.mxu3  ;;  %v2568_v57 = vadd.f32 %v5602_v61, %v2006_v45  ;;  %v4286_v53 = vld [vmem:[%s4546_s17 + $0xd0] sm:$0xff]  ;;  %v4216_v45 = vld [vmem:[%s4392_s9 + $0x374] sm:$0xf0]  ;;  %v3573_v61 = vor.u32 %v4174_v60, %v3570_v55 }
 0x23e   : > { %1790 = vmatmul.bf16.gmra.mxu2 %v3713_v38  ;;  %v2770_v50 = vld [vmem:[#allocation2 + $0x78] ss:$2 sm:$0xf]  ;;  %v2772_v6 = vld [vmem:[#allocation2 + $0x79] ss:$2 sm:$0xf] }
 0x23f   : > { %v2774_v21 = vmax.f32 %v2770_v50, %v2772_v6  ;;  %2633 = vst.msk [vmem:[#allocation2 + $0x80] sm:$0xff] %vm2616_vm2, %v2568_v57  ;;  %v3728_v38 = vld [vmem:[%s4392_s9 + $0x368] sm:$0xf] }
 0x240   : > { %v1579_v51 = vpop.f32.mrf.mxu1  ;;  %v1872_v37 = vpop.f32.mrf.mxu0 }
 0x241   : > { %v2775_v19 = vmax.f32 %v2773_v56, %v2774_v21  ;;  %v1580_v9 = vadd.f32 %v1579_v51, %v1411_v22  ;;  %v1873_v26 = vadd.f32 %v1872_v37, %v4941_v33  ;;  %v1751_v59 = vpop.f32.mrf.mxu2  ;;  %v3709_v33 = vor.u32 %v4209_v30, %v3706_v11 }
 0x242   : > { %v3729_v22 = vor.u32 %v4216_v45, %v3728_v38  ;;  %v4213_v45 = vld [vmem:[%s4392_s9 + $0x364] sm:$0xf] }
 0x243   : > { %2776 = vst.msk [vmem:[%s4991_s23 + $0x1c] sm:$0xf] %vm2691_vm3, %v2775_v19  ;;  %v2007_v48 = vmax.f32 %v1873_v26, 0.0  ;;  %v5186_v41 = vadd.f32 %v1748_v29, %v1580_v9 }
 0x245   : > { %v5188_v46 = vpop.f32.mrf.mxu3  ;;  %v2569_v54 = vadd.f32 %v5604_v47, %v2007_v48  ;;  %v5606_v48 = vld [vmem:[#allocation13_spill] sm:$0xff] }
 0x246   : > { %v2778_v51 = vld [vmem:[#allocation2 + $0x80] ss:$2 sm:$0xf]  ;;  %v2780_v37 = vld [vmem:[#allocation2 + $0x81] ss:$2 sm:$0xf] }
 0x247   : > { %2634 = vst.msk [vmem:[#allocation2 + $0x88] sm:$0xff] %vm2616_vm2, %v2569_v54  ;;  %v1416_v30 = vadd.f32 1.0, %v5606_v48  ;;  %v2785_v11 = vmax.f32 %v2778_v51, %v2780_v37 }
 0x248   : > { %v1582_v57 = vpop.f32.mrf.mxu1  ;;  %v1875_v50 = vpop.f32.mrf.mxu0 }
 0x249   : > { %v1583_v29 = vadd.f32 %v1582_v57, %v1414_v32  ;;  %v1876_v6 = vadd.f32 %v1875_v50, %v4955_v15  ;;  %v1753_v0 = vpop.f32.mrf.mxu2  ;;  %v3586_v57 = vld [vmem:[%s4392_s9 + $0x258] sm:$0xf0] }
 0x24a   : > { %4096 = vmatmul.msk.bf16.gmra.mxu3 %vm2286_vm1, %v4286_v53 }
 0x24b   : > { %v2008_v56 = vmax.f32 %v1876_v6, 0.0  ;;  %1621 = vmatmul.bf16.gmra.mxu1 %v3709_v33  ;;  %3923 = vmatmul.msk.bf16.gmra.mxu0 %vm1217_vm0, %v3573_v61  ;;  %v5202_v21 = vadd.f32 %v1751_v59, %v1583_v29  ;;  %v3722_v33 = vld [vmem:[%s4392_s9 + $0x370] sm:$0xf0]  ;;  %v4178_v61 = vld [vmem:[%s4392_s9 + $0x24c] sm:$0xf]  ;;  %v4287_v29 = vld [vmem:[%s4546_s17 + $0xd8] sm:$0xff] }
 0x24c   : > { %v3744_v6 = vld [vmem:[%s4392_s9 + $0x388] sm:$0xf]  ;;  %v3589_v37 = vor.u32 %v4178_v61, %v3586_v57 }
 0x24d   : > { %v5204_v19 = vpop.f32.mrf.mxu3  ;;  %v2570_v9 = vadd.f32 %v4957_v52, %v2008_v56  ;;  %v5607_v56 = vld [vmem:[#allocation16_spill] sm:$0xff] }
 0x24e   : > { %1795 = vmatmul.bf16.gmra.mxu2 %v3729_v22  ;;  %v2782_v15 = vld [vmem:[#allocation2 + $0x88] ss:$2 sm:$0xf]  ;;  %v2784_v26 = vld [vmem:[#allocation2 + $0x89] ss:$2 sm:$0xf] }
 0x24f   : > { %v2786_v60 = vmax.f32 %v2782_v15, %v2784_v26  ;;  %2635 = vst.msk [vmem:[#allocation2 + $0x90] sm:$0xff] %vm2616_vm2, %v2570_v9  ;;  %v4220_v22 = vld [vmem:[%s4392_s9 + $0x394] sm:$0xf0]  ;;  %v1419_v51 = vadd.f32 1.0, %v5607_v56 }
 0x250   : > { %v1584_v59 = vpop.f32.mrf.mxu1  ;;  %v1877_v55 = vpop.f32.mrf.mxu0 }
 0x251   : > { %v2787_v47 = vmax.f32 %v2785_v11, %v2786_v60  ;;  %v1585_v52 = vadd.f32 %v1584_v59, %v1416_v30  ;;  %v1878_v54 = vadd.f32 %v1877_v55, %v4965_v20  ;;  %v1756_v53 = vpop.f32.mrf.mxu2  ;;  %v3725_v20 = vor.u32 %v4213_v45, %v3722_v33 }
 0x252   : > { %v3745_v30 = vor.u32 %v4220_v22, %v3744_v6  ;;  %v4217_v22 = vld [vmem:[%s4392_s9 + $0x384] sm:$0xf] }
 0x253   : > { %2788 = vst.msk [vmem:[%s4991_s23 + $0x20] sm:$0xf] %vm2691_vm3, %v2787_v47  ;;  %v2009_v38 = vmax.f32 %v1878_v54, 0.0  ;;  %v5213_v18 = vadd.f32 %v1753_v0, %v1585_v52  ;;  %v5608_v54 = vld [vmem:[#allocation19_spill] sm:$0xff] }
 0x255   : > { %v5215_v32 = vpop.f32.mrf.mxu3  ;;  %v2571_v50 = vadd.f32 %v4967_v10, %v2009_v38  ;;  %v1421_v38 = vadd.f32 1.0, %v5608_v54 }
 0x256   : > { %v2790_v60 = vld [vmem:[#allocation2 + $0x90] ss:$2 sm:$0xf]  ;;  %v2792_v59 = vld [vmem:[#allocation2 + $0x91] ss:$2 sm:$0xf] }
 0x257   : > { %2636 = vst.msk [vmem:[#allocation2 + $0x98] sm:$0xff] %vm2616_vm2, %v2571_v50  ;;  %v2797_v45 = vmax.f32 %v2790_v60, %v2792_v59 }
 0x258   : > { %v1587_v9 = vpop.f32.mrf.mxu1  ;;  %v1880_v15 = vpop.f32.mrf.mxu0 }
 0x259   : > { %v1588_v0 = vadd.f32 %v1587_v9, %v1419_v51  ;;  %v1881_v26 = vadd.f32 %v1880_v15, %v4981_v2  ;;  %v1758_v48 = vpop.f32.mrf.mxu2  ;;  %v3602_v9 = vld [vmem:[%s4392_s9 + $0x278] sm:$0xf0] }
 0x25a   : > { %4097 = vmatmul.msk.bf16.gmra.mxu3 %vm2286_vm1, %v4287_v29 }
 0x25b   : > { %v2010_v11 = vmax.f32 %v1881_v26, 0.0  ;;  %1626 = vmatmul.bf16.gmra.mxu1 %v3725_v20  ;;  %3924 = vmatmul.msk.bf16.gmra.mxu0 %vm1217_vm0, %v3589_v37  ;;  %v5229_v10 = vadd.f32 %v1756_v53, %v1588_v0  ;;  %v3738_v20 = vld [vmem:[%s4392_s9 + $0x390] sm:$0xf0]  ;;  %v4182_v37 = vld [vmem:[%s4392_s9 + $0x26c] sm:$0xf]  ;;  %v4288_v0 = vld [vmem:[%s4546_s17 + $0xe0] sm:$0xff] }
 0x25c   : > { %v3760_v26 = vld [vmem:[%s4392_s9 + $0x3a8] sm:$0xf]  ;;  %v3605_v59 = vor.u32 %v4182_v37, %v3602_v9 }
 0x25d   : > { %v5231_v55 = vpop.f32.mrf.mxu3  ;;  %v2572_v47 = vadd.f32 %v4983_v28, %v2010_v11  ;;  %v5609_v11 = vld [vmem:[#allocation22_spill] sm:$0xff] }
 0x25e   : > { %1800 = vmatmul.bf16.gmra.mxu2 %v3745_v30  ;;  %v2794_v2 = vld [vmem:[#allocation2 + $0x98] ss:$2 sm:$0xf]  ;;  %v2796_v52 = vld [vmem:[#allocation2 + $0x99] ss:$2 sm:$0xf] }
 0x25f   : > { %v2798_v33 = vmax.f32 %v2794_v2, %v2796_v52  ;;  %2637 = vst.msk [vmem:[#allocation2 + $0xa0] sm:$0xff] %vm2616_vm2, %v2572_v47  ;;  %v4224_v30 = vld [vmem:[%s4392_s9 + $0x3b4] sm:$0xf0]  ;;  %v1424_v60 = vadd.f32 1.0, %v5609_v11 }
 0x260   : > { %v1589_v53 = vpop.f32.mrf.mxu1  ;;  %v1882_v61 = vpop.f32.mrf.mxu0 }
 0x261   : > { %v2799_v57 = vmax.f32 %v2797_v45, %v2798_v33  ;;  %v1590_v28 = vadd.f32 %v1589_v53, %v1421_v38  ;;  %v1883_v50 = vadd.f32 %v1882_v61, %v4997_v7  ;;  %v1761_v29 = vpop.f32.mrf.mxu2  ;;  %v3741_v7 = vor.u32 %v4217_v22, %v3738_v20 }
 0x262   : > { %v3761_v38 = vor.u32 %v4224_v30, %v3760_v26  ;;  %v4221_v30 = vld [vmem:[%s4392_s9 + $0x3a4] sm:$0xf] }
 0x263   : > { %2800 = vst.msk [vmem:[%s4991_s23 + $0x24] sm:$0xf] %vm2691_vm3, %v2799_v57  ;;  %v2011_v6 = vmax.f32 %v1883_v50, 0.0  ;;  %v5240_v56 = vadd.f32 %v1758_v48, %v1590_v28  ;;  %v5610_v50 = vld [vmem:[#allocation25_spill] sm:$0xff] }
 0x265   : > { %v5242_v51 = vpop.f32.mrf.mxu3  ;;  %v2573_v15 = vadd.f32 %v4999_v8, %v2011_v6  ;;  %v1426_v6 = vadd.f32 1.0, %v5610_v50 }
 0x266   : > { %v2802_v33 = vld [vmem:[#allocation2 + $0xa0] ss:$2 sm:$0xf]  ;;  %v2804_v53 = vld [vmem:[#allocation2 + $0xa1] ss:$2 sm:$0xf] }
 0x267   : > { %2638 = vst.msk [vmem:[#allocation2 + $0xa8] sm:$0xff] %vm2616_vm2, %v2573_v15  ;;  %v2809_v22 = vmax.f32 %v2802_v33, %v2804_v53 }
 0x268   : > { %v1592_v47 = vpop.f32.mrf.mxu1  ;;  %v1885_v2 = vpop.f32.mrf.mxu0 }
 0x269   : > { %v1593_v48 = vadd.f32 %v1592_v47, %v1424_v60  ;;  %v1886_v52 = vadd.f32 %v1885_v2, %v5013_v5  ;;  %v1763_v54 = vpop.f32.mrf.mxu2  ;;  %v3618_v47 = vld [vmem:[%s4392_s9 + $0x298] sm:$0xf0] }
 0x26a   : > { %4098 = vmatmul.msk.bf16.gmra.mxu3 %vm2286_vm1, %v4288_v0 }
 0x26b   : > { %v2012_v45 = vmax.f32 %v1886_v52, 0.0  ;;  %1631 = vmatmul.bf16.gmra.mxu1 %v3741_v7  ;;  %3925 = vmatmul.msk.bf16.gmra.mxu0 %vm1217_vm0, %v3605_v59  ;;  %v5256_v8 = vadd.f32 %v1761_v29, %v1593_v48  ;;  %v3754_v7 = vld [vmem:[%s4392_s9 + $0x3b0] sm:$0xf0]  ;;  %v4186_v59 = vld [vmem:[%s4392_s9 + $0x28c] sm:$0xf] }
 0x26c   : > { %v4289_v48 = vld [vmem:[%s4546_s17 + $0xe8] sm:$0xff]  ;;  %v3621_v53 = vor.u32 %v4186_v59, %v3618_v47 }
 0x26d   : > { %v5258_v61 = vpop.f32.mrf.mxu3  ;;  %v2574_v57 = vadd.f32 %v5015_v4, %v2012_v45  ;;  %v3776_v52 = vld [vmem:[%s4392_s9 + $0x3c8] sm:$0xf] }
 0x26e   : > { %1805 = vmatmul.bf16.gmra.mxu2 %v3761_v38  ;;  %v2806_v5 = vld [vmem:[#allocation2 + $0xa8] ss:$2 sm:$0xf]  ;;  %v2808_v28 = vld [vmem:[#allocation2 + $0xa9] ss:$2 sm:$0xf] }
 0x26f   : > { %v2810_v20 = vmax.f32 %v2806_v5, %v2808_v28  ;;  %2639 = vst.msk [vmem:[#allocation2 + $0xb0] sm:$0xff] %vm2616_vm2, %v2574_v57  ;;  %v4228_v38 = vld [vmem:[%s4392_s9 + $0x3d4] sm:$0xf0]  ;;  %v5611_v45 = vld [vmem:[#allocation28_spill] sm:$0xff] }
 0x270   : > { %v1594_v29 = vpop.f32.mrf.mxu1  ;;  %v1887_v37 = vpop.f32.mrf.mxu0  ;;  %v1429_v33 = vadd.f32 1.0, %v5611_v45 }
 0x271   : > { %v2811_v9 = vmax.f32 %v2809_v22, %v2810_v20  ;;  %v1595_v4 = vadd.f32 %v1594_v29, %v1426_v6  ;;  %v1888_v15 = vadd.f32 %v1887_v37, %v5024_v25  ;;  %v1766_v0 = vpop.f32.mrf.mxu2  ;;  %v3757_v25 = vor.u32 %v4221_v30, %v3754_v7 }
 0x272   : > { %v3777_v6 = vor.u32 %v4228_v38, %v3776_v52  ;;  %v4225_v38 = vld [vmem:[%s4392_s9 + $0x3c4] sm:$0xf] }
 0x273   : > { %2812 = vst.msk [vmem:[%s4991_s23 + $0x28] sm:$0xf] %vm2691_vm3, %v2811_v9  ;;  %v2013_v26 = vmax.f32 %v1888_v15, 0.0  ;;  %v5267_v11 = vadd.f32 %v1763_v54, %v1595_v4  ;;  %v5612_v15 = vld [vmem:[#allocation31_spill] sm:$0xff] }
 0x275   : > { %v5269_v60 = vpop.f32.mrf.mxu3  ;;  %v2575_v2 = vadd.f32 %v5026_v27, %v2013_v26  ;;  %v1431_v26 = vadd.f32 1.0, %v5612_v15 }
 0x276   : > { %v2814_v20 = vld [vmem:[#allocation2 + $0xb0] ss:$2 sm:$0xf]  ;;  %v2816_v29 = vld [vmem:[#allocation2 + $0xb1] ss:$2 sm:$0xf] }
 0x277   : > { %2640 = vst.msk [vmem:[#allocation2 + $0xb8] sm:$0xff] %vm2616_vm2, %v2575_v2  ;;  %v2821_v30 = vmax.f32 %v2814_v20, %v2816_v29 }
 0x278   : > { %v1597_v57 = vpop.f32.mrf.mxu1  ;;  %v1890_v5 = vpop.f32.mrf.mxu0 }
 0x279   : > { %v1598_v54 = vadd.f32 %v1597_v57, %v1429_v33  ;;  %v1891_v28 = vadd.f32 %v1890_v5, %v5040_v49  ;;  %v1768_v50 = vpop.f32.mrf.mxu2  ;;  %v3634_v57 = vld [vmem:[%s4392_s9 + $0x2b8] sm:$0xf0] }
 0x27a   : > { %4099 = vmatmul.msk.bf16.gmra.mxu3 %vm2286_vm1, %v4289_v48 }
 0x27b   : > { %v2014_v22 = vmax.f32 %v1891_v28, 0.0  ;;  %1636 = vmatmul.bf16.gmra.mxu1 %v3757_v25  ;;  %3926 = vmatmul.msk.bf16.gmra.mxu0 %vm1217_vm0, %v3621_v53  ;;  %v5283_v27 = vadd.f32 %v1766_v0, %v1598_v54  ;;  %v3770_v25 = vld [vmem:[%s4392_s9 + $0x3d0] sm:$0xf0]  ;;  %v4190_v53 = vld [vmem:[%s4392_s9 + $0x2ac] sm:$0xf] }
 0x27c   : > { %v4290_v54 = vld [vmem:[%s4546_s17 + $0xf0] sm:$0xff]  ;;  %v3792_v28 = vld [vmem:[%s4392_s9 + $0x3e8] sm:$0xf]  ;;  %v3637_v29 = vor.u32 %v4190_v53, %v3634_v57 }
 0x27d   : > { %v5285_v37 = vpop.f32.mrf.mxu3  ;;  %v2576_v9 = vadd.f32 %v5042_v34, %v2014_v22  ;;  %v5613_v22 = vld [vmem:[#allocation34_spill] sm:$0xff] }
 0x27e   : > { %1810 = vmatmul.bf16.gmra.mxu2 %v3777_v6  ;;  %v2818_v49 = vld [vmem:[#allocation2 + $0xb8] ss:$2 sm:$0xf]  ;;  %v2820_v4 = vld [vmem:[#allocation2 + $0xb9] ss:$2 sm:$0xf] }
 0x27f   : > { %v2822_v7 = vmax.f32 %v2818_v49, %v2820_v4  ;;  %2641 = vst.msk [vmem:[#allocation2 + $0xc0] sm:$0xff] %vm2616_vm2, %v2576_v9  ;;  %v4232_v6 = vld [vmem:[%s4392_s9 + $0x3f4] sm:$0xf0]  ;;  %v1434_v20 = vadd.f32 1.0, %v5613_v22 }
 0x280   : > { %v1599_v0 = vpop.f32.mrf.mxu1  ;;  %v1892_v59 = vpop.f32.mrf.mxu0 }
 0x281   : > { %v2823_v47 = vmax.f32 %v2821_v30, %v2822_v7  ;;  %v1600_v34 = vadd.f32 %v1599_v0, %v1431_v26  ;;  %v1893_v2 = vadd.f32 %v1892_v59, %v5051_v16  ;;  %v1771_v48 = vpop.f32.mrf.mxu2  ;;  %v3773_v16 = vor.u32 %v4225_v38, %v3770_v25 }
 0x282   : > { %v3793_v26 = vor.u32 %v4232_v6, %v3792_v28  ;;  %v4229_v6 = vld [vmem:[%s4392_s9 + $0x3e4] sm:$0xf] }
 0x283   : > { %2824 = vst.msk [vmem:[%s4991_s23 + $0x2c] sm:$0xf] %vm2691_vm3, %v2823_v47  ;;  %v2015_v52 = vmax.f32 %v1893_v2, 0.0  ;;  %v5294_v45 = vadd.f32 %v1768_v50, %v1600_v34  ;;  %v5614_v2 = vld [vmem:[#allocation37_spill] sm:$0xff] }
 0x285   : > { %v5296_v33 = vpop.f32.mrf.mxu3  ;;  %v2577_v5 = vadd.f32 %v5053_v43, %v2015_v52  ;;  %v1436_v52 = vadd.f32 1.0, %v5614_v2 }
 0x286   : > { %v2826_v7 = vld [vmem:[#allocation2 + $0xc0] ss:$2 sm:$0xf]  ;;  %v2828_v0 = vld [vmem:[#allocation2 + $0xc1] ss:$2 sm:$0xf] }
 0x287   : > { %2642 = vst.msk [vmem:[#allocation2 + $0xc8] sm:$0xff] %vm2616_vm2, %v2577_v5  ;;  %v2833_v38 = vmax.f32 %v2826_v7, %v2828_v0 }
 0x288   : > { %v1602_v9 = vpop.f32.mrf.mxu1  ;;  %v1895_v49 = vpop.f32.mrf.mxu0 }
 0x289   : > { %v1603_v50 = vadd.f32 %v1602_v9, %v1434_v20  ;;  %v1896_v4 = vadd.f32 %v1895_v49, %v5067_v31  ;;  %v1773_v15 = vpop.f32.mrf.mxu2  ;;  %v3650_v9 = vld [vmem:[%s4392_s9 + $0x2d8] sm:$0xf0] }
 0x28a   : > { %4100 = vmatmul.msk.bf16.gmra.mxu3 %vm2286_vm1, %v4290_v54 }
 0x28b   : > { %v2016_v30 = vmax.f32 %v1896_v4, 0.0  ;;  %1641 = vmatmul.bf16.gmra.mxu1 %v3773_v16  ;;  %3927 = vmatmul.msk.bf16.gmra.mxu0 %vm1217_vm0, %v3637_v29  ;;  %v5310_v43 = vadd.f32 %v1771_v48, %v1603_v50  ;;  %v3786_v16 = vld [vmem:[%s4392_s9 + $0x3f0] sm:$0xf0]  ;;  %v4194_v29 = vld [vmem:[%s4392_s9 + $0x2cc] sm:$0xf]  ;;  %v4291_v50 = vld [vmem:[%s4546_s17 + $0xf8] sm:$0xff] }
 0x28c   : > { %v5615_v4 = vld [vmem:[#allocation40_spill] sm:$0xff]  ;;  %s3285_s9 = sshll.u32 %s5656_s19, 1 }
 0x28d   : > { %v5312_v59 = vpop.f32.mrf.mxu3  ;;  %v2578_v47 = vadd.f32 %v5069_v17, %v2016_v30  ;;  %v3653_v30 = vor.u32 %v4194_v29, %v3650_v9  ;;  %s263_s27 = scalar_lea.vmem %s5540_s5, %s3285_s9 }
 0x28e   : > { %1815 = vmatmul.bf16.gmra.mxu2 %v3793_v26  ;;  %v2830_v31 = vld [vmem:[#allocation2 + $0xc8] ss:$2 sm:$0xf]  ;;  %v2832_v34 = vld [vmem:[#allocation2 + $0xc9] ss:$2 sm:$0xf] }
 0x28f   : > { %v2834_v25 = vmax.f32 %v2830_v31, %v2832_v34  ;;  %2643 = vst.msk [vmem:[#allocation2 + $0xd0] sm:$0xff] %vm2616_vm2, %v2578_v47  ;;  %v1439_v26 = vadd.f32 1.0, %v5615_v4 }
 0x290   : > { %v1604_v48 = vpop.f32.mrf.mxu1  ;;  %v1897_v53 = vpop.f32.mrf.mxu0 }
 0x291   : > { %v2835_v57 = vmax.f32 %v2833_v38, %v2834_v25  ;;  %v1605_v5 = vadd.f32 %v1604_v48, %v1436_v52  ;;  %v1898_v17 = vadd.f32 %v1897_v53, %v5078_v62  ;;  %v1776_v54 = vpop.f32.mrf.mxu2  ;;  %v3789_v62 = vor.u32 %v4229_v6, %v3786_v16  ;;  %v5616_v48 = vld [vmem:[#allocation3_spill] sm:$0xff] }
 0x293   : > { %2836 = vst.msk [vmem:[%s4991_s23 + $0x30] sm:$0xf] %vm2691_vm3, %v2835_v57  ;;  %v2017_v28 = vmax.f32 %v1898_v17, 0.0  ;;  %v5321_v22 = vadd.f32 %v1773_v15, %v1605_v5  ;;  %v5617_v17 = vld [vmem:[#allocation43_spill] sm:$0xff] }
 0x295   : > { %v5323_v20 = vpop.f32.mrf.mxu3  ;;  %v2579_v49 = vadd.f32 %v5080_v12, %v2017_v28 }
 0x296   : > { %v2838_v12 = vld [vmem:[#allocation2 + $0xd0] ss:$2 sm:$0xf]  ;;  %v2840_v52 = vld [vmem:[#allocation2 + $0xd1] ss:$2 sm:$0xf] }
 0x297   : > { %2644 = vst.msk [vmem:[#allocation2 + $0xd8] sm:$0xff] %vm2616_vm2, %v2579_v49  ;;  %v2845_v28 = vmax.f32 %v2838_v12, %v2840_v52 }
 0x298   : > { %v1607_v7 = vpop.f32.mrf.mxu1  ;;  %v1900_v0 = vpop.f32.mrf.mxu0 }
 0x299   : > { %v1608_v47 = vadd.f32 %v1607_v7, %v1439_v26  ;;  %v1901_v15 = vadd.f32 %v1900_v0, %v5094_v13  ;;  %v1778_v31 = vpop.f32.mrf.mxu2  ;;  %v1441_v13 = vadd.f32 1.0, %v5617_v17  ;;  %v5618_v0 = vld [vmem:[#allocation4_spill] sm:$0xff] }
 0x29a   : > { %4101 = vmatmul.msk.bf16.gmra.mxu3 %vm2286_vm1, %v4291_v50 }
 0x29b   : > { %v1777_v34 = vadd.f32 %v1776_v54, %v1608_v47  ;;  %v2018_v2 = vmax.f32 %v1901_v15, 0.0  ;;  %1646 = vmatmul.bf16.gmra.mxu1 %v3789_v62  ;;  %3928 = vmatmul.msk.bf16.gmra.mxu0 %vm1217_vm0, %v3653_v30  ;;  %v5619_v15 = vld [vmem:[#allocation46_spill] sm:$0xff] }
 0x29d   : > { %v2507_v38 = vpop.f32.mrf.mxu3  ;;  %v2580_v25 = vadd.f32 %v5096_v24, %v2018_v2  ;;  %v1946_v53 = vadd.f32 %v5616_v48, %v1777_v34  ;;  %v1444_v34 = vadd.f32 1.0, %v5619_v15 }
 0x29e   : > { %v2842_v57 = vld [vmem:[#allocation2 + $0xd8] ss:$2 sm:$0xf]  ;;  %v2844_v5 = vld [vmem:[#allocation2 + $0xd9] ss:$2 sm:$0xf] }
 0x29f   : > { %v2846_v6 = vmax.f32 %v2842_v57, %v2844_v5  ;;  %2645 = vst.msk [vmem:[#allocation2 + $0xe0] sm:$0xff] %vm2616_vm2, %v2580_v25  ;;  %v2036_v54 = vmax.f32 %v1946_v53, 0.0 }
 0x2a0   : > { %v1609_v16 = vpop.f32.mrf.mxu1  ;;  %v1902_v29 = vpop.f32.mrf.mxu0 }
 0x2a1   : > { %v2847_v9 = vmax.f32 %v2845_v28, %v2846_v6  ;;  %v2598_v49 = vadd.f32 %v2507_v38, %v2036_v54  ;;  %v1610_v50 = vadd.f32 %v1609_v16, %v1441_v13  ;;  %v1903_v4 = vadd.f32 %v1902_v29, %v5105_v36  ;;  %v1781_v24 = vpop.f32.mrf.mxu2  ;;  %v5620_v13 = vld [vmem:[#allocation6_spill] sm:$0xff]  ;;  %v5621_v16 = vld [vmem:[#allocation49_spill] sm:$0xff] }
 0x2a2   : > { %v1446_v29 = vadd.f32 1.0, %v5621_v16 }
 0x2a3   : > { %2848 = vst.msk [vmem:[%s4991_s23 + $0x34] sm:$0xf] %vm2691_vm3, %v2847_v9  ;;  %v1779_v26 = vadd.f32 %v1778_v31, %v1610_v50  ;;  %v2019_v62 = vmax.f32 %v1903_v4, 0.0 }
 0x2a4   : > { %2663 = vst.msk [vmem:[#allocation2 + $0x170] sm:$0xff] %vm2616_vm2, %v2598_v49 }
 0x2a5   : > { %v2509_v30 = vpop.f32.mrf.mxu3  ;;  %v2581_v7 = vadd.f32 %v5107_v58, %v2019_v62  ;;  %v1948_v47 = vadd.f32 %v5618_v0, %v1779_v26 }
 0x2a6   : > { %v2850_v57 = vld [vmem:[#allocation2 + $0xe0] ss:$2 sm:$0xf]  ;;  %v2852_v58 = vld [vmem:[#allocation2 + $0xe1] ss:$2 sm:$0xf] }
 0x2a7   : > { %2646 = vst.msk [vmem:[#allocation2 + $0xe8] sm:$0xff] %vm2616_vm2, %v2581_v7  ;;  %v2037_v2 = vmax.f32 %v1948_v47, 0.0  ;;  %v2857_v9 = vmax.f32 %v2850_v57, %v2852_v58  ;;  %v5623_v57 = vld [vmem:[#allocation8_spill] sm:$0xff] }
 0x2a8   : > { %v1612_v12 = vpop.f32.mrf.mxu1  ;;  %v1905_v52 = vpop.f32.mrf.mxu0  ;;  %v1449_v58 = vadd.f32 1.0, %v5623_v57 }
 0x2a9   : > { %v2599_v36 = vadd.f32 %v2509_v30, %v2037_v2  ;;  %v1613_v38 = vadd.f32 %v1612_v12, %v1444_v34  ;;  %v1906_v25 = vadd.f32 %v1905_v52, %v5121_v63  ;;  %v1783_v31 = vpop.f32.mrf.mxu2 }
 0x2ab   : > { %2664 = vst.msk [vmem:[#allocation2 + $0x178] sm:$0xff] %vm2616_vm2, %v2599_v36  ;;  %v1782_v48 = vadd.f32 %v1781_v24, %v1613_v38  ;;  %v2020_v53 = vmax.f32 %v1906_v25, 0.0  ;;  %v2958_v50 = vld [vmem:[#allocation2 + $0x170] ss:$2 sm:$0xf] }
 0x2ac   : > { %v2960_v4 = vld [vmem:[#allocation2 + $0x171] ss:$2 sm:$0xf] }
 0x2ad   : > { %v2512_v5 = vpop.f32.mrf.mxu3  ;;  %v2582_v17 = vadd.f32 %v5123_v39, %v2020_v53  ;;  %v1951_v28 = vadd.f32 %v5620_v13, %v1782_v48  ;;  %v2965_v34 = vmax.f32 %v2958_v50, %v2960_v4  ;;  %v5622_v48 = vld [vmem:[#allocation9_spill] sm:$0xff]  ;;  %v5625_v50 = vld [vmem:[#allocation11_spill] sm:$0xff] }
 0x2ae   : > { %v2854_v6 = vld [vmem:[#allocation2 + $0xe8] ss:$2 sm:$0xf]  ;;  %v2856_v54 = vld [vmem:[#allocation2 + $0xe9] ss:$2 sm:$0xf] }
 0x2af   : > { %v2858_v49 = vmax.f32 %v2854_v6, %v2856_v54  ;;  %2647 = vst.msk [vmem:[#allocation2 + $0xf0] sm:$0xff] %vm2616_vm2, %v2582_v17  ;;  %v2038_v63 = vmax.f32 %v1951_v28, 0.0  ;;  %v1451_v4 = vadd.f32 1.0, %v5625_v50 }
 0x2b0   : > { %v1614_v24 = vpop.f32.mrf.mxu1  ;;  %v1907_v26 = vpop.f32.mrf.mxu0 }
 0x2b1   : > { %v2859_v62 = vmax.f32 %v2857_v9, %v2858_v49  ;;  %v2600_v30 = vadd.f32 %v2512_v5, %v2038_v63  ;;  %v1615_v7 = vadd.f32 %v1614_v24, %v1446_v29  ;;  %v1908_v39 = vadd.f32 %v1907_v26, %v5132_v23  ;;  %v1786_v0 = vpop.f32.mrf.mxu2  ;;  %v5624_v49 = vld [vmem:[#allocation12_spill] sm:$0xff] }
 0x2b2   : > { %v2962_v47 = vld [vmem:[#allocation2 + $0x178] ss:$2 sm:$0xf]  ;;  %v2964_v15 = vld [vmem:[#allocation2 + $0x179] ss:$2 sm:$0xf] }
 0x2b3   : > { %2860 = vst.msk [vmem:[%s4991_s23 + $0x38] sm:$0xf] %vm2691_vm3, %v2859_v62  ;;  %v2966_v2 = vmax.f32 %v2962_v47, %v2964_v15  ;;  %v1784_v12 = vadd.f32 %v1783_v31, %v1615_v7  ;;  %v2021_v52 = vmax.f32 %v1908_v39, 0.0 }
 0x2b4   : > { %2665 = vst.msk [vmem:[#allocation2 + $0x180] sm:$0xff] %vm2616_vm2, %v2600_v30 }
 0x2b5   : > { %v2514_v36 = vpop.f32.mrf.mxu3  ;;  %v2967_v38 = vmax.f32 %v2965_v34, %v2966_v2  ;;  %v2583_v25 = vadd.f32 %v5134_v3, %v2021_v52  ;;  %v1953_v53 = vadd.f32 %v5622_v48, %v1784_v12 }
 0x2b6   : > { %v2862_v29 = vld [vmem:[#allocation2 + $0xf0] ss:$2 sm:$0xf]  ;;  %v2864_v9 = vld [vmem:[#allocation2 + $0xf1] ss:$2 sm:$0xf] }
 0x2b7   : > { %2968 = vst.msk [vmem:[%s4991_s23 + $0x5c] sm:$0xf] %vm2691_vm3, %v2967_v38  ;;  %v2039_v23 = vmax.f32 %v1953_v53, 0.0  ;;  %v2869_v30 = vmax.f32 %v2862_v29, %v2864_v9 }
 0x2b8   : > { %2648 = vst.msk [vmem:[#allocation2 + $0xf8] sm:$0xff] %vm2616_vm2, %v2583_v25  ;;  %v1617_v5 = vpop.f32.mrf.mxu1  ;;  %v1910_v17 = vpop.f32.mrf.mxu0 }
 0x2b9   : > { %v2601_v13 = vadd.f32 %v2514_v36, %v2039_v23  ;;  %v1618_v31 = vadd.f32 %v1617_v5, %v1449_v58  ;;  %v1911_v28 = vadd.f32 %v1910_v17, %v5148_v40  ;;  %v1788_v6 = vpop.f32.mrf.mxu2  ;;  %v5626_v23 = vld [vmem:[#allocation15_spill] sm:$0xff] }
 0x2bb   : > { %v1787_v54 = vadd.f32 %v1786_v0, %v1618_v31  ;;  %2666 = vst.msk [vmem:[#allocation2 + $0x188] sm:$0xff] %vm2616_vm2, %v2601_v13  ;;  %v2022_v3 = vmax.f32 %v1911_v28, 0.0  ;;  %v2970_v47 = vld [vmem:[#allocation2 + $0x180] ss:$2 sm:$0xf]  ;;  %v5627_v13 = vld [vmem:[#allocation14_spill] sm:$0xff] }
 0x2bc   : > { %v2972_v15 = vld [vmem:[#allocation2 + $0x181] ss:$2 sm:$0xf]  ;;  %v1454_v31 = vadd.f32 1.0, %v5627_v13 }
 0x2bd   : > { %v2517_v16 = vpop.f32.mrf.mxu3  ;;  %v1956_v63 = vadd.f32 %v5624_v49, %v1787_v54  ;;  %v2584_v24 = vadd.f32 %v5150_v14, %v2022_v3  ;;  %v2977_v48 = vmax.f32 %v2970_v47, %v2972_v15 }
 0x2bf   : > { %v2866_v26 = vld [vmem:[#allocation2 + $0xf8] ss:$2 sm:$0xf]  ;;  %v2868_v62 = vld [vmem:[#allocation2 + $0xf9] ss:$2 sm:$0xf] }
 0x2c0   : > { %v2870_v7 = vmax.f32 %v2866_v26, %v2868_v62  ;;  %2649 = vst.msk [vmem:[#allocation2 + $0x100] sm:$0xff] %vm2616_vm2, %v2584_v24  ;;  %v2040_v40 = vmax.f32 %v1956_v63, 0.0  ;;  %v1619_v39 = vpop.f32.mrf.mxu1  ;;  %v1912_v0 = vpop.f32.mrf.mxu0  ;;  %v5628_v26 = vld [vmem:[#allocation18_spill] sm:$0xff] }
 0x2c1   : > { %v1620_v34 = vadd.f32 %v1619_v39, %v1451_v4  ;;  %v1913_v2 = vadd.f32 %v1912_v0, %v5159_v44  ;;  %v1791_v12 = vpop.f32.mrf.mxu2 }
 0x2c2   : > { %v2871_v52 = vmax.f32 %v2869_v30, %v2870_v7  ;;  %v2602_v36 = vadd.f32 %v2517_v16, %v2040_v40  ;;  %v2974_v14 = vld [vmem:[#allocation2 + $0x188] ss:$2 sm:$0xf]  ;;  %v2976_v38 = vld [vmem:[#allocation2 + $0x189] ss:$2 sm:$0xf] }
 0x2c3   : > { %v1789_v25 = vadd.f32 %v1788_v6, %v1620_v34  ;;  %v2978_v53 = vmax.f32 %v2974_v14, %v2976_v38  ;;  %v2023_v57 = vmax.f32 %v1913_v2, 0.0  ;;  %v5629_v30 = vld [vmem:[#allocation17_spill] sm:$0xff] }
 0x2c4   : > { %2872 = vst.msk [vmem:[%s4991_s23 + $0x3c] sm:$0xf] %vm2691_vm3, %v2871_v52  ;;  %v1456_v7 = vadd.f32 1.0, %v5629_v30  ;;  %v5633_v30 = vld [vmem:[#allocation23_spill] sm:$0xff] }
 0x2c5   : > { %v2519_v58 = vpop.f32.mrf.mxu3  ;;  %2667 = vst.msk [vmem:[#allocation2 + $0x190] sm:$0xff] %vm2616_vm2, %v2602_v36  ;;  %v1958_v5 = vadd.f32 %v5626_v23, %v1789_v25  ;;  %v2979_v17 = vmax.f32 %v2977_v48, %v2978_v53  ;;  %v2585_v44 = vadd.f32 %v5161_v42, %v2023_v57 }
 0x2c7   : > { %2980 = vst.msk [vmem:[%s4991_s23 + $0x60] sm:$0xf] %vm2691_vm3, %v2979_v17  ;;  %v2041_v28 = vmax.f32 %v1958_v5, 0.0  ;;  %v2874_v42 = vld [vmem:[#allocation2 + $0x100] ss:$2 sm:$0xf] }
 0x2c8   : > { %v1622_v54 = vpop.f32.mrf.mxu1  ;;  %v1915_v6 = vpop.f32.mrf.mxu0  ;;  %2650 = vst.msk [vmem:[#allocation2 + $0x108] sm:$0xff] %vm2616_vm2, %v2585_v44  ;;  %v2876_v4 = vld [vmem:[#allocation2 + $0x101] ss:$2 sm:$0xf]  ;;  %v5630_v17 = vld [vmem:[#allocation21_spill] sm:$0xff] }
 0x2c9   : > { %v1623_v3 = vadd.f32 %v1622_v54, %v1454_v31  ;;  %v1916_v16 = vadd.f32 %v1915_v6, %v5175_v35  ;;  %v1793_v29 = vpop.f32.mrf.mxu2  ;;  %v2603_v9 = vadd.f32 %v2519_v58, %v2041_v28  ;;  %v2881_v39 = vmax.f32 %v2874_v42, %v2876_v4 }
 0x2cb   : > { %v1792_v49 = vadd.f32 %v1791_v12, %v1623_v3  ;;  %v2024_v63 = vmax.f32 %v1916_v16, 0.0  ;;  %2668 = vst.msk [vmem:[#allocation2 + $0x198] sm:$0xff] %vm2616_vm2, %v2603_v9 }
 0x2cc   : > { %v2982_v34 = vld [vmem:[#allocation2 + $0x190] ss:$2 sm:$0xf]  ;;  %v2984_v2 = vld [vmem:[#allocation2 + $0x191] ss:$2 sm:$0xf] }
 0x2cd   : > { %v2522_v50 = vpop.f32.mrf.mxu3  ;;  %v2586_v24 = vadd.f32 %v5177_v1, %v2024_v63  ;;  %v1961_v62 = vadd.f32 %v5628_v26, %v1792_v49  ;;  %v2989_v57 = vmax.f32 %v2982_v34, %v2984_v2 }
 0x2cf   : > { %2651 = vst.msk [vmem:[#allocation2 + $0x110] sm:$0xff] %vm2616_vm2, %v2586_v24  ;;  %v2042_v40 = vmax.f32 %v1961_v62, 0.0  ;;  %v2878_v35 = vld [vmem:[#allocation2 + $0x108] ss:$2 sm:$0xf] }
 0x2d0   : > { %v2880_v0 = vld [vmem:[#allocation2 + $0x109] ss:$2 sm:$0xf]  ;;  %v1624_v47 = vpop.f32.mrf.mxu1  ;;  %v1917_v15 = vpop.f32.mrf.mxu0 }
 0x2d1   : > { %v2882_v12 = vmax.f32 %v2878_v35, %v2880_v0  ;;  %v2604_v52 = vadd.f32 %v2522_v50, %v2042_v40  ;;  %v1625_v36 = vadd.f32 %v1624_v47, %v1456_v7  ;;  %v1918_v1 = vadd.f32 %v1917_v15, %v5186_v41  ;;  %v1796_v14 = vpop.f32.mrf.mxu2  ;;  %v5631_v41 = vld [vmem:[#allocation20_spill] sm:$0xff] }
 0x2d2   : > { %v2986_v25 = vld [vmem:[#allocation2 + $0x198] ss:$2 sm:$0xf]  ;;  %v2988_v48 = vld [vmem:[#allocation2 + $0x199] ss:$2 sm:$0xf] }
 0x2d3   : > { %v2883_v38 = vmax.f32 %v2881_v39, %v2882_v12  ;;  %v1794_v53 = vadd.f32 %v1793_v29, %v1625_v36  ;;  %v2990_v58 = vmax.f32 %v2986_v25, %v2988_v48  ;;  %2669 = vst.msk [vmem:[#allocation2 + $0x1a0] sm:$0xff] %vm2616_vm2, %v2604_v52  ;;  %v2025_v23 = vmax.f32 %v1918_v1, 0.0 }
 0x2d4   : > { %v1459_v28 = vadd.f32 1.0, %v5631_v41  ;;  %v1461_v7 = vadd.f32 1.0, %v5633_v30 }
 0x2d5   : > { %v2524_v5 = vpop.f32.mrf.mxu3  ;;  %2884 = vst.msk [vmem:[%s4991_s23 + $0x40] sm:$0xf] %vm2691_vm3, %v2883_v38  ;;  %v1963_v44 = vadd.f32 %v5630_v17, %v1794_v53  ;;  %v2991_v13 = vmax.f32 %v2989_v57, %v2990_v58  ;;  %v2587_v31 = vadd.f32 %v5188_v46, %v2025_v23  ;;  %v5632_v46 = vld [vmem:[#allocation24_spill] sm:$0xff]  ;;  %v5634_v23 = vld [vmem:[#allocation27_spill] sm:$0xff] }
 0x2d6   : > { %v2886_v24 = vld [vmem:[#allocation2 + $0x110] ss:$2 sm:$0xf]  ;;  %v2888_v26 = vld [vmem:[#allocation2 + $0x111] ss:$2 sm:$0xf] }
 0x2d7   : > { %v2043_v54 = vmax.f32 %v1963_v44, 0.0  ;;  %2992 = vst.msk [vmem:[%s4991_s23 + $0x64] sm:$0xf] %vm2691_vm3, %v2991_v13  ;;  %v2893_v36 = vmax.f32 %v2886_v24, %v2888_v26  ;;  %v5635_v44 = vld [vmem:[#allocation26_spill] sm:$0xff] }
 0x2d8   : > { %v1627_v6 = vpop.f32.mrf.mxu1  ;;  %v1920_v3 = vpop.f32.mrf.mxu0  ;;  %2652 = vst.msk [vmem:[#allocation2 + $0x118] sm:$0xff] %vm2616_vm2, %v2587_v31  ;;  %v1464_v13 = vadd.f32 1.0, %v5635_v44 }
 0x2d9   : > { %v2605_v16 = vadd.f32 %v2524_v5, %v2043_v54  ;;  %v1628_v29 = vadd.f32 %v1627_v6, %v1459_v28  ;;  %v1921_v9 = vadd.f32 %v1920_v3, %v5202_v21  ;;  %v1798_v49 = vpop.f32.mrf.mxu2 }
 0x2da   : > { %v2994_v40 = vld [vmem:[#allocation2 + $0x1a0] ss:$2 sm:$0xf]  ;;  %v2996_v47 = vld [vmem:[#allocation2 + $0x1a1] ss:$2 sm:$0xf] }
 0x2db   : > { %v1797_v63 = vadd.f32 %v1796_v14, %v1628_v29  ;;  %2670 = vst.msk [vmem:[#allocation2 + $0x1a8] sm:$0xff] %vm2616_vm2, %v2605_v16  ;;  %v2026_v50 = vmax.f32 %v1921_v9, 0.0  ;;  %v3001_v25 = vmax.f32 %v2994_v40, %v2996_v47 }
 0x2dd   : > { %v2527_v42 = vpop.f32.mrf.mxu3  ;;  %v1966_v4 = vadd.f32 %v5632_v46, %v1797_v63  ;;  %v2588_v62 = vadd.f32 %v5204_v19, %v2026_v50 }
 0x2df   : > { %v2044_v39 = vmax.f32 %v1966_v4, 0.0  ;;  %v2890_v35 = vld [vmem:[#allocation2 + $0x118] ss:$2 sm:$0xf]  ;;  %2653 = vst.msk [vmem:[#allocation2 + $0x120] sm:$0xff] %vm2616_vm2, %v2588_v62  ;;  %v5637_v4 = vld [vmem:[#allocation29_spill] sm:$0xff] }
 0x2e0   : > { %v1629_v21 = vpop.f32.mrf.mxu1  ;;  %v1922_v0 = vpop.f32.mrf.mxu0  ;;  %v2892_v15 = vld [vmem:[#allocation2 + $0x119] ss:$2 sm:$0xf]  ;;  %v1466_v24 = vadd.f32 1.0, %v5637_v4 }
 0x2e1   : > { %v2606_v34 = vadd.f32 %v2527_v42, %v2044_v39  ;;  %v1630_v2 = vadd.f32 %v1629_v21, %v1461_v7  ;;  %v1923_v12 = vadd.f32 %v1922_v0, %v5213_v18  ;;  %v1801_v52 = vpop.f32.mrf.mxu2  ;;  %v2894_v19 = vmax.f32 %v2890_v35, %v2892_v15 }
 0x2e2   : > { %v2998_v1 = vld [vmem:[#allocation2 + $0x1a8] ss:$2 sm:$0xf]  ;;  %v3000_v14 = vld [vmem:[#allocation2 + $0x1a9] ss:$2 sm:$0xf] }
 0x2e3   : > { %v1799_v38 = vadd.f32 %v1798_v49, %v1630_v2  ;;  %v2895_v48 = vmax.f32 %v2893_v36, %v2894_v19  ;;  %v3002_v53 = vmax.f32 %v2998_v1, %v3000_v14  ;;  %2671 = vst.msk [vmem:[#allocation2 + $0x1b0] sm:$0xff] %vm2616_vm2, %v2606_v34  ;;  %v2027_v57 = vmax.f32 %v1923_v12, 0.0 }
 0x2e5   : > { %v2529_v58 = vpop.f32.mrf.mxu3  ;;  %v1968_v5 = vadd.f32 %v5634_v23, %v1799_v38  ;;  %2896 = vst.msk [vmem:[%s4991_s23 + $0x44] sm:$0xf] %vm2691_vm3, %v2895_v48  ;;  %v3003_v17 = vmax.f32 %v3001_v25, %v3002_v53  ;;  %v2589_v18 = vadd.f32 %v5215_v32, %v2027_v57  ;;  %v5636_v32 = vld [vmem:[#allocation30_spill] sm:$0xff]  ;;  %v5638_v38 = vld [vmem:[#allocation33_spill] sm:$0xff]  ;;  %v5639_v53 = vld [vmem:[#allocation32_spill] sm:$0xff] }
 0x2e6   : > { %v2898_v50 = vld [vmem:[#allocation2 + $0x120] ss:$2 sm:$0xf]  ;;  %v2900_v42 = vld [vmem:[#allocation2 + $0x121] ss:$2 sm:$0xf] }
 0x2e7   : > { %3004 = vst.msk [vmem:[%s4991_s23 + $0x68] sm:$0xf] %vm2691_vm3, %v3003_v17  ;;  %v2045_v31 = vmax.f32 %v1968_v5, 0.0  ;;  %v2905_v15 = vmax.f32 %v2898_v50, %v2900_v42  ;;  %v1469_v57 = vadd.f32 1.0, %v5639_v53  ;;  %v5644_v53 = vld [vmem:[#allocation42_spill] sm:$0xff] }
 0x2e8   : > { %v1632_v41 = vpop.f32.mrf.mxu1  ;;  %v1925_v28 = vpop.f32.mrf.mxu0  ;;  %2654 = vst.msk [vmem:[#allocation2 + $0x128] sm:$0xff] %vm2616_vm2, %v2589_v18 }
 0x2e9   : > { %v1633_v54 = vadd.f32 %v1632_v41, %v1464_v13  ;;  %v1926_v6 = vadd.f32 %v1925_v28, %v5229_v10  ;;  %v1803_v3 = vpop.f32.mrf.mxu2  ;;  %v2607_v16 = vadd.f32 %v2529_v58, %v2045_v31 }
 0x2ea   : > { %v3006_v26 = vld [vmem:[#allocation2 + $0x1b0] ss:$2 sm:$0xf]  ;;  %v3008_v40 = vld [vmem:[#allocation2 + $0x1b1] ss:$2 sm:$0xf] }
 0x2eb   : > { %v1802_v29 = vadd.f32 %v1801_v52, %v1633_v54  ;;  %2672 = vst.msk [vmem:[#allocation2 + $0x1b8] sm:$0xff] %vm2616_vm2, %v2607_v16  ;;  %v2028_v9 = vmax.f32 %v1926_v6, 0.0  ;;  %v3013_v52 = vmax.f32 %v3006_v26, %v3008_v40 }
 0x2ed   : > { %v2532_v49 = vpop.f32.mrf.mxu3  ;;  %v1971_v63 = vadd.f32 %v5636_v32, %v1802_v29  ;;  %v2590_v46 = vadd.f32 %v5231_v55, %v2028_v9  ;;  %v5641_v29 = vld [vmem:[#allocation35_spill] sm:$0xff] }
 0x2ee   : > { %v1471_v9 = vadd.f32 1.0, %v5641_v29 }
 0x2ef   : > { %v2046_v62 = vmax.f32 %v1971_v63, 0.0  ;;  %v2902_v30 = vld [vmem:[#allocation2 + $0x128] ss:$2 sm:$0xf]  ;;  %2655 = vst.msk [vmem:[#allocation2 + $0x130] sm:$0xff] %vm2616_vm2, %v2590_v46 }
 0x2f0   : > { %v1634_v10 = vpop.f32.mrf.mxu1  ;;  %v1927_v7 = vpop.f32.mrf.mxu0  ;;  %v2904_v39 = vld [vmem:[#allocation2 + $0x129] ss:$2 sm:$0xf] }
 0x2f1   : > { %v2608_v35 = vadd.f32 %v2532_v49, %v2046_v62  ;;  %v1635_v21 = vadd.f32 %v1634_v10, %v1466_v24  ;;  %v1928_v0 = vadd.f32 %v1927_v7, %v5240_v56  ;;  %v1806_v47 = vpop.f32.mrf.mxu2  ;;  %v2906_v55 = vmax.f32 %v2902_v30, %v2904_v39 }
 0x2f2   : > { %v3010_v34 = vld [vmem:[#allocation2 + $0x1b8] ss:$2 sm:$0xf]  ;;  %v3012_v2 = vld [vmem:[#allocation2 + $0x1b9] ss:$2 sm:$0xf] }
 0x2f3   : > { %v1804_v12 = vadd.f32 %v1803_v3, %v1635_v21  ;;  %v2907_v36 = vmax.f32 %v2905_v15, %v2906_v55  ;;  %v3014_v19 = vmax.f32 %v3010_v34, %v3012_v2  ;;  %2673 = vst.msk [vmem:[#allocation2 + $0x1c0] sm:$0xff] %vm2616_vm2, %v2608_v35  ;;  %v2029_v1 = vmax.f32 %v1928_v0, 0.0  ;;  %v5642_v15 = vld [vmem:[#allocation39_spill] sm:$0xff]  ;;  %v5643_v2 = vld [vmem:[#allocation38_spill] sm:$0xff] }
 0x2f5   : > { %v2534_v14 = vpop.f32.mrf.mxu3  ;;  %v1973_v25 = vadd.f32 %v5638_v38, %v1804_v12  ;;  %2908 = vst.msk [vmem:[%s4991_s23 + $0x48] sm:$0xf] %vm2691_vm3, %v2907_v36  ;;  %v3015_v48 = vmax.f32 %v3013_v52, %v3014_v19  ;;  %v2591_v56 = vadd.f32 %v5242_v51, %v2029_v1  ;;  %v5640_v51 = vld [vmem:[#allocation36_spill] sm:$0xff]  ;;  %v1474_v12 = vadd.f32 1.0, %v5643_v2 }
 0x2f6   : > { %v2910_v6 = vld [vmem:[#allocation2 + $0x130] ss:$2 sm:$0xf]  ;;  %v2912_v3 = vld [vmem:[#allocation2 + $0x131] ss:$2 sm:$0xf] }
 0x2f7   : > { %3016 = vst.msk [vmem:[%s4991_s23 + $0x6c] sm:$0xf] %vm2691_vm3, %v3015_v48  ;;  %v2047_v58 = vmax.f32 %v1973_v25, 0.0  ;;  %v2917_v62 = vmax.f32 %v2910_v6, %v2912_v3 }
 0x2f8   : > { %v1637_v23 = vpop.f32.mrf.mxu1  ;;  %v1930_v5 = vpop.f32.mrf.mxu0  ;;  %2656 = vst.msk [vmem:[#allocation2 + $0x138] sm:$0xff] %vm2616_vm2, %v2591_v56 }
 0x2f9   : > { %v1638_v17 = vadd.f32 %v1637_v23, %v1469_v57  ;;  %v1931_v18 = vadd.f32 %v1930_v5, %v5256_v8  ;;  %v1808_v44 = vpop.f32.mrf.mxu2  ;;  %v2609_v13 = vadd.f32 %v2534_v14, %v2047_v58 }
 0x2fa   : > { %v3018_v49 = vld [vmem:[#allocation2 + $0x1c0] ss:$2 sm:$0xf]  ;;  %v3020_v42 = vld [vmem:[#allocation2 + $0x1c1] ss:$2 sm:$0xf] }
 0x2fb   : > { %v1807_v31 = vadd.f32 %v1806_v47, %v1638_v17  ;;  %2674 = vst.msk [vmem:[#allocation2 + $0x1c8] sm:$0xff] %vm2616_vm2, %v2609_v13  ;;  %v2030_v41 = vmax.f32 %v1931_v18, 0.0  ;;  %v3025_v39 = vmax.f32 %v3018_v49, %v3020_v42  ;;  %v5645_v17 = vld [vmem:[#allocation41_spill] sm:$0xff] }
 0x2fc   : > { %v1476_v18 = vadd.f32 1.0, %v5645_v17  ;;  %v5646_v42 = vld [vmem:[#allocation45_spill] sm:$0xff]  ;;  %v3065_v17 = vld [vmem:[%s4991_s23] sm:$0xff] }
 0x2fd   : > { %v2537_v28 = vpop.f32.mrf.mxu3  ;;  %v1976_v54 = vadd.f32 %v5640_v51, %v1807_v31  ;;  %v2592_v16 = vadd.f32 %v5258_v61, %v2030_v41 }
 0x2ff   : > { %v2048_v32 = vmax.f32 %v1976_v54, 0.0  ;;  %v2914_v63 = vld [vmem:[#allocation2 + $0x138] ss:$2 sm:$0xf]  ;;  %2657 = vst.msk [vmem:[#allocation2 + $0x140] sm:$0xff] %vm2616_vm2, %v2592_v16 }
 0x300   : > { %v1639_v8 = vpop.f32.mrf.mxu1  ;;  %v1932_v50 = vpop.f32.mrf.mxu0  ;;  %v2916_v46 = vld [vmem:[#allocation2 + $0x139] ss:$2 sm:$0xf] }
 0x301   : > { %v2610_v4 = vadd.f32 %v2537_v28, %v2048_v32  ;;  %v1640_v24 = vadd.f32 %v1639_v8, %v1471_v9  ;;  %v1933_v26 = vadd.f32 %v1932_v50, %v5267_v11  ;;  %v2918_v30 = vmax.f32 %v2914_v63, %v2916_v46  ;;  %v1811_v40 = vpop.f32.mrf.mxu2 }
 0x302   : > { %v3022_v61 = vld [vmem:[#allocation2 + $0x1c8] ss:$2 sm:$0xf]  ;;  %v3024_v10 = vld [vmem:[#allocation2 + $0x1c9] ss:$2 sm:$0xf] }
 0x303   : > { %v1809_v7 = vadd.f32 %v1808_v44, %v1640_v24  ;;  %v2919_v35 = vmax.f32 %v2917_v62, %v2918_v30  ;;  %v3026_v21 = vmax.f32 %v3022_v61, %v3024_v10  ;;  %2675 = vst.msk [vmem:[#allocation2 + $0x1d0] sm:$0xff] %vm2616_vm2, %v2610_v4  ;;  %v2031_v0 = vmax.f32 %v1933_v26, 0.0  ;;  %v5647_v26 = vld [vmem:[#allocation44_spill] sm:$0xff] }
 0x304   : > { %v1479_v62 = vadd.f32 1.0, %v5647_v26 }
 0x305   : > { %v2539_v47 = vpop.f32.mrf.mxu3  ;;  %v1978_v55 = vadd.f32 %v5642_v15, %v1809_v7  ;;  %2920 = vst.msk [vmem:[%s4991_s23 + $0x4c] sm:$0xf] %vm2691_vm3, %v2919_v35  ;;  %v3027_v34 = vmax.f32 %v3025_v39, %v3026_v21  ;;  %v2593_v11 = vadd.f32 %v5269_v60, %v2031_v0 }
 0x306   : > { %v2922_v58 = vld [vmem:[#allocation2 + $0x140] ss:$2 sm:$0xf]  ;;  %v2924_v23 = vld [vmem:[#allocation2 + $0x141] ss:$2 sm:$0xf] }
 0x307   : > { %3028 = vst.msk [vmem:[%s4991_s23 + $0x70] sm:$0xf] %vm2691_vm3, %v3027_v34  ;;  %v2049_v52 = vmax.f32 %v1978_v55, 0.0  ;;  %v2929_v16 = vmax.f32 %v2922_v58, %v2924_v23 }
 0x308   : > { %v1642_v36 = vpop.f32.mrf.mxu1  ;;  %v1935_v19 = vpop.f32.mrf.mxu0  ;;  %2658 = vst.msk [vmem:[#allocation2 + $0x148] sm:$0xff] %vm2616_vm2, %v2593_v11  ;;  %v5649_v11 = vld [vmem:[#allocation47_spill] sm:$0xff] }
 0x309   : > { %v1643_v1 = vadd.f32 %v1642_v36, %v1474_v12  ;;  %v1936_v14 = vadd.f32 %v1935_v19, %v5283_v27  ;;  %v2611_v38 = vadd.f32 %v2539_v47, %v2049_v52  ;;  %v1813_v57 = vpop.f32.mrf.mxu2  ;;  %v5648_v47 = vld [vmem:[#allocation48_spill] sm:$0xff]  ;;  %v1481_v2 = vadd.f32 1.0, %v5649_v11  ;;  %v3073_v11 = vld [vmem:[%s4991_s23 + $0x40] sm:$0xff] }
 0x30a   : > { %v3030_v44 = vld [vmem:[#allocation2 + $0x1d0] ss:$2 sm:$0xf]  ;;  %v3032_v28 = vld [vmem:[#allocation2 + $0x1d1] ss:$2 sm:$0xf] }
 0x30b   : > { %v1812_v25 = vadd.f32 %v1811_v40, %v1643_v1  ;;  %2676 = vst.msk [vmem:[#allocation2 + $0x1d8] sm:$0xff] %vm2616_vm2, %v2611_v38  ;;  %v2032_v48 = vmax.f32 %v1936_v14, 0.0  ;;  %v3037_v32 = vmax.f32 %v3030_v44, %v3032_v28 }
 0x30d   : > { %v2542_v56 = vpop.f32.mrf.mxu3  ;;  %v1981_v60 = vadd.f32 %v5644_v53, %v1812_v25  ;;  %v2594_v5 = vadd.f32 %v5285_v37, %v2032_v48  ;;  %v3066_v53 = vld [vmem:[%s4991_s23 + $0x8] sm:$0xff] }
 0x30f   : > { %v2050_v13 = vmax.f32 %v1981_v60, 0.0  ;;  %v2926_v31 = vld [vmem:[#allocation2 + $0x148] ss:$2 sm:$0xf]  ;;  %2659 = vst.msk [vmem:[#allocation2 + $0x150] sm:$0xff] %vm2616_vm2, %v2594_v5 }
 0x310   : > { %v1644_v27 = vpop.f32.mrf.mxu1  ;;  %v1937_v41 = vpop.f32.mrf.mxu0  ;;  %v2928_v51 = vld [vmem:[#allocation2 + $0x149] ss:$2 sm:$0xf] }
 0x311   : > { %v2612_v54 = vadd.f32 %v2542_v56, %v2050_v13  ;;  %v1645_v6 = vadd.f32 %v1644_v27, %v1476_v18  ;;  %v1938_v3 = vadd.f32 %v1937_v41, %v5294_v45  ;;  %v2930_v29 = vmax.f32 %v2926_v31, %v2928_v51  ;;  %v1816_v30 = vpop.f32.mrf.mxu2  ;;  %v3067_v27 = vld [vmem:[%s4991_s23 + $0x10] sm:$0xff]  ;;  %v5650_v41 = vld [vmem:[#allocation50_spill] sm:$0xff] }
 0x312   : > { %v3034_v37 = vld [vmem:[#allocation2 + $0x1d8] ss:$2 sm:$0xf]  ;;  %v3036_v9 = vld [vmem:[#allocation2 + $0x1d9] ss:$2 sm:$0xf]  ;;  %v3119_v31 = vmul.f32 %v3066_v53, %v3066_v53 }
 0x313   : > { %v1814_v49 = vadd.f32 %v1813_v57, %v1645_v6  ;;  %v2931_v63 = vmax.f32 %v2929_v16, %v2930_v29  ;;  %v3038_v8 = vmax.f32 %v3034_v37, %v3036_v9  ;;  %2677 = vst.msk [vmem:[#allocation2 + $0x1e0] sm:$0xff] %vm2616_vm2, %v2612_v54  ;;  %v2033_v50 = vmax.f32 %v1938_v3, 0.0  ;;  %v3068_v51 = vld [vmem:[%s4991_s23 + $0x18] sm:$0xff]  ;;  %v3069_v54 = vld [vmem:[%s4991_s23 + $0x20] sm:$0xff]  ;;  %v3070_v29 = vld [vmem:[%s4991_s23 + $0x28] sm:$0xff] }
 0x314   : > { %v3118_v16 = vmul.f32 %v3065_v17, %v3065_v17  ;;  %v3071_v37 = vld [vmem:[%s4991_s23 + $0x30] sm:$0xff]  ;;  %v3082_v9 = vsel %vm2616_vm2, %v3066_v53, 0.0 }
 0x315   : > { %v1983_v46 = vadd.f32 %v5646_v42, %v1814_v49  ;;  %v2544_v4 = vpop.f32.mrf.mxu3  ;;  %2932 = vst.msk [vmem:[%s4991_s23 + $0x50] sm:$0xf] %vm2691_vm3, %v2931_v63  ;;  %v3039_v24 = vmax.f32 %v3037_v32, %v3038_v8  ;;  %v2595_v45 = vadd.f32 %v5296_v33, %v2033_v50  ;;  %v3120_v49 = vmul.f32 %v3067_v27, %v3067_v27 }
 0x316   : > { %v2934_v15 = vld [vmem:[#allocation2 + $0x150] ss:$2 sm:$0xf]  ;;  %v2936_v55 = vld [vmem:[#allocation2 + $0x151] ss:$2 sm:$0xf]  ;;  %v3121_v50 = vmul.f32 %v3068_v51, %v3068_v51  ;;  %v3122_v42 = vmul.f32 %v3069_v54, %v3069_v54 }
 0x317   : > { %3040 = vst.msk [vmem:[%s4991_s23 + $0x74] sm:$0xf] %vm2691_vm3, %v3039_v24  ;;  %v2051_v61 = vmax.f32 %v1983_v46, 0.0  ;;  %v3081_v63 = vsel %vm2616_vm2, %v3065_v17, 0.0  ;;  %v3135_v8 = vsel %vm2616_vm2, %v3119_v31, 0.0  ;;  %v3124_v24 = vmul.f32 %v3071_v37, %v3071_v37 }
 0x318   : > { %v1647_v10 = vpop.f32.mrf.mxu1  ;;  %v1940_v7 = vpop.f32.mrf.mxu0  ;;  %2660 = vst.msk [vmem:[#allocation2 + $0x158] sm:$0xff] %vm2616_vm2, %v2595_v45  ;;  %v3134_v26 = vsel %vm2616_vm2, %v3118_v16, 0.0 }
 0x319   : > { %v1648_v40 = vadd.f32 %v1647_v10, %v1479_v62  ;;  %v1941_v39 = vadd.f32 %v1940_v7, %v5310_v43  ;;  %v2613_v35 = vadd.f32 %v2544_v4, %v2051_v61  ;;  %v1818_v57 = vpop.f32.mrf.mxu2  ;;  %v3123_v4 = vmul.f32 %v3070_v29, %v3070_v29 }
 0x31a   : > { %v3042_v12 = vld [vmem:[#allocation2 + $0x1e0] ss:$2 sm:$0xf]  ;;  %v3044_v14 = vld [vmem:[#allocation2 + $0x1e1] ss:$2 sm:$0xf]  ;;  %v3083_v62 = vadd.f32 %v3082_v9, %v3081_v63 }
 0x31b   : > { %v1817_v21 = vadd.f32 %v1816_v30, %v1648_v40  ;;  %2678 = vst.msk [vmem:[#allocation2 + $0x1e8] sm:$0xff] %vm2616_vm2, %v2613_v35  ;;  %v2034_v0 = vmax.f32 %v1941_v39, 0.0  ;;  %v3049_v18 = vmax.f32 %v3042_v12, %v3044_v14  ;;  %v3136_v30 = vadd.f32 %v3135_v8, %v3134_v26 }
 0x31c   : > { %v3137_v61 = vsel %vm2616_vm2, %v3120_v49, 0.0  ;;  %v3086_v10 = vsel %vm2616_vm2, %v3068_v51, 0.0  ;;  %v3139_v40 = vsel %vm2616_vm2, %v3121_v50, 0.0  ;;  %v3088_v39 = vsel %vm2616_vm2, %v3069_v54, 0.0 }
 0x31d   : > { %v1986_v33 = vadd.f32 %v5648_v47, %v1817_v21  ;;  %v2596_v34 = vadd.f32 %v5312_v59, %v2034_v0  ;;  %v2547_v36 = vpop.f32.mrf.mxu3  ;;  %v2941_v59 = vmax.f32 %v2934_v15, %v2936_v55  ;;  %v3141_v35 = vsel %vm2616_vm2, %v3122_v42, 0.0  ;;  %v3072_v15 = vld [vmem:[%s4991_s23 + $0x38] sm:$0xff]  ;;  %v3078_v42 = vld [vmem:[%s4991_s23 + $0x68] sm:$0xff] }
 0x31e   : > { %v3090_v21 = vsel %vm2616_vm2, %v3070_v29, 0.0  ;;  %v3143_v0 = vsel %vm2616_vm2, %v3123_v4, 0.0  ;;  %v3092_v47 = vsel %vm2616_vm2, %v3071_v37, 0.0  ;;  %v3138_v55 = vadd.f32 %v3137_v61, %v3136_v30 }
 0x31f   : > { %v2052_v52 = vmax.f32 %v1986_v33, 0.0  ;;  %v2938_v19 = vld [vmem:[#allocation2 + $0x158] ss:$2 sm:$0xf]  ;;  %2661 = vst.msk [vmem:[#allocation2 + $0x160] sm:$0xff] %vm2616_vm2, %v2596_v34  ;;  %v3145_v33 = vsel %vm2616_vm2, %v3124_v24, 0.0 }
 0x320   : > { %v1649_v43 = vpop.f32.mrf.mxu1  ;;  %v1942_v1 = vpop.f32.mrf.mxu0  ;;  %v2940_v38 = vld [vmem:[#allocation2 + $0x159] ss:$2 sm:$0xf] }
 0x321   : > { %v2614_v25 = vadd.f32 %v2547_v36, %v2052_v52  ;;  %v1650_v48 = vadd.f32 %v1649_v43, %v1481_v2  ;;  %v1943_v56 = vadd.f32 %v1942_v1, %v5321_v22  ;;  %v2942_v60 = vmax.f32 %v2938_v19, %v2940_v38 }
 0x322   : > { %v3046_v58 = vld [vmem:[#allocation2 + $0x1e8] ss:$2 sm:$0xf]  ;;  %v3048_v23 = vld [vmem:[#allocation2 + $0x1e9] ss:$2 sm:$0xf]  ;;  %v3140_v19 = vadd.f32 %v3139_v40, %v3138_v55 }
 0x323   : > { %v1819_v5 = vadd.f32 %v1818_v57, %v1650_v48  ;;  %v2943_v44 = vmax.f32 %v2941_v59, %v2942_v60  ;;  %v3050_v13 = vmax.f32 %v3046_v58, %v3048_v23  ;;  %2679 = vst.msk [vmem:[#allocation2 + $0x1f0] sm:$0xff] %vm2616_vm2, %v2614_v25  ;;  %v2035_v22 = vmax.f32 %v1943_v56, 0.0  ;;  %v3074_v48 = vld [vmem:[%s4991_s23 + $0x48] sm:$0xff] }
 0x324   : > { %v3094_v38 = vsel %vm2616_vm2, %v3072_v15, 0.0  ;;  %v3125_v25 = vmul.f32 %v3072_v15, %v3072_v15  ;;  %v3142_v59 = vadd.f32 %v3141_v35, %v3140_v19  ;;  %v3126_v23 = vmul.f32 %v3073_v11, %v3073_v11 }
 0x325   : > { %v1988_v28 = vadd.f32 %v5650_v41, %v1819_v5  ;;  %2944 = vst.msk [vmem:[%s4991_s23 + $0x54] sm:$0xf] %vm2691_vm3, %v2943_v44  ;;  %v3051_v6 = vmax.f32 %v3049_v18, %v3050_v13  ;;  %v2597_v3 = vadd.f32 %v5323_v20, %v2035_v22  ;;  %v2549_v46 = vpop.f32.mrf.mxu3  ;;  %v3084_v20 = vsel %vm2616_vm2, %v3067_v27, 0.0 }
 0x326   : > { %v3085_v7 = vadd.f32 %v3084_v20, %v3083_v62  ;;  %v2946_v2 = vld [vmem:[#allocation2 + $0x160] ss:$2 sm:$0xf]  ;;  %v2948_v12 = vld [vmem:[#allocation2 + $0x161] ss:$2 sm:$0xf]  ;;  %v3144_v44 = vadd.f32 %v3143_v0, %v3142_v59  ;;  %v3127_v41 = vmul.f32 %v3074_v48, %v3074_v48 }
 0x327   : > { %3052 = vst.msk [vmem:[%s4991_s23 + $0x78] sm:$0xf] %vm2691_vm3, %v3051_v6  ;;  %v2053_v32 = vmax.f32 %v1988_v28, 0.0  ;;  %v2953_v56 = vmax.f32 %v2946_v2, %v2948_v12  ;;  %v3147_v31 = vsel %vm2616_vm2, %v3125_v25, 0.0  ;;  %v3096_v27 = vsel %vm2616_vm2, %v3073_v11, 0.0  ;;  %v3079_v62 = vld [vmem:[%s4991_s23 + $0x70] sm:$0xff] }
 0x328   : > { %2662 = vst.msk [vmem:[#allocation2 + $0x168] sm:$0xff] %vm2616_vm2, %v2597_v3  ;;  %v3087_v34 = vadd.f32 %v3086_v10, %v3085_v7  ;;  %v3146_v51 = vadd.f32 %v3145_v33, %v3144_v44  ;;  %v3149_v6 = vsel %vm2616_vm2, %v3126_v23, 0.0  ;;  %v3098_v3 = vsel %vm2616_vm2, %v3074_v48, 0.0 }
 0x329   : > { %v2615_v45 = vadd.f32 %v2549_v46, %v2053_v32  ;;  %v3151_v9 = vsel %vm2616_vm2, %v3127_v41, 0.0  ;;  %v3077_v32 = vld [vmem:[%s4991_s23 + $0x60] sm:$0xff]  ;;  %v3131_v7 = vmul.f32 %v3078_v42, %v3078_v42  ;;  %v3132_v33 = vmul.f32 %v3079_v62, %v3079_v62 }
 0x32a   : > { %v3054_v52 = vld [vmem:[#allocation2 + $0x1f0] ss:$2 sm:$0xf]  ;;  %v3089_v43 = vadd.f32 %v3088_v39, %v3087_v34  ;;  %v3056_v1 = vld [vmem:[#allocation2 + $0x1f1] ss:$2 sm:$0xf]  ;;  %v3148_v29 = vadd.f32 %v3147_v31, %v3146_v51  ;;  %v3130_v24 = vmul.f32 %v3077_v32, %v3077_v32 }
 0x32b   : > { %2680 = vst.msk [vmem:[#allocation2 + $0x1f8] sm:$0xff] %vm2616_vm2, %v2615_v45  ;;  %v3061_v5 = vmax.f32 %v3054_v52, %v3056_v1  ;;  %v3104_v10 = vsel %vm2616_vm2, %v3077_v32, 0.0  ;;  %v3159_v34 = vsel %vm2616_vm2, %v3131_v7, 0.0  ;;  %v3108_v11 = vsel %vm2616_vm2, %v3079_v62, 0.0 }
 0x32c   : > { %v3091_v60 = vadd.f32 %v3090_v21, %v3089_v43  ;;  %v3075_v22 = vld [vmem:[%s4991_s23 + $0x50] sm:$0xff]  ;;  %v3150_v63 = vadd.f32 %v3149_v6, %v3148_v29  ;;  %v3157_v0 = vsel %vm2616_vm2, %v3130_v24, 0.0 }
 0x32d   : > { %v3128_v16 = vmul.f32 %v3075_v22, %v3075_v22  ;;  %v3100_v49 = vsel %vm2616_vm2, %v3075_v22, 0.0 }
 0x32e   : > { %v3093_v13 = vadd.f32 %v3092_v47, %v3091_v60  ;;  %v3152_v46 = vadd.f32 %v3151_v9, %v3150_v63  ;;  %v3106_v47 = vsel %vm2616_vm2, %v3078_v42, 0.0 }
 0x32f   : > { %v2950_v36 = vld [vmem:[#allocation2 + $0x168] ss:$2 sm:$0xf]  ;;  %v2952_v14 = vld [vmem:[#allocation2 + $0x169] ss:$2 sm:$0xf] }
 0x330   : > { %v2954_v53 = vmax.f32 %v2950_v36, %v2952_v14  ;;  %v3095_v54 = vadd.f32 %v3094_v38, %v3093_v13  ;;  %v3153_v50 = vsel %vm2616_vm2, %v3128_v16, 0.0  ;;  %v3161_v36 = vsel %vm2616_vm2, %v3132_v33, 0.0 }
 0x331   : > { %v3154_v30 = vadd.f32 %v3153_v50, %v3152_v46 }
 0x332   : > { %v3058_v57 = vld [vmem:[#allocation2 + $0x1f8] ss:$2 sm:$0xf]  ;;  %v3060_v58 = vld [vmem:[#allocation2 + $0x1f9] ss:$2 sm:$0xf]  ;;  %v2955_v17 = vmax.f32 %v2953_v56, %v2954_v53  ;;  %v3097_v37 = vadd.f32 %v3096_v27, %v3095_v54 }
 0x333   : > { %v3062_v18 = vmax.f32 %v3058_v57, %v3060_v58 }
 0x334   : > { %2956 = vst.msk [vmem:[%s4991_s23 + $0x58] sm:$0xf] %vm2691_vm3, %v2955_v17  ;;  %v3099_v8 = vadd.f32 %v3098_v3, %v3097_v37 }
 0x335   : > { %v3063_v28 = vmax.f32 %v3061_v5, %v3062_v18 }
 0x336   : > { %v3101_v20 = vadd.f32 %v3100_v49, %v3099_v8 }
 0x337   : > { %3064 = vst.msk [vmem:[%s4991_s23 + $0x7c] sm:$0xf] %vm2691_vm3, %v3063_v28 }
 0x33b   : > { %v3076_v4 = vld [vmem:[%s4991_s23 + $0x58] sm:$0xff] }
 0x33c   : > { %v3102_v45 = vsel %vm2616_vm2, %v3076_v4, 0.0  ;;  %v3129_v26 = vmul.f32 %v3076_v4, %v3076_v4 }
 0x33d   : > { %v3103_v61 = vadd.f32 %v3102_v45, %v3101_v20 }
 0x33e   : > { %v3155_v40 = vsel %vm2616_vm2, %v3129_v26, 0.0  ;;  %v3080_v21 = vld [vmem:[%s4991_s23 + $0x78] sm:$0xff] }
 0x33f   : > { %v3105_v39 = vadd.f32 %v3104_v10, %v3103_v61  ;;  %v3156_v35 = vadd.f32 %v3155_v40, %v3154_v30  ;;  %v3133_v2 = vmul.f32 %v3080_v21, %v3080_v21  ;;  %v3110_v19 = vsel %vm2616_vm2, %v3080_v21, 0.0 }
 0x341   : > { %v3158_v15 = vadd.f32 %v3157_v0, %v3156_v35  ;;  %v3107_v55 = vadd.f32 %v3106_v47, %v3105_v39  ;;  %v3163_v14 = vsel %vm2616_vm2, %v3133_v2, 0.0 }
 0x343   : > { %v3109_v12 = vadd.f32 %v3108_v11, %v3107_v55  ;;  %v3160_v52 = vadd.f32 %v3159_v34, %v3158_v15 }
 0x345   : > { %v3111_v43 = vadd.f32 %v3110_v19, %v3109_v12  ;;  %v3162_v1 = vadd.f32 %v3161_v36, %v3160_v52 }
 0x347   : > { %v3112_v38 = vrot.slane %v3111_v43, 4  ;;  %v3164_v25 = vadd.f32 %v3163_v14, %v3162_v1 }
 0x349   : > { %v3113_v48 = vadd.f32 %v3112_v38, %v3111_v43  ;;  %v3165_v56 = vrot.slane %v3164_v25, 4 }
 0x34b   : > { %v3114_v53 = vrot.slane %v3113_v48, 2  ;;  %v3166_v59 = vadd.f32 %v3165_v56, %v3164_v25 }
 0x34d   : > { %v3115_v60 = vadd.f32 %v3114_v53, %v3113_v48  ;;  %v3167_v57 = vrot.slane %v3166_v59, 2 }
 0x34f   : > { %v3116_v58 = vrot.slane %v3115_v60, 1  ;;  %v3168_v23 = vadd.f32 %v3167_v57, %v3166_v59 }
 0x351   : > { %v3117_v5 = vadd.f32 %v3116_v58, %v3115_v60  ;;  %v3169_v17 = vrot.slane %v3168_v23, 1 }
 0x353   : > { %v3170_v18 = vadd.f32 %v3169_v17, %v3168_v23  ;;  %3172 = vst.msk [vmem:[%s263_s27] sm:$0x1] %vm3171_vm4, %v3117_v5 }
 0x355   : > { %3173 = vst.msk [vmem:[%s263_s27 + $0x1] sm:$0x1] %vm3171_vm4, %v3170_v18 }
 0x356 PF: > { %s16_s18 = sadd.s32 1, %s4326_s18  }
 0x357   : > { %p13_p6 = scmp.ge.s32.totalorder %s16_s18, 6  }
 0x359   :  { %15 = sbr.rel (!%p13_p6) target bundleno = 1 (0x1), region = 208 }

// kernel: rkhs_vnn_forward.5
= control target key start
LH: loop header
LB: loop body
LE: loop exit
PB: predicated region body
PF: predicated region fallthrough
CT: control target
= control target key end

     0   :  { %s3524_s18 = smov 0   ;;  %s4260_s0 = inlined_call_operand.vmem [shape: bf16[512,648], index: 0, kind: input, shape index: {}]   ;;  %s4261_s1 = inlined_call_operand.vmem [shape: bf16[648,48], index: 1, kind: input, shape index: {}]   ;;  %s4262_s2 = inlined_call_operand.vmem [shape: bf16[512,24], index: 2, kind: input, shape index: {}]   ;;  %s4263_s3 = inlined_call_operand.vmem [shape: bf16[24,48], index: 3, kind: input, shape index: {}]   ;;  %s4264_s4 = inlined_call_operand.vmem [shape: f32[128,48], index: 4, kind: output, shape index: {0}]   ;;  %s4265_s5 = inlined_call_operand.vmem [shape: f32[2,2,48], index: 5, kind: output, shape index: {1}]  }
   0x1 LB: > { %s3530_s19 = sadd.s32 4294967295, %s3492_s18   ;;  %p2646_p0 = scmp.ge.s32.totalorder %s3492_s18, 1  ;;  %s3492_s18 = sphi %s3524_s18, %s16_s18  }
   0x2   : > { %p203_p1 = scmp.lt.s32.totalorder %s3492_s18, 3 }
   0x4   : > { %p204_p2 = pnand %p2646_p0, %p203_p1 }
   0x5   : > { %s2647_s13 = sshll.u32 (!%p204_p2), %s3530_s19, 5  ;;  %p260_p5 = scmp.lt.s32.totalorder (!%p204_p2), %s3530_s19, 1 }
   0x6   : > { %207 = sbr.rel (%p204_p2) target bundleno = 665 (0x299), region = 36  ;;  %p242_p3 = scmp.lt.s32.totalorder (!%p204_p2), %s2647_s13, 63 }
   0xb   : > { %v3403_v0 = vld [vmem:[%s4261_s1 + $0x38] sm:$0xff]  ;;  %v3402_v3 = vld [vmem:[%s4261_s1 + $0x30] sm:$0xff]  ;;  %v3401_v6 = vld [vmem:[%s4261_s1 + $0x28] sm:$0xff]  ;;  %s4267_s13 = smov (!%p242_p3, %s2647_s13), 63  ;;  %vm1198_vm0 = vcmask 1043456   ;;  %vm1892_vm1 = vcmask 195584  }
   0xc   : > { %v3540_v1 = vld [vmem:[%s4261_s1 + $0xb8] sm:$0xff]  ;;  %1202 = vmatpush.bf16.msra.mxu0 %v3403_v0  ;;  %3453 = vmatpush.bf16.msra.mxu3 %v3403_v0  ;;  %v3555_v4 = vld [vmem:[%s4261_s1 + $0xb0] sm:$0xff]  ;;  %v3570_v7 = vld [vmem:[%s4261_s1 + $0xa8] sm:$0xff]  ;;  %s3477_s30 = smul.u32 24, %s4267_s13  ;;  %s2650_s24 = sshll.u32 %s4267_s13, 2  ;;  %vm1149_vm2 = vcmask 64512  }
   0xd   : > { %v3545_v2 = vld [vmem:[%s4261_s1 + $0x78] sm:$0xff]  ;;  %1380 = vmatpush.bf16.msra.mxu2 %v3540_v1  ;;  %v3560_v5 = vld [vmem:[%s4261_s1 + $0x70] sm:$0xff]  ;;  %v3575_v8 = vld [vmem:[%s4261_s1 + $0x68] sm:$0xff]  ;;  %s3868_s27 = scalar_lea.vmem %s4262_s2, %s2650_s24  ;;  %s2651_s13 = sshll.u32 %s3530_s19, 3  ;;  %vm2065_vm3 = vcmask 392192   ;;  %vm2108_vm4 = vcmask 386048  }
   0xe   : > { %1291 = vmatpush.bf16.msra.mxu1 %v3545_v2  ;;  %v3400_v9 = vld [vmem:[%s4261_s1 + $0x20] sm:$0xff]  ;;  %v3399_v12 = vld [vmem:[%s4261_s1 + $0x18] sm:$0xff]  ;;  %v3398_v15 = vld [vmem:[%s4261_s1 + $0x10] sm:$0xff]  ;;  %s3638_s21 = scalar_lea.vmem %s4260_s0, %s3477_s30  ;;  %p255_p4 = scmp.lt.s32.totalorder %s2651_s13, 15  ;;  %vm2540_vm5 = vcmask 385024  }
   0xf   : > { %v3586_v10 = vld [vmem:[%s4261_s1 + $0xa0] sm:$0xff]  ;;  %v3603_v13 = vld [vmem:[%s4261_s1 + $0x98] sm:$0xff]  ;;  %v3619_v16 = vld [vmem:[%s4261_s1 + $0x90] sm:$0xff]  ;;  %s4271_s19 = smov (!%p260_p5, %s3530_s19), 1 }
  0x10   : > { %1203 = vmatpush.bf16.msra.mxu0 %v3402_v3  ;;  %3454 = vmatpush.bf16.msra.mxu3 %v3402_v3  ;;  %v3591_v11 = vld [vmem:[%s4261_s1 + $0x60] sm:$0xff]  ;;  %v3608_v14 = vld [vmem:[%s4261_s1 + $0x58] sm:$0xff]  ;;  %v3624_v17 = vld [vmem:[%s4261_s1 + $0x50] sm:$0xff]  ;;  %s4269_s13 = smov (!%p255_p4, %s2651_s13), 15 }
  0x11   : > { %1381 = vmatpush.bf16.msra.mxu2 %v3555_v4  ;;  %v1802_v18 = vld [vmem:[%s4263_s3 + $0x8] sm:$0xf]  ;;  %v441_v19 = vld [vmem:[%s4261_s1 + $0x140] sm:$0xf]  ;;  %v3303_v29 = vld [vmem:[%s3638_s21 + $0x14] sm:$0xf0] }
  0x12   : > { %1292 = vmatpush.bf16.msra.mxu1 %v3560_v5  ;;  %v3397_v20 = vld [vmem:[%s4261_s1 + $0x8] sm:$0xff]  ;;  %v3396_v23 = vld [vmem:[%s4261_s1] sm:$0xff]  ;;  %v1888_v24 = vunpack.c.l.b16 %v1802_v18  ;;  %v1067_v25 = vunpack.c.l.b16 %v441_v19  ;;  %v3375_v31 = vld [vmem:[%s3638_s21 + $0x254] sm:$0xf0]  ;;  %s2652_s28 = sshll.u32 %s4269_s13, 3 }
  0x13   : > { %v3645_v21 = vld [vmem:[%s4261_s1 + $0x88] sm:$0xff]  ;;  %v3658_v26 = vld [vmem:[%s4261_s1 + $0x80] sm:$0xff]  ;;  %v2658_v35 = vld [vmem:[%s3638_s21 + $0x18] sm:$0xf0]  ;;  %s4049_s6 = scalar_lea.vmem %s4264_s4, %s2652_s28 }
  0x14   : > { %1204 = vmatpush.bf16.msra.mxu0 %v3401_v6  ;;  %3455 = vmatpush.bf16.msra.mxu3 %v3401_v6  ;;  %v3650_v22 = vld [vmem:[%s4261_s1 + $0x48] sm:$0xff]  ;;  %v3663_v27 = vld [vmem:[%s4261_s1 + $0x40] sm:$0xff]  ;;  %v3435_v36 = vld [vmem:[%s4261_s1 + $0x138] sm:$0xff]  ;;  %v1890_v37 = vpack.c.b16 %v1888_v24, %v1888_v24  ;;  %v1108_v38 = vpack.c.b16 %v1067_v25, %v1067_v25 }
  0x15   : > { %1382 = vmatpush.bf16.msra.mxu2 %v3570_v7  ;;  %v2656_v28 = vld [vmem:[%s3638_s21] sm:$0xf]  ;;  %v2664_v32 = vld [vmem:[%s3638_s21 + $0x8] sm:$0xf]  ;;  %v3300_v34 = vld [vmem:[%s3638_s21 + $0x4] sm:$0xf] }
  0x16   : > { %1293 = vmatpush.bf16.msra.mxu1 %v3575_v8  ;;  %v2944_v30 = vld [vmem:[%s3638_s21 + $0x240] sm:$0xf]  ;;  %v2657_v39 = vor.u32 %v3303_v29, %v2656_v28  ;;  %v2661_v42 = vor.u32 %v3300_v34, %v2658_v35  ;;  %v1942_v43 = vsel %vm1198_vm0, %v1890_v37, 0  ;;  %v1200_v44 = vsel %vm1198_vm0, %v1108_v38, 0  ;;  %v3434_v45 = vld [vmem:[%s4261_s1 + $0x130] sm:$0xff]  ;;  %v3433_v58 = vld [vmem:[%s4261_s1 + $0x128] sm:$0xff] }
  0x17   : > { %v3304_v33 = vld [vmem:[%s3638_s21 + $0x1c] sm:$0xf0]  ;;  %v2945_v40 = vor.u32 %v3375_v31, %v2944_v30  ;;  %v2680_v46 = vld [vmem:[%s3638_s21 + $0x30] sm:$0xf]  ;;  %v3309_v47 = vld [vmem:[%s3638_s21 + $0x44] sm:$0xf0] }
  0x18   : > { %1205 = vmatpush.bf16.msra.mxu0 %v3400_v9  ;;  %3456 = vmatpush.bf16.msra.mxu3 %v3400_v9  ;;  %v2665_v41 = vor.u32 %v3304_v33, %v2664_v32  ;;  %v2968_v48 = vld [vmem:[%s3638_s21 + $0x270] sm:$0xf]  ;;  %v3381_v49 = vld [vmem:[%s3638_s21 + $0x284] sm:$0xf0]  ;;  %v2688_v50 = vld [vmem:[%s3638_s21 + $0x38] sm:$0xf]  ;;  %v2681_v54 = vor.u32 %v3309_v47, %v2680_v46 }
  0x19   : > { %1383 = vmatpush.bf16.msra.mxu2 %v3586_v10  ;;  %v3310_v51 = vld [vmem:[%s3638_s21 + $0x4c] sm:$0xf0]  ;;  %v3306_v52 = vld [vmem:[%s3638_s21 + $0x34] sm:$0xf]  ;;  %v2682_v53 = vld [vmem:[%s3638_s21 + $0x48] sm:$0xf0]  ;;  %v2969_v55 = vor.u32 %v3381_v49, %v2968_v48 }
  0x1a   : > { %1294 = vmatpush.bf16.msra.mxu1 %v3591_v11  ;;  %v2689_v56 = vor.u32 %v3310_v51, %v2688_v50  ;;  %v2685_v57 = vor.u32 %v3306_v52, %v2682_v53  ;;  %v2704_v59 = vld [vmem:[%s3638_s21 + $0x60] sm:$0xf]  ;;  %v3315_v60 = vld [vmem:[%s3638_s21 + $0x74] sm:$0xf0]  ;;  %v2712_v63 = vld [vmem:[%s3638_s21 + $0x68] sm:$0xf] }
  0x1b   : > { %v2992_v61 = vld [vmem:[%s3638_s21 + $0x2a0] sm:$0xf]  ;;  %v3387_v62 = vld [vmem:[%s3638_s21 + $0x2b4] sm:$0xf0]  ;;  %v2706_v3 = vld [vmem:[%s3638_s21 + $0x78] sm:$0xf0] }
  0x1c   : > { %1206 = vmatpush.bf16.msra.mxu0 %v3399_v12  ;;  %3457 = vmatpush.bf16.msra.mxu3 %v3399_v12  ;;  %v3316_v0 = vld [vmem:[%s3638_s21 + $0x7c] sm:$0xf0]  ;;  %v2993_v6 = vor.u32 %v3387_v62, %v2992_v61  ;;  %v3321_v12 = vld [vmem:[%s3638_s21 + $0xa4] sm:$0xf0]  ;;  %v3322_v18 = vld [vmem:[%s3638_s21 + $0xac] sm:$0xf0] }
  0x1d   : > { %1384 = vmatpush.bf16.msra.mxu2 %v3603_v13  ;;  %v3318_v19 = vld [vmem:[%s3638_s21 + $0x94] sm:$0xf]  ;;  %v3327_v24 = vld [vmem:[%s3638_s21 + $0xd4] sm:$0xf0]  ;;  %v3372_v25 = vld [vmem:[%s3638_s21 + $0x244] sm:$0xf] }
  0x1e   : > { %1295 = vmatpush.bf16.msra.mxu1 %v3608_v14  ;;  %v2760_v28 = vld [vmem:[%s3638_s21 + $0xc8] sm:$0xf]  ;;  %v3324_v29 = vld [vmem:[%s3638_s21 + $0xc4] sm:$0xf]  ;;  %v2754_v30 = vld [vmem:[%s3638_s21 + $0xd8] sm:$0xf0] }
  0x1f   : > { %v3431_v33 = vld [vmem:[%s4261_s1 + $0x118] sm:$0xff]  ;;  %v2776_v34 = vld [vmem:[%s3638_s21 + $0xf0] sm:$0xf]  ;;  %v3333_v35 = vld [vmem:[%s3638_s21 + $0x104] sm:$0xf0] }
  0x20   : > { %1207 = vmatpush.bf16.msra.mxu0 %v3398_v15  ;;  %3458 = vmatpush.bf16.msra.mxu3 %v3398_v15  ;;  %v3393_v15 = vld [vmem:[%s3638_s21 + $0x2e4] sm:$0xf0]  ;;  %v2970_v37 = vld [vmem:[%s3638_s21 + $0x288] sm:$0xf0]  ;;  %v2784_v38 = vld [vmem:[%s3638_s21 + $0xf8] sm:$0xf] }
  0x21   : > { %1385 = vmatpush.bf16.msra.mxu2 %v3619_v16  ;;  %v2800_v46 = vld [vmem:[%s3638_s21 + $0x120] sm:$0xf]  ;;  %v3339_v47 = vld [vmem:[%s3638_s21 + $0x134] sm:$0xf0]  ;;  %v3384_v48 = vld [vmem:[%s3638_s21 + $0x2a4] sm:$0xf] }
  0x22   : > { %1296 = vmatpush.bf16.msra.mxu1 %v3624_v17  ;;  %v2994_v49 = vld [vmem:[%s3638_s21 + $0x2b8] sm:$0xf0]  ;;  %v2808_v50 = vld [vmem:[%s3638_s21 + $0x128] sm:$0xf]  ;;  %v3340_v51 = vld [vmem:[%s3638_s21 + $0x13c] sm:$0xf0] }
  0x23   : > { %v3336_v52 = vld [vmem:[%s3638_s21 + $0x124] sm:$0xf]  ;;  %v2802_v53 = vld [vmem:[%s3638_s21 + $0x138] sm:$0xf0]  ;;  %v3345_v61 = vld [vmem:[%s3638_s21 + $0x164] sm:$0xf0] }
  0x24   : > { %1208 = vmatpush.bf16.msra.mxu0 %v3397_v20  ;;  %3459 = vmatpush.bf16.msra.mxu3 %v3397_v20  ;;  %v3426_v62 = vld [vmem:[%s4261_s1 + $0xf0] sm:$0xff] }
  0x25   : > { %1386 = vmatpush.bf16.msra.mxu2 %v3645_v21 }
  0x26   : > { %1297 = vmatpush.bf16.msra.mxu1 %v3650_v22 }
  0x28   : > { %1209 = vmatpush.bf16.msra.mxu0 %v3396_v23  ;;  %3460 = vmatpush.bf16.msra.mxu3 %v3396_v23  ;;  %v2752_v23 = vld [vmem:[%s3638_s21 + $0xc0] sm:$0xf] }
  0x29   : > { %1387 = vmatpush.bf16.msra.mxu2 %v3658_v26  ;;  %v2753_v31 = vor.u32 %v3327_v24, %v2752_v23 }
  0x2a   : > { %1298 = vmatpush.bf16.msra.mxu1 %v3663_v27 }
  0x2b   : > { %1210 = vmatmul.bf16.vlgmr.msra.gmra.mxu0 %v2657_v39  ;;  %1270 = vmatmul.bf16.vlgmr.msra.gmra.mxu3 %v2945_v40  ;;  %v3334_v39 = vld [vmem:[%s3638_s21 + $0x10c] sm:$0xf0]  ;;  %v3330_v40 = vld [vmem:[%s3638_s21 + $0xf4] sm:$0xf] }
  0x2c   : > { %3461 = vmatpush.bf16.msrb.mxu3 %v3545_v2  ;;  %1558 = vmatpush.bf16.msrb.mxu0 %v3435_v36  ;;  %v3312_v2 = vld [vmem:[%s3638_s21 + $0x64] sm:$0xf]  ;;  %v3378_v36 = vld [vmem:[%s3638_s21 + $0x274] sm:$0xf] }
  0x2d   : > { %1388 = vmatmul.bf16.vlgmr.msra.gmra.mxu2 %v2665_v41  ;;  %1299 = vmatmul.bf16.vlgmr.msra.gmra.mxu1 %v2661_v42  ;;  %v2709_v9 = vor.u32 %v3312_v2, %v2706_v3  ;;  %v2778_v41 = vld [vmem:[%s3638_s21 + $0x108] sm:$0xf0]  ;;  %v2777_v42 = vor.u32 %v3333_v35, %v2776_v34  ;;  %v2832_v2 = vld [vmem:[%s3638_s21 + $0x158] sm:$0xf]  ;;  %v3346_v3 = vld [vmem:[%s3638_s21 + $0x16c] sm:$0xf0] }
  0x2e   : > { %1950 = vmatpush.bf16.msrb.mxu2 %v1942_v43  ;;  %1654 = vmatpush.bf16.msrb.mxu1 %v1200_v44  ;;  %v2973_v43 = vor.u32 %v3378_v36, %v2970_v37  ;;  %v2785_v44 = vor.u32 %v3334_v39, %v2784_v38  ;;  %v2872_v36 = vld [vmem:[%s3638_s21 + $0x1b0] sm:$0xf]  ;;  %v3357_v37 = vld [vmem:[%s3638_s21 + $0x1c4] sm:$0xf0]  ;;  %v2880_v39 = vld [vmem:[%s3638_s21 + $0x1b8] sm:$0xf] }
  0x2f   : > { %v3422_v38 = vld [vmem:[%s4261_s1 + $0xd0] sm:$0xff] }
  0x30   : > { %3462 = vmatpush.bf16.msrb.mxu3 %v3560_v5  ;;  %1559 = vmatpush.bf16.msrb.mxu0 %v3434_v45  ;;  %v2705_v5 = vor.u32 %v3315_v60, %v2704_v59  ;;  %v2781_v45 = vor.u32 %v3330_v40, %v2778_v41  ;;  %v3430_v59 = vld [vmem:[%s4261_s1 + $0x110] sm:$0xff]  ;;  %v2976_v40 = vld [vmem:[%s3638_s21 + $0x278] sm:$0xf] }
  0x31   : > { %v2824_v60 = vld [vmem:[%s3638_s21 + $0x150] sm:$0xf] }
  0x32   : > { %v3382_v41 = vld [vmem:[%s3638_s21 + $0x28c] sm:$0xf0] }
  0x34   : > { %3463 = vmatpush.bf16.msrb.mxu3 %v3575_v8  ;;  %1560 = vmatpush.bf16.msrb.mxu0 %v3433_v58  ;;  %v2713_v8 = vor.u32 %v3316_v0, %v2712_v63  ;;  %v3427_v58 = vld [vmem:[%s4261_s1 + $0xf8] sm:$0xff]  ;;  %v3390_v63 = vld [vmem:[%s3638_s21 + $0x2d4] sm:$0xf]  ;;  %v3018_v0 = vld [vmem:[%s3638_s21 + $0x2e8] sm:$0xf0] }
  0x38   : > { %3464 = vmatpush.bf16.msrb.mxu3 %v3591_v11  ;;  %v2728_v11 = vld [vmem:[%s3638_s21 + $0x90] sm:$0xf] }
  0x39   : > { %v2729_v20 = vor.u32 %v3321_v12, %v2728_v11  ;;  %v2833_v11 = vor.u32 %v3346_v3, %v2832_v2  ;;  %v2896_v2 = vld [vmem:[%s3638_s21 + $0x1e0] sm:$0xf]  ;;  %v3363_v3 = vld [vmem:[%s3638_s21 + $0x1f4] sm:$0xf0] }
  0x3b   : > { %1215 = vmatmul.bf16.gmra.mxu0 %v2681_v54  ;;  %1275 = vmatmul.bf16.gmra.mxu3 %v2969_v55  ;;  %v2801_v54 = vor.u32 %v3339_v47, %v2800_v46  ;;  %v2997_v55 = vor.u32 %v3384_v48, %v2994_v49  ;;  %v2873_v47 = vor.u32 %v3357_v37, %v2872_v36  ;;  %v3366_v36 = vld [vmem:[%s3638_s21 + $0x214] sm:$0xf]  ;;  %v2922_v37 = vld [vmem:[%s3638_s21 + $0x228] sm:$0xf0] }
  0x3c   : > { %3465 = vmatpush.bf16.msrb.mxu3 %v3608_v14  ;;  %v3016_v14 = vld [vmem:[%s3638_s21 + $0x2d0] sm:$0xf]  ;;  %v2977_v48 = vor.u32 %v3382_v41, %v2976_v40 }
  0x3d   : > { %1393 = vmatmul.bf16.gmra.mxu2 %v2689_v56  ;;  %1304 = vmatmul.bf16.gmra.mxu1 %v2685_v57  ;;  %v2809_v56 = vor.u32 %v3340_v51, %v2808_v50  ;;  %v2805_v57 = vor.u32 %v3336_v52, %v2802_v53 }
  0x40   : > { %3466 = vmatpush.bf16.msrb.mxu3 %v3624_v17  ;;  %v2736_v17 = vld [vmem:[%s3638_s21 + $0x98] sm:$0xf] }
  0x44   : > { %3467 = vmatpush.bf16.msrb.mxu3 %v3650_v22  ;;  %v3017_v22 = vor.u32 %v3393_v15, %v3016_v14  ;;  %v3425_v14 = vld [vmem:[%s4261_s1 + $0xe8] sm:$0xff]  ;;  %v2848_v15 = vld [vmem:[%s3638_s21 + $0x180] sm:$0xf] }
  0x48   : > { %3468 = vmatpush.bf16.msrb.mxu3 %v3663_v27  ;;  %v2946_v27 = vld [vmem:[%s3638_s21 + $0x258] sm:$0xf0] }
  0x4b   : > { %1220 = vmatmul.bf16.gmra.mxu0 %v2705_v5  ;;  %1280 = vmatmul.bf16.gmra.mxu3 %v2993_v6  ;;  %v3342_v5 = vld [vmem:[%s3638_s21 + $0x154] sm:$0xf]  ;;  %v2826_v6 = vld [vmem:[%s3638_s21 + $0x168] sm:$0xf0] }
  0x4c   : > { %3469 = vmatpush.bf16.msra.mxu3 %v3540_v1  ;;  %v2730_v1 = vld [vmem:[%s3638_s21 + $0xa8] sm:$0xf0]  ;;  %v2829_v12 = vor.u32 %v3342_v5, %v2826_v6  ;;  %v3420_v5 = vld [vmem:[%s4261_s1 + $0xc0] sm:$0xff]  ;;  %v2904_v6 = vld [vmem:[%s3638_s21 + $0x1e8] sm:$0xf] }
  0x4d   : > { %1398 = vmatmul.bf16.gmra.mxu2 %v2713_v8  ;;  %1309 = vmatmul.bf16.gmra.mxu1 %v2709_v9  ;;  %v2825_v8 = vor.u32 %v3345_v61, %v2824_v60  ;;  %v3021_v9 = vor.u32 %v3390_v63, %v3018_v0 }
  0x50   : > { %3470 = vmatpush.bf16.msra.mxu3 %v3555_v4  ;;  %v2737_v4 = vor.u32 %v3322_v18, %v2736_v17  ;;  %v3351_v17 = vld [vmem:[%s3638_s21 + $0x194] sm:$0xf0]  ;;  %v3424_v18 = vld [vmem:[%s4261_s1 + $0xe0] sm:$0xff] }
  0x51   : > { %v2849_v23 = vor.u32 %v3351_v17, %v2848_v15 }
  0x54   : > { %3471 = vmatpush.bf16.msra.mxu3 %v3570_v7  ;;  %v2733_v7 = vor.u32 %v3318_v19, %v2730_v1  ;;  %v3429_v19 = vld [vmem:[%s4261_s1 + $0x108] sm:$0xff] }
  0x55   : > { %v2856_v1 = vld [vmem:[%s3638_s21 + $0x188] sm:$0xf] }
  0x58   : > { %3472 = vmatpush.bf16.msra.mxu3 %v3586_v10  ;;  %v3432_v10 = vld [vmem:[%s4261_s1 + $0x120] sm:$0xff] }
  0x59   : > { %1561 = vmatpush.bf16.msrb.mxu0 %v3432_v10  ;;  %v2850_v10 = vld [vmem:[%s3638_s21 + $0x198] sm:$0xf0] }
  0x5b   : > { %1225 = vmatmul.bf16.gmra.mxu0 %v2729_v20  ;;  %1285 = vmatmul.bf16.gmra.mxu3 %v3017_v22  ;;  %v2952_v20 = vld [vmem:[%s3638_s21 + $0x248] sm:$0xf]  ;;  %v3376_v22 = vld [vmem:[%s3638_s21 + $0x25c] sm:$0xf0] }
  0x5c   : > { %3473 = vmatpush.bf16.msra.mxu3 %v3603_v13  ;;  %v3328_v13 = vld [vmem:[%s3638_s21 + $0xdc] sm:$0xf0]  ;;  %v2953_v24 = vor.u32 %v3376_v22, %v2952_v20 }
  0x5d   : > { %1403 = vmatmul.bf16.gmra.mxu2 %v2737_v4  ;;  %1314 = vmatmul.bf16.gmra.mxu1 %v2733_v7  ;;  %v2761_v32 = vor.u32 %v3328_v13, %v2760_v28  ;;  %v3352_v4 = vld [vmem:[%s3638_s21 + $0x19c] sm:$0xf0]  ;;  %v3348_v7 = vld [vmem:[%s3638_s21 + $0x184] sm:$0xf] }
  0x5e   : > { %1562 = vmatpush.bf16.msrb.mxu0 %v3431_v33  ;;  %v2853_v28 = vor.u32 %v3348_v7, %v2850_v10 }
  0x60   : > { %3474 = vmatpush.bf16.msra.mxu3 %v3619_v16  ;;  %v2949_v16 = vor.u32 %v3372_v25, %v2946_v27  ;;  %v2857_v27 = vor.u32 %v3352_v4, %v2856_v1 }
  0x62   : > { %1563 = vmatpush.bf16.msrb.mxu0 %v3430_v59 }
  0x64   : > { %3475 = vmatpush.bf16.msra.mxu3 %v3645_v21  ;;  %v2757_v21 = vor.u32 %v3324_v29, %v2754_v30 }
  0x66   : > { %1564 = vmatpush.bf16.msrb.mxu0 %v3429_v19 }
  0x68   : > { %3476 = vmatpush.bf16.msra.mxu3 %v3658_v26  ;;  %v3452_v26 = vld [vmem:[%s4263_s3] sm:$0xff] }
  0x69   : > { %1951 = vmatpush.bf16.msrb.mxu2 %v3452_v26 }
  0x6b   : > { %1230 = vmatmul.bf16.gmra.mxu0 %v2753_v31  ;;  %1359 = vmatmul.bf16.vlgmr.msrb.gmra.mxu3 %v2949_v16  ;;  %v3423_v31 = vld [vmem:[%s4261_s1 + $0xd8] sm:$0xff] }
  0x6c   : > { %1469 = vmatpush.bf16.msrb.mxu3 %v3427_v58 }
  0x6d   : > { %1408 = vmatmul.bf16.gmra.mxu2 %v2761_v32  ;;  %1319 = vmatmul.bf16.gmra.mxu1 %v2757_v21 }
  0x70   : > { %1470 = vmatpush.bf16.msrb.mxu3 %v3426_v62 }
  0x74   : > { %1471 = vmatpush.bf16.msrb.mxu3 %v3425_v14  ;;  %v2898_v14 = vld [vmem:[%s3638_s21 + $0x1f8] sm:$0xf0] }
  0x78   : > { %1472 = vmatpush.bf16.msrb.mxu3 %v3424_v18  ;;  %v2897_v18 = vor.u32 %v3363_v3, %v2896_v2  ;;  %v2674_v2 = vld [vmem:[%s3638_s21 + $0x28] sm:$0xf0] }
  0x7b   : > { %1235 = vmatmul.bf16.gmra.mxu0 %v2777_v42  ;;  %1364 = vmatmul.bf16.gmra.mxu3 %v2973_v43  ;;  %v3358_v42 = vld [vmem:[%s3638_s21 + $0x1cc] sm:$0xf0]  ;;  %v3354_v43 = vld [vmem:[%s3638_s21 + $0x1b4] sm:$0xf] }
  0x7c   : > { %1473 = vmatpush.bf16.msrb.mxu3 %v3423_v31  ;;  %v2881_v51 = vor.u32 %v3358_v42, %v2880_v39  ;;  %v2920_v31 = vld [vmem:[%s3638_s21 + $0x210] sm:$0xf] }
  0x7d   : > { %1413 = vmatmul.bf16.gmra.mxu2 %v2785_v44  ;;  %1324 = vmatmul.bf16.gmra.mxu1 %v2781_v45  ;;  %v2874_v44 = vld [vmem:[%s3638_s21 + $0x1c8] sm:$0xf0] }
  0x7e   : > { %v2877_v52 = vor.u32 %v3354_v43, %v2874_v44 }
  0x80   : > { %1474 = vmatpush.bf16.msrb.mxu3 %v3422_v38 }
  0x8b   : > { %1240 = vmatmul.bf16.gmra.mxu0 %v2801_v54  ;;  %1369 = vmatmul.bf16.gmra.mxu3 %v2997_v55 }
  0x8d   : > { %1418 = vmatmul.bf16.gmra.mxu2 %v2809_v56  ;;  %1329 = vmatmul.bf16.gmra.mxu1 %v2805_v57  ;;  %v3421_v56 = vld [vmem:[%s4261_s1 + $0xc8] sm:$0xff]  ;;  %v3428_v57 = vld [vmem:[%s4261_s1 + $0x100] sm:$0xff] }
  0x8e   : > { %1475 = vmatpush.bf16.msrb.mxu3 %v3421_v56  ;;  %1565 = vmatpush.bf16.msrb.mxu0 %v3428_v57 }
  0x92   : > { %1476 = vmatpush.bf16.msrb.mxu3 %v3420_v5 }
  0x9b   : > { %1245 = vmatmul.bf16.gmra.mxu0 %v2825_v8  ;;  %1374 = vmatmul.bf16.gmra.mxu3 %v3021_v9  ;;  %v3000_v8 = vld [vmem:[%s3638_s21 + $0x2a8] sm:$0xf]  ;;  %v3388_v9 = vld [vmem:[%s3638_s21 + $0x2bc] sm:$0xf0] }
  0x9c   : > { %v3001_v19 = vor.u32 %v3388_v9, %v3000_v8 }
  0x9d   : > { %1423 = vmatmul.bf16.gmra.mxu2 %v2833_v11  ;;  %1334 = vmatmul.bf16.gmra.mxu1 %v2829_v12  ;;  %v3364_v11 = vld [vmem:[%s3638_s21 + $0x1fc] sm:$0xf0]  ;;  %v3360_v12 = vld [vmem:[%s3638_s21 + $0x1e4] sm:$0xf] }
  0x9e   : > { %v2905_v22 = vor.u32 %v3364_v11, %v2904_v6  ;;  %v2901_v4 = vor.u32 %v3360_v12, %v2898_v14  ;;  %v3436_v12 = vld [vmem:[%s3868_s27] sm:$0xff] }
  0xa8   : > { %v1211_v25 = vpop.f32.mrf.mxu0 }
  0xa9   : > { %v1212_v13 = vadd.f32 1.0, %v1211_v25 }
  0xaa   : > { %v1300_v29 = vpop.f32.mrf.mxu1 }
  0xab   : > { %v1301_v30 = vadd.f32 %v1300_v29, %v1212_v13  ;;  %1250 = vmatmul.bf16.gmra.mxu0 %v2849_v23  ;;  %1448 = vmatmul.bf16.vlgmr.msra.gmra.mxu3 %v2953_v24 }
  0xad   : > { %1428 = vmatmul.bf16.gmra.mxu2 %v2857_v27  ;;  %1339 = vmatmul.bf16.gmra.mxu1 %v2853_v28 }
  0xae   : > { %v3796_v16 = vpop.f32.mrf.mxu3 }
  0xb0   : > { %v1389_v32 = vpop.f32.mrf.mxu2  ;;  %v1213_v33 = vpop.f32.mrf.mxu0 }
  0xb1   : > { %v3798_v21 = vadd.f32 %v1389_v32, %v1301_v30  ;;  %v1214_v26 = vadd.f32 1.0, %v1213_v33  ;;  %v3369_v32 = vld [vmem:[%s3638_s21 + $0x224] sm:$0xf0]  ;;  %v2928_v33 = vld [vmem:[%s3638_s21 + $0x218] sm:$0xf] }
  0xb2   : > { %v1302_v34 = vpop.f32.mrf.mxu1  ;;  %v2921_v40 = vor.u32 %v3369_v32, %v2920_v31  ;;  %v2696_v31 = vld [vmem:[%s3638_s21 + $0x40] sm:$0xf]  ;;  %v3311_v32 = vld [vmem:[%s3638_s21 + $0x54] sm:$0xf0] }
  0xb3   : > { %v1303_v35 = vadd.f32 %v1302_v34, %v1214_v26  ;;  %v3024_v26 = vld [vmem:[%s3638_s21 + $0x2d8] sm:$0xf]  ;;  %v3394_v34 = vld [vmem:[%s3638_s21 + $0x2ec] sm:$0xf0] }
  0xb4   : > { %v3025_v41 = vor.u32 %v3394_v34, %v3024_v26  ;;  %v3308_v26 = vld [vmem:[%s3638_s21 + $0x44] sm:$0xf]  ;;  %v2698_v34 = vld [vmem:[%s3638_s21 + $0x58] sm:$0xf0] }
  0xb6   : > { %v3811_v45 = vpop.f32.mrf.mxu3 }
  0xb8   : > { %v1391_v46 = vpop.f32.mrf.mxu2  ;;  %v1216_v50 = vpop.f32.mrf.mxu0 }
  0xb9   : > { %v3813_v49 = vadd.f32 %v1391_v46, %v1303_v35  ;;  %v1217_v53 = vadd.f32 1.0, %v1216_v50  ;;  %v3370_v35 = vld [vmem:[%s3638_s21 + $0x22c] sm:$0xf0]  ;;  %v2925_v46 = vor.u32 %v3366_v36, %v2922_v37 }
  0xba   : > { %v1305_v54 = vpop.f32.mrf.mxu1  ;;  %v2929_v44 = vor.u32 %v3370_v35, %v2928_v33  ;;  %v1274_v33 = vadd.f32 1.0, %v3811_v45 }
  0xbb   : > { %v1306_v55 = vadd.f32 %v1305_v54, %v1217_v53  ;;  %1255 = vmatmul.bf16.gmra.mxu0 %v2873_v47  ;;  %1453 = vmatmul.bf16.gmra.mxu3 %v2977_v48 }
  0xbd   : > { %1433 = vmatmul.bf16.gmra.mxu2 %v2881_v51  ;;  %1344 = vmatmul.bf16.gmra.mxu1 %v2877_v52 }
  0xbe   : > { %v3821_v58 = vpop.f32.mrf.mxu3 }
  0xbf   : > { %v1277_v45 = vadd.f32 1.0, %v3821_v58 }
  0xc0   : > { %v1394_v59 = vpop.f32.mrf.mxu2  ;;  %v1218_v61 = vpop.f32.mrf.mxu0 }
  0xc1   : > { %v3823_v60 = vadd.f32 %v1394_v59, %v1306_v55  ;;  %v1219_v62 = vadd.f32 1.0, %v1218_v61  ;;  %v3301_v59 = vld [vmem:[%s3638_s21 + $0xc] sm:$0xf]  ;;  %v2666_v61 = vld [vmem:[%s3638_s21 + $0x20] sm:$0xf0] }
  0xc2   : > { %v1307_v63 = vpop.f32.mrf.mxu1  ;;  %v2669_v6 = vor.u32 %v3301_v59, %v2666_v61 }
  0xc3   : > { %v1308_v0 = vadd.f32 %v1307_v63, %v1219_v62  ;;  %v2672_v62 = vld [vmem:[%s3638_s21 + $0x10] sm:$0xf]  ;;  %v3305_v63 = vld [vmem:[%s3638_s21 + $0x24] sm:$0xf0] }
  0xc4   : > { %v2673_v8 = vor.u32 %v3305_v63, %v2672_v62  ;;  %v3313_v62 = vld [vmem:[%s3638_s21 + $0x6c] sm:$0xf]  ;;  %v2714_v63 = vld [vmem:[%s3638_s21 + $0x80] sm:$0xf0] }
  0xc6   : > { %v3836_v15 = vpop.f32.mrf.mxu3 }
  0xc8   : > { %v1396_v17 = vpop.f32.mrf.mxu2  ;;  %v1221_v20 = vpop.f32.mrf.mxu0 }
  0xc9   : > { %v3838_v1 = vadd.f32 %v1396_v17, %v1308_v0  ;;  %v1222_v7 = vadd.f32 1.0, %v1221_v20  ;;  %v3302_v0 = vld [vmem:[%s3638_s21 + $0x14] sm:$0xf]  ;;  %v1272_v20 = vadd.f32 1.0, %v3796_v16 }
  0xca   : > { %v1310_v10 = vpop.f32.mrf.mxu1  ;;  %v2677_v14 = vor.u32 %v3302_v0, %v2674_v2  ;;  %v2720_v0 = vld [vmem:[%s3638_s21 + $0x70] sm:$0xf]  ;;  %v3317_v2 = vld [vmem:[%s3638_s21 + $0x84] sm:$0xf0] }
  0xcb   : > { %v1311_v23 = vadd.f32 %v1310_v10, %v1222_v7  ;;  %1260 = vmatmul.bf16.gmra.mxu0 %v2897_v18  ;;  %1458 = vmatmul.bf16.gmra.mxu3 %v3001_v19 }
  0xcd   : > { %1438 = vmatmul.bf16.gmra.mxu2 %v2905_v22  ;;  %1349 = vmatmul.bf16.gmra.mxu1 %v2901_v4 }
  0xce   : > { %v3840_v24 = vpop.f32.mrf.mxu3 }
  0xd0   : > { %v1399_v25 = vpop.f32.mrf.mxu2  ;;  %v1223_v28 = vpop.f32.mrf.mxu0 }
  0xd1   : > { %v3842_v27 = vadd.f32 %v1399_v25, %v1311_v23  ;;  %v1224_v13 = vadd.f32 1.0, %v1223_v28 }
  0xd2   : > { %v1312_v29 = vpop.f32.mrf.mxu1 }
  0xd3   : > { %v1313_v30 = vadd.f32 %v1312_v29, %v1224_v13  ;;  %v3307_v29 = vld [vmem:[%s3638_s21 + $0x3c] sm:$0xf] }
  0xd6   : > { %v3852_v38 = vpop.f32.mrf.mxu3 }
  0xd8   : > { %v1401_v39 = vpop.f32.mrf.mxu2  ;;  %v1226_v43 = vpop.f32.mrf.mxu0 }
  0xd9   : > { %v3854_v42 = vadd.f32 %v1401_v39, %v1313_v30  ;;  %v1227_v47 = vadd.f32 1.0, %v1226_v43  ;;  %v2690_v30 = vld [vmem:[%s3638_s21 + $0x50] sm:$0xf0]  ;;  %v2697_v39 = vor.u32 %v3311_v32, %v2696_v31  ;;  %v3437_v43 = vld [vmem:[%s3868_s27 + $0x8] sm:$0xff] }
  0xda   : > { %v1315_v48 = vpop.f32.mrf.mxu1  ;;  %v2693_v37 = vor.u32 %v3307_v29, %v2690_v30 }
  0xdb   : > { %v1316_v50 = vadd.f32 %v1315_v48, %v1227_v47  ;;  %1265 = vmatmul.bf16.gmra.mxu0 %v2921_v40  ;;  %1463 = vmatmul.bf16.gmra.mxu3 %v3025_v41 }
  0xdd   : > { %1443 = vmatmul.bf16.gmra.mxu2 %v2929_v44  ;;  %1354 = vmatmul.bf16.gmra.mxu1 %v2925_v46  ;;  %v2701_v44 = vor.u32 %v3308_v26, %v2698_v34  ;;  %v3319_v34 = vld [vmem:[%s3638_s21 + $0x9c] sm:$0xf] }
  0xde   : > { %v3856_v51 = vpop.f32.mrf.mxu3 }
  0xe0   : > { %v1404_v52 = vpop.f32.mrf.mxu2  ;;  %v1228_v54 = vpop.f32.mrf.mxu0 }
  0xe1   : > { %v3858_v53 = vadd.f32 %v1404_v52, %v1316_v50  ;;  %v1229_v55 = vadd.f32 1.0, %v1228_v54 }
  0xe2   : > { %v1317_v56 = vpop.f32.mrf.mxu1 }
  0xe3   : > { %v1318_v57 = vadd.f32 %v1317_v56, %v1229_v55 }
  0xe6   : > { %v3872_v3 = vpop.f32.mrf.mxu3 }
  0xe8   : > { %v1406_v5 = vpop.f32.mrf.mxu2  ;;  %v1231_v11 = vpop.f32.mrf.mxu0 }
  0xe9   : > { %v3874_v9 = vadd.f32 %v1406_v5, %v1318_v57  ;;  %v1232_v17 = vadd.f32 1.0, %v1231_v11  ;;  %v1279_v5 = vadd.f32 1.0, %v3836_v15  ;;  %v1282_v15 = vadd.f32 1.0, %v3840_v24 }
  0xea   : > { %v1320_v18 = vpop.f32.mrf.mxu1 }
  0xeb   : > { %v1321_v19 = vadd.f32 %v1320_v18, %v1232_v17  ;;  %1477 = vmatmul.bf16.vlgmr.msrb.gmra.mxu3 %v2669_v6  ;;  %1566 = vmatmul.bf16.vlgmr.msrb.gmra.mxu0 %v2673_v8  ;;  %v3314_v6 = vld [vmem:[%s3638_s21 + $0x74] sm:$0xf]  ;;  %v2722_v8 = vld [vmem:[%s3638_s21 + $0x88] sm:$0xf0]  ;;  %v2721_v17 = vor.u32 %v3317_v2, %v2720_v0 }
  0xed   : > { %3282 = vmatmul.msk.bf16.vlgmr.msrb.gmra.mxu2 %vm1892_vm1, %v3436_v12  ;;  %3198 = vmatmul.msk.bf16.vlgmr.msrb.gmra.mxu1 %vm1149_vm2, %v2677_v14  ;;  %v2717_v14 = vor.u32 %v3313_v62, %v2714_v63 }
  0xee   : > { %v1360_v22 = vpop.f32.mrf.mxu3 }
  0xef   : > { %v3880_v4 = vadd.f32 %v1360_v22, %v1272_v20  ;;  %v3438_v20 = vld [vmem:[%s3868_s27 + $0x10] sm:$0xff]  ;;  %v2725_v22 = vor.u32 %v3314_v6, %v2722_v8 }
  0xf0   : > { %v1409_v7 = vpop.f32.mrf.mxu2  ;;  %v1233_v23 = vpop.f32.mrf.mxu0 }
  0xf1   : > { %v3882_v10 = vadd.f32 %v1409_v7, %v1321_v19  ;;  %v1234_v25 = vadd.f32 1.0, %v1233_v23 }
  0xf2   : > { %v1322_v28 = vpop.f32.mrf.mxu1 }
  0xf3   : > { %v1323_v13 = vadd.f32 %v1322_v28, %v1234_v25 }
  0xf6   : > { %v1362_v16 = vpop.f32.mrf.mxu3 }
  0xf7   : > { %v3891_v35 = vadd.f32 %v1362_v16, %v1274_v33  ;;  %v2738_v16 = vld [vmem:[%s3638_s21 + $0xb0] sm:$0xf0] }
  0xf8   : > { %v1411_v36 = vpop.f32.mrf.mxu2  ;;  %v1236_v41 = vpop.f32.mrf.mxu0 }
  0xf9   : > { %v3893_v40 = vadd.f32 %v1411_v36, %v1323_v13  ;;  %v1237_v46 = vadd.f32 1.0, %v1236_v41  ;;  %v2744_v36 = vld [vmem:[%s3638_s21 + $0xa0] sm:$0xf]  ;;  %v3320_v41 = vld [vmem:[%s3638_s21 + $0xa4] sm:$0xf] }
  0xfa   : > { %v1325_v47 = vpop.f32.mrf.mxu1 }
  0xfb   : > { %v1326_v48 = vadd.f32 %v1325_v47, %v1237_v46  ;;  %1482 = vmatmul.bf16.gmra.mxu3 %v2693_v37  ;;  %1571 = vmatmul.bf16.gmra.mxu0 %v2697_v39  ;;  %v3323_v37 = vld [vmem:[%s3638_s21 + $0xb4] sm:$0xf0]  ;;  %v1284_v39 = vadd.f32 1.0, %v3852_v38  ;;  %v2741_v47 = vor.u32 %v3319_v34, %v2738_v16  ;;  %v1287_v38 = vadd.f32 1.0, %v3856_v51 }
  0xfd   : > { %3283 = vmatmul.msk.bf16.gmra.mxu2 %vm1892_vm1, %v3437_v43  ;;  %3199 = vmatmul.msk.bf16.gmra.mxu1 %vm1149_vm2, %v2701_v44  ;;  %v2746_v43 = vld [vmem:[%s3638_s21 + $0xb8] sm:$0xf0] }
  0xfe   : > { %v1365_v50 = vpop.f32.mrf.mxu3 }
  0xff   : > { %v3899_v52 = vadd.f32 %v1365_v50, %v1277_v45 }
 0x100   : > { %v1414_v54 = vpop.f32.mrf.mxu2  ;;  %v1238_v56 = vpop.f32.mrf.mxu0 }
 0x101   : > { %v3901_v55 = vadd.f32 %v1414_v54, %v1326_v48  ;;  %v1239_v57 = vadd.f32 1.0, %v1238_v56  ;;  %v2745_v48 = vor.u32 %v3323_v37, %v2744_v36  ;;  %v3439_v54 = vld [vmem:[%s3868_s27 + $0x18] sm:$0xff]  ;;  %v2749_v56 = vor.u32 %v3320_v41, %v2746_v43 }
 0x102   : > { %v1327_v59 = vpop.f32.mrf.mxu1 }
 0x103   : > { %v1328_v61 = vadd.f32 %v1327_v59, %v1239_v57 }
 0x106   : > { %v1367_v58 = vpop.f32.mrf.mxu3 }
 0x107   : > { %v3910_v11 = vadd.f32 %v1367_v58, %v1279_v5 }
 0x108   : > { %v1416_v12 = vpop.f32.mrf.mxu2  ;;  %v1241_v19 = vpop.f32.mrf.mxu0 }
 0x109   : > { %v3912_v18 = vadd.f32 %v1416_v12, %v1328_v61  ;;  %v1242_v7 = vadd.f32 1.0, %v1241_v19  ;;  %v3325_v12 = vld [vmem:[%s3638_s21 + $0xcc] sm:$0xf]  ;;  %v3329_v19 = vld [vmem:[%s3638_s21 + $0xe4] sm:$0xf0] }
 0x10a   : > { %v1330_v23 = vpop.f32.mrf.mxu1 }
 0x10b   : > { %v1331_v25 = vadd.f32 %v1330_v23, %v1242_v7  ;;  %1487 = vmatmul.bf16.gmra.mxu3 %v2717_v14  ;;  %1576 = vmatmul.bf16.gmra.mxu0 %v2721_v17  ;;  %v2762_v14 = vld [vmem:[%s3638_s21 + $0xe0] sm:$0xf0]  ;;  %v2768_v17 = vld [vmem:[%s3638_s21 + $0xd0] sm:$0xf]  ;;  %v2770_v7 = vld [vmem:[%s3638_s21 + $0xe8] sm:$0xf0] }
 0x10d   : > { %3284 = vmatmul.msk.bf16.gmra.mxu2 %vm1892_vm1, %v3438_v20  ;;  %3200 = vmatmul.msk.bf16.gmra.mxu1 %vm1149_vm2, %v2725_v22  ;;  %v1289_v20 = vadd.f32 1.0, %v3872_v3  ;;  %v3326_v22 = vld [vmem:[%s3638_s21 + $0xd4] sm:$0xf] }
 0x10e   : > { %v1370_v28 = vpop.f32.mrf.mxu3 }
 0x10f   : > { %v3918_v13 = vadd.f32 %v1370_v28, %v1282_v15  ;;  %v2765_v15 = vor.u32 %v3325_v12, %v2762_v14  ;;  %v2769_v28 = vor.u32 %v3329_v19, %v2768_v17 }
 0x110   : > { %v1419_v29 = vpop.f32.mrf.mxu2  ;;  %v1243_v31 = vpop.f32.mrf.mxu0 }
 0x111   : > { %v3920_v30 = vadd.f32 %v1419_v29, %v1331_v25  ;;  %v1244_v32 = vadd.f32 1.0, %v1243_v31 }
 0x112   : > { %v1332_v33 = vpop.f32.mrf.mxu1 }
 0x113   : > { %v1333_v26 = vadd.f32 %v1332_v33, %v1244_v32  ;;  %v3440_v32 = vld [vmem:[%s3868_s27 + $0x20] sm:$0xff]  ;;  %v2773_v33 = vor.u32 %v3326_v22, %v2770_v7 }
 0x116   : > { %v1372_v24 = vpop.f32.mrf.mxu3 }
 0x117   : > { %v3929_v44 = vadd.f32 %v1372_v24, %v1284_v39 }
 0x118   : > { %v1421_v46 = vpop.f32.mrf.mxu2  ;;  %v1246_v50 = vpop.f32.mrf.mxu0 }
 0x119   : > { %v3931_v45 = vadd.f32 %v1421_v46, %v1333_v26  ;;  %v1247_v57 = vadd.f32 1.0, %v1246_v50  ;;  %v2792_v50 = vld [vmem:[%s3638_s21 + $0x100] sm:$0xf] }
 0x11a   : > { %v1335_v59 = vpop.f32.mrf.mxu1 }
 0x11b   : > { %v1336_v61 = vadd.f32 %v1335_v59, %v1247_v57  ;;  %1492 = vmatmul.bf16.gmra.mxu3 %v2741_v47  ;;  %1581 = vmatmul.bf16.gmra.mxu0 %v2745_v48  ;;  %v3331_v47 = vld [vmem:[%s3638_s21 + $0xfc] sm:$0xf]  ;;  %v2786_v48 = vld [vmem:[%s3638_s21 + $0x110] sm:$0xf0] }
 0x11c   : > { %v2794_v57 = vld [vmem:[%s3638_s21 + $0x118] sm:$0xf0] }
 0x11d   : > { %3285 = vmatmul.msk.bf16.gmra.mxu2 %vm1892_vm1, %v3439_v54  ;;  %3201 = vmatmul.msk.bf16.gmra.mxu1 %vm1149_vm2, %v2749_v56  ;;  %v3335_v54 = vld [vmem:[%s3638_s21 + $0x114] sm:$0xf0]  ;;  %v3332_v56 = vld [vmem:[%s3638_s21 + $0x104] sm:$0xf] }
 0x11e   : > { %v1375_v62 = vpop.f32.mrf.mxu3 }
 0x11f   : > { %v3937_v63 = vadd.f32 %v1375_v62, %v1287_v38  ;;  %v2793_v62 = vor.u32 %v3335_v54, %v2792_v50 }
 0x120   : > { %v1424_v0 = vpop.f32.mrf.mxu2  ;;  %v1248_v5 = vpop.f32.mrf.mxu0 }
 0x121   : > { %v3939_v2 = vadd.f32 %v1424_v0, %v1336_v61  ;;  %v1249_v6 = vadd.f32 1.0, %v1248_v5 }
 0x122   : > { %v1337_v8 = vpop.f32.mrf.mxu1 }
 0x123   : > { %v1338_v58 = vadd.f32 %v1337_v8, %v1249_v6  ;;  %v3441_v6 = vld [vmem:[%s3868_s27 + $0x28] sm:$0xff]  ;;  %v2797_v8 = vor.u32 %v3332_v56, %v2794_v57 }
 0x126   : > { %v1377_v51 = vpop.f32.mrf.mxu3 }
 0x127   : > { %v3948_v23 = vadd.f32 %v1377_v51, %v1289_v20 }
 0x128   : > { %v1426_v25 = vpop.f32.mrf.mxu2  ;;  %v1251_v31 = vpop.f32.mrf.mxu0 }
 0x129   : > { %v3950_v29 = vadd.f32 %v1426_v25, %v1338_v58  ;;  %v1252_v26 = vadd.f32 1.0, %v1251_v31  ;;  %v2816_v31 = vld [vmem:[%s3638_s21 + $0x130] sm:$0xf] }
 0x12a   : > { %v1340_v34 = vpop.f32.mrf.mxu1 }
 0x12b   : > { %v1341_v16 = vadd.f32 %v1340_v34, %v1252_v26  ;;  %1497 = vmatmul.bf16.gmra.mxu3 %v2765_v15  ;;  %1586 = vmatmul.bf16.gmra.mxu0 %v2769_v28  ;;  %v3337_v15 = vld [vmem:[%s3638_s21 + $0x12c] sm:$0xf]  ;;  %v2810_v28 = vld [vmem:[%s3638_s21 + $0x140] sm:$0xf0] }
 0x12c   : > { %v2818_v26 = vld [vmem:[%s3638_s21 + $0x148] sm:$0xf0] }
 0x12d   : > { %3286 = vmatmul.msk.bf16.gmra.mxu2 %vm1892_vm1, %v3440_v32  ;;  %3202 = vmatmul.msk.bf16.gmra.mxu1 %vm1149_vm2, %v2773_v33  ;;  %v3341_v32 = vld [vmem:[%s3638_s21 + $0x144] sm:$0xf0]  ;;  %v3338_v33 = vld [vmem:[%s3638_s21 + $0x134] sm:$0xf] }
 0x12e   : > { %v1449_v3 = vpop.f32.mrf.mxu3 }
 0x12f   : > { %v3956_v37 = vadd.f32 %v1449_v3, %v3880_v4  ;;  %v2789_v4 = vor.u32 %v3331_v47, %v2786_v48 }
 0x130   : > { %v1429_v36 = vpop.f32.mrf.mxu2  ;;  %v1253_v41 = vpop.f32.mrf.mxu0 }
 0x131   : > { %v3958_v39 = vadd.f32 %v1429_v36, %v1341_v16  ;;  %v1254_v43 = vadd.f32 1.0, %v1253_v41  ;;  %v2817_v36 = vor.u32 %v3341_v32, %v2816_v31 }
 0x132   : > { %v1342_v24 = vpop.f32.mrf.mxu1 }
 0x133   : > { %v1343_v46 = vadd.f32 %v1342_v24, %v1254_v43  ;;  %v3442_v24 = vld [vmem:[%s3868_s27 + $0x30] sm:$0xff] }
 0x136   : > { %v1451_v59 = vpop.f32.mrf.mxu3 }
 0x137   : > { %v3967_v38 = vadd.f32 %v1451_v59, %v3891_v35 }
 0x138   : > { %v1431_v61 = vpop.f32.mrf.mxu2  ;;  %v1256_v5 = vpop.f32.mrf.mxu0 }
 0x139   : > { %v3969_v0 = vadd.f32 %v1431_v61, %v1343_v46  ;;  %v1257_v58 = vadd.f32 1.0, %v1256_v5  ;;  %v2821_v46 = vor.u32 %v3338_v33, %v2818_v26  ;;  %v3343_v5 = vld [vmem:[%s3638_s21 + $0x15c] sm:$0xf] }
 0x13a   : > { %v1345_v12 = vpop.f32.mrf.mxu1 }
 0x13b   : > { %v1346_v14 = vadd.f32 %v1345_v12, %v1257_v58  ;;  %1502 = vmatmul.bf16.gmra.mxu3 %v2789_v4  ;;  %1591 = vmatmul.bf16.gmra.mxu0 %v2793_v62  ;;  %v3347_v58 = vld [vmem:[%s3638_s21 + $0x174] sm:$0xf0]  ;;  %v3344_v12 = vld [vmem:[%s3638_s21 + $0x164] sm:$0xf] }
 0x13d   : > { %3287 = vmatmul.msk.bf16.gmra.mxu2 %vm1892_vm1, %v3441_v6  ;;  %3203 = vmatmul.msk.bf16.gmra.mxu1 %vm1149_vm2, %v2797_v8  ;;  %v2834_v6 = vld [vmem:[%s3638_s21 + $0x170] sm:$0xf0]  ;;  %v2840_v8 = vld [vmem:[%s3638_s21 + $0x160] sm:$0xf] }
 0x13e   : > { %v1454_v35 = vpop.f32.mrf.mxu3 }
 0x13f   : > { %v3975_v19 = vadd.f32 %v1454_v35, %v3899_v52  ;;  %v2813_v52 = vor.u32 %v3337_v15, %v2810_v28  ;;  %v3443_v15 = vld [vmem:[%s3868_s27 + $0x38] sm:$0xff] }
 0x140   : > { %v1434_v17 = vpop.f32.mrf.mxu2  ;;  %v1258_v22 = vpop.f32.mrf.mxu0 }
 0x141   : > { %v3977_v20 = vadd.f32 %v1434_v17, %v1346_v14  ;;  %v1259_v7 = vadd.f32 1.0, %v1258_v22  ;;  %v2842_v14 = vld [vmem:[%s3638_s21 + $0x178] sm:$0xf0] }
 0x142   : > { %v1347_v51 = vpop.f32.mrf.mxu1  ;;  %v2845_v28 = vor.u32 %v3344_v12, %v2842_v14 }
 0x143   : > { %v1348_v25 = vadd.f32 %v1347_v51, %v1259_v7  ;;  %v2841_v7 = vor.u32 %v3347_v58, %v2840_v8  ;;  %v3444_v8 = vld [vmem:[%s3868_s27 + $0x40] sm:$0xff] }
 0x146   : > { %v1456_v34 = vpop.f32.mrf.mxu3 }
 0x147   : > { %v3986_v3 = vadd.f32 %v1456_v34, %v3910_v11 }
 0x148   : > { %v1436_v16 = vpop.f32.mrf.mxu2  ;;  %v1261_v43 = vpop.f32.mrf.mxu0 }
 0x149   : > { %v3988_v41 = vadd.f32 %v1436_v16, %v1348_v25  ;;  %v1262_v47 = vadd.f32 1.0, %v1261_v43 }
 0x14a   : > { %v1350_v48 = vpop.f32.mrf.mxu1 }
 0x14b   : > { %v1351_v50 = vadd.f32 %v1350_v48, %v1262_v47  ;;  %1507 = vmatmul.bf16.gmra.mxu3 %v2813_v52  ;;  %1596 = vmatmul.bf16.gmra.mxu0 %v2817_v36  ;;  %v2858_v47 = vld [vmem:[%s3638_s21 + $0x1a0] sm:$0xf0]  ;;  %v2864_v48 = vld [vmem:[%s3638_s21 + $0x190] sm:$0xf] }
 0x14d   : > { %3288 = vmatmul.msk.bf16.gmra.mxu2 %vm1892_vm1, %v3442_v24  ;;  %3204 = vmatmul.msk.bf16.gmra.mxu1 %vm1149_vm2, %v2821_v46  ;;  %v3349_v46 = vld [vmem:[%s3638_s21 + $0x18c] sm:$0xf] }
 0x14e   : > { %v1459_v11 = vpop.f32.mrf.mxu3 }
 0x14f   : > { %v3994_v56 = vadd.f32 %v1459_v11, %v3918_v13  ;;  %v2837_v13 = vor.u32 %v3343_v5, %v2834_v6  ;;  %v3350_v11 = vld [vmem:[%s3638_s21 + $0x194] sm:$0xf] }
 0x150   : > { %v1439_v54 = vpop.f32.mrf.mxu2  ;;  %v1263_v59 = vpop.f32.mrf.mxu0 }
 0x151   : > { %v3996_v57 = vadd.f32 %v1439_v54, %v1351_v50  ;;  %v1264_v61 = vadd.f32 1.0, %v1263_v59  ;;  %v3353_v50 = vld [vmem:[%s3638_s21 + $0x1a4] sm:$0xf0]  ;;  %v2866_v54 = vld [vmem:[%s3638_s21 + $0x1a8] sm:$0xf0] }
 0x152   : > { %v1352_v4 = vpop.f32.mrf.mxu1  ;;  %v2869_v58 = vor.u32 %v3350_v11, %v2866_v54 }
 0x153   : > { %v1353_v62 = vadd.f32 %v1352_v4, %v1264_v61 }
 0x156   : > { %v1461_v35 = vpop.f32.mrf.mxu3 }
 0x157   : > { %v4005_v22 = vadd.f32 %v1461_v35, %v3929_v44 }
 0x158   : > { %v1441_v17 = vpop.f32.mrf.mxu2  ;;  %v1266_v25 = vpop.f32.mrf.mxu0 }
 0x159   : > { %v4007_v51 = vadd.f32 %v1441_v17, %v1353_v62  ;;  %v1267_v31 = vadd.f32 1.0, %v1266_v25  ;;  %v2865_v62 = vor.u32 %v3353_v50, %v2864_v48  ;;  %v3445_v48 = vld [vmem:[%s3868_s27 + $0x48] sm:$0xff] }
 0x15a   : > { %v1355_v32 = vpop.f32.mrf.mxu1 }
 0x15b   : > { %v1356_v33 = vadd.f32 %v1355_v32, %v1267_v31  ;;  %1512 = vmatmul.bf16.gmra.mxu3 %v2837_v13  ;;  %1601 = vmatmul.bf16.gmra.mxu0 %v2841_v7  ;;  %v2888_v31 = vld [vmem:[%s3638_s21 + $0x1c0] sm:$0xf]  ;;  %v3359_v32 = vld [vmem:[%s3638_s21 + $0x1d4] sm:$0xf0] }
 0x15d   : > { %3289 = vmatmul.msk.bf16.gmra.mxu2 %vm1892_vm1, %v3443_v15  ;;  %3205 = vmatmul.msk.bf16.gmra.mxu1 %vm1149_vm2, %v2845_v28  ;;  %v3355_v15 = vld [vmem:[%s3638_s21 + $0x1bc] sm:$0xf]  ;;  %v2882_v28 = vld [vmem:[%s3638_s21 + $0x1d0] sm:$0xf0] }
 0x15e   : > { %v1464_v44 = vpop.f32.mrf.mxu3 }
 0x15f   : > { %v4013_v34 = vadd.f32 %v1464_v44, %v3937_v63  ;;  %v2861_v63 = vor.u32 %v3349_v46, %v2858_v47  ;;  %v3356_v44 = vld [vmem:[%s3638_s21 + $0x1c4] sm:$0xf]  ;;  %v2889_v46 = vor.u32 %v3359_v32, %v2888_v31  ;;  %v2912_v31 = vld [vmem:[%s3638_s21 + $0x1f0] sm:$0xf]  ;;  %v3365_v32 = vld [vmem:[%s3638_s21 + $0x204] sm:$0xf0] }
 0x160   : > { %v1444_v26 = vpop.f32.mrf.mxu2  ;;  %v1268_v52 = vpop.f32.mrf.mxu0 }
 0x161   : > { %v4015_v16 = vadd.f32 %v1444_v26, %v1356_v33  ;;  %v1269_v36 = vadd.f32 1.0, %v1268_v52  ;;  %v2890_v26 = vld [vmem:[%s3638_s21 + $0x1d8] sm:$0xf0] }
 0x162   : > { %v1357_v43 = vpop.f32.mrf.mxu1  ;;  %v2893_v50 = vor.u32 %v3356_v44, %v2890_v26  ;;  %v3362_v44 = vld [vmem:[%s3638_s21 + $0x1f4] sm:$0xf]  ;;  %v2914_v26 = vld [vmem:[%s3638_s21 + $0x208] sm:$0xf0] }
 0x163   : > { %v1358_v24 = vadd.f32 %v1357_v43, %v1269_v36 }
 0x166   : > { %v1466_v59 = vpop.f32.mrf.mxu3 }
 0x167   : > { %v4024_v4 = vadd.f32 %v1466_v59, %v3948_v23 }
 0x168   : > { %v1446_v61 = vpop.f32.mrf.mxu2  ;;  %v1567_v6 = vpop.f32.mrf.mxu0 }
 0x169   : > { %v4026_v5 = vadd.f32 %v1446_v61, %v1358_v24  ;;  %v2885_v24 = vor.u32 %v3355_v15, %v2882_v28  ;;  %v2906_v28 = vld [vmem:[%s3638_s21 + $0x200] sm:$0xf0] }
 0x16a   : > { %v1656_v12 = vpop.f32.mrf.mxu1 }
 0x16b   : > { %1517 = vmatmul.bf16.gmra.mxu3 %v2861_v63  ;;  %1606 = vmatmul.bf16.gmra.mxu0 %v2865_v62 }
 0x16d   : > { %3290 = vmatmul.msk.bf16.gmra.mxu2 %vm1892_vm1, %v3444_v8  ;;  %3206 = vmatmul.msk.bf16.gmra.mxu1 %vm1149_vm2, %v2869_v58 }
 0x16e   : > { %v1478_v23 = vpop.f32.mrf.mxu3 }
 0x16f   : > { %v1479_v14 = vadd.f32 %v1478_v23, %v3798_v21 }
 0x170   : > { %v1953_v35 = vpop.f32.mrf.mxu2  ;;  %v1569_v17 = vpop.f32.mrf.mxu0 }
 0x171   : > { %v1568_v13 = vadd.f32 %v1567_v6, %v1479_v14 }
 0x172   : > { %v1658_v7 = vpop.f32.mrf.mxu1 }
 0x173   : > { %v1657_v25 = vadd.f32 %v1656_v12, %v1568_v13 }
 0x175   : > { %v1736_v33 = vmax.f32 %v1657_v25, 0.0  ;;  %v3361_v25 = vld [vmem:[%s3638_s21 + $0x1ec] sm:$0xf] }
 0x176   : > { %v1480_v52 = vpop.f32.mrf.mxu3 }
 0x177   : > { %v2033_v36 = vadd.f32 %v1953_v35, %v1736_v33  ;;  %v1481_v21 = vadd.f32 %v1480_v52, %v3813_v49 }
 0x178   : > { %v1955_v43 = vpop.f32.mrf.mxu2  ;;  %v1572_v47 = vpop.f32.mrf.mxu0 }
 0x179   : > { %2066 = vst.msk [vmem:[#allocation2] sm:$0xff] %vm2065_vm3, %v2033_v36  ;;  %v1570_v11 = vadd.f32 %v1569_v17, %v1481_v21 }
 0x17a   : > { %v1661_v54 = vpop.f32.mrf.mxu1 }
 0x17b   : > { %v1659_v59 = vadd.f32 %v1658_v7, %v1570_v11  ;;  %1522 = vmatmul.bf16.gmra.mxu3 %v2885_v24  ;;  %1611 = vmatmul.bf16.gmra.mxu0 %v2889_v46  ;;  %v2909_v24 = vor.u32 %v3361_v25, %v2906_v28  ;;  %v2913_v46 = vor.u32 %v3365_v32, %v2912_v31 }
 0x17d   : > { %3291 = vmatmul.msk.bf16.gmra.mxu2 %vm1892_vm1, %v3445_v48  ;;  %3207 = vmatmul.msk.bf16.gmra.mxu1 %vm1149_vm2, %v2893_v50  ;;  %v1737_v61 = vmax.f32 %v1659_v59, 0.0  ;;  %v3446_v48 = vld [vmem:[%s3868_s27 + $0x50] sm:$0xff]  ;;  %v2917_v50 = vor.u32 %v3362_v44, %v2914_v26 }
 0x17e   : > { %v1483_v49 = vpop.f32.mrf.mxu3  ;;  %v2930_v26 = vld [vmem:[%s3638_s21 + $0x230] sm:$0xf0] }
 0x17f   : > { %v2034_v63 = vadd.f32 %v1955_v43, %v1737_v61  ;;  %v1484_v62 = vadd.f32 %v1483_v49, %v3823_v60 }
 0x180   : > { %v1958_v6 = vpop.f32.mrf.mxu2  ;;  %v2098_v8 = vld [vmem:[#allocation2] ss:$2 sm:$0x3]  ;;  %v2100_v58 = vld [vmem:[#allocation2 + $0x1] ss:$2 sm:$0x3]  ;;  %v1574_v12 = vpop.f32.mrf.mxu0 }
 0x181   : > { %v2102_v23 = vld [vmem:[#allocation2 + $0x4] ss:$2 sm:$0x3]  ;;  %v2104_v14 = vld [vmem:[#allocation2 + $0x5] ss:$2 sm:$0x3]  ;;  %v2105_v35 = vmax.f32 %v2098_v8, %v2100_v58  ;;  %v1573_v17 = vadd.f32 %v1572_v47, %v1484_v62 }
 0x182   : > { %v1663_v13 = vpop.f32.mrf.mxu1  ;;  %v2106_v7 = vmax.f32 %v2102_v23, %v2104_v14  ;;  %2067 = vst.msk [vmem:[#allocation2 + $0x8] sm:$0xff] %vm2065_vm3, %v2034_v63 }
 0x183   : > { %v1662_v60 = vadd.f32 %v1661_v54, %v1573_v17 }
 0x184   : > { %v2107_v15 = vmax.f32 %v2105_v35, %v2106_v7 }
 0x185   : > { %v1738_v33 = vmax.f32 %v1662_v60, 0.0 }
 0x186   : > { %2109 = vst.msk [vmem:[%s4049_s6] sm:$0x3] %vm2108_vm4, %v2107_v15  ;;  %v1485_v52 = vpop.f32.mrf.mxu3  ;;  %v3367_v15 = vld [vmem:[%s3638_s21 + $0x21c] sm:$0xf] }
 0x187   : > { %v2035_v36 = vadd.f32 %v1958_v6, %v1738_v33  ;;  %v1486_v21 = vadd.f32 %v1485_v52, %v3838_v1  ;;  %v3371_v52 = vld [vmem:[%s3638_s21 + $0x234] sm:$0xf0] }
 0x188   : > { %v1960_v43 = vpop.f32.mrf.mxu2  ;;  %v1577_v47 = vpop.f32.mrf.mxu0 }
 0x189   : > { %v2111_v11 = vld [vmem:[#allocation2 + $0x8] ss:$2 sm:$0x3]  ;;  %v2113_v54 = vld [vmem:[#allocation2 + $0x9] ss:$2 sm:$0x3]  ;;  %v1575_v59 = vadd.f32 %v1574_v12, %v1486_v21 }
 0x18a   : > { %v1666_v61 = vpop.f32.mrf.mxu1  ;;  %v2115_v49 = vld [vmem:[#allocation2 + $0xc] ss:$2 sm:$0x3]  ;;  %v2117_v63 = vld [vmem:[#allocation2 + $0xd] ss:$2 sm:$0x3]  ;;  %v2118_v62 = vmax.f32 %v2111_v11, %v2113_v54  ;;  %v2933_v11 = vor.u32 %v3367_v15, %v2930_v26 }
 0x18b   : > { %v2119_v8 = vmax.f32 %v2115_v49, %v2117_v63  ;;  %2068 = vst.msk [vmem:[#allocation2 + $0x10] sm:$0xff] %vm2065_vm3, %v2035_v36  ;;  %v1664_v6 = vadd.f32 %v1663_v13, %v1575_v59  ;;  %1527 = vmatmul.bf16.gmra.mxu3 %v2909_v24  ;;  %1616 = vmatmul.bf16.gmra.mxu0 %v2913_v46  ;;  %v3368_v21 = vld [vmem:[%s3638_s21 + $0x224] sm:$0xf]  ;;  %v3447_v49 = vld [vmem:[%s3868_s27 + $0x58] sm:$0xff] }
 0x18d   : > { %3292 = vmatmul.msk.bf16.gmra.mxu2 %vm1892_vm1, %v3446_v48  ;;  %3208 = vmatmul.msk.bf16.gmra.mxu1 %vm1149_vm2, %v2917_v50  ;;  %v2120_v1 = vmax.f32 %v2118_v62, %v2119_v8  ;;  %v1739_v58 = vmax.f32 %v1664_v6, 0.0 }
 0x18e   : > { %v1488_v23 = vpop.f32.mrf.mxu3 }
 0x18f   : > { %2121 = vst.msk [vmem:[%s4049_s6 + $0x2] sm:$0x3] %vm2108_vm4, %v2120_v1  ;;  %v2036_v12 = vadd.f32 %v1960_v43, %v1739_v58  ;;  %v1489_v14 = vadd.f32 %v1488_v23, %v3842_v27  ;;  %v2936_v27 = vld [vmem:[%s3638_s21 + $0x220] sm:$0xf]  ;;  %v2938_v43 = vld [vmem:[%s3638_s21 + $0x238] sm:$0xf0] }
 0x190   : > { %v1963_v35 = vpop.f32.mrf.mxu2  ;;  %v1579_v17 = vpop.f32.mrf.mxu0  ;;  %v2937_v54 = vor.u32 %v3371_v52, %v2936_v27  ;;  %v2941_v63 = vor.u32 %v3368_v21, %v2938_v43  ;;  %v2960_v21 = vld [vmem:[%s3638_s21 + $0x250] sm:$0xf]  ;;  %v3377_v43 = vld [vmem:[%s3638_s21 + $0x264] sm:$0xf0] }
 0x191   : > { %2069 = vst.msk [vmem:[#allocation2 + $0x18] sm:$0xff] %vm2065_vm3, %v2036_v12  ;;  %v1578_v13 = vadd.f32 %v1577_v47, %v1489_v14 }
 0x192   : > { %v1668_v7 = vpop.f32.mrf.mxu1  ;;  %v2123_v60 = vld [vmem:[#allocation2 + $0x10] ss:$2 sm:$0x3]  ;;  %v2125_v25 = vld [vmem:[#allocation2 + $0x11] ss:$2 sm:$0x3] }
 0x193   : > { %v2127_v28 = vld [vmem:[#allocation2 + $0x14] ss:$2 sm:$0x3]  ;;  %v2129_v31 = vld [vmem:[#allocation2 + $0x15] ss:$2 sm:$0x3]  ;;  %v2130_v32 = vmax.f32 %v2123_v60, %v2125_v25  ;;  %v1667_v33 = vadd.f32 %v1666_v61, %v1578_v13 }
 0x194   : > { %v2131_v44 = vmax.f32 %v2127_v28, %v2129_v31 }
 0x195   : > { %v1740_v36 = vmax.f32 %v1667_v33, 0.0 }
 0x196   : > { %v2132_v24 = vmax.f32 %v2130_v32, %v2131_v44  ;;  %v1490_v46 = vpop.f32.mrf.mxu3 }
 0x197   : > { %v2037_v47 = vadd.f32 %v1963_v35, %v1740_v36  ;;  %v1491_v48 = vadd.f32 %v1490_v46, %v3854_v42  ;;  %v3373_v36 = vld [vmem:[%s3638_s21 + $0x24c] sm:$0xf] }
 0x198   : > { %v1965_v50 = vpop.f32.mrf.mxu2  ;;  %2133 = vst.msk [vmem:[%s4049_s6 + $0x4] sm:$0x3] %vm2108_vm4, %v2132_v24  ;;  %v2135_v59 = vld [vmem:[#allocation2 + $0x18] ss:$2 sm:$0x3]  ;;  %v1582_v61 = vpop.f32.mrf.mxu0 }
 0x199   : > { %v2137_v62 = vld [vmem:[#allocation2 + $0x19] ss:$2 sm:$0x3]  ;;  %v2139_v8 = vld [vmem:[#allocation2 + $0x1c] ss:$2 sm:$0x3]  ;;  %v1580_v6 = vadd.f32 %v1579_v17, %v1491_v48 }
 0x19a   : > { %v1671_v1 = vpop.f32.mrf.mxu1  ;;  %v2141_v58 = vld [vmem:[#allocation2 + $0x1d] ss:$2 sm:$0x3]  ;;  %v2142_v23 = vmax.f32 %v2135_v59, %v2137_v62  ;;  %2070 = vst.msk [vmem:[#allocation2 + $0x20] sm:$0xff] %vm2065_vm3, %v2037_v47  ;;  %v3374_v47 = vld [vmem:[%s3638_s21 + $0x254] sm:$0xf] }
 0x19b   : > { %v2143_v12 = vmax.f32 %v2139_v8, %v2141_v58  ;;  %v1669_v42 = vadd.f32 %v1668_v7, %v1580_v6  ;;  %1532 = vmatmul.bf16.gmra.mxu3 %v2933_v11  ;;  %1621 = vmatmul.bf16.gmra.mxu0 %v2937_v54  ;;  %v2962_v48 = vld [vmem:[%s3638_s21 + $0x268] sm:$0xf0]  ;;  %v3448_v62 = vld [vmem:[%s3868_s27 + $0x60] sm:$0xff] }
 0x19c   : > { %v2965_v8 = vor.u32 %v3374_v47, %v2962_v48  ;;  %v3380_v48 = vld [vmem:[%s3638_s21 + $0x284] sm:$0xf] }
 0x19d   : > { %3293 = vmatmul.msk.bf16.gmra.mxu2 %vm1892_vm1, %v3447_v49  ;;  %3209 = vmatmul.msk.bf16.gmra.mxu1 %vm1149_vm2, %v2941_v63  ;;  %v2144_v14 = vmax.f32 %v2142_v23, %v2143_v12  ;;  %v1741_v35 = vmax.f32 %v1669_v42, 0.0  ;;  %v2961_v49 = vor.u32 %v3377_v43, %v2960_v21  ;;  %v2978_v21 = vld [vmem:[%s3638_s21 + $0x290] sm:$0xf0]  ;;  %v2984_v43 = vld [vmem:[%s3638_s21 + $0x280] sm:$0xf] }
 0x19e   : > { %v1493_v13 = vpop.f32.mrf.mxu3 }
 0x19f   : > { %2145 = vst.msk [vmem:[%s4049_s6 + $0x6] sm:$0x3] %vm2108_vm4, %v2144_v14  ;;  %v2038_v17 = vadd.f32 %v1965_v50, %v1741_v35  ;;  %v1494_v60 = vadd.f32 %v1493_v13, %v3858_v53  ;;  %v2954_v53 = vld [vmem:[%s3638_s21 + $0x260] sm:$0xf0] }
 0x1a0   : > { %v1968_v25 = vpop.f32.mrf.mxu2  ;;  %v1584_v7 = vpop.f32.mrf.mxu0 }
 0x1a1   : > { %v2147_v15 = vld [vmem:[#allocation2 + $0x20] ss:$2 sm:$0x3]  ;;  %v2149_v28 = vld [vmem:[#allocation2 + $0x21] ss:$2 sm:$0x3]  ;;  %v1583_v31 = vadd.f32 %v1582_v61, %v1494_v60  ;;  %v2957_v61 = vor.u32 %v3373_v36, %v2954_v53 }
 0x1a2   : > { %v1673_v32 = vpop.f32.mrf.mxu1  ;;  %v2151_v33 = vld [vmem:[#allocation2 + $0x24] ss:$2 sm:$0x3]  ;;  %v2153_v44 = vld [vmem:[#allocation2 + $0x25] ss:$2 sm:$0x3]  ;;  %v2154_v26 = vmax.f32 %v2147_v15, %v2149_v28 }
 0x1a3   : > { %v2155_v27 = vmax.f32 %v2151_v33, %v2153_v44  ;;  %2071 = vst.msk [vmem:[#allocation2 + $0x28] sm:$0xff] %vm2065_vm3, %v2038_v17  ;;  %v1672_v52 = vadd.f32 %v1671_v1, %v1583_v31  ;;  %v3379_v53 = vld [vmem:[%s3638_s21 + $0x27c] sm:$0xf] }
 0x1a5   : > { %v2156_v24 = vmax.f32 %v2154_v26, %v2155_v27  ;;  %v1742_v46 = vmax.f32 %v1672_v52, 0.0 }
 0x1a6   : > { %v1495_v50 = vpop.f32.mrf.mxu3 }
 0x1a7   : > { %2157 = vst.msk [vmem:[%s4049_s6 + $0x8] sm:$0x3] %vm2108_vm4, %v2156_v24  ;;  %v2039_v11 = vadd.f32 %v1968_v25, %v1742_v46  ;;  %v1496_v54 = vadd.f32 %v1495_v50, %v3874_v9  ;;  %v3383_v24 = vld [vmem:[%s3638_s21 + $0x294] sm:$0xf0]  ;;  %v2986_v50 = vld [vmem:[%s3638_s21 + $0x298] sm:$0xf0] }
 0x1a8   : > { %v1970_v59 = vpop.f32.mrf.mxu2  ;;  %v1587_v63 = vpop.f32.mrf.mxu0 }
 0x1a9   : > { %2072 = vst.msk [vmem:[#allocation2 + $0x30] sm:$0xff] %vm2065_vm3, %v2039_v11  ;;  %v1585_v6 = vadd.f32 %v1584_v7, %v1496_v54 }
 0x1aa   : > { %v1676_v1 = vpop.f32.mrf.mxu1  ;;  %v2159_v58 = vld [vmem:[#allocation2 + $0x28] ss:$2 sm:$0x3]  ;;  %v2161_v23 = vld [vmem:[#allocation2 + $0x29] ss:$2 sm:$0x3] }
 0x1ab   : > { %v2163_v12 = vld [vmem:[#allocation2 + $0x2c] ss:$2 sm:$0x3]  ;;  %v2165_v42 = vld [vmem:[#allocation2 + $0x2d] ss:$2 sm:$0x3]  ;;  %v2166_v14 = vmax.f32 %v2159_v58, %v2161_v23  ;;  %v1674_v35 = vadd.f32 %v1673_v32, %v1585_v6  ;;  %1537 = vmatmul.bf16.gmra.mxu3 %v2957_v61  ;;  %1626 = vmatmul.bf16.gmra.mxu0 %v2961_v49  ;;  %v2981_v49 = vor.u32 %v3379_v53, %v2978_v21 }
 0x1ac   : > { %v2167_v9 = vmax.f32 %v2163_v12, %v2165_v42  ;;  %v2989_v6 = vor.u32 %v3380_v48, %v2986_v50  ;;  %v3002_v21 = vld [vmem:[%s3638_s21 + $0x2c0] sm:$0xf0] }
 0x1ad   : > { %3294 = vmatmul.msk.bf16.gmra.mxu2 %vm1892_vm1, %v3448_v62  ;;  %3210 = vmatmul.msk.bf16.gmra.mxu1 %vm1149_vm2, %v2965_v8  ;;  %v1743_v13 = vmax.f32 %v1674_v35, 0.0  ;;  %v3449_v8 = vld [vmem:[%s3868_s27 + $0x68] sm:$0xff] }
 0x1ae   : > { %v2168_v17 = vmax.f32 %v2166_v14, %v2167_v9  ;;  %v1498_v60 = vpop.f32.mrf.mxu3 }
 0x1af   : > { %v2040_v25 = vadd.f32 %v1970_v59, %v1743_v13  ;;  %v1499_v7 = vadd.f32 %v1498_v60, %v3882_v10 }
 0x1b0   : > { %v1973_v15 = vpop.f32.mrf.mxu2  ;;  %2169 = vst.msk [vmem:[%s4049_s6 + $0xa] sm:$0x3] %vm2108_vm4, %v2168_v17  ;;  %v2171_v28 = vld [vmem:[#allocation2 + $0x30] ss:$2 sm:$0x3]  ;;  %v1589_v31 = vpop.f32.mrf.mxu0 }
 0x1b1   : > { %v2173_v32 = vld [vmem:[#allocation2 + $0x31] ss:$2 sm:$0x3]  ;;  %v2175_v33 = vld [vmem:[#allocation2 + $0x34] ss:$2 sm:$0x3]  ;;  %v1588_v44 = vadd.f32 %v1587_v63, %v1499_v7  ;;  %v2985_v63 = vor.u32 %v3383_v24, %v2984_v43 }
 0x1b2   : > { %v1678_v26 = vpop.f32.mrf.mxu1  ;;  %v2177_v27 = vld [vmem:[#allocation2 + $0x35] ss:$2 sm:$0x3]  ;;  %v2178_v52 = vmax.f32 %v2171_v28, %v2173_v32  ;;  %2073 = vst.msk [vmem:[#allocation2 + $0x38] sm:$0xff] %vm2065_vm3, %v2040_v25  ;;  %v3389_v43 = vld [vmem:[%s3638_s21 + $0x2c4] sm:$0xf0] }
 0x1b3   : > { %v2179_v36 = vmax.f32 %v2175_v33, %v2177_v27  ;;  %v1677_v10 = vadd.f32 %v1676_v1, %v1588_v44 }
 0x1b5   : > { %v2180_v46 = vmax.f32 %v2178_v52, %v2179_v36  ;;  %v1744_v47 = vmax.f32 %v1677_v10, 0.0 }
 0x1b6   : > { %v1500_v11 = vpop.f32.mrf.mxu3 }
 0x1b7   : > { %2181 = vst.msk [vmem:[%s4049_s6 + $0xc] sm:$0x3] %vm2108_vm4, %v2180_v46  ;;  %v2041_v54 = vadd.f32 %v1973_v15, %v1744_v47  ;;  %v1501_v59 = vadd.f32 %v1500_v11, %v3893_v40  ;;  %v3386_v46 = vld [vmem:[%s3638_s21 + $0x2b4] sm:$0xf]  ;;  %v3010_v47 = vld [vmem:[%s3638_s21 + $0x2c8] sm:$0xf0] }
 0x1b8   : > { %v1975_v61 = vpop.f32.mrf.mxu2  ;;  %v1592_v62 = vpop.f32.mrf.mxu0 }
 0x1b9   : > { %v2183_v1 = vld [vmem:[#allocation2 + $0x38] ss:$2 sm:$0x3]  ;;  %v2185_v58 = vld [vmem:[#allocation2 + $0x39] ss:$2 sm:$0x3]  ;;  %v1590_v23 = vadd.f32 %v1589_v31, %v1501_v59 }
 0x1ba   : > { %v1681_v12 = vpop.f32.mrf.mxu1  ;;  %v2187_v42 = vld [vmem:[#allocation2 + $0x3c] ss:$2 sm:$0x3]  ;;  %v2189_v14 = vld [vmem:[#allocation2 + $0x3d] ss:$2 sm:$0x3]  ;;  %v2190_v35 = vmax.f32 %v2183_v1, %v2185_v58 }
 0x1bb   : > { %v2191_v9 = vmax.f32 %v2187_v42, %v2189_v14  ;;  %2074 = vst.msk [vmem:[#allocation2 + $0x40] sm:$0xff] %vm2065_vm3, %v2041_v54  ;;  %v1679_v13 = vadd.f32 %v1678_v26, %v1590_v23  ;;  %1542 = vmatmul.bf16.gmra.mxu3 %v2981_v49  ;;  %1631 = vmatmul.bf16.gmra.mxu0 %v2985_v63  ;;  %v3385_v26 = vld [vmem:[%s3638_s21 + $0x2ac] sm:$0xf] }
 0x1bd   : > { %3295 = vmatmul.msk.bf16.gmra.mxu2 %vm1892_vm1, %v3449_v8  ;;  %3211 = vmatmul.msk.bf16.gmra.mxu1 %vm1149_vm2, %v2989_v6  ;;  %v2192_v40 = vmax.f32 %v2190_v35, %v2191_v9  ;;  %v1745_v17 = vmax.f32 %v1679_v13, 0.0  ;;  %v3450_v8 = vld [vmem:[%s3868_s27 + $0x70] sm:$0xff]  ;;  %v3013_v6 = vor.u32 %v3386_v46, %v3010_v47 }
 0x1be   : > { %v1503_v60 = vpop.f32.mrf.mxu3 }
 0x1bf   : > { %2193 = vst.msk [vmem:[%s4049_s6 + $0xe] sm:$0x3] %vm2108_vm4, %v2192_v40  ;;  %v2042_v25 = vadd.f32 %v1975_v61, %v1745_v17  ;;  %v1504_v7 = vadd.f32 %v1503_v60, %v3901_v55  ;;  %v3008_v55 = vld [vmem:[%s3638_s21 + $0x2b0] sm:$0xf]  ;;  %v3005_v61 = vor.u32 %v3385_v26, %v3002_v21  ;;  %v3395_v21 = vld [vmem:[%s3638_s21 + $0x2f4] sm:$0xf0] }
 0x1c0   : > { %v1978_v15 = vpop.f32.mrf.mxu2  ;;  %v1594_v28 = vpop.f32.mrf.mxu0  ;;  %v3009_v49 = vor.u32 %v3389_v43, %v3008_v55  ;;  %v3392_v43 = vld [vmem:[%s3638_s21 + $0x2e4] sm:$0xf] }
 0x1c1   : > { %2075 = vst.msk [vmem:[#allocation2 + $0x48] sm:$0xff] %vm2065_vm3, %v2042_v25  ;;  %v1593_v31 = vadd.f32 %v1592_v62, %v1504_v7 }
 0x1c2   : > { %v1683_v32 = vpop.f32.mrf.mxu1  ;;  %v2195_v33 = vld [vmem:[#allocation2 + $0x40] ss:$2 sm:$0x3]  ;;  %v2197_v44 = vld [vmem:[#allocation2 + $0x41] ss:$2 sm:$0x3] }
 0x1c3   : > { %v2199_v27 = vld [vmem:[#allocation2 + $0x44] ss:$2 sm:$0x3]  ;;  %v2201_v52 = vld [vmem:[#allocation2 + $0x45] ss:$2 sm:$0x3]  ;;  %v2202_v36 = vmax.f32 %v2195_v33, %v2197_v44  ;;  %v1682_v10 = vadd.f32 %v1681_v12, %v1593_v31 }
 0x1c4   : > { %v2203_v53 = vmax.f32 %v2199_v27, %v2201_v52 }
 0x1c5   : > { %v1746_v24 = vmax.f32 %v1682_v10, 0.0  ;;  %v3026_v10 = vld [vmem:[%s3638_s21 + $0x2f0] sm:$0xf0] }
 0x1c6   : > { %v2204_v48 = vmax.f32 %v2202_v36, %v2203_v53  ;;  %v1505_v50 = vpop.f32.mrf.mxu3  ;;  %v3391_v36 = vld [vmem:[%s3638_s21 + $0x2dc] sm:$0xf]  ;;  %v3032_v53 = vld [vmem:[%s3638_s21 + $0x2e0] sm:$0xf] }
 0x1c7   : > { %v2043_v11 = vadd.f32 %v1978_v15, %v1746_v24  ;;  %v1506_v54 = vadd.f32 %v1505_v50, %v3912_v18  ;;  %v3034_v24 = vld [vmem:[%s3638_s21 + $0x2f8] sm:$0xf0]  ;;  %s2653_s21 = sshll.u32 %s4271_s19, 1 }
 0x1c8   : > { %v1980_v59 = vpop.f32.mrf.mxu2  ;;  %2205 = vst.msk [vmem:[%s4049_s6 + $0x10] sm:$0x3] %vm2108_vm4, %v2204_v48  ;;  %v2207_v63 = vld [vmem:[#allocation2 + $0x48] ss:$2 sm:$0x3]  ;;  %v1597_v62 = vpop.f32.mrf.mxu0  ;;  %s263_s9 = scalar_lea.vmem %s4265_s5, %s2653_s21 }
 0x1c9   : > { %v2209_v1 = vld [vmem:[#allocation2 + $0x49] ss:$2 sm:$0x3]  ;;  %2076 = vst.msk [vmem:[#allocation2 + $0x50] sm:$0xff] %vm2065_vm3, %v2043_v11  ;;  %v1595_v58 = vadd.f32 %v1594_v28, %v1506_v54  ;;  %v3029_v11 = vor.u32 %v3391_v36, %v3026_v10  ;;  %v3033_v54 = vor.u32 %v3395_v21, %v3032_v53 }
 0x1ca   : > { %v1686_v23 = vpop.f32.mrf.mxu1  ;;  %v2211_v12 = vld [vmem:[#allocation2 + $0x4c] ss:$2 sm:$0x3]  ;;  %v2213_v42 = vld [vmem:[#allocation2 + $0x4d] ss:$2 sm:$0x3]  ;;  %v2214_v14 = vmax.f32 %v2207_v63, %v2209_v1 }
 0x1cb   : > { %v2215_v35 = vmax.f32 %v2211_v12, %v2213_v42  ;;  %v1684_v18 = vadd.f32 %v1683_v32, %v1595_v58  ;;  %1547 = vmatmul.bf16.gmra.mxu3 %v3005_v61  ;;  %1636 = vmatmul.bf16.gmra.mxu0 %v3009_v49  ;;  %v3451_v61 = vld [vmem:[%s3868_s27 + $0x78] sm:$0xff]  ;;  %v3037_v49 = vor.u32 %v3392_v43, %v3034_v24 }
 0x1cd   : > { %3296 = vmatmul.msk.bf16.gmra.mxu2 %vm1892_vm1, %v3450_v8  ;;  %3212 = vmatmul.msk.bf16.gmra.mxu1 %vm1149_vm2, %v3013_v6  ;;  %v2216_v9 = vmax.f32 %v2214_v14, %v2215_v35  ;;  %v1747_v13 = vmax.f32 %v1684_v18, 0.0 }
 0x1ce   : > { %v1508_v40 = vpop.f32.mrf.mxu3 }
 0x1cf   : > { %2217 = vst.msk [vmem:[%s4049_s6 + $0x12] sm:$0x3] %vm2108_vm4, %v2216_v9  ;;  %v2044_v17 = vadd.f32 %v1980_v59, %v1747_v13  ;;  %v1509_v60 = vadd.f32 %v1508_v40, %v3920_v30 }
 0x1d0   : > { %v1983_v25 = vpop.f32.mrf.mxu2  ;;  %v2219_v7 = vld [vmem:[#allocation2 + $0x50] ss:$2 sm:$0x3]  ;;  %v2221_v15 = vld [vmem:[#allocation2 + $0x51] ss:$2 sm:$0x3]  ;;  %v1599_v28 = vpop.f32.mrf.mxu0 }
 0x1d1   : > { %v2223_v31 = vld [vmem:[#allocation2 + $0x54] ss:$2 sm:$0x3]  ;;  %v2225_v32 = vld [vmem:[#allocation2 + $0x55] ss:$2 sm:$0x3]  ;;  %v2226_v33 = vmax.f32 %v2219_v7, %v2221_v15  ;;  %v1598_v44 = vadd.f32 %v1597_v62, %v1509_v60 }
 0x1d2   : > { %v1688_v26 = vpop.f32.mrf.mxu1  ;;  %v2227_v27 = vmax.f32 %v2223_v31, %v2225_v32  ;;  %2077 = vst.msk [vmem:[#allocation2 + $0x58] sm:$0xff] %vm2065_vm3, %v2044_v17 }
 0x1d3   : > { %v1687_v52 = vadd.f32 %v1686_v23, %v1598_v44 }
 0x1d4   : > { %v2228_v30 = vmax.f32 %v2226_v33, %v2227_v27 }
 0x1d5   : > { %v1748_v55 = vmax.f32 %v1687_v52, 0.0 }
 0x1d6   : > { %2229 = vst.msk [vmem:[%s4049_s6 + $0x14] sm:$0x3] %vm2108_vm4, %v2228_v30  ;;  %v1510_v46 = vpop.f32.mrf.mxu3 }
 0x1d7   : > { %v2045_v47 = vadd.f32 %v1983_v25, %v1748_v55  ;;  %v1511_v48 = vadd.f32 %v1510_v46, %v3931_v45 }
 0x1d8   : > { %v1985_v50 = vpop.f32.mrf.mxu2  ;;  %v1602_v59 = vpop.f32.mrf.mxu0 }
 0x1d9   : > { %v2231_v63 = vld [vmem:[#allocation2 + $0x58] ss:$2 sm:$0x3]  ;;  %v2233_v62 = vld [vmem:[#allocation2 + $0x59] ss:$2 sm:$0x3]  ;;  %v1600_v8 = vadd.f32 %v1599_v28, %v1511_v48 }
 0x1da   : > { %v1691_v6 = vpop.f32.mrf.mxu1  ;;  %v2235_v1 = vld [vmem:[#allocation2 + $0x5c] ss:$2 sm:$0x3]  ;;  %v2237_v58 = vld [vmem:[#allocation2 + $0x5d] ss:$2 sm:$0x3]  ;;  %v2238_v23 = vmax.f32 %v2231_v63, %v2233_v62 }
 0x1db   : > { %v2239_v12 = vmax.f32 %v2235_v1, %v2237_v58  ;;  %2078 = vst.msk [vmem:[#allocation2 + $0x60] sm:$0xff] %vm2065_vm3, %v2045_v47  ;;  %v1689_v42 = vadd.f32 %v1688_v26, %v1600_v8  ;;  %1552 = vmatmul.bf16.gmra.mxu3 %v3029_v11  ;;  %1641 = vmatmul.bf16.gmra.mxu0 %v3033_v54 }
 0x1dd   : > { %3297 = vmatmul.msk.bf16.gmra.mxu2 %vm1892_vm1, %v3451_v61  ;;  %3213 = vmatmul.msk.bf16.gmra.mxu1 %vm1149_vm2, %v3037_v49  ;;  %v2240_v45 = vmax.f32 %v2238_v23, %v2239_v12  ;;  %v1749_v14 = vmax.f32 %v1689_v42, 0.0 }
 0x1de   : > { %v1513_v35 = vpop.f32.mrf.mxu3 }
 0x1df   : > { %2241 = vst.msk [vmem:[%s4049_s6 + $0x16] sm:$0x3] %vm2108_vm4, %v2240_v45  ;;  %v2046_v18 = vadd.f32 %v1985_v50, %v1749_v14  ;;  %v1514_v9 = vadd.f32 %v1513_v35, %v3939_v2 }
 0x1e0   : > { %v1988_v13 = vpop.f32.mrf.mxu2  ;;  %v1604_v40 = vpop.f32.mrf.mxu0 }
 0x1e1   : > { %2079 = vst.msk [vmem:[#allocation2 + $0x68] sm:$0xff] %vm2065_vm3, %v2046_v18  ;;  %v1603_v17 = vadd.f32 %v1602_v59, %v1514_v9 }
 0x1e2   : > { %v1693_v60 = vpop.f32.mrf.mxu1  ;;  %v2243_v25 = vld [vmem:[#allocation2 + $0x60] ss:$2 sm:$0x3]  ;;  %v2245_v7 = vld [vmem:[#allocation2 + $0x61] ss:$2 sm:$0x3] }
 0x1e3   : > { %v2247_v15 = vld [vmem:[#allocation2 + $0x64] ss:$2 sm:$0x3]  ;;  %v2249_v28 = vld [vmem:[#allocation2 + $0x65] ss:$2 sm:$0x3]  ;;  %v2250_v31 = vmax.f32 %v2243_v25, %v2245_v7  ;;  %v1692_v32 = vadd.f32 %v1691_v6, %v1603_v17 }
 0x1e4   : > { %v2251_v33 = vmax.f32 %v2247_v15, %v2249_v28 }
 0x1e5   : > { %v1750_v44 = vmax.f32 %v1692_v32, 0.0 }
 0x1e6   : > { %v2252_v26 = vmax.f32 %v2250_v31, %v2251_v33  ;;  %v1515_v27 = vpop.f32.mrf.mxu3 }
 0x1e7   : > { %v2047_v52 = vadd.f32 %v1988_v13, %v1750_v44  ;;  %v1516_v2 = vadd.f32 %v1515_v27, %v3950_v29 }
 0x1e8   : > { %v1990_v36 = vpop.f32.mrf.mxu2  ;;  %2253 = vst.msk [vmem:[%s4049_s6 + $0x18] sm:$0x3] %vm2108_vm4, %v2252_v26  ;;  %v2255_v30 = vld [vmem:[#allocation2 + $0x68] ss:$2 sm:$0x3]  ;;  %v1607_v10 = vpop.f32.mrf.mxu0 }
 0x1e9   : > { %v2257_v53 = vld [vmem:[#allocation2 + $0x69] ss:$2 sm:$0x3]  ;;  %2080 = vst.msk [vmem:[#allocation2 + $0x70] sm:$0xff] %vm2065_vm3, %v2047_v52  ;;  %v1605_v21 = vadd.f32 %v1604_v40, %v1516_v2 }
 0x1ea   : > { %v1696_v55 = vpop.f32.mrf.mxu1  ;;  %v2259_v43 = vld [vmem:[#allocation2 + $0x6c] ss:$2 sm:$0x3]  ;;  %v2261_v24 = vld [vmem:[#allocation2 + $0x6d] ss:$2 sm:$0x3]  ;;  %v2262_v46 = vmax.f32 %v2255_v30, %v2257_v53 }
 0x1eb   : > { %v2263_v47 = vmax.f32 %v2259_v43, %v2261_v24  ;;  %v1694_v48 = vadd.f32 %v1693_v60, %v1605_v21 }
 0x1ed   : > { %v2264_v50 = vmax.f32 %v2262_v46, %v2263_v47  ;;  %v1751_v11 = vmax.f32 %v1694_v48, 0.0 }
 0x1ee   : > { %v1518_v54 = vpop.f32.mrf.mxu3 }
 0x1ef   : > { %2265 = vst.msk [vmem:[%s4049_s6 + $0x1a] sm:$0x3] %vm2108_vm4, %v2264_v50  ;;  %v2048_v29 = vadd.f32 %v1990_v36, %v1751_v11  ;;  %v1519_v59 = vadd.f32 %v1518_v54, %v3958_v39 }
 0x1f0   : > { %v1993_v61 = vpop.f32.mrf.mxu2  ;;  %v2267_v49 = vld [vmem:[#allocation2 + $0x70] ss:$2 sm:$0x3]  ;;  %v2269_v63 = vld [vmem:[#allocation2 + $0x71] ss:$2 sm:$0x3]  ;;  %v1609_v62 = vpop.f32.mrf.mxu0 }
 0x1f1   : > { %v2271_v8 = vld [vmem:[#allocation2 + $0x74] ss:$2 sm:$0x3]  ;;  %v2273_v6 = vld [vmem:[#allocation2 + $0x75] ss:$2 sm:$0x3]  ;;  %v2274_v1 = vmax.f32 %v2267_v49, %v2269_v63  ;;  %v1608_v58 = vadd.f32 %v1607_v10, %v1519_v59 }
 0x1f2   : > { %v1698_v23 = vpop.f32.mrf.mxu1  ;;  %v2275_v12 = vmax.f32 %v2271_v8, %v2273_v6  ;;  %2081 = vst.msk [vmem:[#allocation2 + $0x78] sm:$0xff] %vm2065_vm3, %v2048_v29 }
 0x1f3   : > { %v1697_v42 = vadd.f32 %v1696_v55, %v1608_v58 }
 0x1f4   : > { %v2276_v45 = vmax.f32 %v2274_v1, %v2275_v12 }
 0x1f5   : > { %v1752_v14 = vmax.f32 %v1697_v42, 0.0 }
 0x1f6   : > { %2277 = vst.msk [vmem:[%s4049_s6 + $0x1c] sm:$0x3] %vm2108_vm4, %v2276_v45  ;;  %v1520_v35 = vpop.f32.mrf.mxu3 }
 0x1f7   : > { %v2049_v18 = vadd.f32 %v1993_v61, %v1752_v14  ;;  %v1521_v39 = vadd.f32 %v1520_v35, %v3969_v0 }
 0x1f8   : > { %v1995_v9 = vpop.f32.mrf.mxu2  ;;  %v1612_v13 = vpop.f32.mrf.mxu0 }
 0x1f9   : > { %v2279_v40 = vld [vmem:[#allocation2 + $0x78] ss:$2 sm:$0x3]  ;;  %v2281_v17 = vld [vmem:[#allocation2 + $0x79] ss:$2 sm:$0x3]  ;;  %v1610_v60 = vadd.f32 %v1609_v62, %v1521_v39 }
 0x1fa   : > { %v1701_v25 = vpop.f32.mrf.mxu1  ;;  %v2283_v7 = vld [vmem:[#allocation2 + $0x7c] ss:$2 sm:$0x3]  ;;  %v2285_v15 = vld [vmem:[#allocation2 + $0x7d] ss:$2 sm:$0x3]  ;;  %v2286_v28 = vmax.f32 %v2279_v40, %v2281_v17 }
 0x1fb   : > { %v2287_v31 = vmax.f32 %v2283_v7, %v2285_v15  ;;  %2082 = vst.msk [vmem:[#allocation2 + $0x80] sm:$0xff] %vm2065_vm3, %v2049_v18  ;;  %v1699_v32 = vadd.f32 %v1698_v23, %v1610_v60 }
 0x1fd   : > { %v2288_v33 = vmax.f32 %v2286_v28, %v2287_v31  ;;  %v1753_v44 = vmax.f32 %v1699_v32, 0.0 }
 0x1fe   : > { %v1523_v26 = vpop.f32.mrf.mxu3 }
 0x1ff   : > { %2289 = vst.msk [vmem:[%s4049_s6 + $0x1e] sm:$0x3] %vm2108_vm4, %v2288_v33  ;;  %v2050_v0 = vadd.f32 %v1995_v9, %v1753_v44  ;;  %v1524_v27 = vadd.f32 %v1523_v26, %v3977_v20 }
 0x200   : > { %v1998_v52 = vpop.f32.mrf.mxu2  ;;  %v1614_v2 = vpop.f32.mrf.mxu0 }
 0x201   : > { %2083 = vst.msk [vmem:[#allocation2 + $0x88] sm:$0xff] %vm2065_vm3, %v2050_v0  ;;  %v1613_v36 = vadd.f32 %v1612_v13, %v1524_v27 }
 0x202   : > { %v1703_v30 = vpop.f32.mrf.mxu1  ;;  %v2291_v10 = vld [vmem:[#allocation2 + $0x80] ss:$2 sm:$0x3]  ;;  %v2293_v53 = vld [vmem:[#allocation2 + $0x81] ss:$2 sm:$0x3] }
 0x203   : > { %v2295_v21 = vld [vmem:[#allocation2 + $0x84] ss:$2 sm:$0x3]  ;;  %v2297_v55 = vld [vmem:[#allocation2 + $0x85] ss:$2 sm:$0x3]  ;;  %v2298_v43 = vmax.f32 %v2291_v10, %v2293_v53  ;;  %v1702_v24 = vadd.f32 %v1701_v25, %v1613_v36 }
 0x204   : > { %v2299_v46 = vmax.f32 %v2295_v21, %v2297_v55 }
 0x205   : > { %v1754_v47 = vmax.f32 %v1702_v24, 0.0 }
 0x206   : > { %v2300_v48 = vmax.f32 %v2298_v43, %v2299_v46  ;;  %v1525_v50 = vpop.f32.mrf.mxu3 }
 0x207   : > { %v2051_v11 = vadd.f32 %v1998_v52, %v1754_v47  ;;  %v1526_v20 = vadd.f32 %v1525_v50, %v3988_v41 }
 0x208   : > { %v2000_v54 = vpop.f32.mrf.mxu2  ;;  %2301 = vst.msk [vmem:[%s4049_s6 + $0x20] sm:$0x3] %vm2108_vm4, %v2300_v48  ;;  %v2303_v29 = vld [vmem:[#allocation2 + $0x88] ss:$2 sm:$0x3]  ;;  %v1617_v59 = vpop.f32.mrf.mxu0 }
 0x209   : > { %v2305_v61 = vld [vmem:[#allocation2 + $0x89] ss:$2 sm:$0x3]  ;;  %2084 = vst.msk [vmem:[#allocation2 + $0x90] sm:$0xff] %vm2065_vm3, %v2051_v11  ;;  %v1615_v49 = vadd.f32 %v1614_v2, %v1526_v20 }
 0x20a   : > { %v1706_v63 = vpop.f32.mrf.mxu1  ;;  %v2307_v62 = vld [vmem:[#allocation2 + $0x8c] ss:$2 sm:$0x3]  ;;  %v2309_v8 = vld [vmem:[#allocation2 + $0x8d] ss:$2 sm:$0x3]  ;;  %v2310_v6 = vmax.f32 %v2303_v29, %v2305_v61 }
 0x20b   : > { %v2311_v1 = vmax.f32 %v2307_v62, %v2309_v8  ;;  %v1704_v58 = vadd.f32 %v1703_v30, %v1615_v49 }
 0x20d   : > { %v2312_v23 = vmax.f32 %v2310_v6, %v2311_v1  ;;  %v1755_v12 = vmax.f32 %v1704_v58, 0.0 }
 0x20e   : > { %v1528_v42 = vpop.f32.mrf.mxu3 }
 0x20f   : > { %2313 = vst.msk [vmem:[%s4049_s6 + $0x22] sm:$0x3] %vm2108_vm4, %v2312_v23  ;;  %v2052_v41 = vadd.f32 %v2000_v54, %v1755_v12  ;;  %v1529_v45 = vadd.f32 %v1528_v42, %v3996_v57 }
 0x210   : > { %v2003_v14 = vpop.f32.mrf.mxu2  ;;  %v2315_v35 = vld [vmem:[#allocation2 + $0x90] ss:$2 sm:$0x3]  ;;  %v2317_v18 = vld [vmem:[#allocation2 + $0x91] ss:$2 sm:$0x3]  ;;  %v1619_v39 = vpop.f32.mrf.mxu0 }
 0x211   : > { %v2319_v9 = vld [vmem:[#allocation2 + $0x94] ss:$2 sm:$0x3]  ;;  %v2321_v13 = vld [vmem:[#allocation2 + $0x95] ss:$2 sm:$0x3]  ;;  %v2322_v40 = vmax.f32 %v2315_v35, %v2317_v18  ;;  %v1618_v17 = vadd.f32 %v1617_v59, %v1529_v45 }
 0x212   : > { %v1708_v60 = vpop.f32.mrf.mxu1  ;;  %v2323_v25 = vmax.f32 %v2319_v9, %v2321_v13  ;;  %2085 = vst.msk [vmem:[#allocation2 + $0x98] sm:$0xff] %vm2065_vm3, %v2052_v41 }
 0x213   : > { %v1707_v7 = vadd.f32 %v1706_v63, %v1618_v17 }
 0x214   : > { %v2324_v15 = vmax.f32 %v2322_v40, %v2323_v25 }
 0x215   : > { %v1756_v28 = vmax.f32 %v1707_v7, 0.0 }
 0x216   : > { %2325 = vst.msk [vmem:[%s4049_s6 + $0x24] sm:$0x3] %vm2108_vm4, %v2324_v15  ;;  %v1530_v31 = vpop.f32.mrf.mxu3 }
 0x217   : > { %v2053_v32 = vadd.f32 %v2003_v14, %v1756_v28  ;;  %v1531_v57 = vadd.f32 %v1530_v31, %v4007_v51 }
 0x218   : > { %v2005_v33 = vpop.f32.mrf.mxu2  ;;  %v1622_v44 = vpop.f32.mrf.mxu0 }
 0x219   : > { %v2327_v26 = vld [vmem:[#allocation2 + $0x98] ss:$2 sm:$0x3]  ;;  %v2329_v0 = vld [vmem:[#allocation2 + $0x99] ss:$2 sm:$0x3]  ;;  %v1620_v27 = vadd.f32 %v1619_v39, %v1531_v57 }
 0x21a   : > { %v1711_v52 = vpop.f32.mrf.mxu1  ;;  %v2331_v2 = vld [vmem:[#allocation2 + $0x9c] ss:$2 sm:$0x3]  ;;  %v2333_v36 = vld [vmem:[#allocation2 + $0x9d] ss:$2 sm:$0x3]  ;;  %v2334_v30 = vmax.f32 %v2327_v26, %v2329_v0 }
 0x21b   : > { %v2335_v10 = vmax.f32 %v2331_v2, %v2333_v36  ;;  %2086 = vst.msk [vmem:[#allocation2 + $0xa0] sm:$0xff] %vm2065_vm3, %v2053_v32  ;;  %v1709_v53 = vadd.f32 %v1708_v60, %v1620_v27 }
 0x21d   : > { %v2336_v21 = vmax.f32 %v2334_v30, %v2335_v10  ;;  %v1757_v55 = vmax.f32 %v1709_v53, 0.0 }
 0x21e   : > { %v1533_v43 = vpop.f32.mrf.mxu3 }
 0x21f   : > { %2337 = vst.msk [vmem:[%s4049_s6 + $0x26] sm:$0x3] %vm2108_vm4, %v2336_v21  ;;  %v2054_v51 = vadd.f32 %v2005_v33, %v1757_v55  ;;  %v1534_v24 = vadd.f32 %v1533_v43, %v4015_v16 }
 0x220   : > { %v2008_v46 = vpop.f32.mrf.mxu2  ;;  %v1624_v47 = vpop.f32.mrf.mxu0 }
 0x221   : > { %2087 = vst.msk [vmem:[#allocation2 + $0xa8] sm:$0xff] %vm2065_vm3, %v2054_v51  ;;  %v1623_v48 = vadd.f32 %v1622_v44, %v1534_v24 }
 0x222   : > { %v1713_v50 = vpop.f32.mrf.mxu1  ;;  %v2339_v11 = vld [vmem:[#allocation2 + $0xa0] ss:$2 sm:$0x3]  ;;  %v2341_v20 = vld [vmem:[#allocation2 + $0xa1] ss:$2 sm:$0x3] }
 0x223   : > { %v2343_v54 = vld [vmem:[#allocation2 + $0xa4] ss:$2 sm:$0x3]  ;;  %v2345_v29 = vld [vmem:[#allocation2 + $0xa5] ss:$2 sm:$0x3]  ;;  %v2346_v59 = vmax.f32 %v2339_v11, %v2341_v20  ;;  %v1712_v61 = vadd.f32 %v1711_v52, %v1623_v48 }
 0x224   : > { %v2347_v49 = vmax.f32 %v2343_v54, %v2345_v29 }
 0x225   : > { %v1758_v63 = vmax.f32 %v1712_v61, 0.0 }
 0x226   : > { %v2348_v62 = vmax.f32 %v2346_v59, %v2347_v49  ;;  %v1535_v8 = vpop.f32.mrf.mxu3 }
 0x227   : > { %v2055_v6 = vadd.f32 %v2008_v46, %v1758_v63  ;;  %v1536_v16 = vadd.f32 %v1535_v8, %v4026_v5 }
 0x228   : > { %v2010_v1 = vpop.f32.mrf.mxu2  ;;  %2349 = vst.msk [vmem:[%s4049_s6 + $0x28] sm:$0x3] %vm2108_vm4, %v2348_v62  ;;  %v2351_v58 = vld [vmem:[#allocation2 + $0xa8] ss:$2 sm:$0x3]  ;;  %v1627_v23 = vpop.f32.mrf.mxu0 }
 0x229   : > { %v2353_v12 = vld [vmem:[#allocation2 + $0xa9] ss:$2 sm:$0x3]  ;;  %2088 = vst.msk [vmem:[#allocation2 + $0xb0] sm:$0xff] %vm2065_vm3, %v2055_v6  ;;  %v1625_v42 = vadd.f32 %v1624_v47, %v1536_v16 }
 0x22a   : > { %v1716_v41 = vpop.f32.mrf.mxu1  ;;  %v2355_v45 = vld [vmem:[#allocation2 + $0xac] ss:$2 sm:$0x3]  ;;  %v2357_v14 = vld [vmem:[#allocation2 + $0xad] ss:$2 sm:$0x3]  ;;  %v2358_v35 = vmax.f32 %v2351_v58, %v2353_v12 }
 0x22b   : > { %v2359_v18 = vmax.f32 %v2355_v45, %v2357_v14  ;;  %v1714_v39 = vadd.f32 %v1713_v50, %v1625_v42 }
 0x22d   : > { %v2360_v9 = vmax.f32 %v2358_v35, %v2359_v18  ;;  %v1759_v13 = vmax.f32 %v1714_v39, 0.0 }
 0x22e   : > { %v1538_v40 = vpop.f32.mrf.mxu3 }
 0x22f   : > { %2361 = vst.msk [vmem:[%s4049_s6 + $0x2a] sm:$0x3] %vm2108_vm4, %v2360_v9  ;;  %v2056_v5 = vadd.f32 %v2010_v1, %v1759_v13  ;;  %v1539_v17 = vadd.f32 %v1538_v40, %v3956_v37 }
 0x230   : > { %v2013_v60 = vpop.f32.mrf.mxu2  ;;  %v2363_v25 = vld [vmem:[#allocation2 + $0xb0] ss:$2 sm:$0x3]  ;;  %v2365_v7 = vld [vmem:[#allocation2 + $0xb1] ss:$2 sm:$0x3]  ;;  %v1629_v15 = vpop.f32.mrf.mxu0 }
 0x231   : > { %v2367_v28 = vld [vmem:[#allocation2 + $0xb4] ss:$2 sm:$0x3]  ;;  %v2369_v31 = vld [vmem:[#allocation2 + $0xb5] ss:$2 sm:$0x3]  ;;  %v2370_v32 = vmax.f32 %v2363_v25, %v2365_v7  ;;  %v1628_v57 = vadd.f32 %v1627_v23, %v1539_v17 }
 0x232   : > { %v1718_v33 = vpop.f32.mrf.mxu1  ;;  %v2371_v44 = vmax.f32 %v2367_v28, %v2369_v31  ;;  %2089 = vst.msk [vmem:[#allocation2 + $0xb8] sm:$0xff] %vm2065_vm3, %v2056_v5 }
 0x233   : > { %v1717_v26 = vadd.f32 %v1716_v41, %v1628_v57 }
 0x234   : > { %v2372_v0 = vmax.f32 %v2370_v32, %v2371_v44 }
 0x235   : > { %v1760_v27 = vmax.f32 %v1717_v26, 0.0 }
 0x236   : > { %2373 = vst.msk [vmem:[%s4049_s6 + $0x2c] sm:$0x3] %vm2108_vm4, %v2372_v0  ;;  %v1540_v52 = vpop.f32.mrf.mxu3 }
 0x237   : > { %v2057_v2 = vadd.f32 %v2013_v60, %v1760_v27  ;;  %v1541_v37 = vadd.f32 %v1540_v52, %v3967_v38 }
 0x238   : > { %v2015_v36 = vpop.f32.mrf.mxu2  ;;  %v1632_v30 = vpop.f32.mrf.mxu0 }
 0x239   : > { %v2375_v10 = vld [vmem:[#allocation2 + $0xb8] ss:$2 sm:$0x3]  ;;  %v2377_v53 = vld [vmem:[#allocation2 + $0xb9] ss:$2 sm:$0x3]  ;;  %v1630_v21 = vadd.f32 %v1629_v15, %v1541_v37 }
 0x23a   : > { %v1721_v55 = vpop.f32.mrf.mxu1  ;;  %v2379_v43 = vld [vmem:[#allocation2 + $0xbc] ss:$2 sm:$0x3]  ;;  %v2381_v51 = vld [vmem:[#allocation2 + $0xbd] ss:$2 sm:$0x3]  ;;  %v2382_v24 = vmax.f32 %v2375_v10, %v2377_v53 }
 0x23b   : > { %v2383_v46 = vmax.f32 %v2379_v43, %v2381_v51  ;;  %2090 = vst.msk [vmem:[#allocation2 + $0xc0] sm:$0xff] %vm2065_vm3, %v2057_v2  ;;  %v1719_v47 = vadd.f32 %v1718_v33, %v1630_v21 }
 0x23d   : > { %v2384_v48 = vmax.f32 %v2382_v24, %v2383_v46  ;;  %v1761_v50 = vmax.f32 %v1719_v47, 0.0 }
 0x23e   : > { %v1543_v11 = vpop.f32.mrf.mxu3 }
 0x23f   : > { %2385 = vst.msk [vmem:[%s4049_s6 + $0x2e] sm:$0x3] %vm2108_vm4, %v2384_v48  ;;  %v2058_v38 = vadd.f32 %v2015_v36, %v1761_v50  ;;  %v1544_v20 = vadd.f32 %v1543_v11, %v3975_v19 }
 0x240   : > { %v2018_v54 = vpop.f32.mrf.mxu2  ;;  %v1634_v29 = vpop.f32.mrf.mxu0 }
 0x241   : > { %2091 = vst.msk [vmem:[#allocation2 + $0xc8] sm:$0xff] %vm2065_vm3, %v2058_v38  ;;  %v1633_v59 = vadd.f32 %v1632_v30, %v1544_v20 }
 0x242   : > { %v2387_v61 = vld [vmem:[#allocation2 + $0xc0] ss:$2 sm:$0x3]  ;;  %v2389_v49 = vld [vmem:[#allocation2 + $0xc1] ss:$2 sm:$0x3]  ;;  %v1723_v63 = vpop.f32.mrf.mxu1 }
 0x243   : > { %v2391_v62 = vld [vmem:[#allocation2 + $0xc4] ss:$2 sm:$0x3]  ;;  %v2393_v8 = vld [vmem:[#allocation2 + $0xc5] ss:$2 sm:$0x3]  ;;  %v2394_v6 = vmax.f32 %v2387_v61, %v2389_v49  ;;  %v1722_v16 = vadd.f32 %v1721_v55, %v1633_v59 }
 0x244   : > { %v2395_v1 = vmax.f32 %v2391_v62, %v2393_v8 }
 0x245   : > { %v1762_v58 = vmax.f32 %v1722_v16, 0.0 }
 0x246   : > { %v2396_v23 = vmax.f32 %v2394_v6, %v2395_v1  ;;  %v1545_v12 = vpop.f32.mrf.mxu3 }
 0x247   : > { %v2059_v42 = vadd.f32 %v2018_v54, %v1762_v58  ;;  %v1546_v19 = vadd.f32 %v1545_v12, %v3986_v3 }
 0x248   : > { %v2020_v41 = vpop.f32.mrf.mxu2  ;;  %2397 = vst.msk [vmem:[%s4049_s6 + $0x30] sm:$0x3] %vm2108_vm4, %v2396_v23  ;;  %v2399_v45 = vld [vmem:[#allocation2 + $0xc8] ss:$2 sm:$0x3]  ;;  %v1637_v13 = vpop.f32.mrf.mxu0 }
 0x249   : > { %v2401_v14 = vld [vmem:[#allocation2 + $0xc9] ss:$2 sm:$0x3]  ;;  %2092 = vst.msk [vmem:[#allocation2 + $0xd0] sm:$0xff] %vm2065_vm3, %v2059_v42  ;;  %v1635_v35 = vadd.f32 %v1634_v29, %v1546_v19 }
 0x24a   : > { %v2403_v18 = vld [vmem:[#allocation2 + $0xcc] ss:$2 sm:$0x3]  ;;  %v2405_v39 = vld [vmem:[#allocation2 + $0xcd] ss:$2 sm:$0x3]  ;;  %v2406_v9 = vmax.f32 %v2399_v45, %v2401_v14  ;;  %v1726_v17 = vpop.f32.mrf.mxu1 }
 0x24b   : > { %v2407_v40 = vmax.f32 %v2403_v18, %v2405_v39  ;;  %v1724_v5 = vadd.f32 %v1723_v63, %v1635_v35 }
 0x24d   : > { %v2408_v60 = vmax.f32 %v2406_v9, %v2407_v40  ;;  %v1763_v25 = vmax.f32 %v1724_v5, 0.0 }
 0x24e   : > { %v1548_v7 = vpop.f32.mrf.mxu3 }
 0x24f   : > { %2409 = vst.msk [vmem:[%s4049_s6 + $0x32] sm:$0x3] %vm2108_vm4, %v2408_v60  ;;  %v2060_v3 = vadd.f32 %v2020_v41, %v1763_v25  ;;  %v1549_v15 = vadd.f32 %v1548_v7, %v3994_v56 }
 0x250   : > { %v2411_v28 = vld [vmem:[#allocation2 + $0xd0] ss:$2 sm:$0x3]  ;;  %v2413_v31 = vld [vmem:[#allocation2 + $0xd1] ss:$2 sm:$0x3]  ;;  %v2023_v32 = vpop.f32.mrf.mxu2  ;;  %v1639_v2 = vpop.f32.mrf.mxu0 }
 0x251   : > { %v2415_v57 = vld [vmem:[#allocation2 + $0xd4] ss:$2 sm:$0x3]  ;;  %v2417_v33 = vld [vmem:[#allocation2 + $0xd5] ss:$2 sm:$0x3]  ;;  %v2418_v44 = vmax.f32 %v2411_v28, %v2413_v31  ;;  %v1638_v26 = vadd.f32 %v1637_v13, %v1549_v15 }
 0x252   : > { %v2419_v0 = vmax.f32 %v2415_v57, %v2417_v33  ;;  %2093 = vst.msk [vmem:[#allocation2 + $0xd8] sm:$0xff] %vm2065_vm3, %v2060_v3  ;;  %v1728_v36 = vpop.f32.mrf.mxu1  ;;  %v2482_v33 = vld [vmem:[%s4049_s6] sm:$0xff] }
 0x253   : > { %v1727_v27 = vadd.f32 %v1726_v17, %v1638_v26 }
 0x254   : > { %v2420_v52 = vmax.f32 %v2418_v44, %v2419_v0  ;;  %v2484_v44 = vld [vmem:[%s4049_s6 + $0x10] sm:$0xff]  ;;  %v2490_v0 = vsel %vm2065_vm3, %v2482_v33, 0.0 }
 0x255   : > { %v1764_v37 = vmax.f32 %v1727_v27, 0.0  ;;  %v2511_v27 = vmul.f32 %v2482_v33, %v2482_v33 }
 0x256   : > { %2421 = vst.msk [vmem:[%s4049_s6 + $0x34] sm:$0x3] %vm2108_vm4, %v2420_v52  ;;  %v1550_v30 = vpop.f32.mrf.mxu3 }
 0x257   : > { %v2061_v10 = vadd.f32 %v2023_v32, %v1764_v37  ;;  %v1551_v56 = vadd.f32 %v1550_v30, %v4005_v22  ;;  %v2483_v32 = vld [vmem:[%s4049_s6 + $0x8] sm:$0xff]  ;;  %v2486_v37 = vld [vmem:[%s4049_s6 + $0x20] sm:$0xff] }
 0x258   : > { %v2025_v46 = vpop.f32.mrf.mxu2  ;;  %v1642_v38 = vpop.f32.mrf.mxu0  ;;  %v2512_v26 = vmul.f32 %v2483_v32, %v2483_v32  ;;  %v2491_v52 = vsel %vm2065_vm3, %v2483_v32, 0.0 }
 0x259   : > { %v2423_v53 = vld [vmem:[#allocation2 + $0xd8] ss:$2 sm:$0x3]  ;;  %v2425_v21 = vld [vmem:[#allocation2 + $0xd9] ss:$2 sm:$0x3]  ;;  %v1640_v55 = vadd.f32 %v1639_v2, %v1551_v56 }
 0x25a   : > { %v2427_v43 = vld [vmem:[#allocation2 + $0xdc] ss:$2 sm:$0x3]  ;;  %v2429_v51 = vld [vmem:[#allocation2 + $0xdd] ss:$2 sm:$0x3]  ;;  %v2430_v24 = vmax.f32 %v2423_v53, %v2425_v21  ;;  %v1731_v29 = vpop.f32.mrf.mxu1 }
 0x25b   : > { %v2431_v47 = vmax.f32 %v2427_v43, %v2429_v51  ;;  %2094 = vst.msk [vmem:[#allocation2 + $0xe0] sm:$0xff] %vm2065_vm3, %v2061_v10  ;;  %v1729_v48 = vadd.f32 %v1728_v36, %v1640_v55  ;;  %v2485_v2 = vld [vmem:[%s4049_s6 + $0x18] sm:$0xff]  ;;  %v2513_v36 = vmul.f32 %v2484_v44, %v2484_v44  ;;  %v2520_v55 = vsel %vm2065_vm3, %v2512_v26, 0.0 }
 0x25c   : > { %v2493_v43 = vsel %vm2065_vm3, %v2484_v44, 0.0  ;;  %v2514_v51 = vmul.f32 %v2485_v2, %v2485_v2 }
 0x25d   : > { %v2432_v50 = vmax.f32 %v2430_v24, %v2431_v47  ;;  %v1765_v11 = vmax.f32 %v1729_v48, 0.0  ;;  %v2492_v47 = vadd.f32 %v2491_v52, %v2490_v0  ;;  %v2487_v48 = vld [vmem:[%s4049_s6 + $0x28] sm:$0xff] }
 0x25e   : > { %v1553_v20 = vpop.f32.mrf.mxu3 }
 0x25f   : > { %2433 = vst.msk [vmem:[%s4049_s6 + $0x36] sm:$0x3] %vm2108_vm4, %v2432_v50  ;;  %v2062_v54 = vadd.f32 %v2025_v46, %v1765_v11  ;;  %v1554_v22 = vadd.f32 %v1553_v20, %v4013_v34  ;;  %v2519_v46 = vsel %vm2065_vm3, %v2511_v27, 0.0  ;;  %v2522_v50 = vsel %vm2065_vm3, %v2513_v36, 0.0 }
 0x260   : > { %v2028_v1 = vpop.f32.mrf.mxu2  ;;  %v1644_v41 = vpop.f32.mrf.mxu0  ;;  %v2495_v11 = vsel %vm2065_vm3, %v2485_v2, 0.0 }
 0x261   : > { %2095 = vst.msk [vmem:[#allocation2 + $0xe8] sm:$0xff] %vm2065_vm3, %v2062_v54  ;;  %v1643_v59 = vadd.f32 %v1642_v38, %v1554_v22  ;;  %v2515_v38 = vmul.f32 %v2486_v37, %v2486_v37  ;;  %v2521_v54 = vadd.f32 %v2520_v55, %v2519_v46  ;;  %v2494_v22 = vadd.f32 %v2493_v43, %v2492_v47 }
 0x262   : > { %v2435_v61 = vld [vmem:[#allocation2 + $0xe0] ss:$2 sm:$0x3]  ;;  %v2437_v49 = vld [vmem:[#allocation2 + $0xe1] ss:$2 sm:$0x3]  ;;  %v1733_v9 = vpop.f32.mrf.mxu1 }
 0x263   : > { %v2439_v63 = vld [vmem:[#allocation2 + $0xe4] ss:$2 sm:$0x3]  ;;  %v2441_v62 = vld [vmem:[#allocation2 + $0xe5] ss:$2 sm:$0x3]  ;;  %v2442_v8 = vmax.f32 %v2435_v61, %v2437_v49  ;;  %v1732_v6 = vadd.f32 %v1731_v29, %v1643_v59  ;;  %v2516_v49 = vmul.f32 %v2487_v48, %v2487_v48 }
 0x264   : > { %v2443_v16 = vmax.f32 %v2439_v63, %v2441_v62  ;;  %v2524_v59 = vsel %vm2065_vm3, %v2514_v51, 0.0  ;;  %v2497_v61 = vsel %vm2065_vm3, %v2486_v37, 0.0  ;;  %v2523_v63 = vadd.f32 %v2522_v50, %v2521_v54 }
 0x265   : > { %v1766_v58 = vmax.f32 %v1732_v6, 0.0  ;;  %v2496_v62 = vadd.f32 %v2495_v11, %v2494_v22  ;;  %v2499_v6 = vsel %vm2065_vm3, %v2487_v48, 0.0 }
 0x266   : > { %v2444_v23 = vmax.f32 %v2442_v8, %v2443_v16  ;;  %v1555_v12 = vpop.f32.mrf.mxu3  ;;  %v2488_v29 = vld [vmem:[%s4049_s6 + $0x30] sm:$0xff]  ;;  %v2526_v8 = vsel %vm2065_vm3, %v2515_v38, 0.0 }
 0x267   : > { %v2063_v42 = vadd.f32 %v2028_v1, %v1766_v58  ;;  %v1556_v19 = vadd.f32 %v1555_v12, %v4024_v4  ;;  %v2517_v16 = vmul.f32 %v2488_v29, %v2488_v29  ;;  %v2525_v1 = vadd.f32 %v2524_v59, %v2523_v63 }
 0x268   : > { %2445 = vst.msk [vmem:[%s4049_s6 + $0x38] sm:$0x3] %vm2108_vm4, %v2444_v23  ;;  %v2447_v34 = vld [vmem:[#allocation2 + $0xe8] ss:$2 sm:$0x3]  ;;  %v2030_v17 = vpop.f32.mrf.mxu2  ;;  %v2498_v58 = vadd.f32 %v2497_v61, %v2496_v62  ;;  %v2528_v23 = vsel %vm2065_vm3, %v2516_v49, 0.0 }
 0x269   : > { %v2449_v45 = vld [vmem:[#allocation2 + $0xe9] ss:$2 sm:$0x3]  ;;  %2096 = vst.msk [vmem:[#allocation2 + $0xf0] sm:$0xff] %vm2065_vm3, %v2063_v42  ;;  %v1645_v14 = vadd.f32 %v1644_v41, %v1556_v19  ;;  %v2501_v12 = vsel %vm2065_vm3, %v2488_v29, 0.0  ;;  %v2527_v42 = vadd.f32 %v2526_v8, %v2525_v1 }
 0x26a   : > { %v2451_v35 = vld [vmem:[#allocation2 + $0xec] ss:$2 sm:$0x3]  ;;  %v2453_v18 = vld [vmem:[#allocation2 + $0xed] ss:$2 sm:$0x3]  ;;  %v2454_v39 = vmax.f32 %v2447_v34, %v2449_v45  ;;  %v2500_v19 = vadd.f32 %v2499_v6, %v2498_v58 }
 0x26b   : > { %v2455_v13 = vmax.f32 %v2451_v35, %v2453_v18  ;;  %v1734_v40 = vadd.f32 %v1733_v9, %v1645_v14  ;;  %v2530_v34 = vsel %vm2065_vm3, %v2517_v16, 0.0  ;;  %v2529_v41 = vadd.f32 %v2528_v23, %v2527_v42 }
 0x26c   : > { %v2502_v45 = vadd.f32 %v2501_v12, %v2500_v19 }
 0x26d   : > { %v2456_v5 = vmax.f32 %v2454_v39, %v2455_v13  ;;  %v1767_v4 = vmax.f32 %v1734_v40, 0.0  ;;  %v2531_v39 = vadd.f32 %v2530_v34, %v2529_v41 }
 0x26f   : > { %2457 = vst.msk [vmem:[%s4049_s6 + $0x3a] sm:$0x3] %vm2108_vm4, %v2456_v5  ;;  %v2064_v60 = vadd.f32 %v2030_v17, %v1767_v4 }
 0x270   : > { %v2459_v25 = vld [vmem:[#allocation2 + $0xf0] ss:$2 sm:$0x3]  ;;  %v2461_v7 = vld [vmem:[#allocation2 + $0xf1] ss:$2 sm:$0x3] }
 0x271   : > { %v2463_v3 = vld [vmem:[#allocation2 + $0xf4] ss:$2 sm:$0x3]  ;;  %v2465_v15 = vld [vmem:[#allocation2 + $0xf5] ss:$2 sm:$0x3]  ;;  %v2466_v28 = vmax.f32 %v2459_v25, %v2461_v7 }
 0x272   : > { %v2467_v31 = vmax.f32 %v2463_v3, %v2465_v15  ;;  %2097 = vst.msk [vmem:[#allocation2 + $0xf8] sm:$0xff] %vm2065_vm3, %v2064_v60 }
 0x274   : > { %v2468_v57 = vmax.f32 %v2466_v28, %v2467_v31 }
 0x276   : > { %2469 = vst.msk [vmem:[%s4049_s6 + $0x3c] sm:$0x3] %vm2108_vm4, %v2468_v57 }
 0x279   : > { %v2471_v30 = vld [vmem:[#allocation2 + $0xf8] ss:$2 sm:$0x3]  ;;  %v2473_v10 = vld [vmem:[#allocation2 + $0xf9] ss:$2 sm:$0x3] }
 0x27a   : > { %v2475_v56 = vld [vmem:[#allocation2 + $0xfc] ss:$2 sm:$0x3]  ;;  %v2477_v53 = vld [vmem:[#allocation2 + $0xfd] ss:$2 sm:$0x3]  ;;  %v2478_v21 = vmax.f32 %v2471_v30, %v2473_v10 }
 0x27b   : > { %v2479_v24 = vmax.f32 %v2475_v56, %v2477_v53 }
 0x27d   : > { %v2480_v20 = vmax.f32 %v2478_v21, %v2479_v24 }
 0x27f   : > { %2481 = vst.msk [vmem:[%s4049_s6 + $0x3e] sm:$0x3] %vm2108_vm4, %v2480_v20 }
 0x286   : > { %v2489_v14 = vld [vmem:[%s4049_s6 + $0x38] sm:$0xff] }
 0x287   : > { %v2503_v35 = vsel %vm2065_vm3, %v2489_v14, 0.0  ;;  %v2518_v18 = vmul.f32 %v2489_v14, %v2489_v14 }
 0x288   : > { %v2504_v9 = vadd.f32 %v2503_v35, %v2502_v45 }
 0x289   : > { %v2532_v13 = vsel %vm2065_vm3, %v2518_v18, 0.0 }
 0x28a   : > { %v2505_v40 = vrot.slane %v2504_v9, 4  ;;  %v2533_v5 = vadd.f32 %v2532_v13, %v2531_v39 }
 0x28c   : > { %v2506_v4 = vadd.f32 %v2505_v40, %v2504_v9  ;;  %v2534_v17 = vrot.slane %v2533_v5, 4 }
 0x28e   : > { %v2507_v60 = vrot.slane %v2506_v4, 2  ;;  %v2535_v25 = vadd.f32 %v2534_v17, %v2533_v5 }
 0x290   : > { %v2508_v7 = vadd.f32 %v2507_v60, %v2506_v4  ;;  %v2536_v3 = vrot.slane %v2535_v25, 2 }
 0x292   : > { %v2509_v15 = vrot.slane %v2508_v7, 1  ;;  %v2537_v28 = vadd.f32 %v2536_v3, %v2535_v25 }
 0x294   : > { %v2510_v31 = vadd.f32 %v2509_v15, %v2508_v7  ;;  %v2538_v32 = vrot.slane %v2537_v28, 1 }
 0x296   : > { %v2539_v57 = vadd.f32 %v2538_v32, %v2537_v28  ;;  %2541 = vst.msk [vmem:[%s263_s9] sm:$0x1] %vm2540_vm5, %v2510_v31 }
 0x298   : > { %2542 = vst.msk [vmem:[%s263_s9 + $0x1] sm:$0x1] %vm2540_vm5, %v2539_v57 }
 0x299 PF: > { %s16_s18 = sadd.s32 1, %s3492_s18  }
 0x29a   : > { %p13_p6 = scmp.ge.s32.totalorder %s16_s18, 4  }
 0x29c   :  { %15 = sbr.rel (!%p13_p6) target bundleno = 1 (0x1), region = 208 }

</bundles_post_ra>
